<compile_context>
chip_gen: v5e
topology: v5e:2x2
jax: 0.10.0
libtpu: 0.0.40
codegen_flags: <defaults>
</compile_context>

<pallas_src>
import jax
import jax.numpy as jnp
from jax.experimental import pallas as pl
from jax.experimental.pallas import tpu as pltpu

EMBED_DIM = 768
HIDDEN = 256
PROMPT_LEN = 5
NUM_TASKS = 10


def prompt_ge_kernel(x_ref, task_ref, w1_ref, b1_ref, w2_ref, b2_ref, out_ref):
    # x_ref:    (block_b, L, D)         current batch tile
    # task_ref: (1, D)                  table[task_id], looked up on the host
    # w1_ref:   (D, HIDDEN)    b1_ref:  (1, HIDDEN)
    # w2_ref:   (HIDDEN, 5*D)  b2_ref:  (1, 5*D)
    # out_ref:  (block_b, 5 + L, D)
    bt, L, D = x_ref.shape

    x = x_ref[...]                                           # (bt, L, D)
    xf = x.astype(jnp.float32)

    # mean over the L tokens plus the appended task-embedding token
    mean = (jnp.sum(xf, axis=1) + task_ref[...].astype(jnp.float32)) / jnp.float32(L + 1)
    # (bt, D)

    a = jnp.dot(mean, w1_ref[...], preferred_element_type=jnp.float32) + b1_ref[...]
    h = jnp.maximum(a, 0.0)                                  # (bt, HIDDEN)  ReLU
    p = jnp.dot(h, w2_ref[...], preferred_element_type=jnp.float32) + b2_ref[...]
    # (bt, PROMPT_LEN * D)

    # single grouped store of the 5 generated prompt tokens
    out_ref[:, pl.ds(0, PROMPT_LEN), :] = (
        p.reshape(bt, PROMPT_LEN, D).astype(out_ref.dtype))
    # bulk copy of the original embeddings after the prompt
    out_ref[:, pl.ds(PROMPT_LEN, L), :] = x.astype(out_ref.dtype)


def _pick_block_b(B):
    # Small batches: one step, no padding.  Large batches: big batch tile (MXU fill,
    # fewer grid steps) but keep >= 2 steps so v7x's two TensorCores both get work.
    if B <= 8:
        return B
    return min(256, -(-B // 2))


def _make_weight_spec(shape, single_buffered):
    index_map = lambda b: (0,) * len(shape)
    if single_buffered:
        # Constant block index across the grid -> one resident VMEM buffer is enough;
        # avoids double-buffering the ~4 MB w2 block.
        return pl.BlockSpec(shape, index_map, pipeline_mode=pl.Buffered(1))
    return pl.BlockSpec(shape, index_map)


def _build_call(B_pad, L, D, bt, out_dtype, single_buffered, vmem_limit, cost):
    in_specs = [
        pl.BlockSpec((bt, L, D), lambda b: (b, 0, 0)),               # x tile
        _make_weight_spec((1, D), single_buffered),                   # task row
        _make_weight_spec((D, HIDDEN), single_buffered),              # w1
        _make_weight_spec((1, HIDDEN), single_buffered),              # b1
        _make_weight_spec((HIDDEN, PROMPT_LEN * D), single_buffered), # w2
        _make_weight_spec((1, PROMPT_LEN * D), single_buffered),      # b2
    ]
    out_specs = pl.BlockSpec((bt, PROMPT_LEN + L, D), lambda b: (b, 0, 0))
    return pl.pallas_call(
        prompt_ge_kernel,
        out_shape=jax.ShapeDtypeStruct((B_pad, PROMPT_LEN + L, D), out_dtype),
        grid=(B_pad // bt,),
        in_specs=in_specs,
        out_specs=out_specs,
        compiler_params=pltpu.CompilerParams(
            dimension_semantics=("parallel",),
            vmem_limit_bytes=int(vmem_limit),
        ),
        cost_estimate=cost,
    )


def prompt_ge_forward(x_embed, task_id, params, block_b=None):
    table, w1, b1, w2, b2 = params
    B, L, D = x_embed.shape
    assert D == EMBED_DIM

    bt = block_b if block_b is not None else _pick_block_b(B)
    bt = max(1, min(bt, max(B, 1)))
    B_pad = -(-B // bt) * bt
    x_in = x_embed if B_pad == B else jnp.pad(x_embed, ((0, B_pad - B), (0, 0), (0, 0)))

    # Host-side embedding lookup: task_id is one scalar for the whole call.
    task_row = jnp.take(table, jnp.asarray(task_id, dtype=jnp.int32), axis=0)[None, :]

    itemsize = jnp.dtype(x_embed.dtype).itemsize
    w_bytes = sum(int(a.size) * jnp.dtype(a.dtype).itemsize
                  for a in (task_row, w1, b1, w2, b2))
    blk_bytes = bt * (2 * L + PROMPT_LEN) * D * itemsize     # x block + out block
    # x/out double-buffered + weights (assume worst case double-buffered) + headroom.
    needed = 2 * blk_bytes + 2 * w_bytes + (4 << 20)
    vmem_limit = min(max(needed, 32 << 20), 64 << 20)

    cost = pl.CostEstimate(
        flops=2 * B_pad * (D * HIDDEN + HIDDEN * PROMPT_LEN * D),
        transcendentals=0,
        bytes_accessed=int(B_pad * (2 * L + PROMPT_LEN) * D * itemsize + w_bytes),
    )

    args = (x_in, task_row, w1, b1, w2, b2)
    try:
        prompted = _build_call(B_pad, L, D, bt, x_embed.dtype,
                               True, vmem_limit, cost)(*args)
    except Exception:
        # pipeline_mode=pl.Buffered not supported in this jax version: fall back to
        # default (double-buffered) weight blocks.
        prompted = _build_call(B_pad, L, D, bt, x_embed.dtype,
                               False, vmem_limit, cost)(*args)

    if B_pad != B:
        prompted = prompted[:B]
    return {"total_prompt_len": PROMPT_LEN, "prompted_embedding": prompted}


def init_params(key):
    k1, k2, k3, k4, k5 = jax.random.split(key, 5)
    table = jax.random.normal(k1, (NUM_TASKS, EMBED_DIM), jnp.float32) * 0.02
    w1 = jax.random.normal(k2, (EMBED_DIM, HIDDEN), jnp.float32) * 0.02
    b1 = jax.random.normal(k3, (1, HIDDEN), jnp.float32) * 0.02
    w2 = jax.random.normal(k4, (HIDDEN, PROMPT_LEN * EMBED_DIM), jnp.float32) * 0.02
    b2 = jax.random.normal(k5, (1, PROMPT_LEN * EMBED_DIM), jnp.float32) * 0.02
    return table, w1, b1, w2, b2


def reference_forward(x_embed, task_id, params):
    table, w1, b1, w2, b2 = params
    B, L, D = x_embed.shape
    n = jnp.broadcast_to(table[task_id][None, None, :], (B, 1, D))
    x_task = jnp.concatenate([x_embed, n], axis=1)
    mean = jnp.mean(x_task, axis=1, keepdims=True)           # (B, 1, D)
    a = mean @ w1 + b1[None]                                  # (B, 1, HIDDEN)
    h = jnp.maximum(a, 0.0)
    p = h @ w2 + b2[None]                                     # (B, 1, 5*D)
    prompt = p.reshape(B, PROMPT_LEN, D)
    return jnp.concatenate([prompt, x_embed], axis=1)


if __name__ == "__main__":
    key = jax.random.PRNGKey(0)
    kp, kx = jax.random.split(key)
    params = init_params(kp)

    B, L = 2, 8
    x_embed = jax.random.normal(kx, (B, L, EMBED_DIM), jnp.float32)
    task_id = 3

    out = prompt_ge_forward(x_embed, task_id, params)
    prompted = jax.block_until_ready(out["prompted_embedding"])

    ref = reference_forward(x_embed, task_id, params)
    assert prompted.shape == (B, PROMPT_LEN + L, EMBED_DIM)
    assert out["total_prompt_len"] == PROMPT_LEN
    assert jnp.allclose(prompted, ref, atol=1e-4, rtol=1e-4)

    print("KERNEL_OK")
</pallas_src>

<mosaic_0001>
module attributes {stable_mosaic.version = 11 : i64} {
  func.func @prompt_ge_kernel(%arg0: i32, %arg1: memref<2x8x768xf32, #tpu.memory_space<vmem>>, %arg2: memref<1x768xf32, #tpu.memory_space<vmem>>, %arg3: memref<768x256xf32, #tpu.memory_space<vmem>>, %arg4: memref<1x256xf32, #tpu.memory_space<vmem>>, %arg5: memref<256x3840xf32, #tpu.memory_space<vmem>>, %arg6: memref<1x3840xf32, #tpu.memory_space<vmem>>, %arg7: memref<2x13x768xf32, #tpu.memory_space<vmem>>) attributes {dimension_semantics = [#tpu.dimension_semantics<parallel>], iteration_bounds = array<i64: 1>, scalar_prefetch = 0 : i64, scratch_operands = 0 : i64, tpu.core_type = #tpu.core_type<tc>, window_params = [{transform_indices = @transform_0, window_bounds = array<i64: 2, 8, 768>}, {pipeline_mode = #tpu.pipeline_mode<synchronous>, transform_indices = @transform_1, window_bounds = array<i64: 1, 768>}, {pipeline_mode = #tpu.pipeline_mode<synchronous>, transform_indices = @transform_2, window_bounds = array<i64: 768, 256>}, {pipeline_mode = #tpu.pipeline_mode<synchronous>, transform_indices = @transform_3, window_bounds = array<i64: 1, 256>}, {pipeline_mode = #tpu.pipeline_mode<synchronous>, transform_indices = @transform_4, window_bounds = array<i64: 256, 3840>}, {pipeline_mode = #tpu.pipeline_mode<synchronous>, transform_indices = @transform_5, window_bounds = array<i64: 1, 3840>}, {transform_indices = @transform_6, window_bounds = array<i64: 2, 13, 768>}]} {
    %c0 = arith.constant 0 : index
    %c0_0 = arith.constant 0 : index
    %c0_1 = arith.constant 0 : index
    %0 = vector.load %arg1[%c0, %c0_0, %c0_1] : memref<2x8x768xf32, #tpu.memory_space<vmem>>, vector<2x8x768xf32>
    %cst = arith.constant dense<0.000000e+00> : vector<2x768xf32>
    %1 = vector.multi_reduction <add>, %0, %cst [1] : vector<2x8x768xf32> to vector<2x768xf32>
    %c0_2 = arith.constant 0 : index
    %c0_3 = arith.constant 0 : index
    %2 = vector.load %arg2[%c0_2, %c0_3] : memref<1x768xf32, #tpu.memory_space<vmem>>, vector<1x768xf32>
    %3 = vector.broadcast %2 : vector<1x768xf32> to vector<2x768xf32>
    %4 = arith.addf %1, %3 : vector<2x768xf32>
    %cst_4 = arith.constant 9.000000e+00 : f32
    %5 = vector.broadcast %cst_4 : f32 to vector<2x768xf32>
    %6 = arith.divf %4, %5 : vector<2x768xf32>
    %c0_5 = arith.constant 0 : index
    %c0_6 = arith.constant 0 : index
    %7 = vector.load %arg3[%c0_5, %c0_6] : memref<768x256xf32, #tpu.memory_space<vmem>>, vector<768x256xf32>
    %cst_7 = arith.constant dense<0.000000e+00> : vector<2x256xf32>
    %8 = tpu.matmul %6, %7, %cst_7 {dimension_numbers = #tpu.dot_dimension_numbers<[1], [0], [0], [1], [0, 0, 1, 1], [], []>} : vector<2x768xf32>, vector<768x256xf32>, vector<2x256xf32> -> vector<2x256xf32>
    %c0_8 = arith.constant 0 : index
    %c0_9 = arith.constant 0 : index
    %9 = vector.load %arg4[%c0_8, %c0_9] : memref<1x256xf32, #tpu.memory_space<vmem>>, vector<1x256xf32>
    %10 = vector.broadcast %9 : vector<1x256xf32> to vector<2x256xf32>
    %11 = arith.addf %8, %10 : vector<2x256xf32>
    %cst_10 = arith.constant 0.000000e+00 : f32
    %12 = vector.broadcast %cst_10 : f32 to vector<2x256xf32>
    %13 = arith.maximumf %11, %12 : vector<2x256xf32>
    %c0_11 = arith.constant 0 : index
    %c0_12 = arith.constant 0 : index
    %14 = vector.load %arg5[%c0_11, %c0_12] : memref<256x3840xf32, #tpu.memory_space<vmem>>, vector<256x3840xf32>
    %cst_13 = arith.constant dense<0.000000e+00> : vector<2x3840xf32>
    %15 = tpu.matmul %13, %14, %cst_13 {dimension_numbers = #tpu.dot_dimension_numbers<[1], [0], [0], [1], [0, 0, 1, 1], [], []>} : vector<2x256xf32>, vector<256x3840xf32>, vector<2x3840xf32> -> vector<2x3840xf32>
    %c0_14 = arith.constant 0 : index
    %c0_15 = arith.constant 0 : index
    %16 = vector.load %arg6[%c0_14, %c0_15] : memref<1x3840xf32, #tpu.memory_space<vmem>>, vector<1x3840xf32>
    %17 = vector.broadcast %16 : vector<1x3840xf32> to vector<2x3840xf32>
    %18 = arith.addf %15, %17 : vector<2x3840xf32>
    %19 = vector.shape_cast %18 : vector<2x3840xf32> to vector<2x5x768xf32>
    %c0_16 = arith.constant 0 : index
    %c0_17 = arith.constant 0 : index
    %c0_18 = arith.constant 0 : index
    %20 = vector.load %arg7[%c0_16, %c0_17, %c0_18] : memref<2x13x768xf32, #tpu.memory_space<vmem>>, vector<2x5x768xf32>
    tpu.vector_store %arg7[%c0_16, %c0_17, %c0_18], %19 {strides = array<i32>} : memref<2x13x768xf32, #tpu.memory_space<vmem>>, vector<2x5x768xf32>,
    %c0_19 = arith.constant 0 : index
    %c5 = arith.constant 5 : index
    %c0_20 = arith.constant 0 : index
    %21 = vector.load %arg7[%c0_19, %c5, %c0_20] : memref<2x13x768xf32, #tpu.memory_space<vmem>>, vector<2x8x768xf32>
    tpu.vector_store %arg7[%c0_19, %c5, %c0_20], %0 {strides = array<i32>} : memref<2x13x768xf32, #tpu.memory_space<vmem>>, vector<2x8x768xf32>,
    return
  }
  func.func @transform_0(%arg0: i32) -> (i32, i32, i32) {
    %c0_i32 = arith.constant 0 : i32
    %c0_i32_0 = arith.constant 0 : i32
    %c0_i32_1 = arith.constant 0 : i32
    return %arg0, %c0_i32, %c0_i32_0 : i32, i32, i32
  }
  func.func @transform_1(%arg0: i32) -> (i32, i32) {
    %c0_i32 = arith.constant 0 : i32
    %c0_i32_0 = arith.constant 0 : i32
    %c0_i32_1 = arith.constant 0 : i32
    return %c0_i32, %c0_i32_0 : i32, i32
  }
  func.func @transform_2(%arg0: i32) -> (i32, i32) {
    %c0_i32 = arith.constant 0 : i32
    %c0_i32_0 = arith.constant 0 : i32
    %c0_i32_1 = arith.constant 0 : i32
    return %c0_i32, %c0_i32_0 : i32, i32
  }
  func.func @transform_3(%arg0: i32) -> (i32, i32) {
    %c0_i32 = arith.constant 0 : i32
    %c0_i32_0 = arith.constant 0 : i32
    %c0_i32_1 = arith.constant 0 : i32
    return %c0_i32, %c0_i32_0 : i32, i32
  }
  func.func @transform_4(%arg0: i32) -> (i32, i32) {
    %c0_i32 = arith.constant 0 : i32
    %c0_i32_0 = arith.constant 0 : i32
    %c0_i32_1 = arith.constant 0 : i32
    return %c0_i32, %c0_i32_0 : i32, i32
  }
  func.func @transform_5(%arg0: i32) -> (i32, i32) {
    %c0_i32 = arith.constant 0 : i32
    %c0_i32_0 = arith.constant 0 : i32
    %c0_i32_1 = arith.constant 0 : i32
    return %c0_i32, %c0_i32_0 : i32, i32
  }
  func.func @transform_6(%arg0: i32) -> (i32, i32, i32) {
    %c0_i32 = arith.constant 0 : i32
    %c0_i32_0 = arith.constant 0 : i32
    %c0_i32_1 = arith.constant 0 : i32
    return %arg0, %c0_i32, %c0_i32_0 : i32, i32, i32
  }
}

module attributes {stable_mosaic.version = 11 : i64} {
  func.func @prompt_ge_kernel(%arg0: i32, %arg1: memref<2x8x768xf32, #tpu.memory_space<vmem>>, %arg2: memref<1x768xf32, #tpu.memory_space<vmem>>, %arg3: memref<768x256xf32, #tpu.memory_space<vmem>>, %arg4: memref<1x256xf32, #tpu.memory_space<vmem>>, %arg5: memref<256x3840xf32, #tpu.memory_space<vmem>>, %arg6: memref<1x3840xf32, #tpu.memory_space<vmem>>, %arg7: memref<2x13x768xf32, #tpu.memory_space<vmem>>) attributes {dimension_semantics = [#tpu.dimension_semantics<parallel>], iteration_bounds = array<i64: 1>, scalar_prefetch = 0 : i64, scratch_operands = 0 : i64, tpu.core_type = #tpu.core_type<tc>, window_params = [{transform_indices = @transform_0, window_bounds = array<i64: 2, 8, 768>}, {pipeline_mode = #tpu.pipeline_mode<synchronous>, transform_indices = @transform_1, window_bounds = array<i64: 1, 768>}, {pipeline_mode = #tpu.pipeline_mode<synchronous>, transform_indices = @transform_2, window_bounds = array<i64: 768, 256>}, {pipeline_mode = #tpu.pipeline_mode<synchronous>, transform_indices = @transform_3, window_bounds = array<i64: 1, 256>}, {pipeline_mode = #tpu.pipeline_mode<synchronous>, transform_indices = @transform_4, window_bounds = array<i64: 256, 3840>}, {pipeline_mode = #tpu.pipeline_mode<synchronous>, transform_indices = @transform_5, window_bounds = array<i64: 1, 3840>}, {transform_indices = @transform_6, window_bounds = array<i64: 2, 13, 768>}]} {
    %c0 = arith.constant 0 : index
    %c0_0 = arith.constant 0 : index
    %c0_1 = arith.constant 0 : index
    %0 = vector.load %arg1[%c0, %c0_0, %c0_1] : memref<2x8x768xf32, #tpu.memory_space<vmem>>, vector<2x8x768xf32>
    %cst = arith.constant dense<0.000000e+00> : vector<2x768xf32>
    %1 = vector.multi_reduction <add>, %0, %cst [1] : vector<2x8x768xf32> to vector<2x768xf32>
    %c0_2 = arith.constant 0 : index
    %c0_3 = arith.constant 0 : index
    %2 = vector.load %arg2[%c0_2, %c0_3] : memref<1x768xf32, #tpu.memory_space<vmem>>, vector<1x768xf32>
    %3 = vector.broadcast %2 : vector<1x768xf32> to vector<2x768xf32>
    %4 = arith.addf %1, %3 : vector<2x768xf32>
    %cst_4 = arith.constant 9.000000e+00 : f32
    %5 = vector.broadcast %cst_4 : f32 to vector<2x768xf32>
    %6 = arith.divf %4, %5 : vector<2x768xf32>
    %c0_5 = arith.constant 0 : index
    %c0_6 = arith.constant 0 : index
    %7 = vector.load %arg3[%c0_5, %c0_6] : memref<768x256xf32, #tpu.memory_space<vmem>>, vector<768x256xf32>
    %cst_7 = arith.constant dense<0.000000e+00> : vector<2x256xf32>
    %8 = tpu.matmul %6, %7, %cst_7 {dimension_numbers = #tpu.dot_dimension_numbers<[1], [0], [0], [1], [0, 0, 1, 1], [], []>} : vector<2x768xf32>, vector<768x256xf32>, vector<2x256xf32> -> vector<2x256xf32>
    %c0_8 = arith.constant 0 : index
    %c0_9 = arith.constant 0 : index
    %9 = vector.load %arg4[%c0_8, %c0_9] : memref<1x256xf32, #tpu.memory_space<vmem>>, vector<1x256xf32>
    %10 = vector.broadcast %9 : vector<1x256xf32> to vector<2x256xf32>
    %11 = arith.addf %8, %10 : vector<2x256xf32>
    %cst_10 = arith.constant 0.000000e+00 : f32
    %12 = vector.broadcast %cst_10 : f32 to vector<2x256xf32>
    %13 = arith.maximumf %11, %12 : vector<2x256xf32>
    %c0_11 = arith.constant 0 : index
    %c0_12 = arith.constant 0 : index
    %14 = vector.load %arg5[%c0_11, %c0_12] : memref<256x3840xf32, #tpu.memory_space<vmem>>, vector<256x3840xf32>
    %cst_13 = arith.constant dense<0.000000e+00> : vector<2x3840xf32>
    %15 = tpu.matmul %13, %14, %cst_13 {dimension_numbers = #tpu.dot_dimension_numbers<[1], [0], [0], [1], [0, 0, 1, 1], [], []>} : vector<2x256xf32>, vector<256x3840xf32>, vector<2x3840xf32> -> vector<2x3840xf32>
    %c0_14 = arith.constant 0 : index
    %c0_15 = arith.constant 0 : index
    %16 = vector.load %arg6[%c0_14, %c0_15] : memref<1x3840xf32, #tpu.memory_space<vmem>>, vector<1x3840xf32>
    %17 = vector.broadcast %16 : vector<1x3840xf32> to vector<2x3840xf32>
    %18 = arith.addf %15, %17 : vector<2x3840xf32>
    %19 = vector.shape_cast %18 : vector<2x3840xf32> to vector<2x5x768xf32>
    %c0_16 = arith.constant 0 : index
    %c0_17 = arith.constant 0 : index
    %c0_18 = arith.constant 0 : index
    %20 = vector.load %arg7[%c0_16, %c0_17, %c0_18] : memref<2x13x768xf32, #tpu.memory_space<vmem>>, vector<2x5x768xf32>
    tpu.vector_store %arg7[%c0_16, %c0_17, %c0_18], %19 {strides = array<i32>} : memref<2x13x768xf32, #tpu.memory_space<vmem>>, vector<2x5x768xf32>,
    %c0_19 = arith.constant 0 : index
    %c5 = arith.constant 5 : index
    %c0_20 = arith.constant 0 : index
    %21 = vector.load %arg7[%c0_19, %c5, %c0_20] : memref<2x13x768xf32, #tpu.memory_space<vmem>>, vector<2x8x768xf32>
    tpu.vector_store %arg7[%c0_19, %c5, %c0_20], %0 {strides = array<i32>} : memref<2x13x768xf32, #tpu.memory_space<vmem>>, vector<2x8x768xf32>,
    return
  }
  func.func @transform_0(%arg0: i32) -> (i32, i32, i32) {
    %c0_i32 = arith.constant 0 : i32
    %c0_i32_0 = arith.constant 0 : i32
    %c0_i32_1 = arith.constant 0 : i32
    return %arg0, %c0_i32, %c0_i32_0 : i32, i32, i32
  }
  func.func @transform_1(%arg0: i32) -> (i32, i32) {
    %c0_i32 = arith.constant 0 : i32
    %c0_i32_0 = arith.constant 0 : i32
    %c0_i32_1 = arith.constant 0 : i32
    return %c0_i32, %c0_i32_0 : i32, i32
  }
  func.func @transform_2(%arg0: i32) -> (i32, i32) {
    %c0_i32 = arith.constant 0 : i32
    %c0_i32_0 = arith.constant 0 : i32
    %c0_i32_1 = arith.constant 0 : i32
    return %c0_i32, %c0_i32_0 : i32, i32
  }
  func.func @transform_3(%arg0: i32) -> (i32, i32) {
    %c0_i32 = arith.constant 0 : i32
    %c0_i32_0 = arith.constant 0 : i32
    %c0_i32_1 = arith.constant 0 : i32
    return %c0_i32, %c0_i32_0 : i32, i32
  }
  func.func @transform_4(%arg0: i32) -> (i32, i32) {
    %c0_i32 = arith.constant 0 : i32
    %c0_i32_0 = arith.constant 0 : i32
    %c0_i32_1 = arith.constant 0 : i32
    return %c0_i32, %c0_i32_0 : i32, i32
  }
  func.func @transform_5(%arg0: i32) -> (i32, i32) {
    %c0_i32 = arith.constant 0 : i32
    %c0_i32_0 = arith.constant 0 : i32
    %c0_i32_1 = arith.constant 0 : i32
    return %c0_i32, %c0_i32_0 : i32, i32
  }
  func.func @transform_6(%arg0: i32) -> (i32, i32, i32) {
    %c0_i32 = arith.constant 0 : i32
    %c0_i32_0 = arith.constant 0 : i32
    %c0_i32_1 = arith.constant 0 : i32
    return %arg0, %c0_i32, %c0_i32_0 : i32, i32, i32
  }
}

</mosaic_0001>

<bundles_post_ra>
// kernel: tpu_custom_call.1
= control target key start
LH: loop header
LB: loop body
LE: loop exit
PB: predicated region body
PF: predicated region fallthrough
CT: control target
= control target key end

     0   :  { %11 = vsyncpa [#allocation3], 0  ;;  %s3869_s0 = inlined_call_operand.hbm [shape: f32[2,8,768], index: 0, kind: input, shape index: {}]   ;;  %s3870_s1 = inlined_call_operand.hbm [shape: f32[1,768], index: 1, kind: input, shape index: {}]   ;;  %s3871_s2 = inlined_call_operand.hbm [shape: f32[768,256], index: 2, kind: input, shape index: {}]   ;;  %s3872_s3 = inlined_call_operand.hbm [shape: f32[1,256], index: 3, kind: input, shape index: {}]   ;;  %s3873_s4 = inlined_call_operand.hbm [shape: f32[256,3840], index: 4, kind: input, shape index: {}]   ;;  %s3874_s5 = inlined_call_operand.hbm [shape: f32[1,3840], index: 5, kind: input, shape index: {}]   ;;  %s3875_s6 = inlined_call_operand.vmem [shape: f32[2,13,768], index: 6, kind: output, shape index: {}]  }
   0x1   :  { %12 = vsyncpa [#allocation5], 0 }
   0x2   :  { %13 = vsyncpa [#allocation8], 0  ;;  %s33_s23 = sshll.u32 %s3870_s1, 4  ;;  %s34_s23 = int_to_ptr.hbm [resolvable:$true] %s33_s23 }
   0x3   :  { %14 = vsyncpa [#allocation11], 0  ;;  %s3346_s24 = smov [#allocation4]   ;;  %s57_s28 = sshll.u32 %s3872_s3, 4  ;;  %s58_s28 = int_to_ptr.hbm [resolvable:$true] %s57_s28 }
   0x4   :  { %s35_s25 = sshll.u32 %s3346_s24, 4  ;;  %s3347_s29 = smov [#allocation7]   ;;  %s36_s25 = int_to_ptr.vmem [resolvable:$true] %s35_s25 }
   0x5   :  { %38 = dma.hbm_to_vmem [thread:$0]  %s34_s23, 96, %s36_s25, [#allocation5]  }
   0x6   :  { %s59_s30 = sshll.u32 %s3347_s29, 4  ;;  %s19_s9 = sshll.u32 %s3869_s0, 4  ;;  %s60_s30 = int_to_ptr.vmem [resolvable:$true] %s59_s30  ;;  %s20_s9 = int_to_ptr.hbm [resolvable:$true] %s19_s9 }
   0x7   :  { %62 = dma.hbm_to_vmem [thread:$0]  %s58_s28, 32, %s60_s30, [#allocation8]  }
   0x8   :  { %s3348_s1 = smov [#allocation2]   ;;  %s43_s13 = sshll.u32 %s3871_s2, 4  ;;  %s44_s13 = int_to_ptr.hbm [resolvable:$true] %s43_s13 }
   0x9   :  { %s21_s10 = sshll.u32 %s3348_s1, 4  ;;  %s3349_s14 = smov 768   ;;  %s22_s10 = int_to_ptr.vmem [resolvable:$true] %s21_s10 }
   0xa   :  { %s3350_s3 = smov 48   ;;  %s3351_s15 = smov [#allocation6]  }
   0xb   :  { %27 = dma.hbm_to_vmem [thread:$0]  %s20_s9, 1536, %s22_s10, [#allocation3], %s3349_s14, %s3349_s14, %s3350_s3  }
   0xc   :  { %s45_s16 = sshll.u32 %s3351_s15, 4  ;;  %s3352_s17 = smov 256   ;;  %s46_s16 = int_to_ptr.vmem [resolvable:$true] %s45_s16 }
   0xd   :  { %s3353_s18 = smov 16   ;;  %s67_s20 = sshll.u32 %s3873_s4, 4  ;;  %s68_s20 = int_to_ptr.hbm [resolvable:$true] %s67_s20 }
   0xe   :  { %51 = dma.hbm_to_vmem [thread:$0]  %s44_s13, 24576, %s46_s16, [#allocation5], %s3352_s17, %s3352_s17, %s3353_s18  }
   0xf   :  { %s3354_s21 = smov [#allocation9]   ;;  %s81_s24 = sshll.u32 %s3874_s5, 4  ;;  %s82_s24 = int_to_ptr.hbm [resolvable:$true] %s81_s24 }
  0x10   :  { %s69_s22 = sshll.u32 %s3354_s21, 4  ;;  %s3355_s25 = smov 3840   ;;  %s70_s22 = int_to_ptr.vmem [resolvable:$true] %s69_s22 }
  0x11   :  { %s3356_s26 = smov 240   ;;  %s3357_s27 = smov [#allocation10]  }
  0x12   :  { %75 = dma.hbm_to_vmem [thread:$0]  %s68_s20, 122880, %s70_s22, [#allocation8], %s3355_s25, %s3355_s25, %s3356_s26  }
  0x13   :  { %s83_s28 = sshll.u32 %s3357_s27, 4  ;;  %s84_s28 = int_to_ptr.vmem [resolvable:$true] %s83_s28 }
  0x14   :  { %86 = dma.hbm_to_vmem [thread:$0]  %s82_s24, 480, %s84_s28, [#allocation11]  }
  0x15   :  { %3338 = dma.done.wait [#allocation3], 1536  }
  0x16   :  { %3339 = vsyncadd [#allocation3], 4294965760 }
  0x17   :  { %3340 = dma.done.wait [#allocation5], 24672  }
  0x18   :  { %3341 = vsyncadd [#allocation5], 4294942624 }
  0x19   :  { %3342 = dma.done.wait [#allocation8], 122912  }
  0x1a   :  { %3343 = vsyncadd [#allocation8], 4294844384 }
  0x1b   :  { %3344 = dma.done.wait [#allocation11], 480  }
  0x1c   :  { %3345 = vsyncadd [#allocation11], 4294966816  ;;  %v270_v0 = vld [vmem:[#allocation6 + $0xf0] sm:$0xff]  ;;  %v268_v2 = vld [vmem:[#allocation6 + $0xe0] sm:$0xff]  ;;  %v3358_v34 = vmov 9.0   ;;  %vm451_vm1 = vcmask 1041409  }
  0x1d   :  { %v334_v1 = vld [vmem:[#allocation6 + $0x2f0] sm:$0xff]  ;;  %469 = vmatpush.msra.mxu0 %v270_v0  ;;  %v332_v4 = vld [vmem:[#allocation6 + $0x2e0] sm:$0xff]  ;;  %3191 = vrcp.f32 %v3358_v34  ;;  %v261_v34 = vld [vmem:[#allocation6 + $0xa8] sm:$0xff]  ;;  %vm2940_vm2 = vcmask 1047556  }
  0x1e   :  { %509 = vmatpush.msra.mxu2 %v334_v1  ;;  %v302_v3 = vld [vmem:[#allocation6 + $0x1f0] sm:$0xff]  ;;  %v300_v7 = vld [vmem:[#allocation6 + $0x1e0] sm:$0xff] }
  0x1f   :  { %v366_v5 = vld [vmem:[#allocation6 + $0x3f0] sm:$0xff]  ;;  %489 = vmatpush.msra.mxu1 %v302_v3  ;;  %470 = vmatpush.msra.mxu0 %v268_v2  ;;  %v364_v9 = vld [vmem:[#allocation6 + $0x3e0] sm:$0xff]  ;;  %v271_v3 = vld [vmem:[#allocation6 + $0xf8] sm:$0xff] }
  0x20   :  { %529 = vmatpush.msra.mxu3 %v366_v5  ;;  %v266_v6 = vld [vmem:[#allocation6 + $0xd0] sm:$0xff]  ;;  %510 = vmatpush.msra.mxu2 %v332_v4  ;;  %v264_v11 = vld [vmem:[#allocation6 + $0xc0] sm:$0xff] }
  0x21   :  { %v330_v8 = vld [vmem:[#allocation6 + $0x2d0] sm:$0xff]  ;;  %490 = vmatpush.msra.mxu1 %v300_v7  ;;  %v328_v12 = vld [vmem:[#allocation6 + $0x2c0] sm:$0xff]  ;;  %471 = vmatpush.msra.mxu0 %v266_v6 }
  0x22   :  { %v298_v10 = vld [vmem:[#allocation6 + $0x1d0] sm:$0xff]  ;;  %530 = vmatpush.msra.mxu3 %v364_v9  ;;  %511 = vmatpush.msra.mxu2 %v330_v8  ;;  %v296_v14 = vld [vmem:[#allocation6 + $0x1c0] sm:$0xff]  ;;  %v269_v8 = vld [vmem:[#allocation6 + $0xe8] sm:$0xff] }
  0x23   :  { %v362_v13 = vld [vmem:[#allocation6 + $0x3d0] sm:$0xff]  ;;  %v360_v15 = vld [vmem:[#allocation6 + $0x3c0] sm:$0xff]  ;;  %491 = vmatpush.msra.mxu1 %v298_v10  ;;  %472 = vmatpush.msra.mxu0 %v264_v11  ;;  %v3414_v45 = vpop.eup %3191  ;;  %v303_v10 = vld [vmem:[#allocation6 + $0x1f8] sm:$0xff] }
  0x24   :  { %531 = vmatpush.msra.mxu3 %v362_v13  ;;  %v262_v16 = vld [vmem:[#allocation6 + $0xb0] sm:$0xff]  ;;  %512 = vmatpush.msra.mxu2 %v328_v12  ;;  %v260_v20 = vld [vmem:[#allocation6 + $0xa0] sm:$0xff]  ;;  %v222_v54 = vmul.f32 9.0, %v3414_v45  ;;  %v267_v13 = vld [vmem:[#allocation6 + $0xd8] sm:$0xff]  ;;  %vm226_vm0 = vweird.f32 %v3414_v45 }
  0x25   :  { %v326_v17 = vld [vmem:[#allocation6 + $0x2b0] sm:$0xff]  ;;  %492 = vmatpush.msra.mxu1 %v296_v14  ;;  %v324_v21 = vld [vmem:[#allocation6 + $0x2a0] sm:$0xff]  ;;  %473 = vmatpush.msra.mxu0 %v262_v16  ;;  %v301_v14 = vld [vmem:[#allocation6 + $0x1e8] sm:$0xff] }
  0x26   :  { %v294_v18 = vld [vmem:[#allocation6 + $0x1b0] sm:$0xff]  ;;  %532 = vmatpush.msra.mxu3 %v360_v15  ;;  %513 = vmatpush.msra.mxu2 %v326_v17  ;;  %v292_v22 = vld [vmem:[#allocation6 + $0x1a0] sm:$0xff]  ;;  %v223_v63 = vsub.f32 1.0, %v222_v54  ;;  %v265_v17 = vld [vmem:[#allocation6 + $0xc8] sm:$0xff] }
  0x27   :  { %v358_v19 = vld [vmem:[#allocation6 + $0x3b0] sm:$0xff]  ;;  %v356_v23 = vld [vmem:[#allocation6 + $0x3a0] sm:$0xff]  ;;  %493 = vmatpush.msra.mxu1 %v294_v18  ;;  %474 = vmatpush.msra.mxu0 %v260_v20  ;;  %v299_v18 = vld [vmem:[#allocation6 + $0x1d8] sm:$0xff] }
  0x28   :  { %533 = vmatpush.msra.mxu3 %v358_v19  ;;  %v258_v24 = vld [vmem:[#allocation6 + $0x90] sm:$0xff]  ;;  %514 = vmatpush.msra.mxu2 %v324_v21  ;;  %v256_v28 = vld [vmem:[#allocation6 + $0x80] sm:$0xff]  ;;  %v224_v9 = vmul.f32 %v3414_v45, %v223_v63 }
  0x29   :  { %v322_v25 = vld [vmem:[#allocation6 + $0x290] sm:$0xff]  ;;  %494 = vmatpush.msra.mxu1 %v292_v22  ;;  %v320_v29 = vld [vmem:[#allocation6 + $0x280] sm:$0xff]  ;;  %475 = vmatpush.msra.mxu0 %v258_v24  ;;  %v263_v24 = vld [vmem:[#allocation6 + $0xb8] sm:$0xff] }
  0x2a   :  { %v290_v26 = vld [vmem:[#allocation6 + $0x190] sm:$0xff]  ;;  %534 = vmatpush.msra.mxu3 %v356_v23  ;;  %515 = vmatpush.msra.mxu2 %v322_v25  ;;  %v288_v30 = vld [vmem:[#allocation6 + $0x180] sm:$0xff]  ;;  %v225_v23 = vadd.f32 %v3414_v45, %v224_v9 }
  0x2b   :  { %v354_v27 = vld [vmem:[#allocation6 + $0x390] sm:$0xff]  ;;  %v352_v31 = vld [vmem:[#allocation6 + $0x380] sm:$0xff]  ;;  %495 = vmatpush.msra.mxu1 %v290_v26  ;;  %476 = vmatpush.msra.mxu0 %v256_v28 }
  0x2c   :  { %535 = vmatpush.msra.mxu3 %v354_v27  ;;  %v254_v32 = vld [vmem:[#allocation6 + $0x70] sm:$0xff]  ;;  %516 = vmatpush.msra.mxu2 %v320_v29  ;;  %v252_v37 = vld [vmem:[#allocation6 + $0x60] sm:$0xff]  ;;  %v3419_v27 = vld [vmem:[#allocation4] sm:$0x3f] }
  0x2d   :  { %v318_v33 = vld [vmem:[#allocation6 + $0x270] sm:$0xff]  ;;  %496 = vmatpush.msra.mxu1 %v288_v30  ;;  %v316_v38 = vld [vmem:[#allocation6 + $0x260] sm:$0xff]  ;;  %477 = vmatpush.msra.mxu0 %v254_v32  ;;  %v297_v30 = vld [vmem:[#allocation6 + $0x1c8] sm:$0xff] }
  0x2e   :  { %v286_v35 = vld [vmem:[#allocation6 + $0x170] sm:$0xff]  ;;  %536 = vmatpush.msra.mxu3 %v352_v31  ;;  %517 = vmatpush.msra.mxu2 %v318_v33  ;;  %v284_v39 = vld [vmem:[#allocation6 + $0x160] sm:$0xff]  ;;  %v199_v33 = vperm.slane %v3419_v27, 2 }
  0x2f   :  { %v350_v36 = vld [vmem:[#allocation6 + $0x370] sm:$0xff]  ;;  %v348_v40 = vld [vmem:[#allocation6 + $0x360] sm:$0xff]  ;;  %497 = vmatpush.msra.mxu1 %v286_v35  ;;  %478 = vmatpush.msra.mxu0 %v252_v37  ;;  %v295_v35 = vld [vmem:[#allocation6 + $0x1b8] sm:$0xff] }
  0x30   :  { %537 = vmatpush.msra.mxu3 %v350_v36  ;;  %v250_v41 = vld [vmem:[#allocation6 + $0x50] sm:$0xff]  ;;  %518 = vmatpush.msra.mxu2 %v316_v38  ;;  %v248_v46 = vld [vmem:[#allocation6 + $0x40] sm:$0xff] }
  0x31   :  { %v314_v42 = vld [vmem:[#allocation6 + $0x250] sm:$0xff]  ;;  %498 = vmatpush.msra.mxu1 %v284_v39  ;;  %v312_v47 = vld [vmem:[#allocation6 + $0x240] sm:$0xff]  ;;  %479 = vmatpush.msra.mxu0 %v250_v41  ;;  %v200_v41 = vperm.slane %v3419_v27, 3 }
  0x32   :  { %v282_v43 = vld [vmem:[#allocation6 + $0x150] sm:$0xff]  ;;  %538 = vmatpush.msra.mxu3 %v348_v40  ;;  %519 = vmatpush.msra.mxu2 %v314_v42  ;;  %v280_v48 = vld [vmem:[#allocation6 + $0x140] sm:$0xff]  ;;  %v197_v40 = vperm.slane %v3419_v27, 0 }
  0x33   :  { %v346_v44 = vld [vmem:[#allocation6 + $0x350] sm:$0xff]  ;;  %v344_v49 = vld [vmem:[#allocation6 + $0x340] sm:$0xff]  ;;  %499 = vmatpush.msra.mxu1 %v282_v43  ;;  %480 = vmatpush.msra.mxu0 %v248_v46 }
  0x34   :  { %539 = vmatpush.msra.mxu3 %v346_v44  ;;  %v246_v50 = vld [vmem:[#allocation6 + $0x30] sm:$0xff]  ;;  %520 = vmatpush.msra.mxu2 %v312_v47  ;;  %v244_v55 = vld [vmem:[#allocation6 + $0x20] sm:$0xff] }
  0x35   :  { %v310_v51 = vld [vmem:[#allocation6 + $0x230] sm:$0xff]  ;;  %500 = vmatpush.msra.mxu1 %v280_v48  ;;  %v308_v56 = vld [vmem:[#allocation6 + $0x220] sm:$0xff]  ;;  %481 = vmatpush.msra.mxu0 %v246_v50 }
  0x36   :  { %v278_v52 = vld [vmem:[#allocation6 + $0x130] sm:$0xff]  ;;  %540 = vmatpush.msra.mxu3 %v344_v49  ;;  %521 = vmatpush.msra.mxu2 %v310_v51  ;;  %v276_v57 = vld [vmem:[#allocation6 + $0x120] sm:$0xff]  ;;  %v259_v49 = vld [vmem:[#allocation6 + $0x98] sm:$0xff] }
  0x37   :  { %v342_v53 = vld [vmem:[#allocation6 + $0x330] sm:$0xff]  ;;  %v340_v58 = vld [vmem:[#allocation6 + $0x320] sm:$0xff]  ;;  %501 = vmatpush.msra.mxu1 %v278_v52  ;;  %482 = vmatpush.msra.mxu0 %v244_v55  ;;  %v3434_v52 = vsel %vm226_vm0, %v3414_v45, %v225_v23  ;;  %v293_v55 = vld [vmem:[#allocation6 + $0x1a8] sm:$0xff] }
  0x38   :  { %541 = vmatpush.msra.mxu3 %v342_v53  ;;  %v242_v59 = vld [vmem:[#allocation6 + $0x10] sm:$0xff]  ;;  %522 = vmatpush.msra.mxu2 %v308_v56  ;;  %v240_v0 = vld [vmem:[#allocation6] sm:$0xff] }
  0x39   :  { %v306_v60 = vld [vmem:[#allocation6 + $0x210] sm:$0xff]  ;;  %502 = vmatpush.msra.mxu1 %v276_v57  ;;  %v304_v1 = vld [vmem:[#allocation6 + $0x200] sm:$0xff]  ;;  %483 = vmatpush.msra.mxu0 %v242_v59 }
  0x3a   :  { %v274_v61 = vld [vmem:[#allocation6 + $0x110] sm:$0xff]  ;;  %542 = vmatpush.msra.mxu3 %v340_v58  ;;  %523 = vmatpush.msra.mxu2 %v306_v60  ;;  %v272_v4 = vld [vmem:[#allocation6 + $0x100] sm:$0xff] }
  0x3b   :  { %v338_v62 = vld [vmem:[#allocation6 + $0x310] sm:$0xff]  ;;  %503 = vmatpush.msra.mxu1 %v274_v61  ;;  %v336_v5 = vld [vmem:[#allocation6 + $0x300] sm:$0xff]  ;;  %484 = vmatpush.msra.mxu0 %v240_v0  ;;  %v257_v61 = vld [vmem:[#allocation6 + $0x88] sm:$0xff] }
  0x3c   :  { %v398_v2 = vld [vmem:[#allocation6 + $0x4f0] sm:$0xff]  ;;  %543 = vmatpush.msra.mxu3 %v338_v62  ;;  %524 = vmatpush.msra.mxu2 %v304_v1  ;;  %v396_v6 = vld [vmem:[#allocation6 + $0x4e0] sm:$0xff] }
  0x3d   :  { %v430_v7 = vld [vmem:[#allocation6 + $0x5f0] sm:$0xff]  ;;  %549 = vmatpush.msrb.mxu0 %v398_v2  ;;  %v428_v12 = vld [vmem:[#allocation6 + $0x5e0] sm:$0xff]  ;;  %504 = vmatpush.msra.mxu1 %v272_v4 }
  0x3e   :  { %589 = vmatpush.msrb.mxu2 %v271_v3  ;;  %v394_v11 = vld [vmem:[#allocation6 + $0x4d0] sm:$0xff]  ;;  %544 = vmatpush.msra.mxu3 %v336_v5  ;;  %v392_v15 = vld [vmem:[#allocation6 + $0x4c0] sm:$0xff]  ;;  %v291_v3 = vld [vmem:[#allocation6 + $0x198] sm:$0xff] }
  0x3f   :  { %550 = vmatpush.msrb.mxu0 %v396_v6  ;;  %569 = vmatpush.msrb.mxu1 %v430_v7  ;;  %v426_v16 = vld [vmem:[#allocation6 + $0x5d0] sm:$0xff]  ;;  %v424_v20 = vld [vmem:[#allocation6 + $0x5c0] sm:$0xff] }
  0x40   :  { %590 = vmatpush.msrb.mxu2 %v269_v8  ;;  %609 = vmatpush.msrb.mxu3 %v303_v10  ;;  %v390_v19 = vld [vmem:[#allocation6 + $0x4b0] sm:$0xff]  ;;  %v119_v22 = vld [vmem:[#allocation2 + $0x40] sm:$0xff]  ;;  %v3439_v54 = vld [vmem:[#allocation2 + $0x48] sm:$0xff] }
  0x41   :  { %v113_v21 = vld [vmem:[#allocation2 + $0x10] sm:$0xff]  ;;  %551 = vmatpush.msrb.mxu0 %v394_v11  ;;  %570 = vmatpush.msrb.mxu1 %v428_v12  ;;  %v171_v26 = vrot.slane %v119_v22, 4  ;;  %v3128_v29 = vrot.slane %v119_v22, 3  ;;  %v388_v31 = vld [vmem:[#allocation6 + $0x4a0] sm:$0xff]  ;;  %v114_v53 = vld [vmem:[#allocation2 + $0x18] sm:$0xff]  ;;  %v177_v45 = vrot.slane %v3439_v54, 4 }
  0x42   :  { %v135_v25 = vrot.slane %v113_v21, 4  ;;  %v3122_v28 = vrot.slane %v113_v21, 3  ;;  %591 = vmatpush.msrb.mxu2 %v267_v13  ;;  %610 = vmatpush.msrb.mxu3 %v301_v14  ;;  %v422_v32 = vld [vmem:[#allocation6 + $0x5b0] sm:$0xff]  ;;  %v111_v38 = vld [vmem:[#allocation2] sm:$0xff]  ;;  %v141_v59 = vrot.slane %v114_v53, 4  ;;  %v3123_v0 = vrot.slane %v114_v53, 3 }
  0x43   :  { %552 = vmatpush.msrb.mxu0 %v392_v15  ;;  %571 = vmatpush.msrb.mxu1 %v426_v16  ;;  %v172_v37 = vadd.f32 %v171_v26, %v119_v22  ;;  %v117_v39 = vld [vmem:[#allocation2 + $0x30] sm:$0xff]  ;;  %v420_v43 = vld [vmem:[#allocation6 + $0x5a0] sm:$0xff]  ;;  %v123_v44 = vrot.slane %v111_v38, 4  ;;  %v3120_v47 = vrot.slane %v111_v38, 3  ;;  %3158 = vst [vmem:[%s3875_s6 + $0x70] sm:$0xe0] %v3128_v29  ;;  %v178_v7 = vadd.f32 %v177_v45, %v3439_v54 }
  0x44   :  { %v136_v36 = vadd.f32 %v135_v25, %v113_v21  ;;  %3146 = vst [vmem:[%s3875_s6 + $0x10] sm:$0xe0] %v3122_v28  ;;  %592 = vmatpush.msrb.mxu2 %v265_v17  ;;  %611 = vmatpush.msrb.mxu3 %v299_v18  ;;  %v386_v42 = vld [vmem:[#allocation6 + $0x490] sm:$0xff]  ;;  %v159_v46 = vrot.slane %v117_v39, 4  ;;  %v3126_v48 = vrot.slane %v117_v39, 3  ;;  %v384_v56 = vld [vmem:[#allocation6 + $0x480] sm:$0xff]  ;;  %v142_v6 = vadd.f32 %v141_v59, %v114_v53 }
  0x45   :  { %3152 = vst [vmem:[%s3875_s6 + $0x40] sm:$0x1f] %v3122_v28  ;;  %553 = vmatpush.msrb.mxu0 %v390_v19  ;;  %572 = vmatpush.msrb.mxu1 %v424_v20  ;;  %v173_v51 = vrot.slane %v172_v37, 2  ;;  %v124_v57 = vadd.f32 %v123_v44, %v111_v38  ;;  %v418_v60 = vld [vmem:[#allocation6 + $0x590] sm:$0xff]  ;;  %v3129_v1 = vrot.slane %v3439_v54, 3  ;;  %v3449_v2 = vld [vmem:[#allocation2 + $0x8] sm:$0xff] }
  0x46   :  { %v137_v50 = vrot.slane %v136_v36, 2  ;;  %593 = vmatpush.msrb.mxu2 %v263_v24  ;;  %612 = vmatpush.msrb.mxu3 %v297_v30  ;;  %3164 = vst [vmem:[%s3875_s6 + $0xa0] sm:$0x1f] %v3128_v29  ;;  %v160_v58 = vadd.f32 %v159_v46, %v117_v39  ;;  %v3455_v8 = vld [vmem:[#allocation2 + $0x38] sm:$0xff]  ;;  %v129_v11 = vrot.slane %v3449_v2, 4  ;;  %v416_v14 = vld [vmem:[#allocation6 + $0x580] sm:$0xff] }
  0x47   :  { %554 = vmatpush.msrb.mxu0 %v388_v31  ;;  %573 = vmatpush.msrb.mxu1 %v422_v32  ;;  %v174_v63 = vadd.f32 %v173_v51, %v172_v37  ;;  %3144 = vst [vmem:[%s3875_s6] sm:$0xe0] %v3120_v47  ;;  %v125_v4 = vrot.slane %v124_v57, 2  ;;  %v165_v12 = vrot.slane %v3455_v8, 4  ;;  %v382_v13 = vld [vmem:[#allocation6 + $0x470] sm:$0xff]  ;;  %v143_v17 = vrot.slane %v142_v6, 2  ;;  %v255_v19 = vld [vmem:[#allocation6 + $0x78] sm:$0xff] }
  0x48   :  { %v138_v62 = vadd.f32 %v137_v50, %v136_v36  ;;  %594 = vmatpush.msrb.mxu2 %v261_v34  ;;  %613 = vmatpush.msrb.mxu3 %v295_v35  ;;  %v161_v5 = vrot.slane %v160_v58, 2  ;;  %3150 = vst [vmem:[%s3875_s6 + $0x30] sm:$0x1f] %v3120_v47  ;;  %v179_v18 = vrot.slane %v178_v7, 2  ;;  %v289_v20 = vld [vmem:[#allocation6 + $0x188] sm:$0xff]  ;;  %v130_v23 = vadd.f32 %v129_v11, %v3449_v2  ;;  %v380_v24 = vld [vmem:[#allocation6 + $0x460] sm:$0xff] }
  0x49   :  { %555 = vmatpush.msrb.mxu0 %v386_v42  ;;  %574 = vmatpush.msrb.mxu1 %v420_v43  ;;  %v175_v10 = vrot.slane %v174_v63, 1  ;;  %3156 = vst [vmem:[%s3875_s6 + $0x60] sm:$0xe0] %v3126_v48  ;;  %v126_v15 = vadd.f32 %v125_v4, %v124_v57  ;;  %v414_v25 = vld [vmem:[#allocation6 + $0x570] sm:$0xff]  ;;  %v144_v29 = vadd.f32 %v143_v17, %v142_v6  ;;  %v253_v31 = vld [vmem:[#allocation6 + $0x68] sm:$0xff]  ;;  %v287_v32 = vld [vmem:[#allocation6 + $0x178] sm:$0xff] }
  0x4a   :  { %v139_v9 = vrot.slane %v138_v62, 1  ;;  %595 = vmatpush.msrb.mxu2 %v259_v49  ;;  %614 = vmatpush.msrb.mxu3 %v293_v55  ;;  %v162_v16 = vadd.f32 %v161_v5, %v160_v58  ;;  %3162 = vst [vmem:[%s3875_s6 + $0x90] sm:$0x1f] %v3126_v48  ;;  %v180_v30 = vadd.f32 %v179_v18, %v178_v7  ;;  %v131_v36 = vrot.slane %v130_v23, 2  ;;  %v378_v38 = vld [vmem:[#allocation6 + $0x450] sm:$0xff]  ;;  %v412_v39 = vld [vmem:[#allocation6 + $0x560] sm:$0xff] }
  0x4b   :  { %556 = vmatpush.msrb.mxu0 %v384_v56  ;;  %575 = vmatpush.msrb.mxu1 %v418_v60  ;;  %v176_v22 = vadd.f32 %v175_v10, %v174_v63  ;;  %3147 = vst [vmem:[%s3875_s6 + $0x18] sm:$0xe0] %v3123_v0  ;;  %v127_v26 = vrot.slane %v126_v15, 1  ;;  %v3121_v37 = vrot.slane %v3449_v2, 3  ;;  %v145_v44 = vrot.slane %v144_v29, 1  ;;  %v285_v47 = vld [vmem:[#allocation6 + $0x168] sm:$0xff] }
  0x4c   :  { %v140_v21 = vadd.f32 %v139_v9, %v138_v62  ;;  %596 = vmatpush.msrb.mxu2 %v257_v61  ;;  %615 = vmatpush.msrb.mxu3 %v291_v3  ;;  %v163_v28 = vrot.slane %v162_v16, 1  ;;  %3153 = vst [vmem:[%s3875_s6 + $0x48] sm:$0x1f] %v3123_v0  ;;  %v181_v46 = vrot.slane %v180_v30, 1  ;;  %v132_v50 = vadd.f32 %v131_v36, %v130_v23  ;;  %v376_v53 = vld [vmem:[#allocation6 + $0x440] sm:$0xff]  ;;  %v410_v54 = vld [vmem:[#allocation6 + $0x550] sm:$0xff] }
  0x4d   :  { %557 = vmatpush.msrb.mxu0 %v382_v13  ;;  %576 = vmatpush.msrb.mxu1 %v416_v14  ;;  %v217_v35 = vadd.f32 %v199_v33, %v176_v22  ;;  %3159 = vst [vmem:[%s3875_s6 + $0x78] sm:$0xe0] %v3129_v1  ;;  %v128_v42 = vadd.f32 %v127_v26, %v126_v15  ;;  %v3127_v51 = vrot.slane %v3455_v8, 3  ;;  %v283_v55 = vld [vmem:[#allocation6 + $0x158] sm:$0xff]  ;;  %v249_v63 = vld [vmem:[#allocation6 + $0x48] sm:$0xff]  ;;  %v374_v3 = vld [vmem:[#allocation6 + $0x430] sm:$0xff] }
  0x4e   :  { %v211_v34 = vadd.f32 %v199_v33, %v140_v21  ;;  %597 = vmatpush.msrb.mxu2 %v255_v19  ;;  %616 = vmatpush.msrb.mxu3 %v289_v20  ;;  %v164_v43 = vadd.f32 %v163_v28, %v162_v16  ;;  %3165 = vst [vmem:[%s3875_s6 + $0xa8] sm:$0x1f] %v3129_v1  ;;  %v251_v33 = vld [vmem:[#allocation6 + $0x58] sm:$0xff]  ;;  %v133_v60 = vrot.slane %v132_v50, 1  ;;  %v408_v6 = vld [vmem:[#allocation6 + $0x540] sm:$0xff]  ;;  %v198_v17 = vperm.slane %v3419_v27, 1 }
  0x4f   :  { %558 = vmatpush.msrb.mxu0 %v380_v24  ;;  %577 = vmatpush.msrb.mxu1 %v414_v25  ;;  %v236_v49 = vmul.f32 %v3434_v52, %v217_v35  ;;  %v209_v56 = vadd.f32 %v197_v40, %v128_v42  ;;  %v146_v58 = vadd.f32 %v145_v44, %v144_v29  ;;  %v3499_v62 = vld [vmem:[#allocation2 + $0x20] sm:$0xff]  ;;  %v406_v18 = vld [vmem:[#allocation6 + $0x530] sm:$0xff]  ;;  %v3524_v19 = vld [vmem:[#allocation2 + $0x28] sm:$0xff] }
  0x50   :  { %v230_v48 = vmul.f32 %v3434_v52, %v211_v34  ;;  %598 = vmatpush.msrb.mxu2 %v253_v31  ;;  %617 = vmatpush.msrb.mxu3 %v287_v32  ;;  %v215_v57 = vadd.f32 %v197_v40, %v164_v43  ;;  %3145 = vst [vmem:[%s3875_s6 + $0x8] sm:$0xe0] %v3121_v37  ;;  %v3501_v40 = vld [vmem:[#allocation2 + $0x50] sm:$0xff]  ;;  %v247_v7 = vld [vmem:[#allocation6 + $0x38] sm:$0xff]  ;;  %v147_v13 = vrot.slane %v3499_v62, 4  ;;  %v3124_v26 = vrot.slane %v3499_v62, 3 }
  0x51   :  { %559 = vmatpush.msrb.mxu0 %v378_v38  ;;  %578 = vmatpush.msrb.mxu1 %v412_v39  ;;  %v455_v59 = vrot.slane %v236_v49, 7  ;;  %v182_v45 = vadd.f32 %v181_v46, %v180_v30  ;;  %v166_v61 = vadd.f32 %v165_v12, %v3455_v8  ;;  %3151 = vst [vmem:[%s3875_s6 + $0x38] sm:$0x1f] %v3121_v37  ;;  %v281_v8 = vld [vmem:[#allocation6 + $0x148] sm:$0xff]  ;;  %v372_v12 = vld [vmem:[#allocation6 + $0x420] sm:$0xff]  ;;  %v183_v14 = vrot.slane %v3501_v40, 4 }
  0x52   :  { %599 = vmatpush.msrb.mxu2 %v251_v33  ;;  %618 = vmatpush.msrb.mxu3 %v285_v47  ;;  %v228_v0 = vmul.f32 %v3434_v52, %v209_v56  ;;  %v234_v1 = vmul.f32 %v3434_v52, %v215_v57  ;;  %v212_v2 = vadd.f32 %v200_v41, %v146_v58  ;;  %v3526_v20 = vld [vmem:[#allocation2 + $0x58] sm:$0xff]  ;;  %v245_v22 = vld [vmem:[#allocation6 + $0x28] sm:$0xff]  ;;  %v404_v32 = vld [vmem:[#allocation6 + $0x520] sm:$0xff]  ;;  %v3130_v35 = vrot.slane %v3501_v40, 3 }
  0x53   :  { %3157 = vst [vmem:[%s3875_s6 + $0x68] sm:$0xe0] %v3127_v51  ;;  %v3511_v4 = vsel %vm451_vm1, %v455_v59, %v230_v48  ;;  %560 = vmatpush.msrb.mxu0 %v376_v53  ;;  %579 = vmatpush.msrb.mxu1 %v410_v54  ;;  %v218_v5 = vadd.f32 %v200_v41, %v182_v45  ;;  %v167_v10 = vrot.slane %v166_v61, 2  ;;  %v279_v23 = vld [vmem:[#allocation6 + $0x138] sm:$0xff]  ;;  %v370_v31 = vld [vmem:[#allocation6 + $0x410] sm:$0xff]  ;;  %v153_v38 = vrot.slane %v3524_v19, 4 }
  0x54   :  { %v134_v9 = vadd.f32 %v133_v60, %v132_v50  ;;  %525 = vmatmul.f32.vlgmr.msra.gmra.mxu2 %v3511_v4  ;;  %619 = vmatpush.msrb.mxu3 %v283_v55  ;;  %v450_v11 = vrot.slane %v234_v1, 7  ;;  %3163 = vst [vmem:[%s3875_s6 + $0x98] sm:$0x1f] %v3127_v51  ;;  %v231_v41 = vmul.f32 %v3434_v52, %v212_v2  ;;  %v243_v34 = vld [vmem:[#allocation6 + $0x18] sm:$0xff]  ;;  %v189_v39 = vrot.slane %v3526_v20, 4  ;;  %v277_v44 = vld [vmem:[#allocation6 + $0x128] sm:$0xff] }
  0x55   :  { %600 = vmatpush.msrb.mxu2 %v249_v63  ;;  %v237_v15 = vmul.f32 %v3434_v52, %v218_v5  ;;  %561 = vmatpush.msrb.mxu0 %v374_v3  ;;  %v168_v16 = vadd.f32 %v167_v10, %v166_v61  ;;  %v148_v24 = vadd.f32 %v147_v13, %v3499_v62  ;;  %v368_v46 = vld [vmem:[#allocation6 + $0x400] sm:$0xff]  ;;  %v3125_v33 = vrot.slane %v3524_v19, 3  ;;  %v402_v47 = vld [vmem:[#allocation6 + $0x510] sm:$0xff]  ;;  %v241_v48 = vld [vmem:[#allocation6 + $0x8] sm:$0xff] }
  0x56   :  { %v3529_v21 = vsel %vm451_vm1, %v450_v11, %v228_v0  ;;  %580 = vmatpush.msrb.mxu1 %v408_v6  ;;  %620 = vmatpush.msrb.mxu3 %v281_v8  ;;  %v184_v25 = vadd.f32 %v183_v14, %v3501_v40  ;;  %v210_v30 = vadd.f32 %v198_v17, %v134_v9  ;;  %v275_v49 = vld [vmem:[#allocation6 + $0x118] sm:$0xff]  ;;  %v400_v56 = vld [vmem:[#allocation6 + $0x500] sm:$0xff]  ;;  %v3131_v58 = vrot.slane %v3526_v20, 3  ;;  %v273_v0 = vld [vmem:[#allocation6 + $0x108] sm:$0xff] }
  0x57   :  { %485 = vmatmul.f32.vlgmr.msra.gmra.mxu0 %v3529_v21  ;;  %v457_v28 = vrot.slane %v237_v15, 7  ;;  %601 = vmatpush.msrb.mxu2 %v247_v7  ;;  %v169_v29 = vrot.slane %v168_v16, 1  ;;  %v149_v36 = vrot.slane %v148_v24, 2  ;;  %3148 = vst [vmem:[%s3875_s6 + $0x20] sm:$0xe0] %v3124_v26  ;;  %v154_v53 = vadd.f32 %v153_v38, %v3524_v19  ;;  %v399_v55 = vld [vmem:[#allocation6 + $0x4f8] sm:$0xff] }
  0x58   :  { %562 = vmatpush.msrb.mxu0 %v372_v12  ;;  %581 = vmatpush.msrb.mxu1 %v406_v18  ;;  %v185_v37 = vrot.slane %v184_v25, 2  ;;  %3154 = vst [vmem:[%s3875_s6 + $0x50] sm:$0x1f] %v3124_v26  ;;  %v190_v57 = vadd.f32 %v189_v39, %v3526_v20  ;;  %v335_v59 = vld [vmem:[#allocation6 + $0x2f8] sm:$0xff]  ;;  %v201_v61 = vperm.slane %v3419_v27, 4  ;;  %v229_v40 = vmul.f32 %v3434_v52, %v210_v30  ;;  %v397_v2 = vld [vmem:[#allocation6 + $0x4e8] sm:$0xff] }
  0x59   :  { %v3542_v42 = vsel %vm451_vm1, %v457_v28, %v231_v41  ;;  %v170_v43 = vadd.f32 %v169_v29, %v168_v16  ;;  %602 = vmatpush.msrb.mxu2 %v245_v22  ;;  %621 = vmatpush.msrb.mxu3 %v279_v23  ;;  %v150_v50 = vadd.f32 %v149_v36, %v148_v24  ;;  %v155_v62 = vrot.slane %v154_v53, 2  ;;  %v431_v7 = vld [vmem:[#allocation6 + $0x5f8] sm:$0xff]  ;;  %v333_v8 = vld [vmem:[#allocation6 + $0x2e8] sm:$0xff] }
  0x5a   :  { %545 = vmatmul.f32.vlgmr.msra.gmra.mxu3 %v3542_v42  ;;  %563 = vmatpush.msrb.mxu0 %v370_v31  ;;  %v186_v51 = vadd.f32 %v185_v37, %v184_v25  ;;  %3160 = vst [vmem:[%s3875_s6 + $0x80] sm:$0xe0] %v3130_v35  ;;  %v191_v1 = vrot.slane %v190_v57, 2  ;;  %v395_v11 = vld [vmem:[#allocation6 + $0x4d8] sm:$0xff]  ;;  %v429_v15 = vld [vmem:[#allocation6 + $0x5e8] sm:$0xff]  ;;  %v202_v18 = vperm.slane %v3419_v27, 5 }
  0x5b   :  { %v216_v54 = vadd.f32 %v198_v17, %v170_v43  ;;  %582 = vmatpush.msrb.mxu1 %v404_v32  ;;  %603 = vmatpush.msrb.mxu2 %v243_v34  ;;  %3166 = vst [vmem:[%s3875_s6 + $0xb0] sm:$0x1f] %v3130_v35  ;;  %v151_v45 = vrot.slane %v150_v50, 1  ;;  %v156_v6 = vadd.f32 %v155_v62, %v154_v53  ;;  %v367_v41 = vld [vmem:[#allocation6 + $0x3f8] sm:$0xff]  ;;  %v393_v20 = vld [vmem:[#allocation6 + $0x4c8] sm:$0xff] }
  0x5c   :  { %622 = vmatpush.msrb.mxu3 %v277_v44  ;;  %564 = vmatpush.msrb.mxu0 %v368_v46  ;;  %v187_v60 = vrot.slane %v186_v51, 1  ;;  %3149 = vst [vmem:[%s3875_s6 + $0x28] sm:$0xe0] %v3125_v33  ;;  %v192_v10 = vadd.f32 %v191_v1, %v190_v57  ;;  %v331_v19 = vld [vmem:[#allocation6 + $0x2d8] sm:$0xff]  ;;  %v365_v25 = vld [vmem:[#allocation6 + $0x3e8] sm:$0xff] }
  0x5d   :  { %v235_v63 = vmul.f32 %v3434_v52, %v216_v54  ;;  %583 = vmatpush.msrb.mxu1 %v402_v47  ;;  %604 = vmatpush.msrb.mxu2 %v241_v48  ;;  %3155 = vst [vmem:[%s3875_s6 + $0x58] sm:$0x1f] %v3125_v33  ;;  %v152_v3 = vadd.f32 %v151_v45, %v150_v50  ;;  %v157_v14 = vrot.slane %v156_v6, 1  ;;  %v427_v26 = vld [vmem:[#allocation6 + $0x5d8] sm:$0xff]  ;;  %v329_v29 = vld [vmem:[#allocation6 + $0x2c8] sm:$0xff] }
  0x5e   :  { %623 = vmatpush.msrb.mxu3 %v275_v49  ;;  %v188_v5 = vadd.f32 %v187_v60, %v186_v51  ;;  %3161 = vst [vmem:[%s3875_s6 + $0x88] sm:$0xe0] %v3131_v58  ;;  %629 = vmatpush.msra.mxu0 %v335_v59  ;;  %v193_v17 = vrot.slane %v192_v10, 1  ;;  %v391_v30 = vld [vmem:[#allocation6 + $0x4b8] sm:$0xff]  ;;  %v425_v35 = vld [vmem:[#allocation6 + $0x5c8] sm:$0xff] }
  0x5f   :  { %669 = vmatpush.msra.mxu2 %v399_v55  ;;  %v453_v9 = vrot.slane %v235_v63, 7  ;;  %584 = vmatpush.msrb.mxu1 %v400_v56  ;;  %3167 = vst [vmem:[%s3875_s6 + $0xb8] sm:$0x1f] %v3131_v58  ;;  %v213_v12 = vadd.f32 %v201_v61, %v152_v3  ;;  %v158_v24 = vadd.f32 %v157_v14, %v156_v6  ;;  %v363_v32 = vld [vmem:[#allocation6 + $0x3d8] sm:$0xff]  ;;  %v361_v38 = vld [vmem:[#allocation6 + $0x3c8] sm:$0xff] }
  0x60   :  { %v219_v13 = vadd.f32 %v201_v61, %v188_v5  ;;  %624 = vmatpush.msrb.mxu3 %v273_v0  ;;  %630 = vmatpush.msra.mxu0 %v333_v8  ;;  %v194_v28 = vadd.f32 %v193_v17, %v192_v10  ;;  %v327_v36 = vld [vmem:[#allocation6 + $0x2b8] sm:$0xff]  ;;  %v389_v39 = vld [vmem:[#allocation6 + $0x4a8] sm:$0xff] }
  0x61   :  { %670 = vmatpush.msra.mxu2 %v397_v2  ;;  %v3574_v16 = vsel %vm451_vm1, %v453_v9, %v229_v40  ;;  %v232_v22 = vmul.f32 %v3434_v52, %v213_v12  ;;  %v214_v31 = vadd.f32 %v202_v18, %v158_v24  ;;  %v423_v46 = vld [vmem:[#allocation6 + $0x5b8] sm:$0xff]  ;;  %v325_v33 = vld [vmem:[#allocation6 + $0x2a8] sm:$0xff] }
  0x62   :  { %689 = vmatpush.msra.mxu3 %v431_v7  ;;  %505 = vmatmul.f32.vlgmr.msra.gmra.mxu1 %v3574_v16  ;;  %v238_v23 = vmul.f32 %v3434_v52, %v219_v13  ;;  %v220_v34 = vadd.f32 %v202_v18, %v194_v28  ;;  %v359_v47 = vld [vmem:[#allocation6 + $0x3b8] sm:$0xff]  ;;  %v421_v50 = vld [vmem:[#allocation6 + $0x5a8] sm:$0xff] }
  0x63   :  { %671 = vmatpush.msra.mxu2 %v395_v11  ;;  %649 = vmatpush.msra.mxu1 %v367_v41  ;;  %v233_v43 = vmul.f32 %v3434_v52, %v214_v31  ;;  %v387_v48 = vld [vmem:[#allocation6 + $0x498] sm:$0xff]  ;;  %v357_v53 = vld [vmem:[#allocation6 + $0x3a8] sm:$0xff] }
  0x64   :  { %690 = vmatpush.msra.mxu3 %v429_v15  ;;  %v459_v27 = vrot.slane %v238_v23, 7  ;;  %631 = vmatpush.msra.mxu0 %v331_v19  ;;  %v239_v44 = vmul.f32 %v3434_v52, %v220_v34  ;;  %v323_v51 = vld [vmem:[#allocation6 + $0x298] sm:$0xff]  ;;  %v385_v52 = vld [vmem:[#allocation6 + $0x488] sm:$0xff] }
  0x65   :  { %672 = vmatpush.msra.mxu2 %v393_v20  ;;  %650 = vmatpush.msra.mxu1 %v365_v25  ;;  %v419_v55 = vld [vmem:[#allocation6 + $0x598] sm:$0xff]  ;;  %v321_v56 = vld [vmem:[#allocation6 + $0x288] sm:$0xff] }
  0x66   :  { %691 = vmatpush.msra.mxu3 %v427_v26  ;;  %v3581_v37 = vsel %vm451_vm1, %v459_v27, %v232_v22  ;;  %632 = vmatpush.msra.mxu0 %v329_v29  ;;  %v461_v49 = vrot.slane %v239_v44, 7  ;;  %v355_v57 = vld [vmem:[#allocation6 + $0x398] sm:$0xff]  ;;  %v417_v59 = vld [vmem:[#allocation6 + $0x588] sm:$0xff] }
  0x67   :  { %673 = vmatpush.msra.mxu2 %v391_v30  ;;  %565 = vmatmul.f32.vlgmr.msrb.gmra.mxu0 %v3581_v37  ;;  %v383_v58 = vld [vmem:[#allocation6 + $0x478] sm:$0xff]  ;;  %v353_v60 = vld [vmem:[#allocation6 + $0x388] sm:$0xff] }
  0x68   :  { %651 = vmatpush.msra.mxu1 %v363_v32  ;;  %692 = vmatpush.msra.mxu3 %v425_v35  ;;  %v3587_v54 = vsel %vm451_vm1, %v461_v49, %v233_v43  ;;  %v319_v45 = vld [vmem:[#allocation6 + $0x278] sm:$0xff]  ;;  %v381_v61 = vld [vmem:[#allocation6 + $0x468] sm:$0xff] }
  0x69   :  { %633 = vmatpush.msra.mxu0 %v327_v36  ;;  %674 = vmatpush.msra.mxu2 %v389_v39  ;;  %v415_v62 = vld [vmem:[#allocation6 + $0x578] sm:$0xff]  ;;  %v317_v40 = vld [vmem:[#allocation6 + $0x268] sm:$0xff] }
  0x6a   :  { %652 = vmatpush.msra.mxu1 %v361_v38  ;;  %693 = vmatpush.msra.mxu3 %v423_v46  ;;  %v351_v63 = vld [vmem:[#allocation6 + $0x378] sm:$0xff]  ;;  %v413_v1 = vld [vmem:[#allocation6 + $0x568] sm:$0xff] }
  0x6b   :  { %634 = vmatpush.msra.mxu0 %v325_v33  ;;  %675 = vmatpush.msra.mxu2 %v387_v48  ;;  %v379_v0 = vld [vmem:[#allocation6 + $0x458] sm:$0xff]  ;;  %v349_v3 = vld [vmem:[#allocation6 + $0x368] sm:$0xff] }
  0x6c   :  { %653 = vmatpush.msra.mxu1 %v359_v47  ;;  %694 = vmatpush.msra.mxu3 %v421_v50  ;;  %v315_v2 = vld [vmem:[#allocation6 + $0x258] sm:$0xff]  ;;  %v377_v5 = vld [vmem:[#allocation6 + $0x448] sm:$0xff] }
  0x6d   :  { %585 = vmatmul.f32.vlgmr.msrb.gmra.mxu1 %v3587_v54  ;;  %635 = vmatpush.msra.mxu0 %v323_v51  ;;  %v411_v6 = vld [vmem:[#allocation6 + $0x558] sm:$0xff]  ;;  %v313_v7 = vld [vmem:[#allocation6 + $0x248] sm:$0xff] }
  0x6e   :  { %654 = vmatpush.msra.mxu1 %v357_v53  ;;  %676 = vmatpush.msra.mxu2 %v385_v52  ;;  %v347_v8 = vld [vmem:[#allocation6 + $0x358] sm:$0xff]  ;;  %v409_v10 = vld [vmem:[#allocation6 + $0x548] sm:$0xff] }
  0x6f   :  { %695 = vmatpush.msra.mxu3 %v419_v55  ;;  %636 = vmatpush.msra.mxu0 %v321_v56  ;;  %v375_v9 = vld [vmem:[#allocation6 + $0x438] sm:$0xff]  ;;  %v345_v12 = vld [vmem:[#allocation6 + $0x348] sm:$0xff] }
  0x70   :  { %655 = vmatpush.msra.mxu1 %v355_v57  ;;  %677 = vmatpush.msra.mxu2 %v383_v58  ;;  %v311_v11 = vld [vmem:[#allocation6 + $0x238] sm:$0xff]  ;;  %v373_v13 = vld [vmem:[#allocation6 + $0x428] sm:$0xff] }
  0x71   :  { %696 = vmatpush.msra.mxu3 %v417_v59  ;;  %637 = vmatpush.msra.mxu0 %v319_v45  ;;  %v407_v14 = vld [vmem:[#allocation6 + $0x538] sm:$0xff]  ;;  %v309_v41 = vld [vmem:[#allocation6 + $0x228] sm:$0xff] }
  0x72   :  { %656 = vmatpush.msra.mxu1 %v353_v60  ;;  %678 = vmatpush.msra.mxu2 %v381_v61  ;;  %v343_v15 = vld [vmem:[#allocation6 + $0x338] sm:$0xff]  ;;  %v405_v18 = vld [vmem:[#allocation6 + $0x528] sm:$0xff] }
  0x73   :  { %697 = vmatpush.msra.mxu3 %v415_v62  ;;  %638 = vmatpush.msra.mxu0 %v317_v40  ;;  %v371_v17 = vld [vmem:[#allocation6 + $0x418] sm:$0xff]  ;;  %v341_v20 = vld [vmem:[#allocation6 + $0x328] sm:$0xff] }
  0x74   :  { %657 = vmatpush.msra.mxu1 %v351_v63  ;;  %679 = vmatpush.msra.mxu2 %v379_v0  ;;  %v307_v19 = vld [vmem:[#allocation6 + $0x218] sm:$0xff]  ;;  %v305_v23 = vld [vmem:[#allocation6 + $0x208] sm:$0xff] }
  0x75   :  { %698 = vmatpush.msra.mxu3 %v413_v1  ;;  %639 = vmatpush.msra.mxu0 %v315_v2  ;;  %v403_v22 = vld [vmem:[#allocation6 + $0x518] sm:$0xff]  ;;  %v401_v25 = vld [vmem:[#allocation6 + $0x508] sm:$0xff] }
  0x76   :  { %658 = vmatpush.msra.mxu1 %v349_v3  ;;  %680 = vmatpush.msra.mxu2 %v377_v5  ;;  %v339_v24 = vld [vmem:[#allocation6 + $0x318] sm:$0xff]  ;;  %v1131_v29 = vld [vmem:[#allocation9 + $0xd20] sm:$0xff]  ;;  %v1132_v30 = vld [vmem:[#allocation9 + $0xd28] sm:$0xff] }
  0x77   :  { %699 = vmatpush.msra.mxu3 %v411_v6  ;;  %605 = vmatmul.f32.vlgmr.msrb.gmra.mxu2 %v3529_v21  ;;  %v369_v21 = vld [vmem:[#allocation6 + $0x408] sm:$0xff]  ;;  %v1161_v26 = vld [vmem:[#allocation9 + $0xe10] sm:$0xff]  ;;  %v1162_v28 = vld [vmem:[#allocation9 + $0xe18] sm:$0xff] }
  0x78   :  { %640 = vmatpush.msra.mxu0 %v313_v7  ;;  %659 = vmatpush.msra.mxu1 %v347_v8  ;;  %v1101_v27 = vld [vmem:[#allocation9 + $0xc30] sm:$0xff]  ;;  %v1102_v31 = vld [vmem:[#allocation9 + $0xc38] sm:$0xff]  ;;  %v1071_v32 = vld [vmem:[#allocation9 + $0xb40] sm:$0xff] }
  0x79   :  { %681 = vmatpush.msra.mxu2 %v375_v9  ;;  %700 = vmatpush.msra.mxu3 %v409_v10  ;;  %v1072_v34 = vld [vmem:[#allocation9 + $0xb48] sm:$0xff]  ;;  %v1641_v35 = vld [vmem:[#allocation9 + $0x1d10] sm:$0xff]  ;;  %v1642_v36 = vld [vmem:[#allocation9 + $0x1d18] sm:$0xff] }
  0x7a   :  { %641 = vmatpush.msra.mxu0 %v311_v11  ;;  %625 = vmatmul.f32.vlgmr.msrb.gmra.mxu3 %v3574_v16  ;;  %v337_v16 = vld [vmem:[#allocation6 + $0x308] sm:$0xff]  ;;  %v1581_v44 = vld [vmem:[#allocation9 + $0x1b30] sm:$0xff]  ;;  %v1582_v46 = vld [vmem:[#allocation9 + $0x1b38] sm:$0xff] }
  0x7b   :  { %660 = vmatpush.msra.mxu1 %v345_v12  ;;  %682 = vmatpush.msra.mxu2 %v373_v13  ;;  %v1611_v38 = vld [vmem:[#allocation9 + $0x1c20] sm:$0xff]  ;;  %v1612_v39 = vld [vmem:[#allocation9 + $0x1c28] sm:$0xff]  ;;  %v981_v33 = vld [vmem:[#allocation9 + $0x870] sm:$0xff] }
  0x7c   :  { %701 = vmatpush.msra.mxu3 %v407_v14  ;;  %642 = vmatpush.msra.mxu0 %v309_v41  ;;  %v1012_v43 = vld [vmem:[#allocation9 + $0x968] sm:$0xff]  ;;  %v982_v47 = vld [vmem:[#allocation9 + $0x878] sm:$0xff]  ;;  %v1551_v48 = vld [vmem:[#allocation9 + $0x1a40] sm:$0xff] }
  0x7d   :  { %661 = vmatpush.msra.mxu1 %v343_v15  ;;  %683 = vmatpush.msra.mxu2 %v371_v17  ;;  %v1552_v49 = vld [vmem:[#allocation9 + $0x1a48] sm:$0xff]  ;;  %v951_v50 = vld [vmem:[#allocation9 + $0x780] sm:$0xff]  ;;  %v1521_v53 = vld [vmem:[#allocation9 + $0x1950] sm:$0xff] }
  0x7e   :  { %702 = vmatpush.msra.mxu3 %v405_v18  ;;  %643 = vmatpush.msra.mxu0 %v307_v19  ;;  %v952_v51 = vld [vmem:[#allocation9 + $0x788] sm:$0xff]  ;;  %v921_v52 = vld [vmem:[#allocation9 + $0x690] sm:$0xff]  ;;  %v922_v55 = vld [vmem:[#allocation9 + $0x698] sm:$0xff] }
  0x7f   :  { %662 = vmatpush.msra.mxu1 %v341_v20  ;;  %684 = vmatpush.msra.mxu2 %v369_v21  ;;  %v891_v56 = vld [vmem:[#allocation9 + $0x5a0] sm:$0xff]  ;;  %v892_v57 = vld [vmem:[#allocation9 + $0x5a8] sm:$0xff]  ;;  %v861_v58 = vld [vmem:[#allocation9 + $0x4b0] sm:$0xff] }
  0x80   :  { %703 = vmatpush.msra.mxu3 %v403_v22  ;;  %685 = vmatmul.f32.vlgmr.msra.gmra.mxu2 %v3581_v37  ;;  %v1042_v37 = vld [vmem:[#allocation9 + $0xa58] sm:$0xff]  ;;  %v831_v45 = vld [vmem:[#allocation9 + $0x3c0] sm:$0xff]  ;;  %v832_v60 = vld [vmem:[#allocation9 + $0x3c8] sm:$0xff] }
  0x81   :  { %644 = vmatpush.msra.mxu0 %v305_v23  ;;  %663 = vmatpush.msra.mxu1 %v339_v24  ;;  %v862_v59 = vld [vmem:[#allocation9 + $0x4b8] sm:$0xff]  ;;  %v801_v61 = vld [vmem:[#allocation9 + $0x2d0] sm:$0xff]  ;;  %v771_v40 = vld [vmem:[#allocation9 + $0x1e0] sm:$0xff] }
  0x82   :  { %704 = vmatpush.msra.mxu3 %v401_v25  ;;  %645 = vmatmul.f32.vlgmr.msra.gmra.mxu0 %v3511_v4  ;;  %v1041_v4 = vld [vmem:[#allocation9 + $0xa50] sm:$0xff]  ;;  %v802_v62 = vld [vmem:[#allocation9 + $0x2d8] sm:$0xff]  ;;  %v772_v63 = vld [vmem:[#allocation9 + $0x1e8] sm:$0xff] }
  0x83   :  { %705 = vmatmul.f32.vlgmr.msra.gmra.mxu3 %v3587_v54  ;;  %664 = vmatpush.msra.mxu1 %v337_v16  ;;  %v1522_v54 = vld [vmem:[#allocation9 + $0x1958] sm:$0xff]  ;;  %v741_v0 = vld [vmem:[#allocation9 + $0xf0] sm:$0xff]  ;;  %v711_v2 = vld [vmem:[#allocation9] sm:$0xff] }
  0x84   :  { %1739 = vmatpush.msrb.mxu0 %v1161_v26  ;;  %665 = vmatmul.f32.vlgmr.msra.gmra.mxu1 %v3542_v42  ;;  %v1011_v42 = vld [vmem:[#allocation9 + $0x960] sm:$0xff]  ;;  %v742_v1 = vld [vmem:[#allocation9 + $0xf8] sm:$0xff]  ;;  %v712_v3 = vld [vmem:[#allocation9 + $0x8] sm:$0xff] }
  0x85   :  { %1779 = vmatpush.msrb.mxu2 %v1162_v28  ;;  %1759 = vmatpush.msrb.mxu1 %v1641_v35  ;;  %v1163_v5 = vld [vmem:[#allocation9 + $0xe20] sm:$0xff]  ;;  %v1164_v6 = vld [vmem:[#allocation9 + $0xe28] sm:$0xff]  ;;  %v1133_v7 = vld [vmem:[#allocation9 + $0xd30] sm:$0xff] }
  0x86   :  { %1740 = vmatpush.msrb.mxu0 %v1131_v29  ;;  %1799 = vmatpush.msrb.mxu3 %v1642_v36  ;;  %v1134_v8 = vld [vmem:[#allocation9 + $0xd38] sm:$0xff]  ;;  %v1103_v9 = vld [vmem:[#allocation9 + $0xc40] sm:$0xff]  ;;  %v1104_v10 = vld [vmem:[#allocation9 + $0xc48] sm:$0xff] }
  0x87   :  { %1780 = vmatpush.msrb.mxu2 %v1132_v30  ;;  %1760 = vmatpush.msrb.mxu1 %v1611_v38  ;;  %v1073_v11 = vld [vmem:[#allocation9 + $0xb50] sm:$0xff]  ;;  %v1074_v12 = vld [vmem:[#allocation9 + $0xb58] sm:$0xff]  ;;  %v1043_v13 = vld [vmem:[#allocation9 + $0xa60] sm:$0xff] }
  0x88   :  { %1741 = vmatpush.msrb.mxu0 %v1101_v27  ;;  %1800 = vmatpush.msrb.mxu3 %v1612_v39  ;;  %v1044_v14 = vld [vmem:[#allocation9 + $0xa68] sm:$0xff]  ;;  %v1013_v41 = vld [vmem:[#allocation9 + $0x970] sm:$0xff]  ;;  %v1014_v15 = vld [vmem:[#allocation9 + $0x978] sm:$0xff] }
  0x89   :  { %1781 = vmatpush.msrb.mxu2 %v1102_v31  ;;  %1761 = vmatpush.msrb.mxu1 %v1581_v44  ;;  %v983_v17 = vld [vmem:[#allocation9 + $0x880] sm:$0xff]  ;;  %v984_v18 = vld [vmem:[#allocation9 + $0x888] sm:$0xff]  ;;  %v953_v19 = vld [vmem:[#allocation9 + $0x790] sm:$0xff] }
  0x8a   :  { %1742 = vmatpush.msrb.mxu0 %v1071_v32  ;;  %1801 = vmatpush.msrb.mxu3 %v1582_v46  ;;  %v954_v20 = vld [vmem:[#allocation9 + $0x798] sm:$0xff]  ;;  %v1491_v21 = vld [vmem:[#allocation9 + $0x1860] sm:$0xff]  ;;  %v1492_v22 = vld [vmem:[#allocation9 + $0x1868] sm:$0xff] }
  0x8b   :  { %1782 = vmatpush.msrb.mxu2 %v1072_v34  ;;  %1762 = vmatpush.msrb.mxu1 %v1551_v48  ;;  %v923_v23 = vld [vmem:[#allocation9 + $0x6a0] sm:$0xff]  ;;  %v924_v24 = vld [vmem:[#allocation9 + $0x6a8] sm:$0xff]  ;;  %v1461_v25 = vld [vmem:[#allocation9 + $0x1770] sm:$0xff] }
  0x8c   :  { %1743 = vmatpush.msrb.mxu0 %v1041_v4  ;;  %1802 = vmatpush.msrb.mxu3 %v1552_v49  ;;  %v1462_v16 = vld [vmem:[#allocation9 + $0x1778] sm:$0xff]  ;;  %v893_v26 = vld [vmem:[#allocation9 + $0x5b0] sm:$0xff]  ;;  %v1431_v29 = vld [vmem:[#allocation9 + $0x1680] sm:$0xff] }
  0x8d   :  { %1783 = vmatpush.msrb.mxu2 %v1042_v37  ;;  %1763 = vmatpush.msrb.mxu1 %v1521_v53  ;;  %v894_v28 = vld [vmem:[#allocation9 + $0x5b8] sm:$0xff]  ;;  %v1432_v30 = vld [vmem:[#allocation9 + $0x1688] sm:$0xff]  ;;  %v863_v27 = vld [vmem:[#allocation9 + $0x4c0] sm:$0xff] }
  0x8e   :  { %1744 = vmatpush.msrb.mxu0 %v1011_v42  ;;  %1803 = vmatpush.msrb.mxu3 %v1522_v54  ;;  %v864_v31 = vld [vmem:[#allocation9 + $0x4c8] sm:$0xff]  ;;  %v1401_v32 = vld [vmem:[#allocation9 + $0x1590] sm:$0xff]  ;;  %v1402_v34 = vld [vmem:[#allocation9 + $0x1598] sm:$0xff] }
  0x8f   :  { %1784 = vmatpush.msrb.mxu2 %v1012_v43  ;;  %1764 = vmatpush.msrb.mxu1 %v1491_v21  ;;  %v833_v35 = vld [vmem:[#allocation9 + $0x3d0] sm:$0xff]  ;;  %v834_v36 = vld [vmem:[#allocation9 + $0x3d8] sm:$0xff]  ;;  %v1371_v4 = vld [vmem:[#allocation9 + $0x14a0] sm:$0xff] }
  0x90   :  { %1745 = vmatpush.msrb.mxu0 %v981_v33  ;;  %1804 = vmatpush.msrb.mxu3 %v1492_v22  ;;  %v1372_v37 = vld [vmem:[#allocation9 + $0x14a8] sm:$0xff]  ;;  %v803_v38 = vld [vmem:[#allocation9 + $0x2e0] sm:$0xff]  ;;  %v1341_v42 = vld [vmem:[#allocation9 + $0x13b0] sm:$0xff] }
  0x91   :  { %1785 = vmatpush.msrb.mxu2 %v982_v47  ;;  %1765 = vmatpush.msrb.mxu1 %v1461_v25  ;;  %v804_v39 = vld [vmem:[#allocation9 + $0x2e8] sm:$0xff]  ;;  %v1342_v43 = vld [vmem:[#allocation9 + $0x13b8] sm:$0xff]  ;;  %v773_v44 = vld [vmem:[#allocation9 + $0x1f0] sm:$0xff] }
  0x92   :  { %1746 = vmatpush.msrb.mxu0 %v951_v50  ;;  %1805 = vmatpush.msrb.mxu3 %v1462_v16  ;;  %v774_v46 = vld [vmem:[#allocation9 + $0x1f8] sm:$0xff]  ;;  %v1311_v33 = vld [vmem:[#allocation9 + $0x12c0] sm:$0xff]  ;;  %v1312_v47 = vld [vmem:[#allocation9 + $0x12c8] sm:$0xff] }
  0x93   :  { %1786 = vmatpush.msrb.mxu2 %v952_v51  ;;  %1766 = vmatpush.msrb.mxu1 %v1431_v29  ;;  %v743_v48 = vld [vmem:[#allocation9 + $0x100] sm:$0xff]  ;;  %v744_v49 = vld [vmem:[#allocation9 + $0x108] sm:$0xff]  ;;  %v1281_v50 = vld [vmem:[#allocation9 + $0x11d0] sm:$0xff] }
  0x94   :  { %1747 = vmatpush.msrb.mxu0 %v921_v52  ;;  %1806 = vmatpush.msrb.mxu3 %v1432_v30  ;;  %v1282_v51 = vld [vmem:[#allocation9 + $0x11d8] sm:$0xff]  ;;  %v713_v53 = vld [vmem:[#allocation9 + $0x10] sm:$0xff]  ;;  %v1251_v52 = vld [vmem:[#allocation9 + $0x10e0] sm:$0xff] }
  0x95   :  { %1787 = vmatpush.msrb.mxu2 %v922_v55  ;;  %1767 = vmatpush.msrb.mxu1 %v1401_v32  ;;  %v714_v54 = vld [vmem:[#allocation9 + $0x18] sm:$0xff]  ;;  %v1252_v55 = vld [vmem:[#allocation9 + $0x10e8] sm:$0xff]  ;;  %v1313_v30 = vld [vmem:[#allocation9 + $0x12d0] sm:$0xff] }
  0x96   :  { %1748 = vmatpush.msrb.mxu0 %v891_v56  ;;  %1807 = vmatpush.msrb.mxu3 %v1402_v34  ;;  %v1221_v56 = vld [vmem:[#allocation9 + $0xff0] sm:$0xff]  ;;  %v1404_v21 = vld [vmem:[#allocation9 + $0x15a8] sm:$0xff]  ;;  %v1374_v25 = vld [vmem:[#allocation9 + $0x14b8] sm:$0xff] }
  0x97   :  { %1788 = vmatpush.msrb.mxu2 %v892_v57  ;;  %1768 = vmatpush.msrb.mxu1 %v1371_v4  ;;  %v1222_v57 = vld [vmem:[#allocation9 + $0xff8] sm:$0xff]  ;;  %v1283_v32 = vld [vmem:[#allocation9 + $0x11e0] sm:$0xff]  ;;  %v1284_v34 = vld [vmem:[#allocation9 + $0x11e8] sm:$0xff] }
  0x98   :  { %1749 = vmatpush.msrb.mxu0 %v861_v58  ;;  %1808 = vmatpush.msrb.mxu3 %v1372_v37  ;;  %v1191_v58 = vld [vmem:[#allocation9 + $0xf00] sm:$0xff]  ;;  %v1166_v4 = vld [vmem:[#allocation9 + $0xe38] sm:$0xff] }
  0x99   :  { %1789 = vmatpush.msrb.mxu2 %v862_v59  ;;  %1769 = vmatpush.msrb.mxu1 %v1341_v42  ;;  %v1192_v59 = vld [vmem:[#allocation9 + $0xf08] sm:$0xff]  ;;  %v1135_v37 = vld [vmem:[#allocation9 + $0xd40] sm:$0xff]  ;;  %v1254_v42 = vld [vmem:[#allocation9 + $0x10f8] sm:$0xff] }
  0x9a   :  { %1750 = vmatpush.msrb.mxu0 %v831_v45  ;;  %1809 = vmatpush.msrb.mxu3 %v1342_v43  ;;  %v1643_v45 = vld [vmem:[#allocation9 + $0x1d20] sm:$0xff]  ;;  %v1105_v43 = vld [vmem:[#allocation9 + $0xc50] sm:$0xff] }
  0x9b   :  { %1790 = vmatpush.msrb.mxu2 %v832_v60  ;;  %1770 = vmatpush.msrb.mxu1 %v1311_v33  ;;  %v1644_v60 = vld [vmem:[#allocation9 + $0x1d28] sm:$0xff] }
  0x9c   :  { %1751 = vmatpush.msrb.mxu0 %v801_v61  ;;  %1810 = vmatpush.msrb.mxu3 %v1312_v47  ;;  %v3596_v61 = vld [vmem:[#allocation7] sm:$0x3]  ;;  %v1224_v33 = vld [vmem:[#allocation9 + $0x1008] sm:$0xff]  ;;  %v1075_v47 = vld [vmem:[#allocation9 + $0xb60] sm:$0xff] }
  0x9d   :  { %1791 = vmatpush.msrb.mxu2 %v802_v62  ;;  %1771 = vmatpush.msrb.mxu1 %v1281_v50  ;;  %v1613_v62 = vld [vmem:[#allocation9 + $0x1c30] sm:$0xff]  ;;  %v1194_v50 = vld [vmem:[#allocation9 + $0xf18] sm:$0xff] }
  0x9e   :  { %1752 = vmatpush.msrb.mxu0 %v771_v40  ;;  %1811 = vmatpush.msrb.mxu3 %v1282_v51  ;;  %v1614_v40 = vld [vmem:[#allocation9 + $0x1c38] sm:$0xff]  ;;  %v1045_v51 = vld [vmem:[#allocation9 + $0xa70] sm:$0xff] }
  0x9f   :  { %1792 = vmatpush.msrb.mxu2 %v772_v63  ;;  %1772 = vmatpush.msrb.mxu1 %v1251_v52  ;;  %v1583_v63 = vld [vmem:[#allocation9 + $0x1b40] sm:$0xff]  ;;  %v1016_v52 = vld [vmem:[#allocation9 + $0x988] sm:$0xff] }
  0xa0   :  { %1753 = vmatpush.msrb.mxu0 %v741_v0  ;;  %1812 = vmatpush.msrb.mxu3 %v1252_v55  ;;  %v1584_v0 = vld [vmem:[#allocation9 + $0x1b48] sm:$0xff]  ;;  %v435_v55 = vperm.slane %v3596_v61, 1 }
  0xa1   :  { %1793 = vmatpush.msrb.mxu2 %v742_v1  ;;  %1773 = vmatpush.msrb.mxu1 %v1221_v56  ;;  %v434_v1 = vperm.slane %v3596_v61, 0  ;;  %v985_v56 = vld [vmem:[#allocation9 + $0x890] sm:$0xff] }
  0xa2   :  { %1754 = vmatpush.msrb.mxu0 %v711_v2  ;;  %1813 = vmatpush.msrb.mxu3 %v1222_v57  ;;  %v986_v57 = vld [vmem:[#allocation9 + $0x898] sm:$0xff] }
  0xa3   :  { %1794 = vmatpush.msrb.mxu2 %v712_v3  ;;  %1774 = vmatpush.msrb.mxu1 %v1191_v58  ;;  %v1553_v3 = vld [vmem:[#allocation9 + $0x1a50] sm:$0xff]  ;;  %v955_v58 = vld [vmem:[#allocation9 + $0x7a0] sm:$0xff] }
  0xa4   :  { %1819 = vmatpush.msra.mxu0 %v1163_v5  ;;  %1814 = vmatpush.msrb.mxu3 %v1192_v59  ;;  %v1554_v5 = vld [vmem:[#allocation9 + $0x1a58] sm:$0xff]  ;;  %v956_v59 = vld [vmem:[#allocation9 + $0x7a8] sm:$0xff] }
  0xa5   :  { %1859 = vmatpush.msra.mxu2 %v1164_v6  ;;  %1839 = vmatpush.msra.mxu1 %v1643_v45  ;;  %v1523_v6 = vld [vmem:[#allocation9 + $0x1960] sm:$0xff] }
  0xa6   :  { %1820 = vmatpush.msra.mxu0 %v1133_v7  ;;  %1879 = vmatpush.msra.mxu3 %v1644_v60  ;;  %v1524_v7 = vld [vmem:[#allocation9 + $0x1968] sm:$0xff] }
  0xa7   :  { %1860 = vmatpush.msra.mxu2 %v1134_v8  ;;  %1840 = vmatpush.msra.mxu1 %v1613_v62  ;;  %v925_v62 = vld [vmem:[#allocation9 + $0x6b0] sm:$0xff] }
  0xa8   :  { %1821 = vmatpush.msra.mxu0 %v1103_v9  ;;  %1880 = vmatpush.msra.mxu3 %v1614_v40  ;;  %v1493_v9 = vld [vmem:[#allocation9 + $0x1870] sm:$0xff]  ;;  %v926_v40 = vld [vmem:[#allocation9 + $0x6b8] sm:$0xff] }
  0xa9   :  { %1861 = vmatpush.msra.mxu2 %v1104_v10  ;;  %1841 = vmatpush.msra.mxu1 %v1583_v63  ;;  %v1494_v10 = vld [vmem:[#allocation9 + $0x1878] sm:$0xff] }
  0xaa   :  { %1822 = vmatpush.msra.mxu0 %v1073_v11  ;;  %1881 = vmatpush.msra.mxu3 %v1584_v0  ;;  %v895_v0 = vld [vmem:[#allocation9 + $0x5c0] sm:$0xff] }
  0xab   :  { %1862 = vmatpush.msra.mxu2 %v1074_v12  ;;  %1842 = vmatpush.msra.mxu1 %v1553_v3  ;;  %v865_v3 = vld [vmem:[#allocation9 + $0x4d0] sm:$0xff] }
  0xac   :  { %1823 = vmatpush.msra.mxu0 %v1043_v13  ;;  %1882 = vmatpush.msra.mxu3 %v1554_v5  ;;  %v1463_v13 = vld [vmem:[#allocation9 + $0x1780] sm:$0xff]  ;;  %v866_v5 = vld [vmem:[#allocation9 + $0x4d8] sm:$0xff] }
  0xad   :  { %1863 = vmatpush.msra.mxu2 %v1044_v14  ;;  %1843 = vmatpush.msra.mxu1 %v1523_v6  ;;  %v1464_v14 = vld [vmem:[#allocation9 + $0x1788] sm:$0xff] }
  0xae   :  { %1824 = vmatpush.msra.mxu0 %v1013_v41  ;;  %1883 = vmatpush.msra.mxu3 %v1524_v7 }
  0xaf   :  { %1864 = vmatpush.msra.mxu2 %v1014_v15  ;;  %1844 = vmatpush.msra.mxu1 %v1493_v9  ;;  %v836_v9 = vld [vmem:[#allocation9 + $0x3e8] sm:$0xff] }
  0xb0   :  { %1825 = vmatpush.msra.mxu0 %v983_v17  ;;  %1884 = vmatpush.msra.mxu3 %v1494_v10  ;;  %v1433_v17 = vld [vmem:[#allocation9 + $0x1690] sm:$0xff] }
  0xb1   :  { %1865 = vmatpush.msra.mxu2 %v984_v18  ;;  %1845 = vmatpush.msra.mxu1 %v1463_v13  ;;  %v1434_v18 = vld [vmem:[#allocation9 + $0x1698] sm:$0xff] }
  0xb2   :  { %1826 = vmatpush.msra.mxu0 %v953_v19  ;;  %1885 = vmatpush.msra.mxu3 %v1464_v14  ;;  %v806_v13 = vld [vmem:[#allocation9 + $0x2f8] sm:$0xff] }
  0xb3   :  { %1866 = vmatpush.msra.mxu2 %v954_v20  ;;  %1846 = vmatpush.msra.mxu1 %v1433_v17  ;;  %v1403_v20 = vld [vmem:[#allocation9 + $0x15a0] sm:$0xff]  ;;  %v776_v17 = vld [vmem:[#allocation9 + $0x208] sm:$0xff] }
  0xb4   :  { %1827 = vmatpush.msra.mxu0 %v923_v23  ;;  %1886 = vmatpush.msra.mxu3 %v1434_v18 }
  0xb5   :  { %1867 = vmatpush.msra.mxu2 %v924_v24  ;;  %1847 = vmatpush.msra.mxu1 %v1403_v20  ;;  %v1373_v24 = vld [vmem:[#allocation9 + $0x14b0] sm:$0xff]  ;;  %v746_v20 = vld [vmem:[#allocation9 + $0x118] sm:$0xff] }
  0xb6   :  { %1828 = vmatpush.msra.mxu0 %v893_v26  ;;  %1887 = vmatpush.msra.mxu3 %v1404_v21  ;;  %v1343_v26 = vld [vmem:[#allocation9 + $0x13c0] sm:$0xff] }
  0xb7   :  { %1868 = vmatpush.msra.mxu2 %v894_v28  ;;  %1848 = vmatpush.msra.mxu1 %v1373_v24  ;;  %v1344_v28 = vld [vmem:[#allocation9 + $0x13c8] sm:$0xff]  ;;  %v715_v24 = vld [vmem:[#allocation9 + $0x20] sm:$0xff] }
  0xb8   :  { %1829 = vmatpush.msra.mxu0 %v863_v27  ;;  %1888 = vmatpush.msra.mxu3 %v1374_v25  ;;  %v1314_v27 = vld [vmem:[#allocation9 + $0x12d8] sm:$0xff]  ;;  %v716_v25 = vld [vmem:[#allocation9 + $0x28] sm:$0xff] }
  0xb9   :  { %1869 = vmatpush.msra.mxu2 %v864_v31  ;;  %1849 = vmatpush.msra.mxu1 %v1343_v26  ;;  %v1168_v26 = vld [vmem:[#allocation9 + $0xe48] sm:$0xff] }
  0xba   :  { %1830 = vmatpush.msra.mxu0 %v833_v35  ;;  %1889 = vmatpush.msra.mxu3 %v1344_v28  ;;  %v1615_v28 = vld [vmem:[#allocation9 + $0x1c40] sm:$0xff] }
  0xbb   :  { %1870 = vmatpush.msra.mxu2 %v834_v36  ;;  %1850 = vmatpush.msra.mxu1 %v1313_v30  ;;  %v1165_v36 = vld [vmem:[#allocation9 + $0xe30] sm:$0xff] }
  0xbc   :  { %1831 = vmatpush.msra.mxu0 %v803_v38  ;;  %1890 = vmatpush.msra.mxu3 %v1314_v27  ;;  %v1136_v38 = vld [vmem:[#allocation9 + $0xd48] sm:$0xff]  ;;  %v1137_v30 = vld [vmem:[#allocation9 + $0xd50] sm:$0xff]  ;;  %v1138_v27 = vld [vmem:[#allocation9 + $0xd58] sm:$0xff] }
  0xbd   :  { %1871 = vmatpush.msra.mxu2 %v804_v39  ;;  %1851 = vmatpush.msra.mxu1 %v1283_v32  ;;  %v1253_v39 = vld [vmem:[#allocation9 + $0x10f0] sm:$0xff]  ;;  %v1586_v32 = vld [vmem:[#allocation9 + $0x1b58] sm:$0xff] }
  0xbe   :  { %1832 = vmatpush.msra.mxu0 %v773_v44  ;;  %1891 = vmatpush.msra.mxu3 %v1284_v34  ;;  %v1106_v44 = vld [vmem:[#allocation9 + $0xc58] sm:$0xff]  ;;  %v1107_v34 = vld [vmem:[#allocation9 + $0xc60] sm:$0xff] }
  0xbf   :  { %1872 = vmatpush.msra.mxu2 %v774_v46  ;;  %1852 = vmatpush.msra.mxu1 %v1253_v39  ;;  %v1223_v46 = vld [vmem:[#allocation9 + $0x1000] sm:$0xff]  ;;  %v1078_v39 = vld [vmem:[#allocation9 + $0xb78] sm:$0xff] }
  0xc0   :  { %1833 = vmatpush.msra.mxu0 %v743_v48  ;;  %1892 = vmatpush.msra.mxu3 %v1254_v42  ;;  %v1076_v48 = vld [vmem:[#allocation9 + $0xb68] sm:$0xff]  ;;  %v1047_v42 = vld [vmem:[#allocation9 + $0xa80] sm:$0xff] }
  0xc1   :  { %1873 = vmatpush.msra.mxu2 %v744_v49  ;;  %1853 = vmatpush.msra.mxu1 %v1223_v46  ;;  %v1193_v49 = vld [vmem:[#allocation9 + $0xf10] sm:$0xff]  ;;  %v1526_v46 = vld [vmem:[#allocation9 + $0x1978] sm:$0xff] }
  0xc2   :  { %1834 = vmatpush.msra.mxu0 %v713_v53  ;;  %1893 = vmatpush.msra.mxu3 %v1224_v33  ;;  %v1046_v53 = vld [vmem:[#allocation9 + $0xa78] sm:$0xff]  ;;  %v1017_v33 = vld [vmem:[#allocation9 + $0x990] sm:$0xff] }
  0xc3   :  { %1874 = vmatpush.msra.mxu2 %v714_v54  ;;  %1854 = vmatpush.msra.mxu1 %v1193_v49  ;;  %v1015_v54 = vld [vmem:[#allocation9 + $0x980] sm:$0xff]  ;;  %v1496_v49 = vld [vmem:[#allocation9 + $0x1888] sm:$0xff] }
  0xc4   :  { %1894 = vmatpush.msra.mxu3 %v1194_v50  ;;  %v987_v50 = vld [vmem:[#allocation9 + $0x8a0] sm:$0xff] }
  0xd4   :  { %v486_v2 = vpop.f32.mrf.mxu0 }
  0xd5   :  { %v487_v8 = vadd.f32 %v486_v2, %v434_v1  ;;  %v896_v1 = vld [vmem:[#allocation9 + $0x5c8] sm:$0xff] }
  0xd7   :  { %v526_v12 = vpop.f32.mrf.mxu2 }
  0xdd   :  { %v546_v15 = vpop.f32.mrf.mxu3 }
  0xdf   :  { %v506_v11 = vpop.f32.mrf.mxu1 }
  0xe0   :  { %v507_v41 = vadd.f32 %v506_v11, %v487_v8  ;;  %v835_v8 = vld [vmem:[#allocation9 + $0x3e0] sm:$0xff] }
  0xe2   :  { %v527_v19 = vadd.f32 %v526_v12, %v507_v41  ;;  %v805_v12 = vld [vmem:[#allocation9 + $0x2f0] sm:$0xff] }
  0xe4   :  { %v547_v22 = vadd.f32 %v546_v15, %v527_v19  ;;  %v566_v23 = vpop.f32.mrf.mxu0  ;;  %v775_v15 = vld [vmem:[#allocation9 + $0x200] sm:$0xff]  ;;  %v745_v19 = vld [vmem:[#allocation9 + $0x110] sm:$0xff] }
  0xe6   :  { %v567_v16 = vadd.f32 %v566_v23, %v547_v22  ;;  %v1645_v22 = vld [vmem:[#allocation9 + $0x1d30] sm:$0xff]  ;;  %v1646_v23 = vld [vmem:[#allocation9 + $0x1d38] sm:$0xff] }
  0xea   :  { %v586_v29 = vpop.f32.mrf.mxu1 }
  0xeb   :  { %v587_v31 = vadd.f32 %v586_v29, %v567_v16  ;;  %v1167_v16 = vld [vmem:[#allocation9 + $0xe40] sm:$0xff]  ;;  %v1616_v29 = vld [vmem:[#allocation9 + $0x1c48] sm:$0xff] }
  0xed   :  { %v3599_v35 = vmax.f32 %v587_v31, 0.0  ;;  %v1585_v31 = vld [vmem:[#allocation9 + $0x1b50] sm:$0xff] }
  0xef   :  { %1755 = vmatmul.f32.vlgmr.msrb.gmra.mxu0 %v3599_v35  ;;  %1795 = vmatmul.f32.vlgmr.msrb.gmra.mxu2 %v3599_v35 }
  0xf0   :  { %1899 = vmatpush.msrb.mxu0 %v1165_v36  ;;  %1939 = vmatpush.msrb.mxu2 %v1166_v4  ;;  %v1108_v36 = vld [vmem:[#allocation9 + $0xc68] sm:$0xff]  ;;  %v1555_v4 = vld [vmem:[#allocation9 + $0x1a60] sm:$0xff] }
  0xf2   :  { %1900 = vmatpush.msrb.mxu0 %v1135_v37  ;;  %1940 = vmatpush.msrb.mxu2 %v1136_v38  ;;  %v1556_v37 = vld [vmem:[#allocation9 + $0x1a68] sm:$0xff]  ;;  %v1077_v38 = vld [vmem:[#allocation9 + $0xb70] sm:$0xff] }
  0xf4   :  { %1901 = vmatpush.msrb.mxu0 %v1105_v43  ;;  %1941 = vmatpush.msrb.mxu2 %v1106_v44  ;;  %v1048_v43 = vld [vmem:[#allocation9 + $0xa88] sm:$0xff]  ;;  %v1525_v44 = vld [vmem:[#allocation9 + $0x1970] sm:$0xff] }
  0xf6   :  { %1902 = vmatpush.msrb.mxu0 %v1075_v47  ;;  %1942 = vmatpush.msrb.mxu2 %v1076_v48  ;;  %v1018_v47 = vld [vmem:[#allocation9 + $0x998] sm:$0xff]  ;;  %v1495_v48 = vld [vmem:[#allocation9 + $0x1880] sm:$0xff] }
  0xf7   :  { %1835 = vmatmul.f32.vlgmr.msra.gmra.mxu0 %v3599_v35  ;;  %1875 = vmatmul.f32.vlgmr.msra.gmra.mxu2 %v3599_v35 }
  0xf8   :  { %1903 = vmatpush.msrb.mxu0 %v1045_v51  ;;  %1943 = vmatpush.msrb.mxu2 %v1046_v53  ;;  %v988_v51 = vld [vmem:[#allocation9 + $0x8a8] sm:$0xff]  ;;  %v1465_v53 = vld [vmem:[#allocation9 + $0x1790] sm:$0xff] }
  0xfa   :  { %1904 = vmatpush.msrb.mxu0 %v1015_v54  ;;  %1944 = vmatpush.msrb.mxu2 %v1016_v52  ;;  %v606_v45 = vpop.f32.mrf.mxu2  ;;  %v1466_v54 = vld [vmem:[#allocation9 + $0x1798] sm:$0xff]  ;;  %v957_v52 = vld [vmem:[#allocation9 + $0x7b0] sm:$0xff] }
  0xfb   :  { %v607_v60 = vadd.f32 %v606_v45, %v435_v55  ;;  %v958_v55 = vld [vmem:[#allocation9 + $0x7b8] sm:$0xff]  ;;  %v1405_v45 = vld [vmem:[#allocation9 + $0x15b0] sm:$0xff] }
  0xfc   :  { %1905 = vmatpush.msrb.mxu0 %v985_v56  ;;  %1945 = vmatpush.msrb.mxu2 %v986_v57  ;;  %v1435_v56 = vld [vmem:[#allocation9 + $0x16a0] sm:$0xff]  ;;  %v1436_v57 = vld [vmem:[#allocation9 + $0x16a8] sm:$0xff] }
  0xfd   :  { %v626_v63 = vpop.f32.mrf.mxu3 }
  0xfe   :  { %1906 = vmatpush.msrb.mxu0 %v955_v58  ;;  %1946 = vmatpush.msrb.mxu2 %v956_v59  ;;  %v627_v2 = vadd.f32 %v626_v63, %v607_v60  ;;  %v927_v58 = vld [vmem:[#allocation9 + $0x6c0] sm:$0xff]  ;;  %v928_v59 = vld [vmem:[#allocation9 + $0x6c8] sm:$0xff]  ;;  %v1406_v60 = vld [vmem:[#allocation9 + $0x15b8] sm:$0xff] }
  0xff   :  { %v646_v61 = vpop.f32.mrf.mxu0  ;;  %v1375_v63 = vld [vmem:[#allocation9 + $0x14c0] sm:$0xff] }
 0x100   :  { %1907 = vmatpush.msrb.mxu0 %v925_v62  ;;  %1947 = vmatpush.msrb.mxu2 %v926_v40  ;;  %v647_v6 = vadd.f32 %v646_v61, %v627_v2  ;;  %v897_v62 = vld [vmem:[#allocation9 + $0x5d0] sm:$0xff]  ;;  %v898_v40 = vld [vmem:[#allocation9 + $0x5d8] sm:$0xff]  ;;  %v868_v2 = vld [vmem:[#allocation9 + $0x4e8] sm:$0xff] }
 0x101   :  { %v666_v7 = vpop.f32.mrf.mxu1  ;;  %v1345_v61 = vld [vmem:[#allocation9 + $0x13d0] sm:$0xff] }
 0x102   :  { %1908 = vmatpush.msrb.mxu0 %v895_v0  ;;  %1948 = vmatpush.msrb.mxu2 %v896_v1  ;;  %v667_v10 = vadd.f32 %v666_v7, %v647_v6  ;;  %v1376_v0 = vld [vmem:[#allocation9 + $0x14c8] sm:$0xff]  ;;  %v867_v1 = vld [vmem:[#allocation9 + $0x4e0] sm:$0xff]  ;;  %v838_v6 = vld [vmem:[#allocation9 + $0x3f8] sm:$0xff] }
 0x103   :  { %v686_v11 = vpop.f32.mrf.mxu2  ;;  %v1315_v7 = vld [vmem:[#allocation9 + $0x12e0] sm:$0xff] }
 0x104   :  { %1909 = vmatpush.msrb.mxu0 %v865_v3  ;;  %1949 = vmatpush.msrb.mxu2 %v866_v5  ;;  %v687_v14 = vadd.f32 %v686_v11, %v667_v10  ;;  %v1346_v3 = vld [vmem:[#allocation9 + $0x13d8] sm:$0xff]  ;;  %v837_v5 = vld [vmem:[#allocation9 + $0x3f0] sm:$0xff]  ;;  %v808_v10 = vld [vmem:[#allocation9 + $0x308] sm:$0xff] }
 0x105   :  { %v1285_v11 = vld [vmem:[#allocation9 + $0x11f0] sm:$0xff] }
 0x106   :  { %1910 = vmatpush.msrb.mxu0 %v835_v8  ;;  %1950 = vmatpush.msrb.mxu2 %v836_v9  ;;  %v706_v41 = vpop.f32.mrf.mxu3  ;;  %v1316_v8 = vld [vmem:[#allocation9 + $0x12e8] sm:$0xff]  ;;  %v807_v9 = vld [vmem:[#allocation9 + $0x300] sm:$0xff] }
 0x107   :  { %v707_v18 = vadd.f32 %v706_v41, %v687_v14  ;;  %v778_v14 = vld [vmem:[#allocation9 + $0x218] sm:$0xff]  ;;  %v1255_v41 = vld [vmem:[#allocation9 + $0x1100] sm:$0xff] }
 0x108   :  { %1911 = vmatpush.msrb.mxu0 %v805_v12  ;;  %1951 = vmatpush.msrb.mxu2 %v806_v13  ;;  %v1286_v12 = vld [vmem:[#allocation9 + $0x11f8] sm:$0xff]  ;;  %v777_v13 = vld [vmem:[#allocation9 + $0x210] sm:$0xff] }
 0x109   :  { %v3606_v21 = vmax.f32 %v707_v18, 0.0  ;;  %v748_v18 = vld [vmem:[#allocation9 + $0x128] sm:$0xff] }
 0x10a   :  { %1912 = vmatpush.msrb.mxu0 %v775_v15  ;;  %1952 = vmatpush.msrb.mxu2 %v776_v17  ;;  %v1256_v15 = vld [vmem:[#allocation9 + $0x1108] sm:$0xff]  ;;  %v747_v17 = vld [vmem:[#allocation9 + $0x120] sm:$0xff] }
 0x10b   :  { %1775 = vmatmul.f32.vlgmr.msrb.gmra.mxu1 %v3606_v21  ;;  %1815 = vmatmul.f32.vlgmr.msrb.gmra.mxu3 %v3606_v21 }
 0x10c   :  { %1913 = vmatpush.msrb.mxu0 %v745_v19  ;;  %1953 = vmatpush.msrb.mxu2 %v746_v20  ;;  %v1225_v19 = vld [vmem:[#allocation9 + $0x1010] sm:$0xff]  ;;  %v1226_v20 = vld [vmem:[#allocation9 + $0x1018] sm:$0xff] }
 0x10d   :  { %1919 = vmatpush.msrb.mxu1 %v1645_v22  ;;  %1959 = vmatpush.msrb.mxu3 %v1646_v23  ;;  %v717_v22 = vld [vmem:[#allocation9 + $0x30] sm:$0xff]  ;;  %v718_v23 = vld [vmem:[#allocation9 + $0x38] sm:$0xff] }
 0x10e   :  { %1914 = vmatpush.msrb.mxu0 %v715_v24  ;;  %1954 = vmatpush.msrb.mxu2 %v716_v25  ;;  %v1169_v24 = vld [vmem:[#allocation9 + $0xe50] sm:$0xff]  ;;  %v1170_v25 = vld [vmem:[#allocation9 + $0xe58] sm:$0xff] }
 0x10f   :  { %1915 = vmatmul.f32.vlgmr.msrb.gmra.mxu0 %v3599_v35  ;;  %1955 = vmatmul.f32.vlgmr.msrb.gmra.mxu2 %v3599_v35 }
 0x110   :  { %1979 = vmatpush.msra.mxu0 %v1167_v16  ;;  %2019 = vmatpush.msra.mxu2 %v1168_v26  ;;  %v1195_v16 = vld [vmem:[#allocation9 + $0xf20] sm:$0xff]  ;;  %v1196_v26 = vld [vmem:[#allocation9 + $0xf28] sm:$0xff] }
 0x111   :  { %1920 = vmatpush.msrb.mxu1 %v1615_v28  ;;  %1960 = vmatpush.msrb.mxu3 %v1616_v29  ;;  %v1139_v28 = vld [vmem:[#allocation9 + $0xd60] sm:$0xff]  ;;  %v1140_v29 = vld [vmem:[#allocation9 + $0xd68] sm:$0xff] }
 0x112   :  { %1980 = vmatpush.msra.mxu0 %v1137_v30  ;;  %2020 = vmatpush.msra.mxu2 %v1138_v27  ;;  %v1109_v30 = vld [vmem:[#allocation9 + $0xc70] sm:$0xff]  ;;  %v1110_v27 = vld [vmem:[#allocation9 + $0xc78] sm:$0xff] }
 0x113   :  { %1921 = vmatpush.msrb.mxu1 %v1585_v31  ;;  %1961 = vmatpush.msrb.mxu3 %v1586_v32  ;;  %v1647_v31 = vld [vmem:[#allocation9 + $0x1d40] sm:$0xff]  ;;  %v1648_v32 = vld [vmem:[#allocation9 + $0x1d48] sm:$0xff] }
 0x114   :  { %1981 = vmatpush.msra.mxu0 %v1107_v34  ;;  %2021 = vmatpush.msra.mxu2 %v1108_v36  ;;  %v1079_v34 = vld [vmem:[#allocation9 + $0xb80] sm:$0xff]  ;;  %v1080_v36 = vld [vmem:[#allocation9 + $0xb88] sm:$0xff] }
 0x115   :  { %1922 = vmatpush.msrb.mxu1 %v1555_v4  ;;  %1962 = vmatpush.msrb.mxu3 %v1556_v37  ;;  %v1617_v4 = vld [vmem:[#allocation9 + $0x1c50] sm:$0xff]  ;;  %v1618_v37 = vld [vmem:[#allocation9 + $0x1c58] sm:$0xff] }
 0x116   :  { %1982 = vmatpush.msra.mxu0 %v1077_v38  ;;  %2022 = vmatpush.msra.mxu2 %v1078_v39  ;;  %v1049_v38 = vld [vmem:[#allocation9 + $0xa90] sm:$0xff]  ;;  %v1050_v39 = vld [vmem:[#allocation9 + $0xa98] sm:$0xff] }
 0x117   :  { %1855 = vmatmul.f32.vlgmr.msra.gmra.mxu1 %v3606_v21  ;;  %1895 = vmatmul.f32.vlgmr.msra.gmra.mxu3 %v3606_v21 }
 0x118   :  { %1983 = vmatpush.msra.mxu0 %v1047_v42  ;;  %2023 = vmatpush.msra.mxu2 %v1048_v43  ;;  %v1587_v42 = vld [vmem:[#allocation9 + $0x1b60] sm:$0xff]  ;;  %v1588_v43 = vld [vmem:[#allocation9 + $0x1b68] sm:$0xff] }
 0x119   :  { %1923 = vmatpush.msrb.mxu1 %v1525_v44  ;;  %1963 = vmatpush.msrb.mxu3 %v1526_v46  ;;  %v1019_v44 = vld [vmem:[#allocation9 + $0x9a0] sm:$0xff]  ;;  %v1020_v46 = vld [vmem:[#allocation9 + $0x9a8] sm:$0xff] }
 0x11a   :  { %1984 = vmatpush.msra.mxu0 %v1017_v33  ;;  %2024 = vmatpush.msra.mxu2 %v1018_v47  ;;  %v1557_v33 = vld [vmem:[#allocation9 + $0x1a70] sm:$0xff]  ;;  %v1558_v47 = vld [vmem:[#allocation9 + $0x1a78] sm:$0xff] }
 0x11b   :  { %1924 = vmatpush.msrb.mxu1 %v1495_v48  ;;  %1964 = vmatpush.msrb.mxu3 %v1496_v49  ;;  %v989_v48 = vld [vmem:[#allocation9 + $0x8b0] sm:$0xff]  ;;  %v990_v49 = vld [vmem:[#allocation9 + $0x8b8] sm:$0xff] }
 0x11c   :  { %1985 = vmatpush.msra.mxu0 %v987_v50  ;;  %2025 = vmatpush.msra.mxu2 %v988_v51  ;;  %v1527_v50 = vld [vmem:[#allocation9 + $0x1980] sm:$0xff]  ;;  %v1528_v51 = vld [vmem:[#allocation9 + $0x1988] sm:$0xff] }
 0x11d   :  { %1925 = vmatpush.msrb.mxu1 %v1465_v53  ;;  %1965 = vmatpush.msrb.mxu3 %v1466_v54  ;;  %v959_v53 = vld [vmem:[#allocation9 + $0x7c0] sm:$0xff]  ;;  %v960_v54 = vld [vmem:[#allocation9 + $0x7c8] sm:$0xff] }
 0x11e   :  { %1986 = vmatpush.msra.mxu0 %v957_v52  ;;  %2026 = vmatpush.msra.mxu2 %v958_v55  ;;  %v1497_v52 = vld [vmem:[#allocation9 + $0x1890] sm:$0xff]  ;;  %v1498_v55 = vld [vmem:[#allocation9 + $0x1898] sm:$0xff] }
 0x11f   :  { %1926 = vmatpush.msrb.mxu1 %v1435_v56  ;;  %1966 = vmatpush.msrb.mxu3 %v1436_v57  ;;  %v929_v56 = vld [vmem:[#allocation9 + $0x6d0] sm:$0xff]  ;;  %v930_v57 = vld [vmem:[#allocation9 + $0x6d8] sm:$0xff] }
 0x120   :  { %1987 = vmatpush.msra.mxu0 %v927_v58  ;;  %2027 = vmatpush.msra.mxu2 %v928_v59  ;;  %v1467_v58 = vld [vmem:[#allocation9 + $0x17a0] sm:$0xff]  ;;  %v1468_v59 = vld [vmem:[#allocation9 + $0x17a8] sm:$0xff] }
 0x121   :  { %1927 = vmatpush.msrb.mxu1 %v1405_v45  ;;  %1967 = vmatpush.msrb.mxu3 %v1406_v60  ;;  %v899_v45 = vld [vmem:[#allocation9 + $0x5e0] sm:$0xff]  ;;  %v900_v60 = vld [vmem:[#allocation9 + $0x5e8] sm:$0xff] }
 0x122   :  { %1988 = vmatpush.msra.mxu0 %v897_v62  ;;  %2028 = vmatpush.msra.mxu2 %v898_v40  ;;  %v1437_v62 = vld [vmem:[#allocation9 + $0x16b0] sm:$0xff]  ;;  %v1438_v40 = vld [vmem:[#allocation9 + $0x16b8] sm:$0xff] }
 0x123   :  { %1928 = vmatpush.msrb.mxu1 %v1375_v63  ;;  %1968 = vmatpush.msrb.mxu3 %v1376_v0  ;;  %v869_v63 = vld [vmem:[#allocation9 + $0x4f0] sm:$0xff]  ;;  %v870_v0 = vld [vmem:[#allocation9 + $0x4f8] sm:$0xff] }
 0x124   :  { %1989 = vmatpush.msra.mxu0 %v867_v1  ;;  %2029 = vmatpush.msra.mxu2 %v868_v2  ;;  %v1407_v1 = vld [vmem:[#allocation9 + $0x15c0] sm:$0xff]  ;;  %v1408_v2 = vld [vmem:[#allocation9 + $0x15c8] sm:$0xff] }
 0x125   :  { %1929 = vmatpush.msrb.mxu1 %v1345_v61  ;;  %1969 = vmatpush.msrb.mxu3 %v1346_v3  ;;  %v839_v61 = vld [vmem:[#allocation9 + $0x400] sm:$0xff]  ;;  %v840_v3 = vld [vmem:[#allocation9 + $0x408] sm:$0xff] }
 0x126   :  { %1990 = vmatpush.msra.mxu0 %v837_v5  ;;  %2030 = vmatpush.msra.mxu2 %v838_v6  ;;  %v1377_v5 = vld [vmem:[#allocation9 + $0x14d0] sm:$0xff]  ;;  %v1378_v6 = vld [vmem:[#allocation9 + $0x14d8] sm:$0xff] }
 0x127   :  { %1930 = vmatpush.msrb.mxu1 %v1315_v7  ;;  %1970 = vmatpush.msrb.mxu3 %v1316_v8  ;;  %v809_v7 = vld [vmem:[#allocation9 + $0x310] sm:$0xff]  ;;  %v810_v8 = vld [vmem:[#allocation9 + $0x318] sm:$0xff] }
 0x128   :  { %1991 = vmatpush.msra.mxu0 %v807_v9  ;;  %2031 = vmatpush.msra.mxu2 %v808_v10  ;;  %v1347_v9 = vld [vmem:[#allocation9 + $0x13e0] sm:$0xff]  ;;  %v1348_v10 = vld [vmem:[#allocation9 + $0x13e8] sm:$0xff] }
 0x129   :  { %1931 = vmatpush.msrb.mxu1 %v1285_v11  ;;  %1971 = vmatpush.msrb.mxu3 %v1286_v12  ;;  %v779_v11 = vld [vmem:[#allocation9 + $0x220] sm:$0xff]  ;;  %v780_v12 = vld [vmem:[#allocation9 + $0x228] sm:$0xff] }
 0x12a   :  { %1992 = vmatpush.msra.mxu0 %v777_v13  ;;  %2032 = vmatpush.msra.mxu2 %v778_v14  ;;  %v1317_v13 = vld [vmem:[#allocation9 + $0x12f0] sm:$0xff]  ;;  %v1318_v14 = vld [vmem:[#allocation9 + $0x12f8] sm:$0xff] }
 0x12b   :  { %1932 = vmatpush.msrb.mxu1 %v1255_v41  ;;  %1972 = vmatpush.msrb.mxu3 %v1256_v15  ;;  %v749_v41 = vld [vmem:[#allocation9 + $0x130] sm:$0xff]  ;;  %v750_v15 = vld [vmem:[#allocation9 + $0x138] sm:$0xff] }
 0x12c   :  { %1993 = vmatpush.msra.mxu0 %v747_v17  ;;  %2033 = vmatpush.msra.mxu2 %v748_v18  ;;  %v1287_v17 = vld [vmem:[#allocation9 + $0x1200] sm:$0xff]  ;;  %v1288_v18 = vld [vmem:[#allocation9 + $0x1208] sm:$0xff] }
 0x12d   :  { %1933 = vmatpush.msrb.mxu1 %v1225_v19  ;;  %1973 = vmatpush.msrb.mxu3 %v1226_v20  ;;  %v719_v19 = vld [vmem:[#allocation9 + $0x40] sm:$0xff]  ;;  %v720_v20 = vld [vmem:[#allocation9 + $0x48] sm:$0xff] }
 0x12e   :  { %1994 = vmatpush.msra.mxu0 %v717_v22  ;;  %2034 = vmatpush.msra.mxu2 %v718_v23  ;;  %v1171_v22 = vld [vmem:[#allocation9 + $0xe60] sm:$0xff]  ;;  %v1172_v23 = vld [vmem:[#allocation9 + $0xe68] sm:$0xff] }
 0x12f   :  { %1995 = vmatmul.f32.vlgmr.msra.gmra.mxu0 %v3599_v35  ;;  %2035 = vmatmul.f32.vlgmr.msra.gmra.mxu2 %v3599_v35 }
 0x130   :  { %2059 = vmatpush.msrb.mxu0 %v1169_v24  ;;  %2099 = vmatpush.msrb.mxu2 %v1170_v25  ;;  %v1257_v24 = vld [vmem:[#allocation9 + $0x1110] sm:$0xff]  ;;  %v1258_v25 = vld [vmem:[#allocation9 + $0x1118] sm:$0xff] }
 0x131   :  { %1934 = vmatpush.msrb.mxu1 %v1195_v16  ;;  %1974 = vmatpush.msrb.mxu3 %v1196_v26  ;;  %v1141_v16 = vld [vmem:[#allocation9 + $0xd70] sm:$0xff]  ;;  %v1142_v26 = vld [vmem:[#allocation9 + $0xd78] sm:$0xff] }
 0x132   :  { %2060 = vmatpush.msrb.mxu0 %v1139_v28  ;;  %2100 = vmatpush.msrb.mxu2 %v1140_v29  ;;  %v1227_v28 = vld [vmem:[#allocation9 + $0x1020] sm:$0xff]  ;;  %v1228_v29 = vld [vmem:[#allocation9 + $0x1028] sm:$0xff] }
 0x133   :  { %1935 = vmatmul.f32.vlgmr.msrb.gmra.mxu1 %v3606_v21  ;;  %1975 = vmatmul.f32.vlgmr.msrb.gmra.mxu3 %v3606_v21 }
 0x134   :  { %2061 = vmatpush.msrb.mxu0 %v1109_v30  ;;  %2101 = vmatpush.msrb.mxu2 %v1110_v27  ;;  %v1111_v30 = vld [vmem:[#allocation9 + $0xc80] sm:$0xff]  ;;  %v1112_v27 = vld [vmem:[#allocation9 + $0xc88] sm:$0xff] }
 0x135   :  { %1999 = vmatpush.msra.mxu1 %v1647_v31  ;;  %2039 = vmatpush.msra.mxu3 %v1648_v32  ;;  %v1197_v31 = vld [vmem:[#allocation9 + $0xf30] sm:$0xff]  ;;  %v1198_v32 = vld [vmem:[#allocation9 + $0xf38] sm:$0xff] }
 0x136   :  { %2062 = vmatpush.msrb.mxu0 %v1079_v34  ;;  %2102 = vmatpush.msrb.mxu2 %v1080_v36  ;;  %v1649_v34 = vld [vmem:[#allocation9 + $0x1d50] sm:$0xff]  ;;  %v1650_v36 = vld [vmem:[#allocation9 + $0x1d58] sm:$0xff] }
 0x137   :  { %2000 = vmatpush.msra.mxu1 %v1617_v4  ;;  %2040 = vmatpush.msra.mxu3 %v1618_v37  ;;  %v1081_v4 = vld [vmem:[#allocation9 + $0xb90] sm:$0xff]  ;;  %v1082_v37 = vld [vmem:[#allocation9 + $0xb98] sm:$0xff] }
 0x138   :  { %2063 = vmatpush.msrb.mxu0 %v1049_v38  ;;  %2103 = vmatpush.msrb.mxu2 %v1050_v39  ;;  %v1619_v38 = vld [vmem:[#allocation9 + $0x1c60] sm:$0xff]  ;;  %v1620_v39 = vld [vmem:[#allocation9 + $0x1c68] sm:$0xff] }
 0x139   :  { %2001 = vmatpush.msra.mxu1 %v1587_v42  ;;  %2041 = vmatpush.msra.mxu3 %v1588_v43  ;;  %v1051_v42 = vld [vmem:[#allocation9 + $0xaa0] sm:$0xff]  ;;  %v1052_v43 = vld [vmem:[#allocation9 + $0xaa8] sm:$0xff] }
 0x13a   :  { %2064 = vmatpush.msrb.mxu0 %v1019_v44  ;;  %2104 = vmatpush.msrb.mxu2 %v1020_v46  ;;  %v1589_v44 = vld [vmem:[#allocation9 + $0x1b70] sm:$0xff]  ;;  %v1590_v46 = vld [vmem:[#allocation9 + $0x1b78] sm:$0xff] }
 0x13b   :  { %2002 = vmatpush.msra.mxu1 %v1557_v33  ;;  %2042 = vmatpush.msra.mxu3 %v1558_v47  ;;  %v1021_v33 = vld [vmem:[#allocation9 + $0x9b0] sm:$0xff]  ;;  %v1022_v47 = vld [vmem:[#allocation9 + $0x9b8] sm:$0xff] }
 0x13c   :  { %2065 = vmatpush.msrb.mxu0 %v989_v48  ;;  %2105 = vmatpush.msrb.mxu2 %v990_v49  ;;  %v1559_v48 = vld [vmem:[#allocation9 + $0x1a80] sm:$0xff]  ;;  %v1560_v49 = vld [vmem:[#allocation9 + $0x1a88] sm:$0xff] }
 0x13d   :  { %2003 = vmatpush.msra.mxu1 %v1527_v50  ;;  %2043 = vmatpush.msra.mxu3 %v1528_v51  ;;  %v991_v50 = vld [vmem:[#allocation9 + $0x8c0] sm:$0xff]  ;;  %v992_v51 = vld [vmem:[#allocation9 + $0x8c8] sm:$0xff] }
 0x13e   :  { %2066 = vmatpush.msrb.mxu0 %v959_v53  ;;  %2106 = vmatpush.msrb.mxu2 %v960_v54  ;;  %v1529_v53 = vld [vmem:[#allocation9 + $0x1990] sm:$0xff]  ;;  %v1530_v54 = vld [vmem:[#allocation9 + $0x1998] sm:$0xff] }
 0x13f   :  { %2004 = vmatpush.msra.mxu1 %v1497_v52  ;;  %2044 = vmatpush.msra.mxu3 %v1498_v55  ;;  %v961_v52 = vld [vmem:[#allocation9 + $0x7d0] sm:$0xff]  ;;  %v962_v55 = vld [vmem:[#allocation9 + $0x7d8] sm:$0xff] }
 0x140   :  { %2067 = vmatpush.msrb.mxu0 %v929_v56  ;;  %2107 = vmatpush.msrb.mxu2 %v930_v57  ;;  %v1499_v56 = vld [vmem:[#allocation9 + $0x18a0] sm:$0xff]  ;;  %v1500_v57 = vld [vmem:[#allocation9 + $0x18a8] sm:$0xff] }
 0x141   :  { %2005 = vmatpush.msra.mxu1 %v1467_v58  ;;  %2045 = vmatpush.msra.mxu3 %v1468_v59  ;;  %v931_v58 = vld [vmem:[#allocation9 + $0x6e0] sm:$0xff]  ;;  %v932_v59 = vld [vmem:[#allocation9 + $0x6e8] sm:$0xff] }
 0x142   :  { %2068 = vmatpush.msrb.mxu0 %v899_v45  ;;  %2108 = vmatpush.msrb.mxu2 %v900_v60  ;;  %v1469_v45 = vld [vmem:[#allocation9 + $0x17b0] sm:$0xff]  ;;  %v1470_v60 = vld [vmem:[#allocation9 + $0x17b8] sm:$0xff] }
 0x143   :  { %2006 = vmatpush.msra.mxu1 %v1437_v62  ;;  %2046 = vmatpush.msra.mxu3 %v1438_v40  ;;  %v901_v62 = vld [vmem:[#allocation9 + $0x5f0] sm:$0xff]  ;;  %v902_v40 = vld [vmem:[#allocation9 + $0x5f8] sm:$0xff] }
 0x144   :  { %2069 = vmatpush.msrb.mxu0 %v869_v63  ;;  %2109 = vmatpush.msrb.mxu2 %v870_v0  ;;  %v1439_v63 = vld [vmem:[#allocation9 + $0x16c0] sm:$0xff]  ;;  %v1440_v0 = vld [vmem:[#allocation9 + $0x16c8] sm:$0xff] }
 0x145   :  { %2007 = vmatpush.msra.mxu1 %v1407_v1  ;;  %2047 = vmatpush.msra.mxu3 %v1408_v2  ;;  %v871_v1 = vld [vmem:[#allocation9 + $0x500] sm:$0xff]  ;;  %v872_v2 = vld [vmem:[#allocation9 + $0x508] sm:$0xff] }
 0x146   :  { %2070 = vmatpush.msrb.mxu0 %v839_v61  ;;  %2110 = vmatpush.msrb.mxu2 %v840_v3  ;;  %v1409_v61 = vld [vmem:[#allocation9 + $0x15d0] sm:$0xff]  ;;  %v1410_v3 = vld [vmem:[#allocation9 + $0x15d8] sm:$0xff] }
 0x147   :  { %2008 = vmatpush.msra.mxu1 %v1377_v5  ;;  %2048 = vmatpush.msra.mxu3 %v1378_v6  ;;  %v841_v5 = vld [vmem:[#allocation9 + $0x410] sm:$0xff]  ;;  %v842_v6 = vld [vmem:[#allocation9 + $0x418] sm:$0xff] }
 0x148   :  { %2071 = vmatpush.msrb.mxu0 %v809_v7  ;;  %2111 = vmatpush.msrb.mxu2 %v810_v8  ;;  %v1379_v7 = vld [vmem:[#allocation9 + $0x14e0] sm:$0xff]  ;;  %v1380_v8 = vld [vmem:[#allocation9 + $0x14e8] sm:$0xff] }
 0x149   :  { %2009 = vmatpush.msra.mxu1 %v1347_v9  ;;  %2049 = vmatpush.msra.mxu3 %v1348_v10  ;;  %v811_v9 = vld [vmem:[#allocation9 + $0x320] sm:$0xff]  ;;  %v812_v10 = vld [vmem:[#allocation9 + $0x328] sm:$0xff] }
 0x14a   :  { %2072 = vmatpush.msrb.mxu0 %v779_v11  ;;  %2112 = vmatpush.msrb.mxu2 %v780_v12  ;;  %v1349_v11 = vld [vmem:[#allocation9 + $0x13f0] sm:$0xff]  ;;  %v1350_v12 = vld [vmem:[#allocation9 + $0x13f8] sm:$0xff] }
 0x14b   :  { %2010 = vmatpush.msra.mxu1 %v1317_v13  ;;  %2050 = vmatpush.msra.mxu3 %v1318_v14  ;;  %v781_v13 = vld [vmem:[#allocation9 + $0x230] sm:$0xff]  ;;  %v782_v14 = vld [vmem:[#allocation9 + $0x238] sm:$0xff] }
 0x14c   :  { %2073 = vmatpush.msrb.mxu0 %v749_v41  ;;  %2113 = vmatpush.msrb.mxu2 %v750_v15  ;;  %v1319_v41 = vld [vmem:[#allocation9 + $0x1300] sm:$0xff]  ;;  %v1320_v15 = vld [vmem:[#allocation9 + $0x1308] sm:$0xff] }
 0x14d   :  { %2011 = vmatpush.msra.mxu1 %v1287_v17  ;;  %2051 = vmatpush.msra.mxu3 %v1288_v18  ;;  %v751_v17 = vld [vmem:[#allocation9 + $0x140] sm:$0xff]  ;;  %v752_v18 = vld [vmem:[#allocation9 + $0x148] sm:$0xff] }
 0x14e   :  { %2074 = vmatpush.msrb.mxu0 %v719_v19  ;;  %2114 = vmatpush.msrb.mxu2 %v720_v20  ;;  %v1289_v19 = vld [vmem:[#allocation9 + $0x1210] sm:$0xff]  ;;  %v1290_v20 = vld [vmem:[#allocation9 + $0x1218] sm:$0xff] }
 0x14f   :  { %2075 = vmatmul.f32.vlgmr.msrb.gmra.mxu0 %v3599_v35  ;;  %2115 = vmatmul.f32.vlgmr.msrb.gmra.mxu2 %v3599_v35 }
 0x150   :  { %2139 = vmatpush.msra.mxu0 %v1171_v22  ;;  %2179 = vmatpush.msra.mxu2 %v1172_v23  ;;  %v721_v22 = vld [vmem:[#allocation9 + $0x50] sm:$0xff]  ;;  %v722_v23 = vld [vmem:[#allocation9 + $0x58] sm:$0xff] }
 0x151   :  { %2012 = vmatpush.msra.mxu1 %v1257_v24  ;;  %2052 = vmatpush.msra.mxu3 %v1258_v25  ;;  %v1173_v24 = vld [vmem:[#allocation9 + $0xe70] sm:$0xff]  ;;  %v1174_v25 = vld [vmem:[#allocation9 + $0xe78] sm:$0xff] }
 0x152   :  { %2140 = vmatpush.msra.mxu0 %v1141_v16  ;;  %2180 = vmatpush.msra.mxu2 %v1142_v26  ;;  %v1259_v16 = vld [vmem:[#allocation9 + $0x1120] sm:$0xff]  ;;  %v1260_v26 = vld [vmem:[#allocation9 + $0x1128] sm:$0xff] }
 0x153   :  { %2013 = vmatpush.msra.mxu1 %v1227_v28  ;;  %2053 = vmatpush.msra.mxu3 %v1228_v29  ;;  %v1143_v28 = vld [vmem:[#allocation9 + $0xd80] sm:$0xff]  ;;  %v1144_v29 = vld [vmem:[#allocation9 + $0xd88] sm:$0xff] }
 0x154   :  { %2141 = vmatpush.msra.mxu0 %v1111_v30  ;;  %2181 = vmatpush.msra.mxu2 %v1112_v27  ;;  %v1229_v30 = vld [vmem:[#allocation9 + $0x1030] sm:$0xff]  ;;  %v1230_v27 = vld [vmem:[#allocation9 + $0x1038] sm:$0xff] }
 0x155   :  { %2014 = vmatpush.msra.mxu1 %v1197_v31  ;;  %2054 = vmatpush.msra.mxu3 %v1198_v32  ;;  %v1113_v31 = vld [vmem:[#allocation9 + $0xc90] sm:$0xff]  ;;  %v1114_v32 = vld [vmem:[#allocation9 + $0xc98] sm:$0xff] }
 0x156   :  { %2015 = vmatmul.f32.vlgmr.msra.gmra.mxu1 %v3606_v21  ;;  %2055 = vmatmul.f32.vlgmr.msra.gmra.mxu3 %v3606_v21 }
 0x157   :  { %2079 = vmatpush.msrb.mxu1 %v1649_v34  ;;  %2119 = vmatpush.msrb.mxu3 %v1650_v36  ;;  %v1199_v34 = vld [vmem:[#allocation9 + $0xf40] sm:$0xff]  ;;  %v1200_v36 = vld [vmem:[#allocation9 + $0xf48] sm:$0xff] }
 0x158   :  { %2142 = vmatpush.msra.mxu0 %v1081_v4  ;;  %2182 = vmatpush.msra.mxu2 %v1082_v37  ;;  %v1651_v4 = vld [vmem:[#allocation9 + $0x1d60] sm:$0xff]  ;;  %v1652_v37 = vld [vmem:[#allocation9 + $0x1d68] sm:$0xff] }
 0x159   :  { %2080 = vmatpush.msrb.mxu1 %v1619_v38  ;;  %2120 = vmatpush.msrb.mxu3 %v1620_v39  ;;  %v1083_v38 = vld [vmem:[#allocation9 + $0xba0] sm:$0xff]  ;;  %v1084_v39 = vld [vmem:[#allocation9 + $0xba8] sm:$0xff] }
 0x15a   :  { %2143 = vmatpush.msra.mxu0 %v1051_v42  ;;  %2183 = vmatpush.msra.mxu2 %v1052_v43  ;;  %v1621_v42 = vld [vmem:[#allocation9 + $0x1c70] sm:$0xff]  ;;  %v1622_v43 = vld [vmem:[#allocation9 + $0x1c78] sm:$0xff] }
 0x15b   :  { %2081 = vmatpush.msrb.mxu1 %v1589_v44  ;;  %2121 = vmatpush.msrb.mxu3 %v1590_v46  ;;  %v1053_v44 = vld [vmem:[#allocation9 + $0xab0] sm:$0xff]  ;;  %v1054_v46 = vld [vmem:[#allocation9 + $0xab8] sm:$0xff] }
 0x15c   :  { %2144 = vmatpush.msra.mxu0 %v1021_v33  ;;  %2184 = vmatpush.msra.mxu2 %v1022_v47  ;;  %v1591_v33 = vld [vmem:[#allocation9 + $0x1b80] sm:$0xff]  ;;  %v1592_v47 = vld [vmem:[#allocation9 + $0x1b88] sm:$0xff] }
 0x15d   :  { %2082 = vmatpush.msrb.mxu1 %v1559_v48  ;;  %2122 = vmatpush.msrb.mxu3 %v1560_v49  ;;  %v1023_v48 = vld [vmem:[#allocation9 + $0x9c0] sm:$0xff]  ;;  %v1024_v49 = vld [vmem:[#allocation9 + $0x9c8] sm:$0xff] }
 0x15e   :  { %2145 = vmatpush.msra.mxu0 %v991_v50  ;;  %2185 = vmatpush.msra.mxu2 %v992_v51  ;;  %v1561_v50 = vld [vmem:[#allocation9 + $0x1a90] sm:$0xff]  ;;  %v1562_v51 = vld [vmem:[#allocation9 + $0x1a98] sm:$0xff] }
 0x15f   :  { %2083 = vmatpush.msrb.mxu1 %v1529_v53  ;;  %2123 = vmatpush.msrb.mxu3 %v1530_v54  ;;  %v993_v53 = vld [vmem:[#allocation9 + $0x8d0] sm:$0xff]  ;;  %v994_v54 = vld [vmem:[#allocation9 + $0x8d8] sm:$0xff] }
 0x160   :  { %2146 = vmatpush.msra.mxu0 %v961_v52  ;;  %2186 = vmatpush.msra.mxu2 %v962_v55  ;;  %v1531_v52 = vld [vmem:[#allocation9 + $0x19a0] sm:$0xff]  ;;  %v1532_v55 = vld [vmem:[#allocation9 + $0x19a8] sm:$0xff] }
 0x161   :  { %2084 = vmatpush.msrb.mxu1 %v1499_v56  ;;  %2124 = vmatpush.msrb.mxu3 %v1500_v57  ;;  %v963_v56 = vld [vmem:[#allocation9 + $0x7e0] sm:$0xff]  ;;  %v964_v57 = vld [vmem:[#allocation9 + $0x7e8] sm:$0xff] }
 0x162   :  { %2147 = vmatpush.msra.mxu0 %v931_v58  ;;  %2187 = vmatpush.msra.mxu2 %v932_v59  ;;  %v3626_v58 = vld [vmem:[#allocation10] sm:$0xff]  ;;  %v1501_v59 = vld [vmem:[#allocation9 + $0x18b0] sm:$0xff] }
 0x163   :  { %2085 = vmatpush.msrb.mxu1 %v1469_v45  ;;  %2125 = vmatpush.msrb.mxu3 %v1470_v60  ;;  %v1502_v45 = vld [vmem:[#allocation9 + $0x18b8] sm:$0xff]  ;;  %v933_v60 = vld [vmem:[#allocation9 + $0x6f0] sm:$0xff] }
 0x164   :  { %2148 = vmatpush.msra.mxu0 %v901_v62  ;;  %2188 = vmatpush.msra.mxu2 %v902_v40  ;;  %v934_v62 = vld [vmem:[#allocation9 + $0x6f8] sm:$0xff]  ;;  %v1471_v40 = vld [vmem:[#allocation9 + $0x17c0] sm:$0xff] }
 0x165   :  { %2086 = vmatpush.msrb.mxu1 %v1439_v63  ;;  %2126 = vmatpush.msrb.mxu3 %v1440_v0  ;;  %v1472_v63 = vld [vmem:[#allocation9 + $0x17c8] sm:$0xff]  ;;  %v1679_v0 = vperm.slane %v3626_v58, 0 }
 0x166   :  { %2149 = vmatpush.msra.mxu0 %v871_v1  ;;  %2189 = vmatpush.msra.mxu2 %v872_v2  ;;  %v903_v1 = vld [vmem:[#allocation9 + $0x600] sm:$0xff]  ;;  %v904_v2 = vld [vmem:[#allocation9 + $0x608] sm:$0xff] }
 0x167   :  { %2087 = vmatpush.msrb.mxu1 %v1409_v61  ;;  %2127 = vmatpush.msrb.mxu3 %v1410_v3  ;;  %v1441_v61 = vld [vmem:[#allocation9 + $0x16d0] sm:$0xff]  ;;  %v1442_v3 = vld [vmem:[#allocation9 + $0x16d8] sm:$0xff] }
 0x168   :  { %2150 = vmatpush.msra.mxu0 %v841_v5  ;;  %2190 = vmatpush.msra.mxu2 %v842_v6  ;;  %v873_v5 = vld [vmem:[#allocation9 + $0x510] sm:$0xff]  ;;  %v874_v6 = vld [vmem:[#allocation9 + $0x518] sm:$0xff] }
 0x169   :  { %2088 = vmatpush.msrb.mxu1 %v1379_v7  ;;  %2128 = vmatpush.msrb.mxu3 %v1380_v8  ;;  %v1411_v8 = vld [vmem:[#allocation9 + $0x15e0] sm:$0xff] }
 0x16a   :  { %2151 = vmatpush.msra.mxu0 %v811_v9  ;;  %2191 = vmatpush.msra.mxu2 %v812_v10  ;;  %v1412_v9 = vld [vmem:[#allocation9 + $0x15e8] sm:$0xff] }
 0x16b   :  { %2089 = vmatpush.msrb.mxu1 %v1349_v11  ;;  %2129 = vmatpush.msrb.mxu3 %v1350_v12  ;;  %v843_v11 = vld [vmem:[#allocation9 + $0x420] sm:$0xff]  ;;  %v844_v12 = vld [vmem:[#allocation9 + $0x428] sm:$0xff] }
 0x16c   :  { %2152 = vmatpush.msra.mxu0 %v781_v13  ;;  %2192 = vmatpush.msra.mxu2 %v782_v14  ;;  %v1756_v7 = vpop.f32.mrf.mxu0  ;;  %v1381_v13 = vld [vmem:[#allocation9 + $0x14f0] sm:$0xff]  ;;  %v1382_v14 = vld [vmem:[#allocation9 + $0x14f8] sm:$0xff] }
 0x16d   :  { %2090 = vmatpush.msrb.mxu1 %v1319_v41  ;;  %2130 = vmatpush.msrb.mxu3 %v1320_v15  ;;  %v1757_v10 = vadd.f32 %v1756_v7, %v1679_v0  ;;  %v1680_v15 = vperm.slane %v3626_v58, 1  ;;  %v1624_v0 = vld [vmem:[#allocation9 + $0x1c88] sm:$0xff]  ;;  %v1025_v7 = vld [vmem:[#allocation9 + $0x9d0] sm:$0xff] }
 0x16e   :  { %2153 = vmatpush.msra.mxu0 %v751_v17  ;;  %2193 = vmatpush.msra.mxu2 %v752_v18  ;;  %v813_v17 = vld [vmem:[#allocation9 + $0x330] sm:$0xff]  ;;  %v814_v18 = vld [vmem:[#allocation9 + $0x338] sm:$0xff] }
 0x16f   :  { %2091 = vmatpush.msrb.mxu1 %v1289_v19  ;;  %2131 = vmatpush.msrb.mxu3 %v1290_v20  ;;  %v1351_v20 = vld [vmem:[#allocation9 + $0x1400] sm:$0xff] }
 0x170   :  { %2154 = vmatpush.msra.mxu0 %v721_v22  ;;  %2194 = vmatpush.msra.mxu2 %v722_v23  ;;  %v1352_v22 = vld [vmem:[#allocation9 + $0x1408] sm:$0xff]  ;;  %v783_v23 = vld [vmem:[#allocation9 + $0x240] sm:$0xff] }
 0x171   :  { %2155 = vmatmul.f32.vlgmr.msra.gmra.mxu0 %v3599_v35  ;;  %2195 = vmatmul.f32.vlgmr.msra.gmra.mxu2 %v3599_v35 }
 0x172   :  { %2219 = vmatpush.msrb.mxu0 %v1173_v24  ;;  %2259 = vmatpush.msrb.mxu2 %v1174_v25  ;;  %v784_v24 = vld [vmem:[#allocation9 + $0x248] sm:$0xff]  ;;  %v1796_v25 = vpop.f32.mrf.mxu2 }
 0x173   :  { %2092 = vmatpush.msrb.mxu1 %v1259_v16  ;;  %2132 = vmatpush.msrb.mxu3 %v1260_v26  ;;  %v1321_v16 = vld [vmem:[#allocation9 + $0x1310] sm:$0xff]  ;;  %v1322_v26 = vld [vmem:[#allocation9 + $0x1318] sm:$0xff] }
 0x174   :  { %2220 = vmatpush.msrb.mxu0 %v1143_v28  ;;  %2260 = vmatpush.msrb.mxu2 %v1144_v29  ;;  %v1797_v28 = vadd.f32 %v1796_v25, %v1680_v15  ;;  %v753_v29 = vld [vmem:[#allocation9 + $0x150] sm:$0xff]  ;;  %v966_v15 = vld [vmem:[#allocation9 + $0x7f8] sm:$0xff] }
 0x175   :  { %2093 = vmatpush.msrb.mxu1 %v1229_v30  ;;  %2133 = vmatpush.msrb.mxu3 %v1230_v27  ;;  %v754_v30 = vld [vmem:[#allocation9 + $0x158] sm:$0xff]  ;;  %v1291_v27 = vld [vmem:[#allocation9 + $0x1220] sm:$0xff]  ;;  %v905_v25 = vld [vmem:[#allocation9 + $0x610] sm:$0xff] }
 0x176   :  { %2221 = vmatpush.msrb.mxu0 %v1113_v31  ;;  %2261 = vmatpush.msrb.mxu2 %v1114_v32  ;;  %v1292_v31 = vld [vmem:[#allocation9 + $0x1228] sm:$0xff] }
 0x177   :  { %2094 = vmatpush.msrb.mxu1 %v1199_v34  ;;  %2134 = vmatpush.msrb.mxu3 %v1200_v36  ;;  %v1681_v34 = vperm.slane %v3626_v58, 2  ;;  %v723_v36 = vld [vmem:[#allocation9 + $0x60] sm:$0xff] }
 0x178   :  { %2095 = vmatmul.f32.vlgmr.msrb.gmra.mxu1 %v3606_v21  ;;  %2135 = vmatmul.f32.vlgmr.msrb.gmra.mxu3 %v3606_v21 }
 0x179   :  { %2159 = vmatpush.msra.mxu1 %v1651_v4  ;;  %2199 = vmatpush.msra.mxu3 %v1652_v37  ;;  %v724_v4 = vld [vmem:[#allocation9 + $0x68] sm:$0xff] }
 0x17a   :  { %2222 = vmatpush.msrb.mxu0 %v1083_v38  ;;  %2262 = vmatpush.msrb.mxu2 %v1084_v39  ;;  %v1836_v38 = vpop.f32.mrf.mxu0  ;;  %v1175_v39 = vld [vmem:[#allocation9 + $0xe80] sm:$0xff] }
 0x17b   :  { %2160 = vmatpush.msra.mxu1 %v1621_v42  ;;  %2200 = vmatpush.msra.mxu3 %v1622_v43  ;;  %v1176_v42 = vld [vmem:[#allocation9 + $0xe88] sm:$0xff]  ;;  %v1261_v43 = vld [vmem:[#allocation9 + $0x1130] sm:$0xff] }
 0x17c   :  { %2223 = vmatpush.msrb.mxu0 %v1053_v44  ;;  %2263 = vmatpush.msrb.mxu2 %v1054_v46  ;;  %v1262_v44 = vld [vmem:[#allocation9 + $0x1138] sm:$0xff]  ;;  %v1837_v46 = vadd.f32 %v1836_v38, %v1681_v34  ;;  %v1683_v38 = vperm.slane %v3626_v58, 4 }
 0x17d   :  { %2161 = vmatpush.msra.mxu1 %v1591_v33  ;;  %2201 = vmatpush.msra.mxu3 %v1592_v47  ;;  %v1145_v33 = vld [vmem:[#allocation9 + $0xd90] sm:$0xff]  ;;  %v1146_v47 = vld [vmem:[#allocation9 + $0xd98] sm:$0xff] }
 0x17e   :  { %2224 = vmatpush.msrb.mxu0 %v1023_v48  ;;  %2264 = vmatpush.msrb.mxu2 %v1024_v49  ;;  %v1231_v48 = vld [vmem:[#allocation9 + $0x1040] sm:$0xff]  ;;  %v1232_v49 = vld [vmem:[#allocation9 + $0x1048] sm:$0xff]  ;;  %v846_v34 = vld [vmem:[#allocation9 + $0x438] sm:$0xff] }
 0x17f   :  { %2162 = vmatpush.msra.mxu1 %v1561_v50  ;;  %2202 = vmatpush.msra.mxu3 %v1562_v51  ;;  %v1682_v51 = vperm.slane %v3626_v58, 3 }
 0x180   :  { %2225 = vmatpush.msrb.mxu0 %v993_v53  ;;  %2265 = vmatpush.msrb.mxu2 %v994_v54  ;;  %v1115_v53 = vld [vmem:[#allocation9 + $0xca0] sm:$0xff]  ;;  %v1116_v54 = vld [vmem:[#allocation9 + $0xca8] sm:$0xff] }
 0x181   :  { %2163 = vmatpush.msra.mxu1 %v1531_v52  ;;  %2203 = vmatpush.msra.mxu3 %v1532_v55  ;;  %v1876_v55 = vpop.f32.mrf.mxu2 }
 0x182   :  { %2226 = vmatpush.msrb.mxu0 %v963_v56  ;;  %2266 = vmatpush.msrb.mxu2 %v964_v57  ;;  %v1201_v56 = vld [vmem:[#allocation9 + $0xf50] sm:$0xff]  ;;  %v1202_v57 = vld [vmem:[#allocation9 + $0xf58] sm:$0xff] }
 0x183   :  { %2164 = vmatpush.msra.mxu1 %v1501_v59  ;;  %2204 = vmatpush.msra.mxu3 %v1502_v45  ;;  %v1653_v59 = vld [vmem:[#allocation9 + $0x1d70] sm:$0xff]  ;;  %v1654_v45 = vld [vmem:[#allocation9 + $0x1d78] sm:$0xff] }
 0x184   :  { %2227 = vmatpush.msrb.mxu0 %v933_v60  ;;  %2267 = vmatpush.msrb.mxu2 %v934_v62  ;;  %v1877_v60 = vadd.f32 %v1876_v55, %v1682_v51  ;;  %v1085_v62 = vld [vmem:[#allocation9 + $0xbb0] sm:$0xff]  ;;  %v755_v51 = vld [vmem:[#allocation9 + $0x160] sm:$0xff]  ;;  %v1294_v55 = vld [vmem:[#allocation9 + $0x1238] sm:$0xff] }
 0x185   :  { %2165 = vmatpush.msra.mxu1 %v1471_v40  ;;  %2205 = vmatpush.msra.mxu3 %v1472_v63  ;;  %v1086_v40 = vld [vmem:[#allocation9 + $0xbb8] sm:$0xff]  ;;  %v1623_v63 = vld [vmem:[#allocation9 + $0x1c80] sm:$0xff] }
 0x186   :  { %2228 = vmatpush.msrb.mxu0 %v903_v1  ;;  %2268 = vmatpush.msrb.mxu2 %v904_v2  ;;  %v1055_v2 = vld [vmem:[#allocation9 + $0xac0] sm:$0xff] }
 0x187   :  { %2166 = vmatpush.msra.mxu1 %v1441_v61  ;;  %2206 = vmatpush.msra.mxu3 %v1442_v3  ;;  %v1056_v61 = vld [vmem:[#allocation9 + $0xac8] sm:$0xff] }
 0x188   :  { %2229 = vmatpush.msrb.mxu0 %v873_v5  ;;  %2269 = vmatpush.msrb.mxu2 %v874_v6  ;;  %v1776_v41 = vpop.f32.mrf.mxu1  ;;  %v1593_v5 = vld [vmem:[#allocation9 + $0x1b90] sm:$0xff]  ;;  %v1594_v6 = vld [vmem:[#allocation9 + $0x1b98] sm:$0xff] }
 0x189   :  { %2167 = vmatpush.msra.mxu1 %v1411_v8  ;;  %2207 = vmatpush.msra.mxu3 %v1412_v9  ;;  %v3630_v19 = vadd.f32 %v1776_v41, %v1757_v10  ;;  %v1026_v8 = vld [vmem:[#allocation9 + $0x9d8] sm:$0xff]  ;;  %v1563_v9 = vld [vmem:[#allocation9 + $0x1aa0] sm:$0xff]  ;;  %v1564_v10 = vld [vmem:[#allocation9 + $0x1aa8] sm:$0xff] }
 0x18a   :  { %2230 = vmatpush.msrb.mxu0 %v843_v11  ;;  %2270 = vmatpush.msrb.mxu2 %v844_v12  ;;  %v995_v11 = vld [vmem:[#allocation9 + $0x8e0] sm:$0xff]  ;;  %v996_v12 = vld [vmem:[#allocation9 + $0x8e8] sm:$0xff]  ;;  %v965_v41 = vld [vmem:[#allocation9 + $0x7f0] sm:$0xff] }
 0x18b   :  { %2168 = vmatpush.msra.mxu1 %v1381_v13  ;;  %2208 = vmatpush.msra.mxu3 %v1382_v14  ;;  %v1533_v13 = vld [vmem:[#allocation9 + $0x19b0] sm:$0xff]  ;;  %v1534_v14 = vld [vmem:[#allocation9 + $0x19b8] sm:$0xff] }
 0x18c   :  { %2231 = vmatpush.msrb.mxu0 %v813_v17  ;;  %2271 = vmatpush.msrb.mxu2 %v814_v18  ;;  %v1503_v17 = vld [vmem:[#allocation9 + $0x18c0] sm:$0xff]  ;;  %v1504_v18 = vld [vmem:[#allocation9 + $0x18c8] sm:$0xff] }
 0x18d   :  { %2169 = vmatpush.msra.mxu1 %v1351_v20  ;;  %2209 = vmatpush.msra.mxu3 %v1352_v22  ;;  %v935_v20 = vld [vmem:[#allocation9 + $0x700] sm:$0xff]  ;;  %v936_v22 = vld [vmem:[#allocation9 + $0x708] sm:$0xff] }
 0x18e   :  { %2232 = vmatpush.msrb.mxu0 %v783_v23  ;;  %2272 = vmatpush.msrb.mxu2 %v784_v24  ;;  %v1816_v32 = vpop.f32.mrf.mxu3  ;;  %v1473_v23 = vld [vmem:[#allocation9 + $0x17d0] sm:$0xff]  ;;  %v1474_v24 = vld [vmem:[#allocation9 + $0x17d8] sm:$0xff] }
 0x18f   :  { %2170 = vmatpush.msra.mxu1 %v1321_v16  ;;  %2210 = vmatpush.msra.mxu3 %v1322_v26  ;;  %v3633_v37 = vadd.f32 %v1816_v32, %v1797_v28  ;;  %v906_v16 = vld [vmem:[#allocation9 + $0x618] sm:$0xff]  ;;  %v1443_v26 = vld [vmem:[#allocation9 + $0x16e0] sm:$0xff]  ;;  %v1444_v28 = vld [vmem:[#allocation9 + $0x16e8] sm:$0xff] }
 0x190   :  { %2233 = vmatpush.msrb.mxu0 %v753_v29  ;;  %2273 = vmatpush.msrb.mxu2 %v754_v30  ;;  %v875_v29 = vld [vmem:[#allocation9 + $0x520] sm:$0xff]  ;;  %v876_v30 = vld [vmem:[#allocation9 + $0x528] sm:$0xff]  ;;  %v845_v32 = vld [vmem:[#allocation9 + $0x430] sm:$0xff] }
 0x191   :  { %2171 = vmatpush.msra.mxu1 %v1291_v27  ;;  %2211 = vmatpush.msra.mxu3 %v1292_v31  ;;  %v1413_v27 = vld [vmem:[#allocation9 + $0x15f0] sm:$0xff]  ;;  %v1414_v31 = vld [vmem:[#allocation9 + $0x15f8] sm:$0xff] }
 0x192   :  { %2234 = vmatpush.msrb.mxu0 %v723_v36  ;;  %2274 = vmatpush.msrb.mxu2 %v724_v4  ;;  %v1383_v36 = vld [vmem:[#allocation9 + $0x1500] sm:$0xff]  ;;  %v1384_v4 = vld [vmem:[#allocation9 + $0x1508] sm:$0xff] }
 0x193   :  { %2235 = vmatmul.f32.vlgmr.msrb.gmra.mxu0 %v3599_v35  ;;  %2275 = vmatmul.f32.vlgmr.msrb.gmra.mxu2 %v3599_v35 }
 0x194   :  { %2299 = vmatpush.msra.mxu0 %v1175_v39  ;;  %2339 = vmatpush.msra.mxu2 %v1176_v42  ;;  %v1856_v50 = vpop.f32.mrf.mxu1  ;;  %v815_v39 = vld [vmem:[#allocation9 + $0x340] sm:$0xff]  ;;  %v816_v42 = vld [vmem:[#allocation9 + $0x348] sm:$0xff] }
 0x195   :  { %2172 = vmatpush.msra.mxu1 %v1261_v43  ;;  %2212 = vmatpush.msra.mxu3 %v1262_v44  ;;  %v3638_v52 = vadd.f32 %v1856_v50, %v1837_v46  ;;  %v1916_v43 = vpop.f32.mrf.mxu0  ;;  %v1353_v44 = vld [vmem:[#allocation9 + $0x1410] sm:$0xff]  ;;  %v1354_v46 = vld [vmem:[#allocation9 + $0x1418] sm:$0xff] }
 0x196   :  { %2300 = vmatpush.msra.mxu0 %v1145_v33  ;;  %2340 = vmatpush.msra.mxu2 %v1146_v47  ;;  %v785_v33 = vld [vmem:[#allocation9 + $0x250] sm:$0xff]  ;;  %v786_v47 = vld [vmem:[#allocation9 + $0x258] sm:$0xff]  ;;  %v1917_v50 = vadd.f32 %v1916_v43, %v1683_v38  ;;  %v1475_v43 = vld [vmem:[#allocation9 + $0x17e0] sm:$0xff] }
 0x197   :  { %2173 = vmatpush.msra.mxu1 %v1231_v48  ;;  %2213 = vmatpush.msra.mxu3 %v1232_v49  ;;  %v1323_v48 = vld [vmem:[#allocation9 + $0x1320] sm:$0xff]  ;;  %v1324_v49 = vld [vmem:[#allocation9 + $0x1328] sm:$0xff]  ;;  %v1506_v38 = vld [vmem:[#allocation9 + $0x18d8] sm:$0xff] }
 0x198   :  { %2301 = vmatpush.msra.mxu0 %v1115_v53  ;;  %2341 = vmatpush.msra.mxu2 %v1116_v54  ;;  %v756_v53 = vld [vmem:[#allocation9 + $0x168] sm:$0xff]  ;;  %v1293_v54 = vld [vmem:[#allocation9 + $0x1230] sm:$0xff] }
 0x199   :  { %2174 = vmatpush.msra.mxu1 %v1201_v56  ;;  %2214 = vmatpush.msra.mxu3 %v1202_v57  ;;  %v1684_v57 = vperm.slane %v3626_v58, 5 }
 0x19a   :  { %2175 = vmatmul.f32.vlgmr.msra.gmra.mxu1 %v3606_v21  ;;  %2215 = vmatmul.f32.vlgmr.msra.gmra.mxu3 %v3606_v21  ;;  %v1896_v1 = vpop.f32.mrf.mxu3 }
 0x19b   :  { %2239 = vmatpush.msrb.mxu1 %v1653_v59  ;;  %2279 = vmatpush.msrb.mxu3 %v1654_v45  ;;  %v3642_v3 = vadd.f32 %v1896_v1, %v1877_v60  ;;  %v725_v59 = vld [vmem:[#allocation9 + $0x70] sm:$0xff]  ;;  %v726_v45 = vld [vmem:[#allocation9 + $0x78] sm:$0xff]  ;;  %v1264_v1 = vld [vmem:[#allocation9 + $0x1148] sm:$0xff] }
 0x19c   :  { %2302 = vmatpush.msra.mxu0 %v1085_v62  ;;  %2342 = vmatpush.msra.mxu2 %v1086_v40  ;;  %v1956_v62 = vpop.f32.mrf.mxu2  ;;  %v1177_v40 = vld [vmem:[#allocation9 + $0xe90] sm:$0xff] }
 0x19d   :  { %2240 = vmatpush.msrb.mxu1 %v1623_v63  ;;  %2280 = vmatpush.msrb.mxu3 %v1624_v0  ;;  %v1178_v63 = vld [vmem:[#allocation9 + $0xe98] sm:$0xff]  ;;  %v1263_v0 = vld [vmem:[#allocation9 + $0x1140] sm:$0xff] }
 0x19e   :  { %2303 = vmatpush.msra.mxu0 %v1055_v2  ;;  %2343 = vmatpush.msra.mxu2 %v1056_v61  ;;  %v1957_v2 = vadd.f32 %v1956_v62, %v1684_v57  ;;  %v1147_v61 = vld [vmem:[#allocation9 + $0xda0] sm:$0xff]  ;;  %v1386_v57 = vld [vmem:[#allocation9 + $0x1518] sm:$0xff]  ;;  %v1685_v62 = vperm.slane %v3626_v58, 6 }
 0x19f   :  { %2241 = vmatpush.msrb.mxu1 %v1593_v5  ;;  %2281 = vmatpush.msrb.mxu3 %v1594_v6  ;;  %v1148_v5 = vld [vmem:[#allocation9 + $0xda8] sm:$0xff]  ;;  %v1233_v6 = vld [vmem:[#allocation9 + $0x1050] sm:$0xff] }
 0x1a0   :  { %2304 = vmatpush.msra.mxu0 %v1025_v7  ;;  %2344 = vmatpush.msra.mxu2 %v1026_v8  ;;  %v1234_v7 = vld [vmem:[#allocation9 + $0x1058] sm:$0xff] }
 0x1a1   :  { %2242 = vmatpush.msrb.mxu1 %v1563_v9  ;;  %2282 = vmatpush.msrb.mxu3 %v1564_v10  ;;  %v1117_v9 = vld [vmem:[#allocation9 + $0xcb0] sm:$0xff]  ;;  %v1118_v10 = vld [vmem:[#allocation9 + $0xcb8] sm:$0xff] }
 0x1a2   :  { %2305 = vmatpush.msra.mxu0 %v995_v11  ;;  %2345 = vmatpush.msra.mxu2 %v996_v12  ;;  %v1203_v12 = vld [vmem:[#allocation9 + $0xf60] sm:$0xff] }
 0x1a3   :  { %2243 = vmatpush.msrb.mxu1 %v1533_v13  ;;  %2283 = vmatpush.msrb.mxu3 %v1534_v14  ;;  %v1204_v13 = vld [vmem:[#allocation9 + $0xf68] sm:$0xff]  ;;  %v1655_v14 = vld [vmem:[#allocation9 + $0x1d80] sm:$0xff] }
 0x1a4   :  { %2306 = vmatpush.msra.mxu0 %v965_v41  ;;  %2346 = vmatpush.msra.mxu2 %v966_v15  ;;  %v1656_v41 = vld [vmem:[#allocation9 + $0x1d88] sm:$0xff]  ;;  %v1087_v15 = vld [vmem:[#allocation9 + $0xbc0] sm:$0xff] }
 0x1a5   :  { %2244 = vmatpush.msrb.mxu1 %v1503_v17  ;;  %2284 = vmatpush.msrb.mxu3 %v1504_v18  ;;  %v1088_v17 = vld [vmem:[#allocation9 + $0xbc8] sm:$0xff]  ;;  %v1625_v18 = vld [vmem:[#allocation9 + $0x1c90] sm:$0xff] }
 0x1a6   :  { %2307 = vmatpush.msra.mxu0 %v935_v20  ;;  %2347 = vmatpush.msra.mxu2 %v936_v22  ;;  %v1626_v20 = vld [vmem:[#allocation9 + $0x1c98] sm:$0xff]  ;;  %v1057_v22 = vld [vmem:[#allocation9 + $0xad0] sm:$0xff] }
 0x1a7   :  { %2245 = vmatpush.msrb.mxu1 %v1473_v23  ;;  %2285 = vmatpush.msrb.mxu3 %v1474_v24  ;;  %v1058_v23 = vld [vmem:[#allocation9 + $0xad8] sm:$0xff]  ;;  %v1595_v24 = vld [vmem:[#allocation9 + $0x1ba0] sm:$0xff] }
 0x1a8   :  { %2308 = vmatpush.msra.mxu0 %v905_v25  ;;  %2348 = vmatpush.msra.mxu2 %v906_v16  ;;  %v1596_v25 = vld [vmem:[#allocation9 + $0x1ba8] sm:$0xff]  ;;  %v1027_v16 = vld [vmem:[#allocation9 + $0x9e0] sm:$0xff] }
 0x1a9   :  { %2246 = vmatpush.msrb.mxu1 %v1443_v26  ;;  %2286 = vmatpush.msrb.mxu3 %v1444_v28  ;;  %v1028_v26 = vld [vmem:[#allocation9 + $0x9e8] sm:$0xff]  ;;  %v1565_v28 = vld [vmem:[#allocation9 + $0x1ab0] sm:$0xff] }
 0x1aa   :  { %2309 = vmatpush.msra.mxu0 %v875_v29  ;;  %2349 = vmatpush.msra.mxu2 %v876_v30  ;;  %v1566_v29 = vld [vmem:[#allocation9 + $0x1ab8] sm:$0xff]  ;;  %v997_v30 = vld [vmem:[#allocation9 + $0x8f0] sm:$0xff] }
 0x1ab   :  { %2247 = vmatpush.msrb.mxu1 %v1413_v27  ;;  %2287 = vmatpush.msrb.mxu3 %v1414_v31  ;;  %v998_v27 = vld [vmem:[#allocation9 + $0x8f8] sm:$0xff]  ;;  %v1535_v31 = vld [vmem:[#allocation9 + $0x19c0] sm:$0xff] }
 0x1ac   :  { %2310 = vmatpush.msra.mxu0 %v845_v32  ;;  %2350 = vmatpush.msra.mxu2 %v846_v34  ;;  %v1536_v32 = vld [vmem:[#allocation9 + $0x19c8] sm:$0xff]  ;;  %v967_v34 = vld [vmem:[#allocation9 + $0x800] sm:$0xff] }
 0x1ad   :  { %2248 = vmatpush.msrb.mxu1 %v1383_v36  ;;  %2288 = vmatpush.msrb.mxu3 %v1384_v4  ;;  %v968_v36 = vld [vmem:[#allocation9 + $0x808] sm:$0xff]  ;;  %v1505_v4 = vld [vmem:[#allocation9 + $0x18d0] sm:$0xff] }
 0x1ae   :  { %2311 = vmatpush.msra.mxu0 %v815_v39  ;;  %2351 = vmatpush.msra.mxu2 %v816_v42  ;;  %v937_v39 = vld [vmem:[#allocation9 + $0x710] sm:$0xff]  ;;  %v938_v42 = vld [vmem:[#allocation9 + $0x718] sm:$0xff] }
 0x1af   :  { %2249 = vmatpush.msrb.mxu1 %v1353_v44  ;;  %2289 = vmatpush.msrb.mxu3 %v1354_v46  ;;  %v1476_v44 = vld [vmem:[#allocation9 + $0x17e8] sm:$0xff]  ;;  %v907_v46 = vld [vmem:[#allocation9 + $0x620] sm:$0xff] }
 0x1b0   :  { %2312 = vmatpush.msra.mxu0 %v785_v33  ;;  %2352 = vmatpush.msra.mxu2 %v786_v47  ;;  %v1936_v56 = vpop.f32.mrf.mxu1  ;;  %v908_v33 = vld [vmem:[#allocation9 + $0x628] sm:$0xff]  ;;  %v1445_v47 = vld [vmem:[#allocation9 + $0x16f0] sm:$0xff] }
 0x1b1   :  { %2250 = vmatpush.msrb.mxu1 %v1323_v48  ;;  %2290 = vmatpush.msrb.mxu3 %v1324_v49  ;;  %v3646_v60 = vadd.f32 %v1936_v56, %v1917_v50  ;;  %v1446_v48 = vld [vmem:[#allocation9 + $0x16f8] sm:$0xff]  ;;  %v877_v49 = vld [vmem:[#allocation9 + $0x530] sm:$0xff] }
 0x1b2   :  { %2313 = vmatpush.msra.mxu0 %v755_v51  ;;  %2353 = vmatpush.msra.mxu2 %v756_v53  ;;  %v878_v50 = vld [vmem:[#allocation9 + $0x538] sm:$0xff]  ;;  %v1415_v51 = vld [vmem:[#allocation9 + $0x1600] sm:$0xff]  ;;  %v1416_v53 = vld [vmem:[#allocation9 + $0x1608] sm:$0xff] }
 0x1b3   :  { %2251 = vmatpush.msrb.mxu1 %v1293_v54  ;;  %2291 = vmatpush.msrb.mxu3 %v1294_v55  ;;  %v847_v54 = vld [vmem:[#allocation9 + $0x440] sm:$0xff]  ;;  %v848_v55 = vld [vmem:[#allocation9 + $0x448] sm:$0xff]  ;;  %v1385_v56 = vld [vmem:[#allocation9 + $0x1510] sm:$0xff] }
 0x1b4   :  { %2314 = vmatpush.msra.mxu0 %v725_v59  ;;  %2354 = vmatpush.msra.mxu2 %v726_v45  ;;  %v817_v59 = vld [vmem:[#allocation9 + $0x350] sm:$0xff]  ;;  %v818_v45 = vld [vmem:[#allocation9 + $0x358] sm:$0xff] }
 0x1b5   :  { %2315 = vmatmul.f32.vlgmr.msra.gmra.mxu0 %v3599_v35  ;;  %2355 = vmatmul.f32.vlgmr.msra.gmra.mxu2 %v3599_v35 }
 0x1b6   :  { %2379 = vmatpush.msrb.mxu0 %v1177_v40  ;;  %2419 = vmatpush.msrb.mxu2 %v1178_v63  ;;  %v1976_v8 = vpop.f32.mrf.mxu3  ;;  %v1355_v40 = vld [vmem:[#allocation9 + $0x1420] sm:$0xff]  ;;  %v1356_v63 = vld [vmem:[#allocation9 + $0x1428] sm:$0xff] }
 0x1b7   :  { %2252 = vmatpush.msrb.mxu1 %v1263_v0  ;;  %2292 = vmatpush.msrb.mxu3 %v1264_v1  ;;  %v3650_v11 = vadd.f32 %v1976_v8, %v1957_v2  ;;  %v1996_v0 = vpop.f32.mrf.mxu0  ;;  %v787_v1 = vld [vmem:[#allocation9 + $0x260] sm:$0xff]  ;;  %v788_v2 = vld [vmem:[#allocation9 + $0x268] sm:$0xff] }
 0x1b8   :  { %2380 = vmatpush.msrb.mxu0 %v1147_v61  ;;  %2420 = vmatpush.msrb.mxu2 %v1148_v5  ;;  %v1325_v61 = vld [vmem:[#allocation9 + $0x1330] sm:$0xff]  ;;  %v1326_v5 = vld [vmem:[#allocation9 + $0x1338] sm:$0xff]  ;;  %v1997_v8 = vadd.f32 %v1996_v0, %v1685_v62  ;;  %v939_v62 = vld [vmem:[#allocation9 + $0x720] sm:$0xff] }
 0x1b9   :  { %2253 = vmatpush.msrb.mxu1 %v1233_v6  ;;  %2293 = vmatpush.msrb.mxu3 %v1234_v7  ;;  %v757_v6 = vld [vmem:[#allocation9 + $0x170] sm:$0xff]  ;;  %v758_v7 = vld [vmem:[#allocation9 + $0x178] sm:$0xff] }
 0x1ba   :  { %2381 = vmatpush.msrb.mxu0 %v1117_v9  ;;  %2421 = vmatpush.msrb.mxu2 %v1118_v10  ;;  %v1295_v9 = vld [vmem:[#allocation9 + $0x1240] sm:$0xff]  ;;  %v1296_v10 = vld [vmem:[#allocation9 + $0x1248] sm:$0xff]  ;;  %v1478_v0 = vld [vmem:[#allocation9 + $0x17f8] sm:$0xff] }
 0x1bb   :  { %2254 = vmatpush.msrb.mxu1 %v1203_v12  ;;  %2294 = vmatpush.msrb.mxu3 %v1204_v13  ;;  %v727_v12 = vld [vmem:[#allocation9 + $0x80] sm:$0xff]  ;;  %v728_v13 = vld [vmem:[#allocation9 + $0x88] sm:$0xff] }
 0x1bc   :  { %2255 = vmatmul.f32.vlgmr.msrb.gmra.mxu1 %v3606_v21  ;;  %2295 = vmatmul.f32.vlgmr.msrb.gmra.mxu3 %v3606_v21 }
 0x1bd   :  { %2319 = vmatpush.msra.mxu1 %v1655_v14  ;;  %2359 = vmatpush.msra.mxu3 %v1656_v41  ;;  %v1686_v41 = vperm.slane %v3626_v58, 7 }
 0x1be   :  { %2382 = vmatpush.msrb.mxu0 %v1087_v15  ;;  %2422 = vmatpush.msrb.mxu2 %v1088_v17  ;;  %v2036_v17 = vpop.f32.mrf.mxu2 }
 0x1bf   :  { %2320 = vmatpush.msra.mxu1 %v1625_v18  ;;  %2360 = vmatpush.msra.mxu3 %v1626_v20  ;;  %v1179_v18 = vld [vmem:[#allocation9 + $0xea0] sm:$0xff]  ;;  %v1180_v20 = vld [vmem:[#allocation9 + $0xea8] sm:$0xff]  ;;  %v2037_v58 = vadd.f32 %v2036_v17, %v1686_v41 }
 0x1c0   :  { %2383 = vmatpush.msrb.mxu0 %v1057_v22  ;;  %2423 = vmatpush.msrb.mxu2 %v1058_v23  ;;  %v1265_v22 = vld [vmem:[#allocation9 + $0x1150] sm:$0xff]  ;;  %v1266_v23 = vld [vmem:[#allocation9 + $0x1158] sm:$0xff]  ;;  %v1388_v41 = vld [vmem:[#allocation9 + $0x1528] sm:$0xff] }
 0x1c1   :  { %2321 = vmatpush.msra.mxu1 %v1595_v24  ;;  %2361 = vmatpush.msra.mxu3 %v1596_v25  ;;  %v1149_v24 = vld [vmem:[#allocation9 + $0xdb0] sm:$0xff]  ;;  %v1150_v25 = vld [vmem:[#allocation9 + $0xdb8] sm:$0xff]  ;;  %v819_v17 = vld [vmem:[#allocation9 + $0x360] sm:$0xff] }
 0x1c2   :  { %2384 = vmatpush.msrb.mxu0 %v1027_v16  ;;  %2424 = vmatpush.msrb.mxu2 %v1028_v26  ;;  %v1235_v16 = vld [vmem:[#allocation9 + $0x1060] sm:$0xff]  ;;  %v1236_v26 = vld [vmem:[#allocation9 + $0x1068] sm:$0xff] }
 0x1c3   :  { %2322 = vmatpush.msra.mxu1 %v1565_v28  ;;  %2362 = vmatpush.msra.mxu3 %v1566_v29  ;;  %v1119_v28 = vld [vmem:[#allocation9 + $0xcc0] sm:$0xff]  ;;  %v1120_v29 = vld [vmem:[#allocation9 + $0xcc8] sm:$0xff] }
 0x1c4   :  { %2385 = vmatpush.msrb.mxu0 %v997_v30  ;;  %2425 = vmatpush.msrb.mxu2 %v998_v27  ;;  %v1205_v27 = vld [vmem:[#allocation9 + $0xf70] sm:$0xff] }
 0x1c5   :  { %2323 = vmatpush.msra.mxu1 %v1535_v31  ;;  %2363 = vmatpush.msra.mxu3 %v1536_v32  ;;  %v1206_v31 = vld [vmem:[#allocation9 + $0xf78] sm:$0xff] }
 0x1c6   :  { %2386 = vmatpush.msrb.mxu0 %v967_v34  ;;  %2426 = vmatpush.msrb.mxu2 %v968_v36  ;;  %v1657_v34 = vld [vmem:[#allocation9 + $0x1d90] sm:$0xff]  ;;  %v1658_v36 = vld [vmem:[#allocation9 + $0x1d98] sm:$0xff] }
 0x1c7   :  { %2324 = vmatpush.msra.mxu1 %v1505_v4  ;;  %2364 = vmatpush.msra.mxu3 %v1506_v38  ;;  %v1089_v4 = vld [vmem:[#allocation9 + $0xbd0] sm:$0xff]  ;;  %v1090_v38 = vld [vmem:[#allocation9 + $0xbd8] sm:$0xff] }
 0x1c8   :  { %2387 = vmatpush.msrb.mxu0 %v937_v39  ;;  %2427 = vmatpush.msrb.mxu2 %v938_v42  ;;  %v1627_v39 = vld [vmem:[#allocation9 + $0x1ca0] sm:$0xff]  ;;  %v1628_v42 = vld [vmem:[#allocation9 + $0x1ca8] sm:$0xff] }
 0x1c9   :  { %2325 = vmatpush.msra.mxu1 %v1475_v43  ;;  %2365 = vmatpush.msra.mxu3 %v1476_v44  ;;  %v1059_v43 = vld [vmem:[#allocation9 + $0xae0] sm:$0xff]  ;;  %v1060_v44 = vld [vmem:[#allocation9 + $0xae8] sm:$0xff] }
 0x1ca   :  { %2388 = vmatpush.msrb.mxu0 %v907_v46  ;;  %2428 = vmatpush.msrb.mxu2 %v908_v33  ;;  %v1597_v46 = vld [vmem:[#allocation9 + $0x1bb0] sm:$0xff]  ;;  %v1598_v33 = vld [vmem:[#allocation9 + $0x1bb8] sm:$0xff] }
 0x1cb   :  { %2326 = vmatpush.msra.mxu1 %v1445_v47  ;;  %2366 = vmatpush.msra.mxu3 %v1446_v48  ;;  %v1029_v47 = vld [vmem:[#allocation9 + $0x9f0] sm:$0xff]  ;;  %v1030_v48 = vld [vmem:[#allocation9 + $0x9f8] sm:$0xff] }
 0x1cc   :  { %2389 = vmatpush.msrb.mxu0 %v877_v49  ;;  %2429 = vmatpush.msrb.mxu2 %v878_v50  ;;  %v1567_v49 = vld [vmem:[#allocation9 + $0x1ac0] sm:$0xff]  ;;  %v1568_v50 = vld [vmem:[#allocation9 + $0x1ac8] sm:$0xff] }
 0x1cd   :  { %2327 = vmatpush.msra.mxu1 %v1415_v51  ;;  %2367 = vmatpush.msra.mxu3 %v1416_v53  ;;  %v999_v51 = vld [vmem:[#allocation9 + $0x900] sm:$0xff]  ;;  %v1000_v53 = vld [vmem:[#allocation9 + $0x908] sm:$0xff] }
 0x1ce   :  { %2390 = vmatpush.msrb.mxu0 %v847_v54  ;;  %2430 = vmatpush.msrb.mxu2 %v848_v55  ;;  %v1537_v54 = vld [vmem:[#allocation9 + $0x19d0] sm:$0xff]  ;;  %v1538_v55 = vld [vmem:[#allocation9 + $0x19d8] sm:$0xff] }
 0x1cf   :  { %2328 = vmatpush.msra.mxu1 %v1385_v56  ;;  %2368 = vmatpush.msra.mxu3 %v1386_v57  ;;  %v969_v56 = vld [vmem:[#allocation9 + $0x810] sm:$0xff]  ;;  %v970_v57 = vld [vmem:[#allocation9 + $0x818] sm:$0xff] }
 0x1d0   :  { %2391 = vmatpush.msrb.mxu0 %v817_v59  ;;  %2431 = vmatpush.msrb.mxu2 %v818_v45  ;;  %v1507_v59 = vld [vmem:[#allocation9 + $0x18e0] sm:$0xff]  ;;  %v1508_v45 = vld [vmem:[#allocation9 + $0x18e8] sm:$0xff] }
 0x1d1   :  { %2329 = vmatpush.msra.mxu1 %v1355_v40  ;;  %2369 = vmatpush.msra.mxu3 %v1356_v63  ;;  %v940_v40 = vld [vmem:[#allocation9 + $0x728] sm:$0xff]  ;;  %v1477_v63 = vld [vmem:[#allocation9 + $0x17f0] sm:$0xff] }
 0x1d2   :  { %2392 = vmatpush.msrb.mxu0 %v787_v1  ;;  %2432 = vmatpush.msrb.mxu2 %v788_v2  ;;  %v909_v1 = vld [vmem:[#allocation9 + $0x630] sm:$0xff]  ;;  %v910_v2 = vld [vmem:[#allocation9 + $0x638] sm:$0xff] }
 0x1d3   :  { %2330 = vmatpush.msra.mxu1 %v1325_v61  ;;  %2370 = vmatpush.msra.mxu3 %v1326_v5  ;;  %v2016_v14 = vpop.f32.mrf.mxu1  ;;  %v1447_v61 = vld [vmem:[#allocation9 + $0x1700] sm:$0xff]  ;;  %v1448_v5 = vld [vmem:[#allocation9 + $0x1708] sm:$0xff] }
 0x1d4   :  { %2393 = vmatpush.msrb.mxu0 %v757_v6  ;;  %2433 = vmatpush.msrb.mxu2 %v758_v7  ;;  %v3656_v15 = vadd.f32 %v2016_v14, %v1997_v8  ;;  %v879_v6 = vld [vmem:[#allocation9 + $0x540] sm:$0xff]  ;;  %v880_v7 = vld [vmem:[#allocation9 + $0x548] sm:$0xff]  ;;  %v1417_v8 = vld [vmem:[#allocation9 + $0x1610] sm:$0xff] }
 0x1d5   :  { %2331 = vmatpush.msra.mxu1 %v1295_v9  ;;  %2371 = vmatpush.msra.mxu3 %v1296_v10  ;;  %v1418_v9 = vld [vmem:[#allocation9 + $0x1618] sm:$0xff]  ;;  %v3664_v10 = vld [vmem:[#allocation10 + $0x8] sm:$0xff]  ;;  %v1387_v14 = vld [vmem:[#allocation9 + $0x1520] sm:$0xff] }
 0x1d6   :  { %2394 = vmatpush.msrb.mxu0 %v727_v12  ;;  %2434 = vmatpush.msrb.mxu2 %v728_v13  ;;  %v849_v12 = vld [vmem:[#allocation9 + $0x450] sm:$0xff]  ;;  %v850_v13 = vld [vmem:[#allocation9 + $0x458] sm:$0xff] }
 0x1d7   :  { %2395 = vmatmul.f32.vlgmr.msrb.gmra.mxu0 %v3599_v35  ;;  %2435 = vmatmul.f32.vlgmr.msrb.gmra.mxu2 %v3599_v35 }
 0x1d8   :  { %2459 = vmatpush.msra.mxu0 %v1179_v18  ;;  %2499 = vmatpush.msra.mxu2 %v1180_v20  ;;  %v820_v18 = vld [vmem:[#allocation9 + $0x368] sm:$0xff]  ;;  %v1687_v20 = vperm.slane %v3664_v10, 0 }
 0x1d9   :  { %2332 = vmatpush.msra.mxu1 %v1265_v22  ;;  %2372 = vmatpush.msra.mxu3 %v1266_v23  ;;  %v2056_v30 = vpop.f32.mrf.mxu3  ;;  %v1357_v22 = vld [vmem:[#allocation9 + $0x1430] sm:$0xff]  ;;  %v1358_v23 = vld [vmem:[#allocation9 + $0x1438] sm:$0xff] }
 0x1da   :  { %2460 = vmatpush.msra.mxu0 %v1149_v24  ;;  %2500 = vmatpush.msra.mxu2 %v1150_v25  ;;  %v3660_v32 = vadd.f32 %v2056_v30, %v2037_v58  ;;  %v2076_v24 = vpop.f32.mrf.mxu0  ;;  %v789_v25 = vld [vmem:[#allocation9 + $0x270] sm:$0xff]  ;;  %v790_v58 = vld [vmem:[#allocation9 + $0x278] sm:$0xff] }
 0x1db   :  { %2333 = vmatpush.msra.mxu1 %v1235_v16  ;;  %2373 = vmatpush.msra.mxu3 %v1236_v26  ;;  %v1327_v16 = vld [vmem:[#allocation9 + $0x1340] sm:$0xff]  ;;  %v1328_v26 = vld [vmem:[#allocation9 + $0x1348] sm:$0xff]  ;;  %v2077_v30 = vadd.f32 %v2076_v24, %v1687_v20  ;;  %v941_v24 = vld [vmem:[#allocation9 + $0x730] sm:$0xff] }
 0x1dc   :  { %2461 = vmatpush.msra.mxu0 %v1119_v28  ;;  %2501 = vmatpush.msra.mxu2 %v1120_v29  ;;  %v759_v28 = vld [vmem:[#allocation9 + $0x180] sm:$0xff]  ;;  %v760_v29 = vld [vmem:[#allocation9 + $0x188] sm:$0xff] }
 0x1dd   :  { %2334 = vmatpush.msra.mxu1 %v1205_v27  ;;  %2374 = vmatpush.msra.mxu3 %v1206_v31  ;;  %v1297_v27 = vld [vmem:[#allocation9 + $0x1250] sm:$0xff]  ;;  %v1298_v31 = vld [vmem:[#allocation9 + $0x1258] sm:$0xff]  ;;  %v972_v20 = vld [vmem:[#allocation9 + $0x828] sm:$0xff] }
 0x1de   :  { %2335 = vmatmul.f32.vlgmr.msra.gmra.mxu1 %v3606_v21  ;;  %2375 = vmatmul.f32.vlgmr.msra.gmra.mxu3 %v3606_v21 }
 0x1df   :  { %2399 = vmatpush.msrb.mxu1 %v1657_v34  ;;  %2439 = vmatpush.msrb.mxu3 %v1658_v36  ;;  %v729_v34 = vld [vmem:[#allocation9 + $0x90] sm:$0xff]  ;;  %v730_v36 = vld [vmem:[#allocation9 + $0x98] sm:$0xff] }
 0x1e0   :  { %2462 = vmatpush.msra.mxu0 %v1089_v4  ;;  %2502 = vmatpush.msra.mxu2 %v1090_v38  ;;  %v1688_v38 = vperm.slane %v3664_v10, 1 }
 0x1e1   :  { %2400 = vmatpush.msrb.mxu1 %v1627_v39  ;;  %2440 = vmatpush.msrb.mxu3 %v1628_v42  ;;  %v2116_v42 = vpop.f32.mrf.mxu2 }
 0x1e2   :  { %2463 = vmatpush.msra.mxu0 %v1059_v43  ;;  %2503 = vmatpush.msra.mxu2 %v1060_v44  ;;  %v1181_v43 = vld [vmem:[#allocation9 + $0xeb0] sm:$0xff]  ;;  %v1182_v44 = vld [vmem:[#allocation9 + $0xeb8] sm:$0xff] }
 0x1e3   :  { %2401 = vmatpush.msrb.mxu1 %v1597_v46  ;;  %2441 = vmatpush.msrb.mxu3 %v1598_v33  ;;  %v1267_v46 = vld [vmem:[#allocation9 + $0x1160] sm:$0xff]  ;;  %v1268_v33 = vld [vmem:[#allocation9 + $0x1168] sm:$0xff] }
 0x1e4   :  { %2464 = vmatpush.msra.mxu0 %v1029_v47  ;;  %2504 = vmatpush.msra.mxu2 %v1030_v48  ;;  %v1151_v47 = vld [vmem:[#allocation9 + $0xdc0] sm:$0xff]  ;;  %v1152_v48 = vld [vmem:[#allocation9 + $0xdc8] sm:$0xff] }
 0x1e5   :  { %2402 = vmatpush.msrb.mxu1 %v1567_v49  ;;  %2442 = vmatpush.msrb.mxu3 %v1568_v50  ;;  %v2117_v49 = vadd.f32 %v2116_v42, %v1688_v38  ;;  %v1237_v50 = vld [vmem:[#allocation9 + $0x1070] sm:$0xff]  ;;  %v852_v38 = vld [vmem:[#allocation9 + $0x468] sm:$0xff] }
 0x1e6   :  { %2465 = vmatpush.msra.mxu0 %v999_v51  ;;  %2505 = vmatpush.msra.mxu2 %v1000_v53  ;;  %v1238_v51 = vld [vmem:[#allocation9 + $0x1078] sm:$0xff]  ;;  %v1121_v53 = vld [vmem:[#allocation9 + $0xcd0] sm:$0xff] }
 0x1e7   :  { %2403 = vmatpush.msrb.mxu1 %v1537_v54  ;;  %2443 = vmatpush.msrb.mxu3 %v1538_v55  ;;  %v1122_v54 = vld [vmem:[#allocation9 + $0xcd8] sm:$0xff]  ;;  %v1389_v42 = vld [vmem:[#allocation9 + $0x1530] sm:$0xff] }
 0x1e8   :  { %2466 = vmatpush.msra.mxu0 %v969_v56  ;;  %2506 = vmatpush.msra.mxu2 %v970_v57  ;;  %v1207_v56 = vld [vmem:[#allocation9 + $0xf80] sm:$0xff]  ;;  %v1208_v57 = vld [vmem:[#allocation9 + $0xf88] sm:$0xff] }
 0x1e9   :  { %2404 = vmatpush.msrb.mxu1 %v1507_v59  ;;  %2444 = vmatpush.msrb.mxu3 %v1508_v45  ;;  %v1659_v45 = vld [vmem:[#allocation9 + $0x1da0] sm:$0xff] }
 0x1ea   :  { %2467 = vmatpush.msra.mxu0 %v939_v62  ;;  %2507 = vmatpush.msra.mxu2 %v940_v40  ;;  %v1660_v62 = vld [vmem:[#allocation9 + $0x1da8] sm:$0xff]  ;;  %v1091_v40 = vld [vmem:[#allocation9 + $0xbe0] sm:$0xff] }
 0x1eb   :  { %2405 = vmatpush.msrb.mxu1 %v1477_v63  ;;  %2445 = vmatpush.msrb.mxu3 %v1478_v0  ;;  %v1092_v63 = vld [vmem:[#allocation9 + $0xbe8] sm:$0xff]  ;;  %v1629_v0 = vld [vmem:[#allocation9 + $0x1cb0] sm:$0xff] }
 0x1ec   :  { %2468 = vmatpush.msra.mxu0 %v909_v1  ;;  %2508 = vmatpush.msra.mxu2 %v910_v2  ;;  %v1630_v1 = vld [vmem:[#allocation9 + $0x1cb8] sm:$0xff]  ;;  %v1061_v2 = vld [vmem:[#allocation9 + $0xaf0] sm:$0xff] }
 0x1ed   :  { %2406 = vmatpush.msrb.mxu1 %v1447_v61  ;;  %2446 = vmatpush.msrb.mxu3 %v1448_v5  ;;  %v1062_v61 = vld [vmem:[#allocation9 + $0xaf8] sm:$0xff]  ;;  %v1599_v5 = vld [vmem:[#allocation9 + $0x1bc0] sm:$0xff] }
 0x1ee   :  { %2469 = vmatpush.msra.mxu0 %v879_v6  ;;  %2509 = vmatpush.msra.mxu2 %v880_v7  ;;  %v1600_v6 = vld [vmem:[#allocation9 + $0x1bc8] sm:$0xff]  ;;  %v1031_v7 = vld [vmem:[#allocation9 + $0xa00] sm:$0xff] }
 0x1ef   :  { %2407 = vmatpush.msrb.mxu1 %v1417_v8  ;;  %2447 = vmatpush.msrb.mxu3 %v1418_v9  ;;  %v1032_v8 = vld [vmem:[#allocation9 + $0xa08] sm:$0xff]  ;;  %v1569_v9 = vld [vmem:[#allocation9 + $0x1ad0] sm:$0xff] }
 0x1f0   :  { %2470 = vmatpush.msra.mxu0 %v849_v12  ;;  %2510 = vmatpush.msra.mxu2 %v850_v13  ;;  %v1570_v12 = vld [vmem:[#allocation9 + $0x1ad8] sm:$0xff]  ;;  %v1001_v13 = vld [vmem:[#allocation9 + $0x910] sm:$0xff] }
 0x1f1   :  { %2408 = vmatpush.msrb.mxu1 %v1387_v14  ;;  %2448 = vmatpush.msrb.mxu3 %v1388_v41  ;;  %v1002_v14 = vld [vmem:[#allocation9 + $0x918] sm:$0xff]  ;;  %v1539_v41 = vld [vmem:[#allocation9 + $0x19e0] sm:$0xff] }
 0x1f2   :  { %2471 = vmatpush.msra.mxu0 %v819_v17  ;;  %2511 = vmatpush.msra.mxu2 %v820_v18  ;;  %v1540_v17 = vld [vmem:[#allocation9 + $0x19e8] sm:$0xff]  ;;  %v971_v18 = vld [vmem:[#allocation9 + $0x820] sm:$0xff] }
 0x1f3   :  { %2409 = vmatpush.msrb.mxu1 %v1357_v22  ;;  %2449 = vmatpush.msrb.mxu3 %v1358_v23  ;;  %v1509_v22 = vld [vmem:[#allocation9 + $0x18f0] sm:$0xff]  ;;  %v1510_v23 = vld [vmem:[#allocation9 + $0x18f8] sm:$0xff] }
 0x1f4   :  { %2472 = vmatpush.msra.mxu0 %v789_v25  ;;  %2512 = vmatpush.msra.mxu2 %v790_v58  ;;  %v942_v25 = vld [vmem:[#allocation9 + $0x738] sm:$0xff]  ;;  %v1479_v58 = vld [vmem:[#allocation9 + $0x1800] sm:$0xff] }
 0x1f5   :  { %2410 = vmatpush.msrb.mxu1 %v1327_v16  ;;  %2450 = vmatpush.msrb.mxu3 %v1328_v26  ;;  %v2096_v4 = vpop.f32.mrf.mxu1  ;;  %v1480_v16 = vld [vmem:[#allocation9 + $0x1808] sm:$0xff]  ;;  %v911_v26 = vld [vmem:[#allocation9 + $0x640] sm:$0xff] }
 0x1f6   :  { %2473 = vmatpush.msra.mxu0 %v759_v28  ;;  %2513 = vmatpush.msra.mxu2 %v760_v29  ;;  %v3668_v39 = vadd.f32 %v2096_v4, %v2077_v30  ;;  %v912_v28 = vld [vmem:[#allocation9 + $0x648] sm:$0xff]  ;;  %v1449_v29 = vld [vmem:[#allocation9 + $0x1710] sm:$0xff]  ;;  %v1450_v30 = vld [vmem:[#allocation9 + $0x1718] sm:$0xff] }
 0x1f7   :  { %2411 = vmatpush.msrb.mxu1 %v1297_v27  ;;  %2451 = vmatpush.msrb.mxu3 %v1298_v31  ;;  %v881_v27 = vld [vmem:[#allocation9 + $0x550] sm:$0xff]  ;;  %v882_v31 = vld [vmem:[#allocation9 + $0x558] sm:$0xff]  ;;  %v851_v4 = vld [vmem:[#allocation9 + $0x460] sm:$0xff] }
 0x1f8   :  { %2474 = vmatpush.msra.mxu0 %v729_v34  ;;  %2514 = vmatpush.msra.mxu2 %v730_v36  ;;  %v1419_v34 = vld [vmem:[#allocation9 + $0x1620] sm:$0xff]  ;;  %v1420_v36 = vld [vmem:[#allocation9 + $0x1628] sm:$0xff] }
 0x1f9   :  { %2475 = vmatmul.f32.vlgmr.msra.gmra.mxu0 %v3599_v35  ;;  %2515 = vmatmul.f32.vlgmr.msra.gmra.mxu2 %v3599_v35 }
 0x1fa   :  { %2539 = vmatpush.msrb.mxu0 %v1181_v43  ;;  %2579 = vmatpush.msrb.mxu2 %v1182_v44  ;;  %v1390_v43 = vld [vmem:[#allocation9 + $0x1538] sm:$0xff]  ;;  %v821_v44 = vld [vmem:[#allocation9 + $0x370] sm:$0xff] }
 0x1fb   :  { %2412 = vmatpush.msrb.mxu1 %v1267_v46  ;;  %2452 = vmatpush.msrb.mxu3 %v1268_v33  ;;  %v2136_v55 = vpop.f32.mrf.mxu3  ;;  %v822_v46 = vld [vmem:[#allocation9 + $0x378] sm:$0xff]  ;;  %v1689_v33 = vperm.slane %v3664_v10, 2 }
 0x1fc   :  { %2540 = vmatpush.msrb.mxu0 %v1151_v47  ;;  %2580 = vmatpush.msrb.mxu2 %v1152_v48  ;;  %v3672_v59 = vadd.f32 %v2136_v55, %v2117_v49  ;;  %v1359_v47 = vld [vmem:[#allocation9 + $0x1440] sm:$0xff]  ;;  %v1360_v48 = vld [vmem:[#allocation9 + $0x1448] sm:$0xff]  ;;  %v2156_v49 = vpop.f32.mrf.mxu0  ;;  %v761_v55 = vld [vmem:[#allocation9 + $0x190] sm:$0xff] }
 0x1fd   :  { %2413 = vmatpush.msrb.mxu1 %v1237_v50  ;;  %2453 = vmatpush.msrb.mxu3 %v1238_v51  ;;  %v791_v50 = vld [vmem:[#allocation9 + $0x280] sm:$0xff]  ;;  %v792_v51 = vld [vmem:[#allocation9 + $0x288] sm:$0xff] }
 0x1fe   :  { %2541 = vmatpush.msrb.mxu0 %v1121_v53  ;;  %2581 = vmatpush.msrb.mxu2 %v1122_v54  ;;  %v1329_v53 = vld [vmem:[#allocation9 + $0x1350] sm:$0xff]  ;;  %v1330_v54 = vld [vmem:[#allocation9 + $0x1358] sm:$0xff] }
 0x1ff   :  { %2414 = vmatpush.msrb.mxu1 %v1207_v56  ;;  %2454 = vmatpush.msrb.mxu3 %v1208_v57  ;;  %v762_v56 = vld [vmem:[#allocation9 + $0x198] sm:$0xff]  ;;  %v2157_v57 = vadd.f32 %v2156_v49, %v1689_v33  ;;  %v1511_v49 = vld [vmem:[#allocation9 + $0x1900] sm:$0xff] }
 0x200   :  { %2415 = vmatmul.f32.vlgmr.msrb.gmra.mxu1 %v3606_v21  ;;  %2455 = vmatmul.f32.vlgmr.msrb.gmra.mxu3 %v3606_v21  ;;  %v1542_v33 = vld [vmem:[#allocation9 + $0x19f8] sm:$0xff] }
 0x201   :  { %2479 = vmatpush.msra.mxu1 %v1659_v45  ;;  %2519 = vmatpush.msra.mxu3 %v1660_v62  ;;  %v1299_v45 = vld [vmem:[#allocation9 + $0x1260] sm:$0xff]  ;;  %v1300_v62 = vld [vmem:[#allocation9 + $0x1268] sm:$0xff] }
 0x202   :  { %2542 = vmatpush.msrb.mxu0 %v1091_v40  ;;  %2582 = vmatpush.msrb.mxu2 %v1092_v63  ;;  %v731_v40 = vld [vmem:[#allocation9 + $0xa0] sm:$0xff]  ;;  %v732_v63 = vld [vmem:[#allocation9 + $0xa8] sm:$0xff] }
 0x203   :  { %2480 = vmatpush.msra.mxu1 %v1629_v0  ;;  %2520 = vmatpush.msra.mxu3 %v1630_v1  ;;  %v1690_v1 = vperm.slane %v3664_v10, 3 }
 0x204   :  { %2543 = vmatpush.msrb.mxu0 %v1061_v2  ;;  %2583 = vmatpush.msrb.mxu2 %v1062_v61  ;;  %v2196_v61 = vpop.f32.mrf.mxu2 }
 0x205   :  { %2481 = vmatpush.msra.mxu1 %v1599_v5  ;;  %2521 = vmatpush.msra.mxu3 %v1600_v6  ;;  %v1183_v5 = vld [vmem:[#allocation9 + $0xec0] sm:$0xff]  ;;  %v1184_v6 = vld [vmem:[#allocation9 + $0xec8] sm:$0xff] }
 0x206   :  { %2544 = vmatpush.msrb.mxu0 %v1031_v7  ;;  %2584 = vmatpush.msrb.mxu2 %v1032_v8  ;;  %v1269_v7 = vld [vmem:[#allocation9 + $0x1170] sm:$0xff]  ;;  %v1270_v8 = vld [vmem:[#allocation9 + $0x1178] sm:$0xff] }
 0x207   :  { %2482 = vmatpush.msra.mxu1 %v1569_v9  ;;  %2522 = vmatpush.msra.mxu3 %v1570_v12  ;;  %v1153_v9 = vld [vmem:[#allocation9 + $0xdd0] sm:$0xff]  ;;  %v1154_v12 = vld [vmem:[#allocation9 + $0xdd8] sm:$0xff] }
 0x208   :  { %2545 = vmatpush.msrb.mxu0 %v1001_v13  ;;  %2585 = vmatpush.msrb.mxu2 %v1002_v14  ;;  %v2197_v13 = vadd.f32 %v2196_v61, %v1690_v1  ;;  %v1239_v14 = vld [vmem:[#allocation9 + $0x1080] sm:$0xff]  ;;  %v1422_v1 = vld [vmem:[#allocation9 + $0x1638] sm:$0xff]  ;;  %v853_v61 = vld [vmem:[#allocation9 + $0x470] sm:$0xff] }
 0x209   :  { %2483 = vmatpush.msra.mxu1 %v1539_v41  ;;  %2523 = vmatpush.msra.mxu3 %v1540_v17  ;;  %v1240_v41 = vld [vmem:[#allocation9 + $0x1088] sm:$0xff]  ;;  %v1123_v17 = vld [vmem:[#allocation9 + $0xce0] sm:$0xff] }
 0x20a   :  { %2546 = vmatpush.msrb.mxu0 %v971_v18  ;;  %2586 = vmatpush.msrb.mxu2 %v972_v20  ;;  %v1124_v18 = vld [vmem:[#allocation9 + $0xce8] sm:$0xff] }
 0x20b   :  { %2484 = vmatpush.msra.mxu1 %v1509_v22  ;;  %2524 = vmatpush.msra.mxu3 %v1510_v23  ;;  %v1209_v22 = vld [vmem:[#allocation9 + $0xf90] sm:$0xff]  ;;  %v1210_v23 = vld [vmem:[#allocation9 + $0xf98] sm:$0xff] }
 0x20c   :  { %2547 = vmatpush.msrb.mxu0 %v941_v24  ;;  %2587 = vmatpush.msrb.mxu2 %v942_v25  ;;  %v1661_v25 = vld [vmem:[#allocation9 + $0x1db0] sm:$0xff] }
 0x20d   :  { %2485 = vmatpush.msra.mxu1 %v1479_v58  ;;  %2525 = vmatpush.msra.mxu3 %v1480_v16  ;;  %v1662_v58 = vld [vmem:[#allocation9 + $0x1db8] sm:$0xff]  ;;  %v1093_v16 = vld [vmem:[#allocation9 + $0xbf0] sm:$0xff] }
 0x20e   :  { %2548 = vmatpush.msrb.mxu0 %v911_v26  ;;  %2588 = vmatpush.msrb.mxu2 %v912_v28  ;;  %v1094_v26 = vld [vmem:[#allocation9 + $0xbf8] sm:$0xff]  ;;  %v1631_v28 = vld [vmem:[#allocation9 + $0x1cc0] sm:$0xff] }
 0x20f   :  { %2486 = vmatpush.msra.mxu1 %v1449_v29  ;;  %2526 = vmatpush.msra.mxu3 %v1450_v30  ;;  %v1632_v29 = vld [vmem:[#allocation9 + $0x1cc8] sm:$0xff]  ;;  %v1063_v30 = vld [vmem:[#allocation9 + $0xb00] sm:$0xff] }
 0x210   :  { %2549 = vmatpush.msrb.mxu0 %v881_v27  ;;  %2589 = vmatpush.msrb.mxu2 %v882_v31  ;;  %v1064_v27 = vld [vmem:[#allocation9 + $0xb08] sm:$0xff]  ;;  %v1601_v31 = vld [vmem:[#allocation9 + $0x1bd0] sm:$0xff] }
 0x211   :  { %2487 = vmatpush.msra.mxu1 %v1419_v34  ;;  %2527 = vmatpush.msra.mxu3 %v1420_v36  ;;  %v1602_v34 = vld [vmem:[#allocation9 + $0x1bd8] sm:$0xff]  ;;  %v1033_v36 = vld [vmem:[#allocation9 + $0xa10] sm:$0xff] }
 0x212   :  { %2550 = vmatpush.msrb.mxu0 %v851_v4  ;;  %2590 = vmatpush.msrb.mxu2 %v852_v38  ;;  %v1034_v4 = vld [vmem:[#allocation9 + $0xa18] sm:$0xff]  ;;  %v1571_v38 = vld [vmem:[#allocation9 + $0x1ae0] sm:$0xff] }
 0x213   :  { %2488 = vmatpush.msra.mxu1 %v1389_v42  ;;  %2528 = vmatpush.msra.mxu3 %v1390_v43  ;;  %v1572_v42 = vld [vmem:[#allocation9 + $0x1ae8] sm:$0xff]  ;;  %v1003_v43 = vld [vmem:[#allocation9 + $0x920] sm:$0xff] }
 0x214   :  { %2551 = vmatpush.msrb.mxu0 %v821_v44  ;;  %2591 = vmatpush.msrb.mxu2 %v822_v46  ;;  %v1004_v44 = vld [vmem:[#allocation9 + $0x928] sm:$0xff]  ;;  %v1541_v46 = vld [vmem:[#allocation9 + $0x19f0] sm:$0xff] }
 0x215   :  { %2489 = vmatpush.msra.mxu1 %v1359_v47  ;;  %2529 = vmatpush.msra.mxu3 %v1360_v48  ;;  %v973_v47 = vld [vmem:[#allocation9 + $0x830] sm:$0xff]  ;;  %v974_v48 = vld [vmem:[#allocation9 + $0x838] sm:$0xff] }
 0x216   :  { %2552 = vmatpush.msrb.mxu0 %v791_v50  ;;  %2592 = vmatpush.msrb.mxu2 %v792_v51  ;;  %v1512_v50 = vld [vmem:[#allocation9 + $0x1908] sm:$0xff]  ;;  %v943_v51 = vld [vmem:[#allocation9 + $0x740] sm:$0xff] }
 0x217   :  { %2490 = vmatpush.msra.mxu1 %v1329_v53  ;;  %2530 = vmatpush.msra.mxu3 %v1330_v54  ;;  %v2176_v0 = vpop.f32.mrf.mxu1  ;;  %v944_v53 = vld [vmem:[#allocation9 + $0x748] sm:$0xff]  ;;  %v1481_v54 = vld [vmem:[#allocation9 + $0x1810] sm:$0xff] }
 0x218   :  { %2553 = vmatpush.msrb.mxu0 %v761_v55  ;;  %2593 = vmatpush.msrb.mxu2 %v762_v56  ;;  %v3678_v2 = vadd.f32 %v2176_v0, %v2157_v57  ;;  %v1482_v55 = vld [vmem:[#allocation9 + $0x1818] sm:$0xff]  ;;  %v913_v56 = vld [vmem:[#allocation9 + $0x650] sm:$0xff] }
 0x219   :  { %2491 = vmatpush.msra.mxu1 %v1299_v45  ;;  %2531 = vmatpush.msra.mxu3 %v1300_v62  ;;  %v914_v57 = vld [vmem:[#allocation9 + $0x658] sm:$0xff]  ;;  %v1451_v45 = vld [vmem:[#allocation9 + $0x1720] sm:$0xff]  ;;  %v1452_v62 = vld [vmem:[#allocation9 + $0x1728] sm:$0xff] }
 0x21a   :  { %2554 = vmatpush.msrb.mxu0 %v731_v40  ;;  %2594 = vmatpush.msrb.mxu2 %v732_v63  ;;  %v883_v40 = vld [vmem:[#allocation9 + $0x560] sm:$0xff]  ;;  %v884_v63 = vld [vmem:[#allocation9 + $0x568] sm:$0xff]  ;;  %v1421_v0 = vld [vmem:[#allocation9 + $0x1630] sm:$0xff] }
 0x21b   :  { %2555 = vmatmul.f32.vlgmr.msrb.gmra.mxu0 %v3599_v35  ;;  %2595 = vmatmul.f32.vlgmr.msrb.gmra.mxu2 %v3599_v35 }
 0x21c   :  { %2619 = vmatpush.msra.mxu0 %v1183_v5  ;;  %2659 = vmatpush.msra.mxu2 %v1184_v6  ;;  %v854_v5 = vld [vmem:[#allocation9 + $0x478] sm:$0xff]  ;;  %v1391_v6 = vld [vmem:[#allocation9 + $0x1540] sm:$0xff] }
 0x21d   :  { %2492 = vmatpush.msra.mxu1 %v1269_v7  ;;  %2532 = vmatpush.msra.mxu3 %v1270_v8  ;;  %v2216_v20 = vpop.f32.mrf.mxu3  ;;  %v1392_v7 = vld [vmem:[#allocation9 + $0x1548] sm:$0xff]  ;;  %v823_v8 = vld [vmem:[#allocation9 + $0x380] sm:$0xff] }
 0x21e   :  { %2620 = vmatpush.msra.mxu0 %v1153_v9  ;;  %2660 = vmatpush.msra.mxu2 %v1154_v12  ;;  %v3682_v24 = vadd.f32 %v2216_v20, %v2197_v13  ;;  %v824_v9 = vld [vmem:[#allocation9 + $0x388] sm:$0xff]  ;;  %v1361_v12 = vld [vmem:[#allocation9 + $0x1450] sm:$0xff]  ;;  %v1362_v13 = vld [vmem:[#allocation9 + $0x1458] sm:$0xff] }
 0x21f   :  { %2493 = vmatpush.msra.mxu1 %v1239_v14  ;;  %2533 = vmatpush.msra.mxu3 %v1240_v41  ;;  %v793_v14 = vld [vmem:[#allocation9 + $0x290] sm:$0xff]  ;;  %v794_v41 = vld [vmem:[#allocation9 + $0x298] sm:$0xff]  ;;  %v763_v20 = vld [vmem:[#allocation9 + $0x1a0] sm:$0xff] }
 0x220   :  { %2621 = vmatpush.msra.mxu0 %v1123_v17  ;;  %2661 = vmatpush.msra.mxu2 %v1124_v18  ;;  %v1331_v17 = vld [vmem:[#allocation9 + $0x1360] sm:$0xff]  ;;  %v1332_v18 = vld [vmem:[#allocation9 + $0x1368] sm:$0xff] }
 0x221   :  { %2494 = vmatpush.msra.mxu1 %v1209_v22  ;;  %2534 = vmatpush.msra.mxu3 %v1210_v23  ;;  %v764_v22 = vld [vmem:[#allocation9 + $0x1a8] sm:$0xff]  ;;  %v1301_v23 = vld [vmem:[#allocation9 + $0x1270] sm:$0xff] }
 0x222   :  { %2495 = vmatmul.f32.vlgmr.msra.gmra.mxu1 %v3606_v21  ;;  %2535 = vmatmul.f32.vlgmr.msra.gmra.mxu3 %v3606_v21 }
 0x223   :  { %2559 = vmatpush.msrb.mxu1 %v1661_v25  ;;  %2599 = vmatpush.msrb.mxu3 %v1662_v58  ;;  %v1302_v25 = vld [vmem:[#allocation9 + $0x1278] sm:$0xff]  ;;  %v733_v58 = vld [vmem:[#allocation9 + $0xb0] sm:$0xff] }
 0x224   :  { %2622 = vmatpush.msra.mxu0 %v1093_v16  ;;  %2662 = vmatpush.msra.mxu2 %v1094_v26  ;;  %v734_v16 = vld [vmem:[#allocation9 + $0xb8] sm:$0xff]  ;;  %v1185_v26 = vld [vmem:[#allocation9 + $0xed0] sm:$0xff] }
 0x225   :  { %2560 = vmatpush.msrb.mxu1 %v1631_v28  ;;  %2600 = vmatpush.msrb.mxu3 %v1632_v29  ;;  %v1186_v28 = vld [vmem:[#allocation9 + $0xed8] sm:$0xff]  ;;  %v1271_v29 = vld [vmem:[#allocation9 + $0x1180] sm:$0xff] }
 0x226   :  { %2623 = vmatpush.msra.mxu0 %v1063_v30  ;;  %2663 = vmatpush.msra.mxu2 %v1064_v27  ;;  %v1272_v30 = vld [vmem:[#allocation9 + $0x1188] sm:$0xff]  ;;  %v1155_v27 = vld [vmem:[#allocation9 + $0xde0] sm:$0xff] }
 0x227   :  { %2561 = vmatpush.msrb.mxu1 %v1601_v31  ;;  %2601 = vmatpush.msrb.mxu3 %v1602_v34  ;;  %v1156_v31 = vld [vmem:[#allocation9 + $0xde8] sm:$0xff]  ;;  %v1241_v34 = vld [vmem:[#allocation9 + $0x1090] sm:$0xff] }
 0x228   :  { %2624 = vmatpush.msra.mxu0 %v1033_v36  ;;  %2664 = vmatpush.msra.mxu2 %v1034_v4  ;;  %v1242_v36 = vld [vmem:[#allocation9 + $0x1098] sm:$0xff]  ;;  %v1125_v4 = vld [vmem:[#allocation9 + $0xcf0] sm:$0xff] }
 0x229   :  { %2562 = vmatpush.msrb.mxu1 %v1571_v38  ;;  %2602 = vmatpush.msrb.mxu3 %v1572_v42  ;;  %v1126_v38 = vld [vmem:[#allocation9 + $0xcf8] sm:$0xff]  ;;  %v1211_v42 = vld [vmem:[#allocation9 + $0xfa0] sm:$0xff] }
 0x22a   :  { %2625 = vmatpush.msra.mxu0 %v1003_v43  ;;  %2665 = vmatpush.msra.mxu2 %v1004_v44  ;;  %v1212_v43 = vld [vmem:[#allocation9 + $0xfa8] sm:$0xff]  ;;  %v1663_v44 = vld [vmem:[#allocation9 + $0x1dc0] sm:$0xff] }
 0x22b   :  { %2563 = vmatpush.msrb.mxu1 %v1541_v46  ;;  %2603 = vmatpush.msrb.mxu3 %v1542_v33  ;;  %v1664_v46 = vld [vmem:[#allocation9 + $0x1dc8] sm:$0xff]  ;;  %v1095_v33 = vld [vmem:[#allocation9 + $0xc00] sm:$0xff] }
 0x22c   :  { %2626 = vmatpush.msra.mxu0 %v973_v47  ;;  %2666 = vmatpush.msra.mxu2 %v974_v48  ;;  %v1096_v47 = vld [vmem:[#allocation9 + $0xc08] sm:$0xff]  ;;  %v1633_v48 = vld [vmem:[#allocation9 + $0x1cd0] sm:$0xff] }
 0x22d   :  { %2564 = vmatpush.msrb.mxu1 %v1511_v49  ;;  %2604 = vmatpush.msrb.mxu3 %v1512_v50  ;;  %v1634_v49 = vld [vmem:[#allocation9 + $0x1cd8] sm:$0xff]  ;;  %v1065_v50 = vld [vmem:[#allocation9 + $0xb10] sm:$0xff] }
 0x22e   :  { %2627 = vmatpush.msra.mxu0 %v943_v51  ;;  %2667 = vmatpush.msra.mxu2 %v944_v53  ;;  %v1066_v51 = vld [vmem:[#allocation9 + $0xb18] sm:$0xff]  ;;  %v1603_v53 = vld [vmem:[#allocation9 + $0x1be0] sm:$0xff] }
 0x22f   :  { %2565 = vmatpush.msrb.mxu1 %v1481_v54  ;;  %2605 = vmatpush.msrb.mxu3 %v1482_v55  ;;  %v1604_v54 = vld [vmem:[#allocation9 + $0x1be8] sm:$0xff]  ;;  %v1035_v55 = vld [vmem:[#allocation9 + $0xa20] sm:$0xff] }
 0x230   :  { %2628 = vmatpush.msra.mxu0 %v913_v56  ;;  %2668 = vmatpush.msra.mxu2 %v914_v57  ;;  %v1036_v56 = vld [vmem:[#allocation9 + $0xa28] sm:$0xff]  ;;  %v1573_v57 = vld [vmem:[#allocation9 + $0x1af0] sm:$0xff] }
 0x231   :  { %2566 = vmatpush.msrb.mxu1 %v1451_v45  ;;  %2606 = vmatpush.msrb.mxu3 %v1452_v62  ;;  %v1574_v45 = vld [vmem:[#allocation9 + $0x1af8] sm:$0xff]  ;;  %v1005_v62 = vld [vmem:[#allocation9 + $0x930] sm:$0xff] }
 0x232   :  { %2629 = vmatpush.msra.mxu0 %v883_v40  ;;  %2669 = vmatpush.msra.mxu2 %v884_v63  ;;  %v1006_v40 = vld [vmem:[#allocation9 + $0x938] sm:$0xff]  ;;  %v1543_v63 = vld [vmem:[#allocation9 + $0x1a00] sm:$0xff] }
 0x233   :  { %2567 = vmatpush.msrb.mxu1 %v1421_v0  ;;  %2607 = vmatpush.msrb.mxu3 %v1422_v1  ;;  %v1544_v0 = vld [vmem:[#allocation9 + $0x1a08] sm:$0xff]  ;;  %v975_v1 = vld [vmem:[#allocation9 + $0x840] sm:$0xff] }
 0x234   :  { %2630 = vmatpush.msra.mxu0 %v853_v61  ;;  %2670 = vmatpush.msra.mxu2 %v854_v5  ;;  %v976_v61 = vld [vmem:[#allocation9 + $0x848] sm:$0xff]  ;;  %v1513_v5 = vld [vmem:[#allocation9 + $0x1910] sm:$0xff] }
 0x235   :  { %2568 = vmatpush.msrb.mxu1 %v1391_v6  ;;  %2608 = vmatpush.msrb.mxu3 %v1392_v7  ;;  %v1514_v6 = vld [vmem:[#allocation9 + $0x1918] sm:$0xff]  ;;  %v945_v7 = vld [vmem:[#allocation9 + $0x750] sm:$0xff] }
 0x236   :  { %2631 = vmatpush.msra.mxu0 %v823_v8  ;;  %2671 = vmatpush.msra.mxu2 %v824_v9  ;;  %v946_v8 = vld [vmem:[#allocation9 + $0x758] sm:$0xff]  ;;  %v1483_v9 = vld [vmem:[#allocation9 + $0x1820] sm:$0xff] }
 0x237   :  { %2569 = vmatpush.msrb.mxu1 %v1361_v12  ;;  %2609 = vmatpush.msrb.mxu3 %v1362_v13  ;;  %v1484_v12 = vld [vmem:[#allocation9 + $0x1828] sm:$0xff]  ;;  %v3690_v13 = vpop.f32.mrf.mxu0 }
 0x238   :  { %2632 = vmatpush.msra.mxu0 %v793_v14  ;;  %2672 = vmatpush.msra.mxu2 %v794_v41  ;;  %v915_v14 = vld [vmem:[#allocation9 + $0x660] sm:$0xff]  ;;  %v916_v41 = vld [vmem:[#allocation9 + $0x668] sm:$0xff] }
 0x239   :  { %2570 = vmatpush.msrb.mxu1 %v1331_v17  ;;  %2610 = vmatpush.msrb.mxu3 %v1332_v18  ;;  %v1453_v17 = vld [vmem:[#allocation9 + $0x1730] sm:$0xff]  ;;  %v1454_v18 = vld [vmem:[#allocation9 + $0x1738] sm:$0xff] }
 0x23a   :  { %2633 = vmatpush.msra.mxu0 %v763_v20  ;;  %2673 = vmatpush.msra.mxu2 %v764_v22  ;;  %v885_v20 = vld [vmem:[#allocation9 + $0x570] sm:$0xff]  ;;  %v886_v22 = vld [vmem:[#allocation9 + $0x578] sm:$0xff] }
 0x23b   :  { %2571 = vmatpush.msrb.mxu1 %v1301_v23  ;;  %2611 = vmatpush.msrb.mxu3 %v1302_v25  ;;  %v1423_v23 = vld [vmem:[#allocation9 + $0x1640] sm:$0xff]  ;;  %v1424_v25 = vld [vmem:[#allocation9 + $0x1648] sm:$0xff] }
 0x23c   :  { %2634 = vmatpush.msra.mxu0 %v733_v58  ;;  %2674 = vmatpush.msra.mxu2 %v734_v16  ;;  %v3692_v58 = vpop.f32.mrf.mxu1  ;;  %v855_v16 = vld [vmem:[#allocation9 + $0x480] sm:$0xff] }
 0x23d   :  { %2635 = vmatmul.f32.vlgmr.msra.gmra.mxu0 %v3599_v35  ;;  %2675 = vmatmul.f32.vlgmr.msra.gmra.mxu2 %v3599_v35 }
 0x23e   :  { %2699 = vmatpush.msrb.mxu0 %v1185_v26  ;;  %2739 = vmatpush.msrb.mxu2 %v1186_v28  ;;  %v856_v26 = vld [vmem:[#allocation9 + $0x488] sm:$0xff]  ;;  %v1393_v28 = vld [vmem:[#allocation9 + $0x1550] sm:$0xff] }
 0x23f   :  { %2572 = vmatpush.msrb.mxu1 %v1271_v29  ;;  %2612 = vmatpush.msrb.mxu3 %v1272_v30  ;;  %v1394_v29 = vld [vmem:[#allocation9 + $0x1558] sm:$0xff]  ;;  %v3694_v30 = vpop.f32.mrf.mxu2 }
 0x240   :  { %2700 = vmatpush.msrb.mxu0 %v1155_v27  ;;  %2740 = vmatpush.msrb.mxu2 %v1156_v31  ;;  %v825_v27 = vld [vmem:[#allocation9 + $0x390] sm:$0xff]  ;;  %v826_v31 = vld [vmem:[#allocation9 + $0x398] sm:$0xff] }
 0x241   :  { %2573 = vmatpush.msrb.mxu1 %v1241_v34  ;;  %2613 = vmatpush.msrb.mxu3 %v1242_v36  ;;  %v1693_v34 = vperm.slane %v3664_v10, 6  ;;  %v1363_v36 = vld [vmem:[#allocation9 + $0x1460] sm:$0xff] }
 0x242   :  { %2701 = vmatpush.msrb.mxu0 %v1125_v4  ;;  %2741 = vmatpush.msrb.mxu2 %v1126_v38  ;;  %v1364_v4 = vld [vmem:[#allocation9 + $0x1468] sm:$0xff]  ;;  %v2316_v38 = vpop.f32.mrf.mxu0 }
 0x243   :  { %2574 = vmatpush.msrb.mxu1 %v1211_v42  ;;  %2614 = vmatpush.msrb.mxu3 %v1212_v43  ;;  %v795_v42 = vld [vmem:[#allocation9 + $0x2a0] sm:$0xff]  ;;  %v796_v43 = vld [vmem:[#allocation9 + $0x2a8] sm:$0xff] }
 0x244   :  { %2575 = vmatmul.f32.vlgmr.msrb.gmra.mxu1 %v3606_v21  ;;  %2615 = vmatmul.f32.vlgmr.msrb.gmra.mxu3 %v3606_v21 }
 0x245   :  { %2639 = vmatpush.msra.mxu1 %v1663_v44  ;;  %2679 = vmatpush.msra.mxu3 %v1664_v46  ;;  %v1333_v44 = vld [vmem:[#allocation9 + $0x1370] sm:$0xff]  ;;  %v1334_v46 = vld [vmem:[#allocation9 + $0x1378] sm:$0xff] }
 0x246   :  { %2702 = vmatpush.msrb.mxu0 %v1095_v33  ;;  %2742 = vmatpush.msrb.mxu2 %v1096_v47  ;;  %v3697_v33 = vpop.f32.mrf.mxu3  ;;  %v765_v47 = vld [vmem:[#allocation9 + $0x1b0] sm:$0xff] }
 0x247   :  { %2640 = vmatpush.msra.mxu1 %v1633_v48  ;;  %2680 = vmatpush.msra.mxu3 %v1634_v49  ;;  %v766_v48 = vld [vmem:[#allocation9 + $0x1b8] sm:$0xff]  ;;  %v2317_v49 = vadd.f32 %v2316_v38, %v1693_v34  ;;  %v1575_v38 = vld [vmem:[#allocation9 + $0x1b00] sm:$0xff] }
 0x248   :  { %2703 = vmatpush.msrb.mxu0 %v1065_v50  ;;  %2743 = vmatpush.msrb.mxu2 %v1066_v51  ;;  %v1303_v50 = vld [vmem:[#allocation9 + $0x1280] sm:$0xff]  ;;  %v1304_v51 = vld [vmem:[#allocation9 + $0x1288] sm:$0xff]  ;;  %v1606_v34 = vld [vmem:[#allocation9 + $0x1bf8] sm:$0xff] }
 0x249   :  { %2641 = vmatpush.msra.mxu1 %v1603_v53  ;;  %2681 = vmatpush.msra.mxu3 %v1604_v54  ;;  %v735_v53 = vld [vmem:[#allocation9 + $0xc0] sm:$0xff]  ;;  %v736_v54 = vld [vmem:[#allocation9 + $0xc8] sm:$0xff] }
 0x24a   :  { %2704 = vmatpush.msrb.mxu0 %v1035_v55  ;;  %2744 = vmatpush.msrb.mxu2 %v1036_v56  ;;  %v1694_v56 = vperm.slane %v3664_v10, 7  ;;  %v1158_v10 = vld [vmem:[#allocation9 + $0xdf8] sm:$0xff] }
 0x24b   :  { %2642 = vmatpush.msra.mxu1 %v1573_v57  ;;  %2682 = vmatpush.msra.mxu3 %v1574_v45  ;;  %v2356_v45 = vpop.f32.mrf.mxu2 }
 0x24c   :  { %2705 = vmatpush.msrb.mxu0 %v1005_v62  ;;  %2745 = vmatpush.msrb.mxu2 %v1006_v40  ;;  %v1187_v62 = vld [vmem:[#allocation9 + $0xee0] sm:$0xff]  ;;  %v1188_v40 = vld [vmem:[#allocation9 + $0xee8] sm:$0xff] }
 0x24d   :  { %2643 = vmatpush.msra.mxu1 %v1543_v63  ;;  %2683 = vmatpush.msra.mxu3 %v1544_v0  ;;  %v1273_v63 = vld [vmem:[#allocation9 + $0x1190] sm:$0xff]  ;;  %v1274_v0 = vld [vmem:[#allocation9 + $0x1198] sm:$0xff] }
 0x24e   :  { %2706 = vmatpush.msrb.mxu0 %v975_v1  ;;  %2746 = vmatpush.msrb.mxu2 %v976_v61  ;;  %v1157_v61 = vld [vmem:[#allocation9 + $0xdf0] sm:$0xff] }
 0x24f   :  { %2644 = vmatpush.msra.mxu1 %v1513_v5  ;;  %2684 = vmatpush.msra.mxu3 %v1514_v6  ;;  %v2357_v5 = vadd.f32 %v2356_v45, %v1694_v56  ;;  %v1243_v6 = vld [vmem:[#allocation9 + $0x10a0] sm:$0xff]  ;;  %v917_v56 = vld [vmem:[#allocation9 + $0x670] sm:$0xff] }
 0x250   :  { %2707 = vmatpush.msrb.mxu0 %v945_v7  ;;  %2747 = vmatpush.msrb.mxu2 %v946_v8  ;;  %v1244_v7 = vld [vmem:[#allocation9 + $0x10a8] sm:$0xff]  ;;  %v1455_v45 = vld [vmem:[#allocation9 + $0x1740] sm:$0xff] }
 0x251   :  { %2645 = vmatpush.msra.mxu1 %v1483_v9  ;;  %2685 = vmatpush.msra.mxu3 %v1484_v12  ;;  %v1127_v9 = vld [vmem:[#allocation9 + $0xd00] sm:$0xff]  ;;  %v1128_v12 = vld [vmem:[#allocation9 + $0xd08] sm:$0xff] }
 0x252   :  { %2708 = vmatpush.msrb.mxu0 %v915_v14  ;;  %2748 = vmatpush.msrb.mxu2 %v916_v41  ;;  %v1213_v41 = vld [vmem:[#allocation9 + $0xfb0] sm:$0xff] }
 0x253   :  { %2646 = vmatpush.msra.mxu1 %v1453_v17  ;;  %2686 = vmatpush.msra.mxu3 %v1454_v18  ;;  %v1214_v17 = vld [vmem:[#allocation9 + $0xfb8] sm:$0xff] }
 0x254   :  { %2709 = vmatpush.msrb.mxu0 %v885_v20  ;;  %2749 = vmatpush.msrb.mxu2 %v886_v22  ;;  %v1665_v20 = vld [vmem:[#allocation9 + $0x1dd0] sm:$0xff]  ;;  %v1666_v22 = vld [vmem:[#allocation9 + $0x1dd8] sm:$0xff] }
 0x255   :  { %2647 = vmatpush.msra.mxu1 %v1423_v23  ;;  %2687 = vmatpush.msra.mxu3 %v1424_v25  ;;  %v1098_v25 = vld [vmem:[#allocation9 + $0xc18] sm:$0xff] }
 0x256   :  { %2710 = vmatpush.msrb.mxu0 %v855_v16  ;;  %2750 = vmatpush.msrb.mxu2 %v856_v26  ;;  %v1635_v16 = vld [vmem:[#allocation9 + $0x1ce0] sm:$0xff]  ;;  %v1636_v26 = vld [vmem:[#allocation9 + $0x1ce8] sm:$0xff] }
 0x257   :  { %2648 = vmatpush.msra.mxu1 %v1393_v28  ;;  %2688 = vmatpush.msra.mxu3 %v1394_v29  ;;  %v1067_v29 = vld [vmem:[#allocation9 + $0xb20] sm:$0xff] }
 0x258   :  { %2711 = vmatpush.msrb.mxu0 %v825_v27  ;;  %2751 = vmatpush.msrb.mxu2 %v826_v31  ;;  %v1068_v27 = vld [vmem:[#allocation9 + $0xb28] sm:$0xff]  ;;  %v1605_v31 = vld [vmem:[#allocation9 + $0x1bf0] sm:$0xff] }
 0x259   :  { %2649 = vmatpush.msra.mxu1 %v1363_v36  ;;  %2689 = vmatpush.msra.mxu3 %v1364_v4  ;;  %v1037_v36 = vld [vmem:[#allocation9 + $0xa30] sm:$0xff]  ;;  %v1038_v4 = vld [vmem:[#allocation9 + $0xa38] sm:$0xff] }
 0x25a   :  { %2712 = vmatpush.msrb.mxu0 %v795_v42  ;;  %2752 = vmatpush.msrb.mxu2 %v796_v43  ;;  %v1576_v42 = vld [vmem:[#allocation9 + $0x1b08] sm:$0xff] }
 0x25b   :  { %2650 = vmatpush.msra.mxu1 %v1333_v44  ;;  %2690 = vmatpush.msra.mxu3 %v1334_v46  ;;  %v2336_v55 = vpop.f32.mrf.mxu1  ;;  %v1008_v43 = vld [vmem:[#allocation9 + $0x948] sm:$0xff]  ;;  %v1545_v44 = vld [vmem:[#allocation9 + $0x1a10] sm:$0xff]  ;;  %v1546_v46 = vld [vmem:[#allocation9 + $0x1a18] sm:$0xff] }
 0x25c   :  { %2713 = vmatpush.msrb.mxu0 %v765_v47  ;;  %2753 = vmatpush.msrb.mxu2 %v766_v48  ;;  %v2337_v57 = vadd.f32 %v2336_v55, %v2317_v49  ;;  %v977_v47 = vld [vmem:[#allocation9 + $0x850] sm:$0xff]  ;;  %v978_v48 = vld [vmem:[#allocation9 + $0x858] sm:$0xff]  ;;  %v1515_v49 = vld [vmem:[#allocation9 + $0x1920] sm:$0xff] }
 0x25d   :  { %2651 = vmatpush.msra.mxu1 %v1303_v50  ;;  %2691 = vmatpush.msra.mxu3 %v1304_v51  ;;  %v1516_v50 = vld [vmem:[#allocation9 + $0x1928] sm:$0xff]  ;;  %v947_v51 = vld [vmem:[#allocation9 + $0x760] sm:$0xff]  ;;  %v1486_v55 = vld [vmem:[#allocation9 + $0x1838] sm:$0xff] }
 0x25e   :  { %2714 = vmatpush.msrb.mxu0 %v735_v53  ;;  %2754 = vmatpush.msrb.mxu2 %v736_v54  ;;  %v2992_v1 = vrot.slane %v2337_v57, 4  ;;  %v948_v53 = vld [vmem:[#allocation9 + $0x768] sm:$0xff]  ;;  %v1485_v54 = vld [vmem:[#allocation9 + $0x1830] sm:$0xff]  ;;  %v918_v57 = vld [vmem:[#allocation9 + $0x678] sm:$0xff] }
 0x25f   :  { %2715 = vmatmul.f32.vlgmr.msrb.gmra.mxu0 %v3599_v35  ;;  %2755 = vmatmul.f32.vlgmr.msrb.gmra.mxu2 %v3599_v35 }
 0x260   :  { %2779 = vmatpush.msra.mxu0 %v1187_v62  ;;  %2819 = vmatpush.msra.mxu2 %v1188_v40  ;;  %v3704_v8 = vsel %vm2940_vm2, %v2992_v1, %v3638_v52  ;;  %v1097_v52 = vld [vmem:[#allocation9 + $0xc10] sm:$0xff]  ;;  %v1456_v62 = vld [vmem:[#allocation9 + $0x1748] sm:$0xff]  ;;  %v887_v40 = vld [vmem:[#allocation9 + $0x580] sm:$0xff] }
 0x261   :  { %2652 = vmatpush.msra.mxu1 %v1273_v63  ;;  %2692 = vmatpush.msra.mxu3 %v1274_v0  ;;  %v2376_v14 = vpop.f32.mrf.mxu3  ;;  %v888_v63 = vld [vmem:[#allocation9 + $0x588] sm:$0xff]  ;;  %v1425_v0 = vld [vmem:[#allocation9 + $0x1650] sm:$0xff]  ;;  %v1426_v1 = vld [vmem:[#allocation9 + $0x1658] sm:$0xff] }
 0x262   :  { %2780 = vmatpush.msra.mxu0 %v1157_v61  ;;  %2820 = vmatpush.msra.mxu2 %v1158_v10  ;;  %v2377_v18 = vadd.f32 %v2376_v14, %v2357_v5  ;;  %v3712_v61 = vld [vmem:[#allocation10 + $0x10] sm:$0xff]  ;;  %v858_v5 = vld [vmem:[#allocation9 + $0x498] sm:$0xff] }
 0x263   :  { %2653 = vmatpush.msra.mxu1 %v1243_v6  ;;  %2693 = vmatpush.msra.mxu3 %v1244_v7  ;;  %v857_v10 = vld [vmem:[#allocation9 + $0x490] sm:$0xff]  ;;  %v1395_v6 = vld [vmem:[#allocation9 + $0x1560] sm:$0xff]  ;;  %v1396_v7 = vld [vmem:[#allocation9 + $0x1568] sm:$0xff]  ;;  %v1695_v14 = vperm.slane %v3712_v61, 0 }
 0x264   :  { %2781 = vmatpush.msra.mxu0 %v1127_v9  ;;  %2821 = vmatpush.msra.mxu2 %v1128_v12  ;;  %v3018_v23 = vrot.slane %v2377_v18, 4  ;;  %v827_v9 = vld [vmem:[#allocation9 + $0x3a0] sm:$0xff]  ;;  %v828_v12 = vld [vmem:[#allocation9 + $0x3a8] sm:$0xff]  ;;  %v2396_v18 = vpop.f32.mrf.mxu0 }
 0x265   :  { %2654 = vmatpush.msra.mxu1 %v1213_v41  ;;  %2694 = vmatpush.msra.mxu3 %v1214_v17  ;;  %v1365_v41 = vld [vmem:[#allocation9 + $0x1470] sm:$0xff]  ;;  %v1366_v17 = vld [vmem:[#allocation9 + $0x1478] sm:$0xff] }
 0x266   :  { %2655 = vmatmul.f32.vlgmr.msra.gmra.mxu1 %v3606_v21  ;;  %2695 = vmatmul.f32.vlgmr.msra.gmra.mxu3 %v3606_v21  ;;  %v3710_v28 = vsel %vm2940_vm2, %v3018_v23, %v3642_v3  ;;  %v1007_v3 = vld [vmem:[#allocation9 + $0x940] sm:$0xff] }
 0x267   :  { %2719 = vmatpush.msrb.mxu1 %v1665_v20  ;;  %2759 = vmatpush.msrb.mxu3 %v1666_v22  ;;  %v797_v20 = vld [vmem:[#allocation9 + $0x2b0] sm:$0xff]  ;;  %v798_v22 = vld [vmem:[#allocation9 + $0x2b8] sm:$0xff]  ;;  %v1335_v23 = vld [vmem:[#allocation9 + $0x1380] sm:$0xff] }
 0x268   :  { %2782 = vmatpush.msra.mxu0 %v1097_v52  ;;  %2822 = vmatpush.msra.mxu2 %v1098_v25  ;;  %v1336_v52 = vld [vmem:[#allocation9 + $0x1388] sm:$0xff]  ;;  %v767_v25 = vld [vmem:[#allocation9 + $0x1c0] sm:$0xff] }
 0x269   :  { %2720 = vmatpush.msrb.mxu1 %v1635_v16  ;;  %2760 = vmatpush.msrb.mxu3 %v1636_v26  ;;  %v768_v16 = vld [vmem:[#allocation9 + $0x1c8] sm:$0xff]  ;;  %v2397_v26 = vadd.f32 %v2396_v18, %v1695_v14  ;;  %v1607_v14 = vld [vmem:[#allocation9 + $0x1c00] sm:$0xff] }
 0x26a   :  { %2783 = vmatpush.msra.mxu0 %v1067_v29  ;;  %2823 = vmatpush.msra.mxu2 %v1068_v27  ;;  %v1305_v29 = vld [vmem:[#allocation9 + $0x1290] sm:$0xff]  ;;  %v1306_v27 = vld [vmem:[#allocation9 + $0x1298] sm:$0xff]  ;;  %v1040_v18 = vld [vmem:[#allocation9 + $0xa48] sm:$0xff] }
 0x26b   :  { %2721 = vmatpush.msrb.mxu1 %v1605_v31  ;;  %2761 = vmatpush.msrb.mxu3 %v1606_v34  ;;  %v737_v31 = vld [vmem:[#allocation9 + $0xd0] sm:$0xff]  ;;  %v738_v34 = vld [vmem:[#allocation9 + $0xd8] sm:$0xff] }
 0x26c   :  { %2784 = vmatpush.msra.mxu0 %v1037_v36  ;;  %2824 = vmatpush.msra.mxu2 %v1038_v4  ;;  %v1696_v4 = vperm.slane %v3712_v61, 1 }
 0x26d   :  { %2722 = vmatpush.msrb.mxu1 %v1575_v38  ;;  %2762 = vmatpush.msrb.mxu3 %v1576_v42  ;;  %v2436_v42 = vpop.f32.mrf.mxu2 }
 0x26e   :  { %2785 = vmatpush.msra.mxu0 %v1007_v3  ;;  %2825 = vmatpush.msra.mxu2 %v1008_v43  ;;  %v1189_v3 = vld [vmem:[#allocation9 + $0xef0] sm:$0xff]  ;;  %v1190_v43 = vld [vmem:[#allocation9 + $0xef8] sm:$0xff] }
 0x26f   :  { %2723 = vmatpush.msrb.mxu1 %v1545_v44  ;;  %2763 = vmatpush.msrb.mxu3 %v1546_v46  ;;  %v1275_v44 = vld [vmem:[#allocation9 + $0x11a0] sm:$0xff]  ;;  %v1276_v46 = vld [vmem:[#allocation9 + $0x11a8] sm:$0xff] }
 0x270   :  { %2786 = vmatpush.msra.mxu0 %v977_v47  ;;  %2826 = vmatpush.msra.mxu2 %v978_v48  ;;  %v1159_v48 = vld [vmem:[#allocation9 + $0xe00] sm:$0xff] }
 0x271   :  { %2724 = vmatpush.msrb.mxu1 %v1515_v49  ;;  %2764 = vmatpush.msrb.mxu3 %v1516_v50  ;;  %v1160_v49 = vld [vmem:[#allocation9 + $0xe08] sm:$0xff]  ;;  %v2437_v50 = vadd.f32 %v2436_v42, %v1696_v4 }
 0x272   :  { %2787 = vmatpush.msra.mxu0 %v947_v51  ;;  %2827 = vmatpush.msra.mxu2 %v948_v53  ;;  %v1245_v51 = vld [vmem:[#allocation9 + $0x10b0] sm:$0xff]  ;;  %v1246_v53 = vld [vmem:[#allocation9 + $0x10b8] sm:$0xff]  ;;  %v1488_v4 = vld [vmem:[#allocation9 + $0x1848] sm:$0xff] }
 0x273   :  { %2725 = vmatpush.msrb.mxu1 %v1485_v54  ;;  %2765 = vmatpush.msrb.mxu3 %v1486_v55  ;;  %v1129_v55 = vld [vmem:[#allocation9 + $0xd10] sm:$0xff]  ;;  %v920_v42 = vld [vmem:[#allocation9 + $0x688] sm:$0xff] }
 0x274   :  { %2788 = vmatpush.msra.mxu0 %v917_v56  ;;  %2828 = vmatpush.msra.mxu2 %v918_v57  ;;  %v1130_v56 = vld [vmem:[#allocation9 + $0xd18] sm:$0xff] }
 0x275   :  { %2726 = vmatpush.msrb.mxu1 %v1455_v45  ;;  %2766 = vmatpush.msrb.mxu3 %v1456_v62  ;;  %v1215_v45 = vld [vmem:[#allocation9 + $0xfc0] sm:$0xff]  ;;  %v1216_v62 = vld [vmem:[#allocation9 + $0xfc8] sm:$0xff] }
 0x276   :  { %2789 = vmatpush.msra.mxu0 %v887_v40  ;;  %2829 = vmatpush.msra.mxu2 %v888_v63  ;;  %v1667_v63 = vld [vmem:[#allocation9 + $0x1de0] sm:$0xff] }
 0x277   :  { %2727 = vmatpush.msrb.mxu1 %v1425_v0  ;;  %2767 = vmatpush.msrb.mxu3 %v1426_v1  ;;  %v1668_v0 = vld [vmem:[#allocation9 + $0x1de8] sm:$0xff] }
 0x278   :  { %2790 = vmatpush.msra.mxu0 %v857_v10  ;;  %2830 = vmatpush.msra.mxu2 %v858_v5  ;;  %v1100_v10 = vld [vmem:[#allocation9 + $0xc28] sm:$0xff]  ;;  %v1637_v5 = vld [vmem:[#allocation9 + $0x1cf0] sm:$0xff] }
 0x279   :  { %2728 = vmatpush.msrb.mxu1 %v1395_v6  ;;  %2768 = vmatpush.msrb.mxu3 %v1396_v7  ;;  %v1638_v6 = vld [vmem:[#allocation9 + $0x1cf8] sm:$0xff] }
 0x27a   :  { %2791 = vmatpush.msra.mxu0 %v827_v9  ;;  %2831 = vmatpush.msra.mxu2 %v828_v12  ;;  %v1069_v9 = vld [vmem:[#allocation9 + $0xb30] sm:$0xff]  ;;  %v1070_v12 = vld [vmem:[#allocation9 + $0xb38] sm:$0xff] }
 0x27b   :  { %2729 = vmatpush.msrb.mxu1 %v1365_v41  ;;  %2769 = vmatpush.msrb.mxu3 %v1366_v17  ;;  %v1608_v41 = vld [vmem:[#allocation9 + $0x1c08] sm:$0xff]  ;;  %v1039_v17 = vld [vmem:[#allocation9 + $0xa40] sm:$0xff] }
 0x27c   :  { %2792 = vmatpush.msra.mxu0 %v797_v20  ;;  %2832 = vmatpush.msra.mxu2 %v798_v22  ;;  %v1577_v20 = vld [vmem:[#allocation9 + $0x1b10] sm:$0xff]  ;;  %v1578_v22 = vld [vmem:[#allocation9 + $0x1b18] sm:$0xff] }
 0x27d   :  { %2730 = vmatpush.msrb.mxu1 %v1335_v23  ;;  %2770 = vmatpush.msrb.mxu3 %v1336_v52  ;;  %v2416_v36 = vpop.f32.mrf.mxu1  ;;  %v1010_v23 = vld [vmem:[#allocation9 + $0x958] sm:$0xff]  ;;  %v1547_v52 = vld [vmem:[#allocation9 + $0x1a20] sm:$0xff] }
 0x27e   :  { %2793 = vmatpush.msra.mxu0 %v767_v25  ;;  %2833 = vmatpush.msra.mxu2 %v768_v16  ;;  %v2417_v38 = vadd.f32 %v2416_v36, %v2397_v26  ;;  %v1548_v25 = vld [vmem:[#allocation9 + $0x1a28] sm:$0xff]  ;;  %v979_v16 = vld [vmem:[#allocation9 + $0x860] sm:$0xff] }
 0x27f   :  { %2731 = vmatpush.msrb.mxu1 %v1305_v29  ;;  %2771 = vmatpush.msrb.mxu3 %v1306_v27  ;;  %v980_v26 = vld [vmem:[#allocation9 + $0x868] sm:$0xff]  ;;  %v1517_v29 = vld [vmem:[#allocation9 + $0x1930] sm:$0xff]  ;;  %v1518_v27 = vld [vmem:[#allocation9 + $0x1938] sm:$0xff] }
 0x280   :  { %2794 = vmatpush.msra.mxu0 %v737_v31  ;;  %2834 = vmatpush.msra.mxu2 %v738_v34  ;;  %v3044_v47 = vrot.slane %v2417_v38, 4  ;;  %v949_v31 = vld [vmem:[#allocation9 + $0x770] sm:$0xff]  ;;  %v950_v34 = vld [vmem:[#allocation9 + $0x778] sm:$0xff]  ;;  %v1487_v36 = vld [vmem:[#allocation9 + $0x1840] sm:$0xff] }
 0x281   :  { %2795 = vmatmul.f32.vlgmr.msra.gmra.mxu0 %v3599_v35  ;;  %2835 = vmatmul.f32.vlgmr.msra.gmra.mxu2 %v3599_v35  ;;  %v919_v38 = vld [vmem:[#allocation9 + $0x680] sm:$0xff] }
 0x282   :  { %2859 = vmatpush.msrb.mxu0 %v1189_v3  ;;  %2899 = vmatpush.msrb.mxu2 %v1190_v43  ;;  %v3720_v54 = vsel %vm2940_vm2, %v3044_v47, %v3646_v60  ;;  %v1099_v60 = vld [vmem:[#allocation9 + $0xc20] sm:$0xff]  ;;  %v1457_v3 = vld [vmem:[#allocation9 + $0x1750] sm:$0xff]  ;;  %v1458_v43 = vld [vmem:[#allocation9 + $0x1758] sm:$0xff] }
 0x283   :  { %2732 = vmatpush.msrb.mxu1 %v1275_v44  ;;  %2772 = vmatpush.msrb.mxu3 %v1276_v46  ;;  %v2456_v57 = vpop.f32.mrf.mxu3  ;;  %v889_v44 = vld [vmem:[#allocation9 + $0x590] sm:$0xff]  ;;  %v890_v46 = vld [vmem:[#allocation9 + $0x598] sm:$0xff]  ;;  %v3193_v47 = vld [vmem:[#allocation10 + $0x8] sm:$0xff] }
 0x284   :  { %2860 = vmatpush.msrb.mxu0 %v1159_v48  ;;  %2900 = vmatpush.msrb.mxu2 %v1160_v49  ;;  %v2457_v40 = vadd.f32 %v2456_v57, %v2437_v50  ;;  %v1691_v48 = vperm.slane %v3193_v47, 4  ;;  %v1427_v49 = vld [vmem:[#allocation9 + $0x1660] sm:$0xff]  ;;  %v1428_v50 = vld [vmem:[#allocation9 + $0x1668] sm:$0xff]  ;;  %v829_v57 = vld [vmem:[#allocation9 + $0x3b0] sm:$0xff] }
 0x285   :  { %2733 = vmatpush.msrb.mxu1 %v1245_v51  ;;  %2773 = vmatpush.msrb.mxu3 %v1246_v53  ;;  %v859_v51 = vld [vmem:[#allocation9 + $0x4a0] sm:$0xff]  ;;  %v860_v53 = vld [vmem:[#allocation9 + $0x4a8] sm:$0xff] }
 0x286   :  { %2861 = vmatpush.msrb.mxu0 %v1129_v55  ;;  %2901 = vmatpush.msrb.mxu2 %v1130_v56  ;;  %v3070_v1 = vrot.slane %v2457_v40, 4  ;;  %v1397_v55 = vld [vmem:[#allocation9 + $0x1570] sm:$0xff]  ;;  %v1398_v56 = vld [vmem:[#allocation9 + $0x1578] sm:$0xff]  ;;  %v1697_v40 = vperm.slane %v3712_v61, 2 }
 0x287   :  { %2734 = vmatpush.msrb.mxu1 %v1215_v45  ;;  %2774 = vmatpush.msrb.mxu3 %v1216_v62  ;;  %v830_v45 = vld [vmem:[#allocation9 + $0x3b8] sm:$0xff]  ;;  %v2237_v62 = vadd.f32 %v3690_v13, %v1691_v48  ;;  %v769_v13 = vld [vmem:[#allocation9 + $0x1d0] sm:$0xff] }
 0x288   :  { %2735 = vmatmul.f32.vlgmr.msrb.gmra.mxu1 %v3606_v21  ;;  %2775 = vmatmul.f32.vlgmr.msrb.gmra.mxu3 %v3606_v21  ;;  %v3726_v7 = vsel %vm2940_vm2, %v3070_v1, %v3650_v11  ;;  %v1009_v11 = vld [vmem:[#allocation9 + $0x950] sm:$0xff]  ;;  %v2476_v1 = vpop.f32.mrf.mxu0 }
 0x289   :  { %2799 = vmatpush.msra.mxu1 %v1667_v63  ;;  %2839 = vmatpush.msra.mxu3 %v1668_v0  ;;  %v1367_v63 = vld [vmem:[#allocation9 + $0x1480] sm:$0xff]  ;;  %v1368_v0 = vld [vmem:[#allocation9 + $0x1488] sm:$0xff] }
 0x28a   :  { %2862 = vmatpush.msrb.mxu0 %v1099_v60  ;;  %2902 = vmatpush.msrb.mxu2 %v1100_v10  ;;  %v799_v60 = vld [vmem:[#allocation9 + $0x2c0] sm:$0xff]  ;;  %v800_v10 = vld [vmem:[#allocation9 + $0x2c8] sm:$0xff] }
 0x28b   :  { %2800 = vmatpush.msra.mxu1 %v1637_v5  ;;  %2840 = vmatpush.msra.mxu3 %v1638_v6  ;;  %v1692_v5 = vperm.slane %v3193_v47, 5  ;;  %v2257_v6 = vadd.f32 %v3692_v58, %v2237_v62  ;;  %v1609_v62 = vld [vmem:[#allocation9 + $0x1c10] sm:$0xff] }
 0x28c   :  { %2863 = vmatpush.msrb.mxu0 %v1069_v9  ;;  %2903 = vmatpush.msrb.mxu2 %v1070_v12  ;;  %v1337_v9 = vld [vmem:[#allocation9 + $0x1390] sm:$0xff]  ;;  %v1338_v12 = vld [vmem:[#allocation9 + $0x1398] sm:$0xff] }
 0x28d   :  { %2801 = vmatpush.msra.mxu1 %v1607_v14  ;;  %2841 = vmatpush.msra.mxu3 %v1608_v41  ;;  %v770_v14 = vld [vmem:[#allocation9 + $0x1d8] sm:$0xff]  ;;  %v2477_v41 = vadd.f32 %v2476_v1, %v1697_v40  ;;  %v1579_v1 = vld [vmem:[#allocation9 + $0x1b20] sm:$0xff] }
 0x28e   :  { %2864 = vmatpush.msrb.mxu0 %v1039_v17  ;;  %2904 = vmatpush.msrb.mxu2 %v1040_v18  ;;  %v1307_v17 = vld [vmem:[#allocation9 + $0x12a0] sm:$0xff]  ;;  %v1308_v18 = vld [vmem:[#allocation9 + $0x12a8] sm:$0xff]  ;;  %v1610_v40 = vld [vmem:[#allocation9 + $0x1c18] sm:$0xff] }
 0x28f   :  { %2802 = vmatpush.msra.mxu1 %v1577_v20  ;;  %2842 = vmatpush.msra.mxu3 %v1578_v22  ;;  %v3359_v20 = vmov 1983009808  }
 0x290   :  { %2865 = vmatpush.msrb.mxu0 %v1009_v11  ;;  %2905 = vmatpush.msrb.mxu2 %v1010_v23  ;;  %v2943_v22 = vunpack.c.l.s4 %v3359_v20  ;;  %v739_v11 = vld [vmem:[#allocation9 + $0xe0] sm:$0xff]  ;;  %v740_v23 = vld [vmem:[#allocation9 + $0xe8] sm:$0xff] }
 0x291   :  { %2803 = vmatpush.msra.mxu1 %v1547_v52  ;;  %2843 = vmatpush.msra.mxu3 %v1548_v25  ;;  %v2277_v52 = vadd.f32 %v3694_v30, %v1692_v5  ;;  %v2939_v25 = vrot.slane %v2257_v6, 4  ;;  %v1247_v30 = vld [vmem:[#allocation9 + $0x10c0] sm:$0xff]  ;;  %v1549_v5 = vld [vmem:[#allocation9 + $0x1a30] sm:$0xff]  ;;  %v1550_v6 = vld [vmem:[#allocation9 + $0x1a38] sm:$0xff] }
 0x292   :  { %2866 = vmatpush.msrb.mxu0 %v979_v16  ;;  %2906 = vmatpush.msrb.mxu2 %v980_v26  ;;  %v1698_v16 = vperm.slane %v3712_v61, 3  ;;  %v1399_v20 = vld [vmem:[#allocation9 + $0x1580] sm:$0xff] }
 0x293   :  { %2804 = vmatpush.msra.mxu1 %v1517_v29  ;;  %2844 = vmatpush.msra.mxu3 %v1518_v27  ;;  %v2516_v29 = vpop.f32.mrf.mxu2  ;;  %v1277_v27 = vld [vmem:[#allocation9 + $0x11b0] sm:$0xff] }
 0x294   :  { %2867 = vmatpush.msrb.mxu0 %v949_v31  ;;  %2907 = vmatpush.msrb.mxu2 %v950_v34  ;;  %v1278_v31 = vld [vmem:[#allocation9 + $0x11b8] sm:$0xff]  ;;  %v2297_v34 = vadd.f32 %v3697_v33, %v2277_v52 }
 0x295   :  { %2805 = vmatpush.msra.mxu1 %v1487_v36  ;;  %2845 = vmatpush.msra.mxu3 %v1488_v4  ;;  %v3734_v4 = vunpack.c.0.s8 %v2943_v22  ;;  %v1400_v22 = vld [vmem:[#allocation9 + $0x1588] sm:$0xff] }
 0x296   :  { %2868 = vmatpush.msrb.mxu0 %v919_v38  ;;  %2908 = vmatpush.msrb.mxu2 %v920_v42  ;;  %v1248_v38 = vld [vmem:[#allocation9 + $0x10c8] sm:$0xff]  ;;  %v2941_v42 = vsel %vm2940_vm2, %v2939_v25, %v3630_v19  ;;  %v2966_v48 = vrot.slane %v2297_v34, 4  ;;  %v1339_v25 = vld [vmem:[#allocation9 + $0x13a0] sm:$0xff] }
 0x297   :  { %2806 = vmatpush.msra.mxu1 %v1457_v3  ;;  %2846 = vmatpush.msra.mxu3 %v1458_v43  ;;  %v2517_v3 = vadd.f32 %v2516_v29, %v1698_v16  ;;  %v1217_v43 = vld [vmem:[#allocation9 + $0xfd0] sm:$0xff]  ;;  %v1340_v16 = vld [vmem:[#allocation9 + $0x13a8] sm:$0xff]  ;;  %v1310_v29 = vld [vmem:[#allocation9 + $0x12b8] sm:$0xff] }
 0x298   :  { %2869 = vmatpush.msrb.mxu0 %v889_v44  ;;  %2909 = vmatpush.msrb.mxu2 %v890_v46  ;;  %v1218_v44 = vld [vmem:[#allocation9 + $0xfd8] sm:$0xff]  ;;  %v2556_v52 = vpop.f32.mrf.mxu0  ;;  %v1280_v34 = vld [vmem:[#allocation9 + $0x11c8] sm:$0xff] }
 0x299   :  { %2807 = vmatpush.msra.mxu1 %v1427_v49  ;;  %2847 = vmatpush.msra.mxu3 %v1428_v50  ;;  %v2945_v49 = vperm.slane %v2941_v42, %v3734_v4  ;;  %v1669_v50 = vld [vmem:[#allocation9 + $0x1df0] sm:$0xff] }
 0x29a   :  { %2870 = vmatpush.msrb.mxu0 %v859_v51  ;;  %2910 = vmatpush.msrb.mxu2 %v860_v53  ;;  %v1670_v51 = vld [vmem:[#allocation9 + $0x1df8] sm:$0xff] }
 0x29b   :  { %2808 = vmatpush.msra.mxu1 %v1397_v55  ;;  %2848 = vmatpush.msra.mxu3 %v1398_v56  ;;  %v1639_v55 = vld [vmem:[#allocation9 + $0x1d00] sm:$0xff]  ;;  %v1640_v56 = vld [vmem:[#allocation9 + $0x1d08] sm:$0xff] }
 0x29c   :  { %2871 = vmatpush.msrb.mxu0 %v829_v57  ;;  %2911 = vmatpush.msrb.mxu2 %v830_v45  ;;  %v2967_v57 = vsel %vm2940_vm2, %v2966_v48, %v3633_v37 }
 0x29d   :  { %2809 = vmatpush.msra.mxu1 %v1367_v63  ;;  %2849 = vmatpush.msra.mxu3 %v1368_v0  ;;  %v2971_v0 = vperm.slane %v2967_v57, %v3734_v4  ;;  %v3023_v57 = vperm.slane %v3710_v28, %v3734_v4 }
 0x29e   :  { %2872 = vmatpush.msrb.mxu0 %v799_v60  ;;  %2912 = vmatpush.msrb.mxu2 %v800_v10  ;;  %v1580_v60 = vld [vmem:[#allocation9 + $0x1b28] sm:$0xff]  ;;  %v2596_v42 = vpop.f32.mrf.mxu2 }
 0x29f   :  { %2810 = vmatpush.msra.mxu1 %v1337_v9  ;;  %2850 = vmatpush.msra.mxu3 %v1338_v12  ;;  %v2496_v58 = vpop.f32.mrf.mxu1  ;;  %v1520_v9 = vld [vmem:[#allocation9 + $0x1948] sm:$0xff]  ;;  %v1489_v12 = vld [vmem:[#allocation9 + $0x1850] sm:$0xff] }
 0x2a0   :  { %2873 = vmatpush.msrb.mxu0 %v769_v13  ;;  %2913 = vmatpush.msrb.mxu2 %v770_v14  ;;  %v2497_v26 = vadd.f32 %v2496_v58, %v2477_v41  ;;  %v1490_v13 = vld [vmem:[#allocation9 + $0x1858] sm:$0xff]  ;;  %v1459_v14 = vld [vmem:[#allocation9 + $0x1760] sm:$0xff]  ;;  %v1460_v41 = vld [vmem:[#allocation9 + $0x1768] sm:$0xff]  ;;  %v1699_v58 = vperm.slane %v3712_v61, 4 }
 0x2a1   :  { %2811 = vmatpush.msra.mxu1 %v1307_v17  ;;  %2851 = vmatpush.msra.mxu3 %v1308_v18  ;;  %v1429_v17 = vld [vmem:[#allocation9 + $0x1670] sm:$0xff]  ;;  %v1430_v18 = vld [vmem:[#allocation9 + $0x1678] sm:$0xff] }
 0x2a2   :  { %2874 = vmatpush.msrb.mxu0 %v739_v11  ;;  %2914 = vmatpush.msrb.mxu2 %v740_v23  ;;  %v2946_v36 = vrot.slane %v2497_v26, 4  ;;  %v1369_v11 = vld [vmem:[#allocation9 + $0x1490] sm:$0xff]  ;;  %v1370_v23 = vld [vmem:[#allocation9 + $0x1498] sm:$0xff] }
 0x2a3   :  { %2875 = vmatmul.f32.vlgmr.msrb.gmra.mxu0 %v3599_v35  ;;  %2915 = vmatmul.f32.vlgmr.msrb.gmra.mxu2 %v3599_v35  ;;  %v1309_v26 = vld [vmem:[#allocation9 + $0x12b0] sm:$0xff] }
 0x2a4   :  { %2812 = vmatpush.msra.mxu1 %v1277_v27  ;;  %2852 = vmatpush.msra.mxu3 %v1278_v31  ;;  %v2947_v33 = vsel %vm2940_vm2, %v2946_v36, %v3656_v15  ;;  %v2557_v27 = vadd.f32 %v2556_v52, %v1699_v58  ;;  %v1279_v31 = vld [vmem:[#allocation9 + $0x11c0] sm:$0xff] }
 0x2a5   :  { %v2951_v46 = vperm.slane %v2947_v33, %v3734_v4  ;;  %v2536_v47 = vpop.f32.mrf.mxu3  ;;  %v1250_v33 = vld [vmem:[#allocation9 + $0x10d8] sm:$0xff] }
 0x2a6   :  { %2813 = vmatpush.msra.mxu1 %v1247_v30  ;;  %2853 = vmatpush.msra.mxu3 %v1248_v38  ;;  %v2537_v35 = vadd.f32 %v2536_v47, %v2517_v3  ;;  %v1700_v30 = vperm.slane %v3712_v61, 5  ;;  %v1249_v3 = vld [vmem:[#allocation9 + $0x10d0] sm:$0xff] }
 0x2a7   :  { %v2952_v19 = vrot.slane %v2951_v46, 4  ;;  %v1220_v46 = vld [vmem:[#allocation9 + $0xfe8] sm:$0xff] }
 0x2a8   :  { %2814 = vmatpush.msra.mxu1 %v1217_v43  ;;  %2854 = vmatpush.msra.mxu3 %v1218_v44  ;;  %v2972_v53 = vrot.slane %v2537_v35, 4  ;;  %v1219_v44 = vld [vmem:[#allocation9 + $0xfe0] sm:$0xff]  ;;  %v2597_v47 = vadd.f32 %v2596_v42, %v1700_v30 }
 0x2a9   :  { %2815 = vmatmul.f32.vlgmr.msra.gmra.mxu1 %v3606_v21  ;;  %2855 = vmatmul.f32.vlgmr.msra.gmra.mxu3 %v3606_v21  ;;  %v3747_v15 = vsel %vm2940_vm2, %v2952_v19, %v2945_v49 }
 0x2aa   :  { %2879 = vmatpush.msrb.mxu1 %v1669_v50  ;;  %2919 = vmatpush.msrb.mxu3 %v1670_v51  ;;  %v2973_v45 = vsel %vm2940_vm2, %v2972_v53, %v3660_v32  ;;  %v1519_v32 = vld [vmem:[#allocation9 + $0x1940] sm:$0xff]  ;;  %v2997_v51 = vperm.slane %v3704_v8, %v3734_v4  ;;  %v1701_v8 = vperm.slane %v3712_v61, 6 }
 0x2ab   :  { %v2977_v63 = vperm.slane %v2973_v45, %v3734_v4 }
 0x2ac   :  { %2880 = vmatpush.msrb.mxu1 %v1639_v55  ;;  %2920 = vmatpush.msrb.mxu3 %v1640_v56 }
 0x2ad   :  { %v2978_v10 = vrot.slane %v2977_v63, 4 }
 0x2ae   :  { %2881 = vmatpush.msrb.mxu1 %v1609_v62  ;;  %2921 = vmatpush.msrb.mxu3 %v1610_v40 }
 0x2af   :  { %v3756_v37 = vsel %vm2940_vm2, %v2978_v10, %v2971_v0  ;;  %v1702_v0 = vperm.slane %v3712_v61, 7 }
 0x2b0   :  { %2882 = vmatpush.msrb.mxu1 %v1579_v1  ;;  %2922 = vmatpush.msrb.mxu3 %v1580_v60 }
 0x2b2   :  { %2883 = vmatpush.msrb.mxu1 %v1549_v5  ;;  %2923 = vmatpush.msrb.mxu3 %v1550_v6 }
 0x2b4   :  { %2884 = vmatpush.msrb.mxu1 %v1519_v32  ;;  %2924 = vmatpush.msrb.mxu3 %v1520_v9  ;;  %v3049_v9 = vperm.slane %v3720_v54, %v3734_v4  ;;  %v3794_v54 = vld [vmem:[#allocation10 + $0x18] sm:$0x3f] }
 0x2b6   :  { %2885 = vmatpush.msrb.mxu1 %v1489_v12  ;;  %2925 = vmatpush.msrb.mxu3 %v1490_v13 }
 0x2b8   :  { %2886 = vmatpush.msrb.mxu1 %v1459_v14  ;;  %2926 = vmatpush.msrb.mxu3 %v1460_v41 }
 0x2ba   :  { %2887 = vmatpush.msrb.mxu1 %v1429_v17  ;;  %2927 = vmatpush.msrb.mxu3 %v1430_v18  ;;  %v2636_v40 = vpop.f32.mrf.mxu0 }
 0x2bc   :  { %2888 = vmatpush.msrb.mxu1 %v1399_v20  ;;  %2928 = vmatpush.msrb.mxu3 %v1400_v22  ;;  %v3360_v20 = vmov 1934713408  }
 0x2bd   :  { %v2955_v22 = vunpack.c.l.s4 %v3360_v20 }
 0x2be   :  { %2889 = vmatpush.msrb.mxu1 %v1369_v11  ;;  %2929 = vmatpush.msrb.mxu3 %v1370_v23  ;;  %v1703_v23 = vperm.slane %v3794_v54, 0 }
 0x2bf   :  { %v3796_v11 = vunpack.c.0.s8 %v2955_v22 }
 0x2c0   :  { %2890 = vmatpush.msrb.mxu1 %v1339_v25  ;;  %2930 = vmatpush.msrb.mxu3 %v1340_v16  ;;  %v2676_v60 = vpop.f32.mrf.mxu2 }
 0x2c1   :  { %v2576_v36 = vpop.f32.mrf.mxu1 }
 0x2c2   :  { %2891 = vmatpush.msrb.mxu1 %v1309_v26  ;;  %2931 = vmatpush.msrb.mxu3 %v1310_v29  ;;  %v2577_v38 = vadd.f32 %v2576_v36, %v2557_v27  ;;  %v2983_v27 = vperm.slane %v3756_v37, %v3796_v11 }
 0x2c4   :  { %2892 = vmatpush.msrb.mxu1 %v1279_v31  ;;  %2932 = vmatpush.msrb.mxu3 %v1280_v34  ;;  %v2998_v43 = vrot.slane %v2577_v38, 4 }
 0x2c6   :  { %2893 = vmatpush.msrb.mxu1 %v1249_v3  ;;  %2933 = vmatpush.msrb.mxu3 %v1250_v33  ;;  %v2999_v48 = vsel %vm2940_vm2, %v2998_v43, %v3668_v39  ;;  %v2990_v3 = vrot.slane %v2983_v27, 4 }
 0x2c7   :  { %v3003_v35 = vperm.slane %v2999_v48, %v3734_v4  ;;  %v2616_v49 = vpop.f32.mrf.mxu3 }
 0x2c8   :  { %2894 = vmatpush.msrb.mxu1 %v1219_v44  ;;  %2934 = vmatpush.msrb.mxu3 %v1220_v46  ;;  %v2617_v50 = vadd.f32 %v2616_v49, %v2597_v47  ;;  %v1705_v44 = vperm.slane %v3794_v54, 2  ;;  %v1706_v49 = vperm.slane %v3794_v54, 3 }
 0x2c9   :  { %2895 = vmatmul.f32.vlgmr.msrb.gmra.mxu1 %v3606_v21  ;;  %2935 = vmatmul.f32.vlgmr.msrb.gmra.mxu3 %v3606_v21  ;;  %v3004_v19 = vrot.slane %v3003_v35, 4  ;;  %v2637_v21 = vadd.f32 %v2636_v40, %v1701_v8 }
 0x2ca   :  { %v3024_v53 = vrot.slane %v2617_v50, 4 }
 0x2cb   :  { %v3005_v55 = vsel %vm2940_vm2, %v3004_v19, %v2997_v51 }
 0x2cc   :  { %v3025_v39 = vsel %vm2940_vm2, %v3024_v53, %v3672_v59  ;;  %v2677_v59 = vadd.f32 %v2676_v60, %v1702_v0  ;;  %v3009_v47 = vperm.slane %v3005_v55, %v3796_v11  ;;  %v1707_v60 = vperm.slane %v3794_v54, 4 }
 0x2cd   :  { %v3029_v56 = vperm.slane %v3025_v39, %v3734_v4 }
 0x2ce   :  { %v3016_v53 = vrot.slane %v3009_v47, 4 }
 0x2cf   :  { %v3030_v45 = vrot.slane %v3029_v56, 4 }
 0x2d1   :  { %v3774_v62 = vsel %vm2940_vm2, %v3030_v45, %v3023_v57 }
 0x2d2   :  { %v3035_v39 = vperm.slane %v3774_v62, %v3796_v11 }
 0x2dc   :  { %v2716_v58 = vpop.f32.mrf.mxu0 }
 0x2dd   :  { %v2717_v52 = vadd.f32 %v2716_v58, %v1703_v23 }
 0x2e2   :  { %v2756_v16 = vpop.f32.mrf.mxu2 }
 0x2e3   :  { %v2656_v63 = vpop.f32.mrf.mxu1 }
 0x2e4   :  { %v2657_v1 = vadd.f32 %v2656_v63, %v2637_v21  ;;  %v3042_v63 = vrot.slane %v3035_v39, 4 }
 0x2e6   :  { %v3050_v10 = vrot.slane %v2657_v1, 4 }
 0x2e8   :  { %v3051_v5 = vsel %vm2940_vm2, %v3050_v10, %v3678_v2  ;;  %v3075_v2 = vperm.slane %v3726_v7, %v3734_v4  ;;  %v1704_v7 = vperm.slane %v3794_v54, 1 }
 0x2e9   :  { %v3055_v28 = vperm.slane %v3051_v5, %v3734_v4  ;;  %v2696_v6 = vpop.f32.mrf.mxu3 }
 0x2ea   :  { %v2697_v32 = vadd.f32 %v2696_v6, %v2677_v59  ;;  %v2757_v31 = vadd.f32 %v2756_v16, %v1704_v7  ;;  %v1708_v6 = vperm.slane %v3794_v54, 5 }
 0x2eb   :  { %v3056_v12 = vrot.slane %v3055_v28, 4 }
 0x2ec   :  { %v3076_v13 = vrot.slane %v2697_v32, 4 }
 0x2ed   :  { %v3784_v14 = vsel %vm2940_vm2, %v3056_v12, %v3049_v9 }
 0x2ee   :  { %v3077_v61 = vsel %vm2940_vm2, %v3076_v13, %v3682_v24  ;;  %v2957_v24 = vperm.slane %v3747_v15, %v3796_v11  ;;  %v3061_v59 = vperm.slane %v3784_v14, %v3796_v11 }
 0x2ef   :  { %v3081_v41 = vperm.slane %v3077_v61, %v3734_v4 }
 0x2f0   :  { %v2964_v29 = vrot.slane %v2957_v24, 4  ;;  %v3068_v13 = vrot.slane %v3061_v59, 4 }
 0x2f1   :  { %v3082_v17 = vrot.slane %v3081_v41, 4 }
 0x2f3   :  { %v3792_v18 = vsel %vm2940_vm2, %v3082_v17, %v3075_v2 }
 0x2f4   :  { %v3087_v61 = vperm.slane %v3792_v18, %v3796_v11 }
 0x2f6   :  { %v3094_v23 = vrot.slane %v3087_v61, 4 }
 0x2fe   :  { %v2796_v46 = vpop.f32.mrf.mxu0 }
 0x2ff   :  { %v2797_v48 = vadd.f32 %v2796_v46, %v1705_v44 }
 0x304   :  { %v2836_v51 = vpop.f32.mrf.mxu2 }
 0x305   :  { %v2736_v25 = vpop.f32.mrf.mxu1  ;;  %v2837_v56 = vadd.f32 %v2836_v51, %v1706_v49 }
 0x306   :  { %v2737_v4 = vadd.f32 %v2736_v25, %v2717_v52 }
 0x308   :  { %v2961_v26 = vperm.slane %v2737_v4, %v3796_v11 }
 0x30a   :  { %v2962_v34 = vrot.slane %v2961_v26, 4  ;;  %v2965_v36 = vsel %vm2940_vm2, %v2961_v26, %v2964_v29 }
 0x30b   :  { %3102 = vst [vmem:[%s3875_s6 + $0x60] sm:$0x1f] %v2965_v36  ;;  %v2776_v15 = vpop.f32.mrf.mxu3 }
 0x30c   :  { %v2963_v30 = vsel %vm2940_vm2, %v2962_v34, %v2957_v24  ;;  %v2777_v38 = vadd.f32 %v2776_v15, %v2757_v31 }
 0x30d   :  { %3096 = vst [vmem:[%s3875_s6] sm:$0x1f] %v2963_v30 }
 0x30e   :  { %v2987_v42 = vperm.slane %v2777_v38, %v3796_v11 }
 0x310   :  { %v2988_v37 = vrot.slane %v2987_v42, 4  ;;  %v2991_v33 = vsel %vm2940_vm2, %v2987_v42, %v2990_v3 }
 0x311   :  { %3103 = vst [vmem:[%s3875_s6 + $0x68] sm:$0x1f] %v2991_v33 }
 0x312   :  { %v2989_v43 = vsel %vm2940_vm2, %v2988_v37, %v2983_v27 }
 0x313   :  { %3097 = vst [vmem:[%s3875_s6 + $0x8] sm:$0x1f] %v2989_v43 }
 0x320   :  { %v2876_v10 = vpop.f32.mrf.mxu0 }
 0x321   :  { %v2877_v5 = vadd.f32 %v2876_v10, %v1707_v60 }
 0x326   :  { %v2816_v35 = vpop.f32.mrf.mxu1  ;;  %v2916_v9 = vpop.f32.mrf.mxu2 }
 0x327   :  { %v2817_v50 = vadd.f32 %v2816_v35, %v2797_v48  ;;  %v2917_v41 = vadd.f32 %v2916_v9, %v1708_v6 }
 0x329   :  { %v3013_v19 = vperm.slane %v2817_v50, %v3796_v11 }
 0x32b   :  { %v3014_v57 = vrot.slane %v3013_v19, 4  ;;  %v3017_v45 = vsel %vm2940_vm2, %v3013_v19, %v3016_v53 }
 0x32c   :  { %3104 = vst [vmem:[%s3875_s6 + $0x70] sm:$0x1f] %v3017_v45  ;;  %v2856_v55 = vpop.f32.mrf.mxu3 }
 0x32d   :  { %v3015_v8 = vsel %vm2940_vm2, %v3014_v57, %v3009_v47  ;;  %v2857_v40 = vadd.f32 %v2856_v55, %v2837_v56 }
 0x32e   :  { %3098 = vst [vmem:[%s3875_s6 + $0x10] sm:$0x1f] %v3015_v8 }
 0x32f   :  { %v3039_v21 = vperm.slane %v2857_v40, %v3796_v11 }
 0x331   :  { %v3040_v62 = vrot.slane %v3039_v21, 4  ;;  %v3043_v0 = vsel %vm2940_vm2, %v3039_v21, %v3042_v63 }
 0x332   :  { %3105 = vst [vmem:[%s3875_s6 + $0x78] sm:$0x1f] %v3043_v0 }
 0x333   :  { %v3041_v1 = vsel %vm2940_vm2, %v3040_v62, %v3035_v39 }
 0x334   :  { %3099 = vst [vmem:[%s3875_s6 + $0x18] sm:$0x1f] %v3041_v1 }
 0x346   :  { %v2896_v28 = vpop.f32.mrf.mxu1 }
 0x347   :  { %v2897_v32 = vadd.f32 %v2896_v28, %v2877_v5 }
 0x349   :  { %v3065_v12 = vperm.slane %v2897_v32, %v3796_v11 }
 0x34b   :  { %v3066_v2 = vrot.slane %v3065_v12, 4  ;;  %v3069_v17 = vsel %vm2940_vm2, %v3065_v12, %v3068_v13 }
 0x34c   :  { %3106 = vst [vmem:[%s3875_s6 + $0x80] sm:$0x1f] %v3069_v17  ;;  %v2936_v14 = vpop.f32.mrf.mxu3 }
 0x34d   :  { %v3067_v20 = vsel %vm2940_vm2, %v3066_v2, %v3061_v59  ;;  %v2937_v22 = vadd.f32 %v2936_v14, %v2917_v41 }
 0x34e   :  { %3100 = vst [vmem:[%s3875_s6 + $0x20] sm:$0x1f] %v3067_v20 }
 0x34f   :  { %v3091_v54 = vperm.slane %v2937_v22, %v3796_v11 }
 0x351   :  { %v3092_v18 = vrot.slane %v3091_v54, 4  ;;  %v3095_v58 = vsel %vm2940_vm2, %v3091_v54, %v3094_v23 }
 0x352   :  { %3107 = vst [vmem:[%s3875_s6 + $0x88] sm:$0x1f] %v3095_v58 }
 0x353   :  { %v3093_v24 = vsel %vm2940_vm2, %v3092_v18, %v3087_v61 }
 0x354   :  { %3101 = vst [vmem:[%s3875_s6 + $0x28] sm:$0x1f] %v3093_v24 }
 0x355   :  { %3172 = vsyncpa [#allocation3], 1 }
 0x356   :  { %3173 = vsyncpa [#allocation5], 1 }
 0x357   :  { %3174 = vsyncpa [#allocation8], 1 }
 0x358   :  { %3175 = vsyncpa [#allocation11], 1 }

// kernel: tpu_custom_call.1
= control target key start
LH: loop header
LB: loop body
LE: loop exit
PB: predicated region body
PF: predicated region fallthrough
CT: control target
= control target key end

     0   :  { %11 = vsyncpa [#allocation3], 0  ;;  %s3869_s0 = inlined_call_operand.hbm [shape: f32[2,8,768], index: 0, kind: input, shape index: {}]   ;;  %s3870_s1 = inlined_call_operand.hbm [shape: f32[1,768], index: 1, kind: input, shape index: {}]   ;;  %s3871_s2 = inlined_call_operand.hbm [shape: f32[768,256], index: 2, kind: input, shape index: {}]   ;;  %s3872_s3 = inlined_call_operand.hbm [shape: f32[1,256], index: 3, kind: input, shape index: {}]   ;;  %s3873_s4 = inlined_call_operand.hbm [shape: f32[256,3840], index: 4, kind: input, shape index: {}]   ;;  %s3874_s5 = inlined_call_operand.hbm [shape: f32[1,3840], index: 5, kind: input, shape index: {}]   ;;  %s3875_s6 = inlined_call_operand.vmem [shape: f32[2,13,768], index: 6, kind: output, shape index: {}]  }
   0x1   :  { %12 = vsyncpa [#allocation5], 0 }
   0x2   :  { %13 = vsyncpa [#allocation8], 0  ;;  %s33_s23 = sshll.u32 %s3870_s1, 4  ;;  %s34_s23 = int_to_ptr.hbm [resolvable:$true] %s33_s23 }
   0x3   :  { %14 = vsyncpa [#allocation11], 0  ;;  %s3346_s24 = smov [#allocation4]   ;;  %s57_s28 = sshll.u32 %s3872_s3, 4  ;;  %s58_s28 = int_to_ptr.hbm [resolvable:$true] %s57_s28 }
   0x4   :  { %s35_s25 = sshll.u32 %s3346_s24, 4  ;;  %s3347_s29 = smov [#allocation7]   ;;  %s36_s25 = int_to_ptr.vmem [resolvable:$true] %s35_s25 }
   0x5   :  { %38 = dma.hbm_to_vmem [thread:$0]  %s34_s23, 96, %s36_s25, [#allocation5]  }
   0x6   :  { %s59_s30 = sshll.u32 %s3347_s29, 4  ;;  %s19_s9 = sshll.u32 %s3869_s0, 4  ;;  %s60_s30 = int_to_ptr.vmem [resolvable:$true] %s59_s30  ;;  %s20_s9 = int_to_ptr.hbm [resolvable:$true] %s19_s9 }
   0x7   :  { %62 = dma.hbm_to_vmem [thread:$0]  %s58_s28, 32, %s60_s30, [#allocation8]  }
   0x8   :  { %s3348_s1 = smov [#allocation2]   ;;  %s43_s13 = sshll.u32 %s3871_s2, 4  ;;  %s44_s13 = int_to_ptr.hbm [resolvable:$true] %s43_s13 }
   0x9   :  { %s21_s10 = sshll.u32 %s3348_s1, 4  ;;  %s3349_s14 = smov 768   ;;  %s22_s10 = int_to_ptr.vmem [resolvable:$true] %s21_s10 }
   0xa   :  { %s3350_s3 = smov 48   ;;  %s3351_s15 = smov [#allocation6]  }
   0xb   :  { %27 = dma.hbm_to_vmem [thread:$0]  %s20_s9, 1536, %s22_s10, [#allocation3], %s3349_s14, %s3349_s14, %s3350_s3  }
   0xc   :  { %s45_s16 = sshll.u32 %s3351_s15, 4  ;;  %s3352_s17 = smov 256   ;;  %s46_s16 = int_to_ptr.vmem [resolvable:$true] %s45_s16 }
   0xd   :  { %s3353_s18 = smov 16   ;;  %s67_s20 = sshll.u32 %s3873_s4, 4  ;;  %s68_s20 = int_to_ptr.hbm [resolvable:$true] %s67_s20 }
   0xe   :  { %51 = dma.hbm_to_vmem [thread:$0]  %s44_s13, 24576, %s46_s16, [#allocation5], %s3352_s17, %s3352_s17, %s3353_s18  }
   0xf   :  { %s3354_s21 = smov [#allocation9]   ;;  %s81_s24 = sshll.u32 %s3874_s5, 4  ;;  %s82_s24 = int_to_ptr.hbm [resolvable:$true] %s81_s24 }
  0x10   :  { %s69_s22 = sshll.u32 %s3354_s21, 4  ;;  %s3355_s25 = smov 3840   ;;  %s70_s22 = int_to_ptr.vmem [resolvable:$true] %s69_s22 }
  0x11   :  { %s3356_s26 = smov 240   ;;  %s3357_s27 = smov [#allocation10]  }
  0x12   :  { %75 = dma.hbm_to_vmem [thread:$0]  %s68_s20, 122880, %s70_s22, [#allocation8], %s3355_s25, %s3355_s25, %s3356_s26  }
  0x13   :  { %s83_s28 = sshll.u32 %s3357_s27, 4  ;;  %s84_s28 = int_to_ptr.vmem [resolvable:$true] %s83_s28 }
  0x14   :  { %86 = dma.hbm_to_vmem [thread:$0]  %s82_s24, 480, %s84_s28, [#allocation11]  }
  0x15   :  { %3338 = dma.done.wait [#allocation3], 1536  }
  0x16   :  { %3339 = vsyncadd [#allocation3], 4294965760 }
  0x17   :  { %3340 = dma.done.wait [#allocation5], 24672  }
  0x18   :  { %3341 = vsyncadd [#allocation5], 4294942624 }
  0x19   :  { %3342 = dma.done.wait [#allocation8], 122912  }
  0x1a   :  { %3343 = vsyncadd [#allocation8], 4294844384 }
  0x1b   :  { %3344 = dma.done.wait [#allocation11], 480  }
  0x1c   :  { %3345 = vsyncadd [#allocation11], 4294966816  ;;  %v270_v0 = vld [vmem:[#allocation6 + $0xf0] sm:$0xff]  ;;  %v268_v2 = vld [vmem:[#allocation6 + $0xe0] sm:$0xff]  ;;  %v3358_v34 = vmov 9.0   ;;  %vm451_vm1 = vcmask 1041409  }
  0x1d   :  { %v334_v1 = vld [vmem:[#allocation6 + $0x2f0] sm:$0xff]  ;;  %469 = vmatpush.msra.mxu0 %v270_v0  ;;  %v332_v4 = vld [vmem:[#allocation6 + $0x2e0] sm:$0xff]  ;;  %3191 = vrcp.f32 %v3358_v34  ;;  %v261_v34 = vld [vmem:[#allocation6 + $0xa8] sm:$0xff]  ;;  %vm2940_vm2 = vcmask 1047556  }
  0x1e   :  { %509 = vmatpush.msra.mxu2 %v334_v1  ;;  %v302_v3 = vld [vmem:[#allocation6 + $0x1f0] sm:$0xff]  ;;  %v300_v7 = vld [vmem:[#allocation6 + $0x1e0] sm:$0xff] }
  0x1f   :  { %v366_v5 = vld [vmem:[#allocation6 + $0x3f0] sm:$0xff]  ;;  %489 = vmatpush.msra.mxu1 %v302_v3  ;;  %470 = vmatpush.msra.mxu0 %v268_v2  ;;  %v364_v9 = vld [vmem:[#allocation6 + $0x3e0] sm:$0xff]  ;;  %v271_v3 = vld [vmem:[#allocation6 + $0xf8] sm:$0xff] }
  0x20   :  { %529 = vmatpush.msra.mxu3 %v366_v5  ;;  %v266_v6 = vld [vmem:[#allocation6 + $0xd0] sm:$0xff]  ;;  %510 = vmatpush.msra.mxu2 %v332_v4  ;;  %v264_v11 = vld [vmem:[#allocation6 + $0xc0] sm:$0xff] }
  0x21   :  { %v330_v8 = vld [vmem:[#allocation6 + $0x2d0] sm:$0xff]  ;;  %490 = vmatpush.msra.mxu1 %v300_v7  ;;  %v328_v12 = vld [vmem:[#allocation6 + $0x2c0] sm:$0xff]  ;;  %471 = vmatpush.msra.mxu0 %v266_v6 }
  0x22   :  { %v298_v10 = vld [vmem:[#allocation6 + $0x1d0] sm:$0xff]  ;;  %530 = vmatpush.msra.mxu3 %v364_v9  ;;  %511 = vmatpush.msra.mxu2 %v330_v8  ;;  %v296_v14 = vld [vmem:[#allocation6 + $0x1c0] sm:$0xff]  ;;  %v269_v8 = vld [vmem:[#allocation6 + $0xe8] sm:$0xff] }
  0x23   :  { %v362_v13 = vld [vmem:[#allocation6 + $0x3d0] sm:$0xff]  ;;  %v360_v15 = vld [vmem:[#allocation6 + $0x3c0] sm:$0xff]  ;;  %491 = vmatpush.msra.mxu1 %v298_v10  ;;  %472 = vmatpush.msra.mxu0 %v264_v11  ;;  %v3414_v45 = vpop.eup %3191  ;;  %v303_v10 = vld [vmem:[#allocation6 + $0x1f8] sm:$0xff] }
  0x24   :  { %531 = vmatpush.msra.mxu3 %v362_v13  ;;  %v262_v16 = vld [vmem:[#allocation6 + $0xb0] sm:$0xff]  ;;  %512 = vmatpush.msra.mxu2 %v328_v12  ;;  %v260_v20 = vld [vmem:[#allocation6 + $0xa0] sm:$0xff]  ;;  %v222_v54 = vmul.f32 9.0, %v3414_v45  ;;  %v267_v13 = vld [vmem:[#allocation6 + $0xd8] sm:$0xff]  ;;  %vm226_vm0 = vweird.f32 %v3414_v45 }
  0x25   :  { %v326_v17 = vld [vmem:[#allocation6 + $0x2b0] sm:$0xff]  ;;  %492 = vmatpush.msra.mxu1 %v296_v14  ;;  %v324_v21 = vld [vmem:[#allocation6 + $0x2a0] sm:$0xff]  ;;  %473 = vmatpush.msra.mxu0 %v262_v16  ;;  %v301_v14 = vld [vmem:[#allocation6 + $0x1e8] sm:$0xff] }
  0x26   :  { %v294_v18 = vld [vmem:[#allocation6 + $0x1b0] sm:$0xff]  ;;  %532 = vmatpush.msra.mxu3 %v360_v15  ;;  %513 = vmatpush.msra.mxu2 %v326_v17  ;;  %v292_v22 = vld [vmem:[#allocation6 + $0x1a0] sm:$0xff]  ;;  %v223_v63 = vsub.f32 1.0, %v222_v54  ;;  %v265_v17 = vld [vmem:[#allocation6 + $0xc8] sm:$0xff] }
  0x27   :  { %v358_v19 = vld [vmem:[#allocation6 + $0x3b0] sm:$0xff]  ;;  %v356_v23 = vld [vmem:[#allocation6 + $0x3a0] sm:$0xff]  ;;  %493 = vmatpush.msra.mxu1 %v294_v18  ;;  %474 = vmatpush.msra.mxu0 %v260_v20  ;;  %v299_v18 = vld [vmem:[#allocation6 + $0x1d8] sm:$0xff] }
  0x28   :  { %533 = vmatpush.msra.mxu3 %v358_v19  ;;  %v258_v24 = vld [vmem:[#allocation6 + $0x90] sm:$0xff]  ;;  %514 = vmatpush.msra.mxu2 %v324_v21  ;;  %v256_v28 = vld [vmem:[#allocation6 + $0x80] sm:$0xff]  ;;  %v224_v9 = vmul.f32 %v3414_v45, %v223_v63 }
  0x29   :  { %v322_v25 = vld [vmem:[#allocation6 + $0x290] sm:$0xff]  ;;  %494 = vmatpush.msra.mxu1 %v292_v22  ;;  %v320_v29 = vld [vmem:[#allocation6 + $0x280] sm:$0xff]  ;;  %475 = vmatpush.msra.mxu0 %v258_v24  ;;  %v263_v24 = vld [vmem:[#allocation6 + $0xb8] sm:$0xff] }
  0x2a   :  { %v290_v26 = vld [vmem:[#allocation6 + $0x190] sm:$0xff]  ;;  %534 = vmatpush.msra.mxu3 %v356_v23  ;;  %515 = vmatpush.msra.mxu2 %v322_v25  ;;  %v288_v30 = vld [vmem:[#allocation6 + $0x180] sm:$0xff]  ;;  %v225_v23 = vadd.f32 %v3414_v45, %v224_v9 }
  0x2b   :  { %v354_v27 = vld [vmem:[#allocation6 + $0x390] sm:$0xff]  ;;  %v352_v31 = vld [vmem:[#allocation6 + $0x380] sm:$0xff]  ;;  %495 = vmatpush.msra.mxu1 %v290_v26  ;;  %476 = vmatpush.msra.mxu0 %v256_v28 }
  0x2c   :  { %535 = vmatpush.msra.mxu3 %v354_v27  ;;  %v254_v32 = vld [vmem:[#allocation6 + $0x70] sm:$0xff]  ;;  %516 = vmatpush.msra.mxu2 %v320_v29  ;;  %v252_v37 = vld [vmem:[#allocation6 + $0x60] sm:$0xff]  ;;  %v3419_v27 = vld [vmem:[#allocation4] sm:$0x3f] }
  0x2d   :  { %v318_v33 = vld [vmem:[#allocation6 + $0x270] sm:$0xff]  ;;  %496 = vmatpush.msra.mxu1 %v288_v30  ;;  %v316_v38 = vld [vmem:[#allocation6 + $0x260] sm:$0xff]  ;;  %477 = vmatpush.msra.mxu0 %v254_v32  ;;  %v297_v30 = vld [vmem:[#allocation6 + $0x1c8] sm:$0xff] }
  0x2e   :  { %v286_v35 = vld [vmem:[#allocation6 + $0x170] sm:$0xff]  ;;  %536 = vmatpush.msra.mxu3 %v352_v31  ;;  %517 = vmatpush.msra.mxu2 %v318_v33  ;;  %v284_v39 = vld [vmem:[#allocation6 + $0x160] sm:$0xff]  ;;  %v199_v33 = vperm.slane %v3419_v27, 2 }
  0x2f   :  { %v350_v36 = vld [vmem:[#allocation6 + $0x370] sm:$0xff]  ;;  %v348_v40 = vld [vmem:[#allocation6 + $0x360] sm:$0xff]  ;;  %497 = vmatpush.msra.mxu1 %v286_v35  ;;  %478 = vmatpush.msra.mxu0 %v252_v37  ;;  %v295_v35 = vld [vmem:[#allocation6 + $0x1b8] sm:$0xff] }
  0x30   :  { %537 = vmatpush.msra.mxu3 %v350_v36  ;;  %v250_v41 = vld [vmem:[#allocation6 + $0x50] sm:$0xff]  ;;  %518 = vmatpush.msra.mxu2 %v316_v38  ;;  %v248_v46 = vld [vmem:[#allocation6 + $0x40] sm:$0xff] }
  0x31   :  { %v314_v42 = vld [vmem:[#allocation6 + $0x250] sm:$0xff]  ;;  %498 = vmatpush.msra.mxu1 %v284_v39  ;;  %v312_v47 = vld [vmem:[#allocation6 + $0x240] sm:$0xff]  ;;  %479 = vmatpush.msra.mxu0 %v250_v41  ;;  %v200_v41 = vperm.slane %v3419_v27, 3 }
  0x32   :  { %v282_v43 = vld [vmem:[#allocation6 + $0x150] sm:$0xff]  ;;  %538 = vmatpush.msra.mxu3 %v348_v40  ;;  %519 = vmatpush.msra.mxu2 %v314_v42  ;;  %v280_v48 = vld [vmem:[#allocation6 + $0x140] sm:$0xff]  ;;  %v197_v40 = vperm.slane %v3419_v27, 0 }
  0x33   :  { %v346_v44 = vld [vmem:[#allocation6 + $0x350] sm:$0xff]  ;;  %v344_v49 = vld [vmem:[#allocation6 + $0x340] sm:$0xff]  ;;  %499 = vmatpush.msra.mxu1 %v282_v43  ;;  %480 = vmatpush.msra.mxu0 %v248_v46 }
  0x34   :  { %539 = vmatpush.msra.mxu3 %v346_v44  ;;  %v246_v50 = vld [vmem:[#allocation6 + $0x30] sm:$0xff]  ;;  %520 = vmatpush.msra.mxu2 %v312_v47  ;;  %v244_v55 = vld [vmem:[#allocation6 + $0x20] sm:$0xff] }
  0x35   :  { %v310_v51 = vld [vmem:[#allocation6 + $0x230] sm:$0xff]  ;;  %500 = vmatpush.msra.mxu1 %v280_v48  ;;  %v308_v56 = vld [vmem:[#allocation6 + $0x220] sm:$0xff]  ;;  %481 = vmatpush.msra.mxu0 %v246_v50 }
  0x36   :  { %v278_v52 = vld [vmem:[#allocation6 + $0x130] sm:$0xff]  ;;  %540 = vmatpush.msra.mxu3 %v344_v49  ;;  %521 = vmatpush.msra.mxu2 %v310_v51  ;;  %v276_v57 = vld [vmem:[#allocation6 + $0x120] sm:$0xff]  ;;  %v259_v49 = vld [vmem:[#allocation6 + $0x98] sm:$0xff] }
  0x37   :  { %v342_v53 = vld [vmem:[#allocation6 + $0x330] sm:$0xff]  ;;  %v340_v58 = vld [vmem:[#allocation6 + $0x320] sm:$0xff]  ;;  %501 = vmatpush.msra.mxu1 %v278_v52  ;;  %482 = vmatpush.msra.mxu0 %v244_v55  ;;  %v3434_v52 = vsel %vm226_vm0, %v3414_v45, %v225_v23  ;;  %v293_v55 = vld [vmem:[#allocation6 + $0x1a8] sm:$0xff] }
  0x38   :  { %541 = vmatpush.msra.mxu3 %v342_v53  ;;  %v242_v59 = vld [vmem:[#allocation6 + $0x10] sm:$0xff]  ;;  %522 = vmatpush.msra.mxu2 %v308_v56  ;;  %v240_v0 = vld [vmem:[#allocation6] sm:$0xff] }
  0x39   :  { %v306_v60 = vld [vmem:[#allocation6 + $0x210] sm:$0xff]  ;;  %502 = vmatpush.msra.mxu1 %v276_v57  ;;  %v304_v1 = vld [vmem:[#allocation6 + $0x200] sm:$0xff]  ;;  %483 = vmatpush.msra.mxu0 %v242_v59 }
  0x3a   :  { %v274_v61 = vld [vmem:[#allocation6 + $0x110] sm:$0xff]  ;;  %542 = vmatpush.msra.mxu3 %v340_v58  ;;  %523 = vmatpush.msra.mxu2 %v306_v60  ;;  %v272_v4 = vld [vmem:[#allocation6 + $0x100] sm:$0xff] }
  0x3b   :  { %v338_v62 = vld [vmem:[#allocation6 + $0x310] sm:$0xff]  ;;  %503 = vmatpush.msra.mxu1 %v274_v61  ;;  %v336_v5 = vld [vmem:[#allocation6 + $0x300] sm:$0xff]  ;;  %484 = vmatpush.msra.mxu0 %v240_v0  ;;  %v257_v61 = vld [vmem:[#allocation6 + $0x88] sm:$0xff] }
  0x3c   :  { %v398_v2 = vld [vmem:[#allocation6 + $0x4f0] sm:$0xff]  ;;  %543 = vmatpush.msra.mxu3 %v338_v62  ;;  %524 = vmatpush.msra.mxu2 %v304_v1  ;;  %v396_v6 = vld [vmem:[#allocation6 + $0x4e0] sm:$0xff] }
  0x3d   :  { %v430_v7 = vld [vmem:[#allocation6 + $0x5f0] sm:$0xff]  ;;  %549 = vmatpush.msrb.mxu0 %v398_v2  ;;  %v428_v12 = vld [vmem:[#allocation6 + $0x5e0] sm:$0xff]  ;;  %504 = vmatpush.msra.mxu1 %v272_v4 }
  0x3e   :  { %589 = vmatpush.msrb.mxu2 %v271_v3  ;;  %v394_v11 = vld [vmem:[#allocation6 + $0x4d0] sm:$0xff]  ;;  %544 = vmatpush.msra.mxu3 %v336_v5  ;;  %v392_v15 = vld [vmem:[#allocation6 + $0x4c0] sm:$0xff]  ;;  %v291_v3 = vld [vmem:[#allocation6 + $0x198] sm:$0xff] }
  0x3f   :  { %550 = vmatpush.msrb.mxu0 %v396_v6  ;;  %569 = vmatpush.msrb.mxu1 %v430_v7  ;;  %v426_v16 = vld [vmem:[#allocation6 + $0x5d0] sm:$0xff]  ;;  %v424_v20 = vld [vmem:[#allocation6 + $0x5c0] sm:$0xff] }
  0x40   :  { %590 = vmatpush.msrb.mxu2 %v269_v8  ;;  %609 = vmatpush.msrb.mxu3 %v303_v10  ;;  %v390_v19 = vld [vmem:[#allocation6 + $0x4b0] sm:$0xff]  ;;  %v119_v22 = vld [vmem:[#allocation2 + $0x40] sm:$0xff]  ;;  %v3439_v54 = vld [vmem:[#allocation2 + $0x48] sm:$0xff] }
  0x41   :  { %v113_v21 = vld [vmem:[#allocation2 + $0x10] sm:$0xff]  ;;  %551 = vmatpush.msrb.mxu0 %v394_v11  ;;  %570 = vmatpush.msrb.mxu1 %v428_v12  ;;  %v171_v26 = vrot.slane %v119_v22, 4  ;;  %v3128_v29 = vrot.slane %v119_v22, 3  ;;  %v388_v31 = vld [vmem:[#allocation6 + $0x4a0] sm:$0xff]  ;;  %v114_v53 = vld [vmem:[#allocation2 + $0x18] sm:$0xff]  ;;  %v177_v45 = vrot.slane %v3439_v54, 4 }
  0x42   :  { %v135_v25 = vrot.slane %v113_v21, 4  ;;  %v3122_v28 = vrot.slane %v113_v21, 3  ;;  %591 = vmatpush.msrb.mxu2 %v267_v13  ;;  %610 = vmatpush.msrb.mxu3 %v301_v14  ;;  %v422_v32 = vld [vmem:[#allocation6 + $0x5b0] sm:$0xff]  ;;  %v111_v38 = vld [vmem:[#allocation2] sm:$0xff]  ;;  %v141_v59 = vrot.slane %v114_v53, 4  ;;  %v3123_v0 = vrot.slane %v114_v53, 3 }
  0x43   :  { %552 = vmatpush.msrb.mxu0 %v392_v15  ;;  %571 = vmatpush.msrb.mxu1 %v426_v16  ;;  %v172_v37 = vadd.f32 %v171_v26, %v119_v22  ;;  %v117_v39 = vld [vmem:[#allocation2 + $0x30] sm:$0xff]  ;;  %v420_v43 = vld [vmem:[#allocation6 + $0x5a0] sm:$0xff]  ;;  %v123_v44 = vrot.slane %v111_v38, 4  ;;  %v3120_v47 = vrot.slane %v111_v38, 3  ;;  %3158 = vst [vmem:[%s3875_s6 + $0x70] sm:$0xe0] %v3128_v29  ;;  %v178_v7 = vadd.f32 %v177_v45, %v3439_v54 }
  0x44   :  { %v136_v36 = vadd.f32 %v135_v25, %v113_v21  ;;  %3146 = vst [vmem:[%s3875_s6 + $0x10] sm:$0xe0] %v3122_v28  ;;  %592 = vmatpush.msrb.mxu2 %v265_v17  ;;  %611 = vmatpush.msrb.mxu3 %v299_v18  ;;  %v386_v42 = vld [vmem:[#allocation6 + $0x490] sm:$0xff]  ;;  %v159_v46 = vrot.slane %v117_v39, 4  ;;  %v3126_v48 = vrot.slane %v117_v39, 3  ;;  %v384_v56 = vld [vmem:[#allocation6 + $0x480] sm:$0xff]  ;;  %v142_v6 = vadd.f32 %v141_v59, %v114_v53 }
  0x45   :  { %3152 = vst [vmem:[%s3875_s6 + $0x40] sm:$0x1f] %v3122_v28  ;;  %553 = vmatpush.msrb.mxu0 %v390_v19  ;;  %572 = vmatpush.msrb.mxu1 %v424_v20  ;;  %v173_v51 = vrot.slane %v172_v37, 2  ;;  %v124_v57 = vadd.f32 %v123_v44, %v111_v38  ;;  %v418_v60 = vld [vmem:[#allocation6 + $0x590] sm:$0xff]  ;;  %v3129_v1 = vrot.slane %v3439_v54, 3  ;;  %v3449_v2 = vld [vmem:[#allocation2 + $0x8] sm:$0xff] }
  0x46   :  { %v137_v50 = vrot.slane %v136_v36, 2  ;;  %593 = vmatpush.msrb.mxu2 %v263_v24  ;;  %612 = vmatpush.msrb.mxu3 %v297_v30  ;;  %3164 = vst [vmem:[%s3875_s6 + $0xa0] sm:$0x1f] %v3128_v29  ;;  %v160_v58 = vadd.f32 %v159_v46, %v117_v39  ;;  %v3455_v8 = vld [vmem:[#allocation2 + $0x38] sm:$0xff]  ;;  %v129_v11 = vrot.slane %v3449_v2, 4  ;;  %v416_v14 = vld [vmem:[#allocation6 + $0x580] sm:$0xff] }
  0x47   :  { %554 = vmatpush.msrb.mxu0 %v388_v31  ;;  %573 = vmatpush.msrb.mxu1 %v422_v32  ;;  %v174_v63 = vadd.f32 %v173_v51, %v172_v37  ;;  %3144 = vst [vmem:[%s3875_s6] sm:$0xe0] %v3120_v47  ;;  %v125_v4 = vrot.slane %v124_v57, 2  ;;  %v165_v12 = vrot.slane %v3455_v8, 4  ;;  %v382_v13 = vld [vmem:[#allocation6 + $0x470] sm:$0xff]  ;;  %v143_v17 = vrot.slane %v142_v6, 2  ;;  %v255_v19 = vld [vmem:[#allocation6 + $0x78] sm:$0xff] }
  0x48   :  { %v138_v62 = vadd.f32 %v137_v50, %v136_v36  ;;  %594 = vmatpush.msrb.mxu2 %v261_v34  ;;  %613 = vmatpush.msrb.mxu3 %v295_v35  ;;  %v161_v5 = vrot.slane %v160_v58, 2  ;;  %3150 = vst [vmem:[%s3875_s6 + $0x30] sm:$0x1f] %v3120_v47  ;;  %v179_v18 = vrot.slane %v178_v7, 2  ;;  %v289_v20 = vld [vmem:[#allocation6 + $0x188] sm:$0xff]  ;;  %v130_v23 = vadd.f32 %v129_v11, %v3449_v2  ;;  %v380_v24 = vld [vmem:[#allocation6 + $0x460] sm:$0xff] }
  0x49   :  { %555 = vmatpush.msrb.mxu0 %v386_v42  ;;  %574 = vmatpush.msrb.mxu1 %v420_v43  ;;  %v175_v10 = vrot.slane %v174_v63, 1  ;;  %3156 = vst [vmem:[%s3875_s6 + $0x60] sm:$0xe0] %v3126_v48  ;;  %v126_v15 = vadd.f32 %v125_v4, %v124_v57  ;;  %v414_v25 = vld [vmem:[#allocation6 + $0x570] sm:$0xff]  ;;  %v144_v29 = vadd.f32 %v143_v17, %v142_v6  ;;  %v253_v31 = vld [vmem:[#allocation6 + $0x68] sm:$0xff]  ;;  %v287_v32 = vld [vmem:[#allocation6 + $0x178] sm:$0xff] }
  0x4a   :  { %v139_v9 = vrot.slane %v138_v62, 1  ;;  %595 = vmatpush.msrb.mxu2 %v259_v49  ;;  %614 = vmatpush.msrb.mxu3 %v293_v55  ;;  %v162_v16 = vadd.f32 %v161_v5, %v160_v58  ;;  %3162 = vst [vmem:[%s3875_s6 + $0x90] sm:$0x1f] %v3126_v48  ;;  %v180_v30 = vadd.f32 %v179_v18, %v178_v7  ;;  %v131_v36 = vrot.slane %v130_v23, 2  ;;  %v378_v38 = vld [vmem:[#allocation6 + $0x450] sm:$0xff]  ;;  %v412_v39 = vld [vmem:[#allocation6 + $0x560] sm:$0xff] }
  0x4b   :  { %556 = vmatpush.msrb.mxu0 %v384_v56  ;;  %575 = vmatpush.msrb.mxu1 %v418_v60  ;;  %v176_v22 = vadd.f32 %v175_v10, %v174_v63  ;;  %3147 = vst [vmem:[%s3875_s6 + $0x18] sm:$0xe0] %v3123_v0  ;;  %v127_v26 = vrot.slane %v126_v15, 1  ;;  %v3121_v37 = vrot.slane %v3449_v2, 3  ;;  %v145_v44 = vrot.slane %v144_v29, 1  ;;  %v285_v47 = vld [vmem:[#allocation6 + $0x168] sm:$0xff] }
  0x4c   :  { %v140_v21 = vadd.f32 %v139_v9, %v138_v62  ;;  %596 = vmatpush.msrb.mxu2 %v257_v61  ;;  %615 = vmatpush.msrb.mxu3 %v291_v3  ;;  %v163_v28 = vrot.slane %v162_v16, 1  ;;  %3153 = vst [vmem:[%s3875_s6 + $0x48] sm:$0x1f] %v3123_v0  ;;  %v181_v46 = vrot.slane %v180_v30, 1  ;;  %v132_v50 = vadd.f32 %v131_v36, %v130_v23  ;;  %v376_v53 = vld [vmem:[#allocation6 + $0x440] sm:$0xff]  ;;  %v410_v54 = vld [vmem:[#allocation6 + $0x550] sm:$0xff] }
  0x4d   :  { %557 = vmatpush.msrb.mxu0 %v382_v13  ;;  %576 = vmatpush.msrb.mxu1 %v416_v14  ;;  %v217_v35 = vadd.f32 %v199_v33, %v176_v22  ;;  %3159 = vst [vmem:[%s3875_s6 + $0x78] sm:$0xe0] %v3129_v1  ;;  %v128_v42 = vadd.f32 %v127_v26, %v126_v15  ;;  %v3127_v51 = vrot.slane %v3455_v8, 3  ;;  %v283_v55 = vld [vmem:[#allocation6 + $0x158] sm:$0xff]  ;;  %v249_v63 = vld [vmem:[#allocation6 + $0x48] sm:$0xff]  ;;  %v374_v3 = vld [vmem:[#allocation6 + $0x430] sm:$0xff] }
  0x4e   :  { %v211_v34 = vadd.f32 %v199_v33, %v140_v21  ;;  %597 = vmatpush.msrb.mxu2 %v255_v19  ;;  %616 = vmatpush.msrb.mxu3 %v289_v20  ;;  %v164_v43 = vadd.f32 %v163_v28, %v162_v16  ;;  %3165 = vst [vmem:[%s3875_s6 + $0xa8] sm:$0x1f] %v3129_v1  ;;  %v251_v33 = vld [vmem:[#allocation6 + $0x58] sm:$0xff]  ;;  %v133_v60 = vrot.slane %v132_v50, 1  ;;  %v408_v6 = vld [vmem:[#allocation6 + $0x540] sm:$0xff]  ;;  %v198_v17 = vperm.slane %v3419_v27, 1 }
  0x4f   :  { %558 = vmatpush.msrb.mxu0 %v380_v24  ;;  %577 = vmatpush.msrb.mxu1 %v414_v25  ;;  %v236_v49 = vmul.f32 %v3434_v52, %v217_v35  ;;  %v209_v56 = vadd.f32 %v197_v40, %v128_v42  ;;  %v146_v58 = vadd.f32 %v145_v44, %v144_v29  ;;  %v3499_v62 = vld [vmem:[#allocation2 + $0x20] sm:$0xff]  ;;  %v406_v18 = vld [vmem:[#allocation6 + $0x530] sm:$0xff]  ;;  %v3524_v19 = vld [vmem:[#allocation2 + $0x28] sm:$0xff] }
  0x50   :  { %v230_v48 = vmul.f32 %v3434_v52, %v211_v34  ;;  %598 = vmatpush.msrb.mxu2 %v253_v31  ;;  %617 = vmatpush.msrb.mxu3 %v287_v32  ;;  %v215_v57 = vadd.f32 %v197_v40, %v164_v43  ;;  %3145 = vst [vmem:[%s3875_s6 + $0x8] sm:$0xe0] %v3121_v37  ;;  %v3501_v40 = vld [vmem:[#allocation2 + $0x50] sm:$0xff]  ;;  %v247_v7 = vld [vmem:[#allocation6 + $0x38] sm:$0xff]  ;;  %v147_v13 = vrot.slane %v3499_v62, 4  ;;  %v3124_v26 = vrot.slane %v3499_v62, 3 }
  0x51   :  { %559 = vmatpush.msrb.mxu0 %v378_v38  ;;  %578 = vmatpush.msrb.mxu1 %v412_v39  ;;  %v455_v59 = vrot.slane %v236_v49, 7  ;;  %v182_v45 = vadd.f32 %v181_v46, %v180_v30  ;;  %v166_v61 = vadd.f32 %v165_v12, %v3455_v8  ;;  %3151 = vst [vmem:[%s3875_s6 + $0x38] sm:$0x1f] %v3121_v37  ;;  %v281_v8 = vld [vmem:[#allocation6 + $0x148] sm:$0xff]  ;;  %v372_v12 = vld [vmem:[#allocation6 + $0x420] sm:$0xff]  ;;  %v183_v14 = vrot.slane %v3501_v40, 4 }
  0x52   :  { %599 = vmatpush.msrb.mxu2 %v251_v33  ;;  %618 = vmatpush.msrb.mxu3 %v285_v47  ;;  %v228_v0 = vmul.f32 %v3434_v52, %v209_v56  ;;  %v234_v1 = vmul.f32 %v3434_v52, %v215_v57  ;;  %v212_v2 = vadd.f32 %v200_v41, %v146_v58  ;;  %v3526_v20 = vld [vmem:[#allocation2 + $0x58] sm:$0xff]  ;;  %v245_v22 = vld [vmem:[#allocation6 + $0x28] sm:$0xff]  ;;  %v404_v32 = vld [vmem:[#allocation6 + $0x520] sm:$0xff]  ;;  %v3130_v35 = vrot.slane %v3501_v40, 3 }
  0x53   :  { %3157 = vst [vmem:[%s3875_s6 + $0x68] sm:$0xe0] %v3127_v51  ;;  %v3511_v4 = vsel %vm451_vm1, %v455_v59, %v230_v48  ;;  %560 = vmatpush.msrb.mxu0 %v376_v53  ;;  %579 = vmatpush.msrb.mxu1 %v410_v54  ;;  %v218_v5 = vadd.f32 %v200_v41, %v182_v45  ;;  %v167_v10 = vrot.slane %v166_v61, 2  ;;  %v279_v23 = vld [vmem:[#allocation6 + $0x138] sm:$0xff]  ;;  %v370_v31 = vld [vmem:[#allocation6 + $0x410] sm:$0xff]  ;;  %v153_v38 = vrot.slane %v3524_v19, 4 }
  0x54   :  { %v134_v9 = vadd.f32 %v133_v60, %v132_v50  ;;  %525 = vmatmul.f32.vlgmr.msra.gmra.mxu2 %v3511_v4  ;;  %619 = vmatpush.msrb.mxu3 %v283_v55  ;;  %v450_v11 = vrot.slane %v234_v1, 7  ;;  %3163 = vst [vmem:[%s3875_s6 + $0x98] sm:$0x1f] %v3127_v51  ;;  %v231_v41 = vmul.f32 %v3434_v52, %v212_v2  ;;  %v243_v34 = vld [vmem:[#allocation6 + $0x18] sm:$0xff]  ;;  %v189_v39 = vrot.slane %v3526_v20, 4  ;;  %v277_v44 = vld [vmem:[#allocation6 + $0x128] sm:$0xff] }
  0x55   :  { %600 = vmatpush.msrb.mxu2 %v249_v63  ;;  %v237_v15 = vmul.f32 %v3434_v52, %v218_v5  ;;  %561 = vmatpush.msrb.mxu0 %v374_v3  ;;  %v168_v16 = vadd.f32 %v167_v10, %v166_v61  ;;  %v148_v24 = vadd.f32 %v147_v13, %v3499_v62  ;;  %v368_v46 = vld [vmem:[#allocation6 + $0x400] sm:$0xff]  ;;  %v3125_v33 = vrot.slane %v3524_v19, 3  ;;  %v402_v47 = vld [vmem:[#allocation6 + $0x510] sm:$0xff]  ;;  %v241_v48 = vld [vmem:[#allocation6 + $0x8] sm:$0xff] }
  0x56   :  { %v3529_v21 = vsel %vm451_vm1, %v450_v11, %v228_v0  ;;  %580 = vmatpush.msrb.mxu1 %v408_v6  ;;  %620 = vmatpush.msrb.mxu3 %v281_v8  ;;  %v184_v25 = vadd.f32 %v183_v14, %v3501_v40  ;;  %v210_v30 = vadd.f32 %v198_v17, %v134_v9  ;;  %v275_v49 = vld [vmem:[#allocation6 + $0x118] sm:$0xff]  ;;  %v400_v56 = vld [vmem:[#allocation6 + $0x500] sm:$0xff]  ;;  %v3131_v58 = vrot.slane %v3526_v20, 3  ;;  %v273_v0 = vld [vmem:[#allocation6 + $0x108] sm:$0xff] }
  0x57   :  { %485 = vmatmul.f32.vlgmr.msra.gmra.mxu0 %v3529_v21  ;;  %v457_v28 = vrot.slane %v237_v15, 7  ;;  %601 = vmatpush.msrb.mxu2 %v247_v7  ;;  %v169_v29 = vrot.slane %v168_v16, 1  ;;  %v149_v36 = vrot.slane %v148_v24, 2  ;;  %3148 = vst [vmem:[%s3875_s6 + $0x20] sm:$0xe0] %v3124_v26  ;;  %v154_v53 = vadd.f32 %v153_v38, %v3524_v19  ;;  %v399_v55 = vld [vmem:[#allocation6 + $0x4f8] sm:$0xff] }
  0x58   :  { %562 = vmatpush.msrb.mxu0 %v372_v12  ;;  %581 = vmatpush.msrb.mxu1 %v406_v18  ;;  %v185_v37 = vrot.slane %v184_v25, 2  ;;  %3154 = vst [vmem:[%s3875_s6 + $0x50] sm:$0x1f] %v3124_v26  ;;  %v190_v57 = vadd.f32 %v189_v39, %v3526_v20  ;;  %v335_v59 = vld [vmem:[#allocation6 + $0x2f8] sm:$0xff]  ;;  %v201_v61 = vperm.slane %v3419_v27, 4  ;;  %v229_v40 = vmul.f32 %v3434_v52, %v210_v30  ;;  %v397_v2 = vld [vmem:[#allocation6 + $0x4e8] sm:$0xff] }
  0x59   :  { %v3542_v42 = vsel %vm451_vm1, %v457_v28, %v231_v41  ;;  %v170_v43 = vadd.f32 %v169_v29, %v168_v16  ;;  %602 = vmatpush.msrb.mxu2 %v245_v22  ;;  %621 = vmatpush.msrb.mxu3 %v279_v23  ;;  %v150_v50 = vadd.f32 %v149_v36, %v148_v24  ;;  %v155_v62 = vrot.slane %v154_v53, 2  ;;  %v431_v7 = vld [vmem:[#allocation6 + $0x5f8] sm:$0xff]  ;;  %v333_v8 = vld [vmem:[#allocation6 + $0x2e8] sm:$0xff] }
  0x5a   :  { %545 = vmatmul.f32.vlgmr.msra.gmra.mxu3 %v3542_v42  ;;  %563 = vmatpush.msrb.mxu0 %v370_v31  ;;  %v186_v51 = vadd.f32 %v185_v37, %v184_v25  ;;  %3160 = vst [vmem:[%s3875_s6 + $0x80] sm:$0xe0] %v3130_v35  ;;  %v191_v1 = vrot.slane %v190_v57, 2  ;;  %v395_v11 = vld [vmem:[#allocation6 + $0x4d8] sm:$0xff]  ;;  %v429_v15 = vld [vmem:[#allocation6 + $0x5e8] sm:$0xff]  ;;  %v202_v18 = vperm.slane %v3419_v27, 5 }
  0x5b   :  { %v216_v54 = vadd.f32 %v198_v17, %v170_v43  ;;  %582 = vmatpush.msrb.mxu1 %v404_v32  ;;  %603 = vmatpush.msrb.mxu2 %v243_v34  ;;  %3166 = vst [vmem:[%s3875_s6 + $0xb0] sm:$0x1f] %v3130_v35  ;;  %v151_v45 = vrot.slane %v150_v50, 1  ;;  %v156_v6 = vadd.f32 %v155_v62, %v154_v53  ;;  %v367_v41 = vld [vmem:[#allocation6 + $0x3f8] sm:$0xff]  ;;  %v393_v20 = vld [vmem:[#allocation6 + $0x4c8] sm:$0xff] }
  0x5c   :  { %622 = vmatpush.msrb.mxu3 %v277_v44  ;;  %564 = vmatpush.msrb.mxu0 %v368_v46  ;;  %v187_v60 = vrot.slane %v186_v51, 1  ;;  %3149 = vst [vmem:[%s3875_s6 + $0x28] sm:$0xe0] %v3125_v33  ;;  %v192_v10 = vadd.f32 %v191_v1, %v190_v57  ;;  %v331_v19 = vld [vmem:[#allocation6 + $0x2d8] sm:$0xff]  ;;  %v365_v25 = vld [vmem:[#allocation6 + $0x3e8] sm:$0xff] }
  0x5d   :  { %v235_v63 = vmul.f32 %v3434_v52, %v216_v54  ;;  %583 = vmatpush.msrb.mxu1 %v402_v47  ;;  %604 = vmatpush.msrb.mxu2 %v241_v48  ;;  %3155 = vst [vmem:[%s3875_s6 + $0x58] sm:$0x1f] %v3125_v33  ;;  %v152_v3 = vadd.f32 %v151_v45, %v150_v50  ;;  %v157_v14 = vrot.slane %v156_v6, 1  ;;  %v427_v26 = vld [vmem:[#allocation6 + $0x5d8] sm:$0xff]  ;;  %v329_v29 = vld [vmem:[#allocation6 + $0x2c8] sm:$0xff] }
  0x5e   :  { %623 = vmatpush.msrb.mxu3 %v275_v49  ;;  %v188_v5 = vadd.f32 %v187_v60, %v186_v51  ;;  %3161 = vst [vmem:[%s3875_s6 + $0x88] sm:$0xe0] %v3131_v58  ;;  %629 = vmatpush.msra.mxu0 %v335_v59  ;;  %v193_v17 = vrot.slane %v192_v10, 1  ;;  %v391_v30 = vld [vmem:[#allocation6 + $0x4b8] sm:$0xff]  ;;  %v425_v35 = vld [vmem:[#allocation6 + $0x5c8] sm:$0xff] }
  0x5f   :  { %669 = vmatpush.msra.mxu2 %v399_v55  ;;  %v453_v9 = vrot.slane %v235_v63, 7  ;;  %584 = vmatpush.msrb.mxu1 %v400_v56  ;;  %3167 = vst [vmem:[%s3875_s6 + $0xb8] sm:$0x1f] %v3131_v58  ;;  %v213_v12 = vadd.f32 %v201_v61, %v152_v3  ;;  %v158_v24 = vadd.f32 %v157_v14, %v156_v6  ;;  %v363_v32 = vld [vmem:[#allocation6 + $0x3d8] sm:$0xff]  ;;  %v361_v38 = vld [vmem:[#allocation6 + $0x3c8] sm:$0xff] }
  0x60   :  { %v219_v13 = vadd.f32 %v201_v61, %v188_v5  ;;  %624 = vmatpush.msrb.mxu3 %v273_v0  ;;  %630 = vmatpush.msra.mxu0 %v333_v8  ;;  %v194_v28 = vadd.f32 %v193_v17, %v192_v10  ;;  %v327_v36 = vld [vmem:[#allocation6 + $0x2b8] sm:$0xff]  ;;  %v389_v39 = vld [vmem:[#allocation6 + $0x4a8] sm:$0xff] }
  0x61   :  { %670 = vmatpush.msra.mxu2 %v397_v2  ;;  %v3574_v16 = vsel %vm451_vm1, %v453_v9, %v229_v40  ;;  %v232_v22 = vmul.f32 %v3434_v52, %v213_v12  ;;  %v214_v31 = vadd.f32 %v202_v18, %v158_v24  ;;  %v423_v46 = vld [vmem:[#allocation6 + $0x5b8] sm:$0xff]  ;;  %v325_v33 = vld [vmem:[#allocation6 + $0x2a8] sm:$0xff] }
  0x62   :  { %689 = vmatpush.msra.mxu3 %v431_v7  ;;  %505 = vmatmul.f32.vlgmr.msra.gmra.mxu1 %v3574_v16  ;;  %v238_v23 = vmul.f32 %v3434_v52, %v219_v13  ;;  %v220_v34 = vadd.f32 %v202_v18, %v194_v28  ;;  %v359_v47 = vld [vmem:[#allocation6 + $0x3b8] sm:$0xff]  ;;  %v421_v50 = vld [vmem:[#allocation6 + $0x5a8] sm:$0xff] }
  0x63   :  { %671 = vmatpush.msra.mxu2 %v395_v11  ;;  %649 = vmatpush.msra.mxu1 %v367_v41  ;;  %v233_v43 = vmul.f32 %v3434_v52, %v214_v31  ;;  %v387_v48 = vld [vmem:[#allocation6 + $0x498] sm:$0xff]  ;;  %v357_v53 = vld [vmem:[#allocation6 + $0x3a8] sm:$0xff] }
  0x64   :  { %690 = vmatpush.msra.mxu3 %v429_v15  ;;  %v459_v27 = vrot.slane %v238_v23, 7  ;;  %631 = vmatpush.msra.mxu0 %v331_v19  ;;  %v239_v44 = vmul.f32 %v3434_v52, %v220_v34  ;;  %v323_v51 = vld [vmem:[#allocation6 + $0x298] sm:$0xff]  ;;  %v385_v52 = vld [vmem:[#allocation6 + $0x488] sm:$0xff] }
  0x65   :  { %672 = vmatpush.msra.mxu2 %v393_v20  ;;  %650 = vmatpush.msra.mxu1 %v365_v25  ;;  %v419_v55 = vld [vmem:[#allocation6 + $0x598] sm:$0xff]  ;;  %v321_v56 = vld [vmem:[#allocation6 + $0x288] sm:$0xff] }
  0x66   :  { %691 = vmatpush.msra.mxu3 %v427_v26  ;;  %v3581_v37 = vsel %vm451_vm1, %v459_v27, %v232_v22  ;;  %632 = vmatpush.msra.mxu0 %v329_v29  ;;  %v461_v49 = vrot.slane %v239_v44, 7  ;;  %v355_v57 = vld [vmem:[#allocation6 + $0x398] sm:$0xff]  ;;  %v417_v59 = vld [vmem:[#allocation6 + $0x588] sm:$0xff] }
  0x67   :  { %673 = vmatpush.msra.mxu2 %v391_v30  ;;  %565 = vmatmul.f32.vlgmr.msrb.gmra.mxu0 %v3581_v37  ;;  %v383_v58 = vld [vmem:[#allocation6 + $0x478] sm:$0xff]  ;;  %v353_v60 = vld [vmem:[#allocation6 + $0x388] sm:$0xff] }
  0x68   :  { %651 = vmatpush.msra.mxu1 %v363_v32  ;;  %692 = vmatpush.msra.mxu3 %v425_v35  ;;  %v3587_v54 = vsel %vm451_vm1, %v461_v49, %v233_v43  ;;  %v319_v45 = vld [vmem:[#allocation6 + $0x278] sm:$0xff]  ;;  %v381_v61 = vld [vmem:[#allocation6 + $0x468] sm:$0xff] }
  0x69   :  { %633 = vmatpush.msra.mxu0 %v327_v36  ;;  %674 = vmatpush.msra.mxu2 %v389_v39  ;;  %v415_v62 = vld [vmem:[#allocation6 + $0x578] sm:$0xff]  ;;  %v317_v40 = vld [vmem:[#allocation6 + $0x268] sm:$0xff] }
  0x6a   :  { %652 = vmatpush.msra.mxu1 %v361_v38  ;;  %693 = vmatpush.msra.mxu3 %v423_v46  ;;  %v351_v63 = vld [vmem:[#allocation6 + $0x378] sm:$0xff]  ;;  %v413_v1 = vld [vmem:[#allocation6 + $0x568] sm:$0xff] }
  0x6b   :  { %634 = vmatpush.msra.mxu0 %v325_v33  ;;  %675 = vmatpush.msra.mxu2 %v387_v48  ;;  %v379_v0 = vld [vmem:[#allocation6 + $0x458] sm:$0xff]  ;;  %v349_v3 = vld [vmem:[#allocation6 + $0x368] sm:$0xff] }
  0x6c   :  { %653 = vmatpush.msra.mxu1 %v359_v47  ;;  %694 = vmatpush.msra.mxu3 %v421_v50  ;;  %v315_v2 = vld [vmem:[#allocation6 + $0x258] sm:$0xff]  ;;  %v377_v5 = vld [vmem:[#allocation6 + $0x448] sm:$0xff] }
  0x6d   :  { %585 = vmatmul.f32.vlgmr.msrb.gmra.mxu1 %v3587_v54  ;;  %635 = vmatpush.msra.mxu0 %v323_v51  ;;  %v411_v6 = vld [vmem:[#allocation6 + $0x558] sm:$0xff]  ;;  %v313_v7 = vld [vmem:[#allocation6 + $0x248] sm:$0xff] }
  0x6e   :  { %654 = vmatpush.msra.mxu1 %v357_v53  ;;  %676 = vmatpush.msra.mxu2 %v385_v52  ;;  %v347_v8 = vld [vmem:[#allocation6 + $0x358] sm:$0xff]  ;;  %v409_v10 = vld [vmem:[#allocation6 + $0x548] sm:$0xff] }
  0x6f   :  { %695 = vmatpush.msra.mxu3 %v419_v55  ;;  %636 = vmatpush.msra.mxu0 %v321_v56  ;;  %v375_v9 = vld [vmem:[#allocation6 + $0x438] sm:$0xff]  ;;  %v345_v12 = vld [vmem:[#allocation6 + $0x348] sm:$0xff] }
  0x70   :  { %655 = vmatpush.msra.mxu1 %v355_v57  ;;  %677 = vmatpush.msra.mxu2 %v383_v58  ;;  %v311_v11 = vld [vmem:[#allocation6 + $0x238] sm:$0xff]  ;;  %v373_v13 = vld [vmem:[#allocation6 + $0x428] sm:$0xff] }
  0x71   :  { %696 = vmatpush.msra.mxu3 %v417_v59  ;;  %637 = vmatpush.msra.mxu0 %v319_v45  ;;  %v407_v14 = vld [vmem:[#allocation6 + $0x538] sm:$0xff]  ;;  %v309_v41 = vld [vmem:[#allocation6 + $0x228] sm:$0xff] }
  0x72   :  { %656 = vmatpush.msra.mxu1 %v353_v60  ;;  %678 = vmatpush.msra.mxu2 %v381_v61  ;;  %v343_v15 = vld [vmem:[#allocation6 + $0x338] sm:$0xff]  ;;  %v405_v18 = vld [vmem:[#allocation6 + $0x528] sm:$0xff] }
  0x73   :  { %697 = vmatpush.msra.mxu3 %v415_v62  ;;  %638 = vmatpush.msra.mxu0 %v317_v40  ;;  %v371_v17 = vld [vmem:[#allocation6 + $0x418] sm:$0xff]  ;;  %v341_v20 = vld [vmem:[#allocation6 + $0x328] sm:$0xff] }
  0x74   :  { %657 = vmatpush.msra.mxu1 %v351_v63  ;;  %679 = vmatpush.msra.mxu2 %v379_v0  ;;  %v307_v19 = vld [vmem:[#allocation6 + $0x218] sm:$0xff]  ;;  %v305_v23 = vld [vmem:[#allocation6 + $0x208] sm:$0xff] }
  0x75   :  { %698 = vmatpush.msra.mxu3 %v413_v1  ;;  %639 = vmatpush.msra.mxu0 %v315_v2  ;;  %v403_v22 = vld [vmem:[#allocation6 + $0x518] sm:$0xff]  ;;  %v401_v25 = vld [vmem:[#allocation6 + $0x508] sm:$0xff] }
  0x76   :  { %658 = vmatpush.msra.mxu1 %v349_v3  ;;  %680 = vmatpush.msra.mxu2 %v377_v5  ;;  %v339_v24 = vld [vmem:[#allocation6 + $0x318] sm:$0xff]  ;;  %v1131_v29 = vld [vmem:[#allocation9 + $0xd20] sm:$0xff]  ;;  %v1132_v30 = vld [vmem:[#allocation9 + $0xd28] sm:$0xff] }
  0x77   :  { %699 = vmatpush.msra.mxu3 %v411_v6  ;;  %605 = vmatmul.f32.vlgmr.msrb.gmra.mxu2 %v3529_v21  ;;  %v369_v21 = vld [vmem:[#allocation6 + $0x408] sm:$0xff]  ;;  %v1161_v26 = vld [vmem:[#allocation9 + $0xe10] sm:$0xff]  ;;  %v1162_v28 = vld [vmem:[#allocation9 + $0xe18] sm:$0xff] }
  0x78   :  { %640 = vmatpush.msra.mxu0 %v313_v7  ;;  %659 = vmatpush.msra.mxu1 %v347_v8  ;;  %v1101_v27 = vld [vmem:[#allocation9 + $0xc30] sm:$0xff]  ;;  %v1102_v31 = vld [vmem:[#allocation9 + $0xc38] sm:$0xff]  ;;  %v1071_v32 = vld [vmem:[#allocation9 + $0xb40] sm:$0xff] }
  0x79   :  { %681 = vmatpush.msra.mxu2 %v375_v9  ;;  %700 = vmatpush.msra.mxu3 %v409_v10  ;;  %v1072_v34 = vld [vmem:[#allocation9 + $0xb48] sm:$0xff]  ;;  %v1641_v35 = vld [vmem:[#allocation9 + $0x1d10] sm:$0xff]  ;;  %v1642_v36 = vld [vmem:[#allocation9 + $0x1d18] sm:$0xff] }
  0x7a   :  { %641 = vmatpush.msra.mxu0 %v311_v11  ;;  %625 = vmatmul.f32.vlgmr.msrb.gmra.mxu3 %v3574_v16  ;;  %v337_v16 = vld [vmem:[#allocation6 + $0x308] sm:$0xff]  ;;  %v1581_v44 = vld [vmem:[#allocation9 + $0x1b30] sm:$0xff]  ;;  %v1582_v46 = vld [vmem:[#allocation9 + $0x1b38] sm:$0xff] }
  0x7b   :  { %660 = vmatpush.msra.mxu1 %v345_v12  ;;  %682 = vmatpush.msra.mxu2 %v373_v13  ;;  %v1611_v38 = vld [vmem:[#allocation9 + $0x1c20] sm:$0xff]  ;;  %v1612_v39 = vld [vmem:[#allocation9 + $0x1c28] sm:$0xff]  ;;  %v981_v33 = vld [vmem:[#allocation9 + $0x870] sm:$0xff] }
  0x7c   :  { %701 = vmatpush.msra.mxu3 %v407_v14  ;;  %642 = vmatpush.msra.mxu0 %v309_v41  ;;  %v1012_v43 = vld [vmem:[#allocation9 + $0x968] sm:$0xff]  ;;  %v982_v47 = vld [vmem:[#allocation9 + $0x878] sm:$0xff]  ;;  %v1551_v48 = vld [vmem:[#allocation9 + $0x1a40] sm:$0xff] }
  0x7d   :  { %661 = vmatpush.msra.mxu1 %v343_v15  ;;  %683 = vmatpush.msra.mxu2 %v371_v17  ;;  %v1552_v49 = vld [vmem:[#allocation9 + $0x1a48] sm:$0xff]  ;;  %v951_v50 = vld [vmem:[#allocation9 + $0x780] sm:$0xff]  ;;  %v1521_v53 = vld [vmem:[#allocation9 + $0x1950] sm:$0xff] }
  0x7e   :  { %702 = vmatpush.msra.mxu3 %v405_v18  ;;  %643 = vmatpush.msra.mxu0 %v307_v19  ;;  %v952_v51 = vld [vmem:[#allocation9 + $0x788] sm:$0xff]  ;;  %v921_v52 = vld [vmem:[#allocation9 + $0x690] sm:$0xff]  ;;  %v922_v55 = vld [vmem:[#allocation9 + $0x698] sm:$0xff] }
  0x7f   :  { %662 = vmatpush.msra.mxu1 %v341_v20  ;;  %684 = vmatpush.msra.mxu2 %v369_v21  ;;  %v891_v56 = vld [vmem:[#allocation9 + $0x5a0] sm:$0xff]  ;;  %v892_v57 = vld [vmem:[#allocation9 + $0x5a8] sm:$0xff]  ;;  %v861_v58 = vld [vmem:[#allocation9 + $0x4b0] sm:$0xff] }
  0x80   :  { %703 = vmatpush.msra.mxu3 %v403_v22  ;;  %685 = vmatmul.f32.vlgmr.msra.gmra.mxu2 %v3581_v37  ;;  %v1042_v37 = vld [vmem:[#allocation9 + $0xa58] sm:$0xff]  ;;  %v831_v45 = vld [vmem:[#allocation9 + $0x3c0] sm:$0xff]  ;;  %v832_v60 = vld [vmem:[#allocation9 + $0x3c8] sm:$0xff] }
  0x81   :  { %644 = vmatpush.msra.mxu0 %v305_v23  ;;  %663 = vmatpush.msra.mxu1 %v339_v24  ;;  %v862_v59 = vld [vmem:[#allocation9 + $0x4b8] sm:$0xff]  ;;  %v801_v61 = vld [vmem:[#allocation9 + $0x2d0] sm:$0xff]  ;;  %v771_v40 = vld [vmem:[#allocation9 + $0x1e0] sm:$0xff] }
  0x82   :  { %704 = vmatpush.msra.mxu3 %v401_v25  ;;  %645 = vmatmul.f32.vlgmr.msra.gmra.mxu0 %v3511_v4  ;;  %v1041_v4 = vld [vmem:[#allocation9 + $0xa50] sm:$0xff]  ;;  %v802_v62 = vld [vmem:[#allocation9 + $0x2d8] sm:$0xff]  ;;  %v772_v63 = vld [vmem:[#allocation9 + $0x1e8] sm:$0xff] }
  0x83   :  { %705 = vmatmul.f32.vlgmr.msra.gmra.mxu3 %v3587_v54  ;;  %664 = vmatpush.msra.mxu1 %v337_v16  ;;  %v1522_v54 = vld [vmem:[#allocation9 + $0x1958] sm:$0xff]  ;;  %v741_v0 = vld [vmem:[#allocation9 + $0xf0] sm:$0xff]  ;;  %v711_v2 = vld [vmem:[#allocation9] sm:$0xff] }
  0x84   :  { %1739 = vmatpush.msrb.mxu0 %v1161_v26  ;;  %665 = vmatmul.f32.vlgmr.msra.gmra.mxu1 %v3542_v42  ;;  %v1011_v42 = vld [vmem:[#allocation9 + $0x960] sm:$0xff]  ;;  %v742_v1 = vld [vmem:[#allocation9 + $0xf8] sm:$0xff]  ;;  %v712_v3 = vld [vmem:[#allocation9 + $0x8] sm:$0xff] }
  0x85   :  { %1779 = vmatpush.msrb.mxu2 %v1162_v28  ;;  %1759 = vmatpush.msrb.mxu1 %v1641_v35  ;;  %v1163_v5 = vld [vmem:[#allocation9 + $0xe20] sm:$0xff]  ;;  %v1164_v6 = vld [vmem:[#allocation9 + $0xe28] sm:$0xff]  ;;  %v1133_v7 = vld [vmem:[#allocation9 + $0xd30] sm:$0xff] }
  0x86   :  { %1740 = vmatpush.msrb.mxu0 %v1131_v29  ;;  %1799 = vmatpush.msrb.mxu3 %v1642_v36  ;;  %v1134_v8 = vld [vmem:[#allocation9 + $0xd38] sm:$0xff]  ;;  %v1103_v9 = vld [vmem:[#allocation9 + $0xc40] sm:$0xff]  ;;  %v1104_v10 = vld [vmem:[#allocation9 + $0xc48] sm:$0xff] }
  0x87   :  { %1780 = vmatpush.msrb.mxu2 %v1132_v30  ;;  %1760 = vmatpush.msrb.mxu1 %v1611_v38  ;;  %v1073_v11 = vld [vmem:[#allocation9 + $0xb50] sm:$0xff]  ;;  %v1074_v12 = vld [vmem:[#allocation9 + $0xb58] sm:$0xff]  ;;  %v1043_v13 = vld [vmem:[#allocation9 + $0xa60] sm:$0xff] }
  0x88   :  { %1741 = vmatpush.msrb.mxu0 %v1101_v27  ;;  %1800 = vmatpush.msrb.mxu3 %v1612_v39  ;;  %v1044_v14 = vld [vmem:[#allocation9 + $0xa68] sm:$0xff]  ;;  %v1013_v41 = vld [vmem:[#allocation9 + $0x970] sm:$0xff]  ;;  %v1014_v15 = vld [vmem:[#allocation9 + $0x978] sm:$0xff] }
  0x89   :  { %1781 = vmatpush.msrb.mxu2 %v1102_v31  ;;  %1761 = vmatpush.msrb.mxu1 %v1581_v44  ;;  %v983_v17 = vld [vmem:[#allocation9 + $0x880] sm:$0xff]  ;;  %v984_v18 = vld [vmem:[#allocation9 + $0x888] sm:$0xff]  ;;  %v953_v19 = vld [vmem:[#allocation9 + $0x790] sm:$0xff] }
  0x8a   :  { %1742 = vmatpush.msrb.mxu0 %v1071_v32  ;;  %1801 = vmatpush.msrb.mxu3 %v1582_v46  ;;  %v954_v20 = vld [vmem:[#allocation9 + $0x798] sm:$0xff]  ;;  %v1491_v21 = vld [vmem:[#allocation9 + $0x1860] sm:$0xff]  ;;  %v1492_v22 = vld [vmem:[#allocation9 + $0x1868] sm:$0xff] }
  0x8b   :  { %1782 = vmatpush.msrb.mxu2 %v1072_v34  ;;  %1762 = vmatpush.msrb.mxu1 %v1551_v48  ;;  %v923_v23 = vld [vmem:[#allocation9 + $0x6a0] sm:$0xff]  ;;  %v924_v24 = vld [vmem:[#allocation9 + $0x6a8] sm:$0xff]  ;;  %v1461_v25 = vld [vmem:[#allocation9 + $0x1770] sm:$0xff] }
  0x8c   :  { %1743 = vmatpush.msrb.mxu0 %v1041_v4  ;;  %1802 = vmatpush.msrb.mxu3 %v1552_v49  ;;  %v1462_v16 = vld [vmem:[#allocation9 + $0x1778] sm:$0xff]  ;;  %v893_v26 = vld [vmem:[#allocation9 + $0x5b0] sm:$0xff]  ;;  %v1431_v29 = vld [vmem:[#allocation9 + $0x1680] sm:$0xff] }
  0x8d   :  { %1783 = vmatpush.msrb.mxu2 %v1042_v37  ;;  %1763 = vmatpush.msrb.mxu1 %v1521_v53  ;;  %v894_v28 = vld [vmem:[#allocation9 + $0x5b8] sm:$0xff]  ;;  %v1432_v30 = vld [vmem:[#allocation9 + $0x1688] sm:$0xff]  ;;  %v863_v27 = vld [vmem:[#allocation9 + $0x4c0] sm:$0xff] }
  0x8e   :  { %1744 = vmatpush.msrb.mxu0 %v1011_v42  ;;  %1803 = vmatpush.msrb.mxu3 %v1522_v54  ;;  %v864_v31 = vld [vmem:[#allocation9 + $0x4c8] sm:$0xff]  ;;  %v1401_v32 = vld [vmem:[#allocation9 + $0x1590] sm:$0xff]  ;;  %v1402_v34 = vld [vmem:[#allocation9 + $0x1598] sm:$0xff] }
  0x8f   :  { %1784 = vmatpush.msrb.mxu2 %v1012_v43  ;;  %1764 = vmatpush.msrb.mxu1 %v1491_v21  ;;  %v833_v35 = vld [vmem:[#allocation9 + $0x3d0] sm:$0xff]  ;;  %v834_v36 = vld [vmem:[#allocation9 + $0x3d8] sm:$0xff]  ;;  %v1371_v4 = vld [vmem:[#allocation9 + $0x14a0] sm:$0xff] }
  0x90   :  { %1745 = vmatpush.msrb.mxu0 %v981_v33  ;;  %1804 = vmatpush.msrb.mxu3 %v1492_v22  ;;  %v1372_v37 = vld [vmem:[#allocation9 + $0x14a8] sm:$0xff]  ;;  %v803_v38 = vld [vmem:[#allocation9 + $0x2e0] sm:$0xff]  ;;  %v1341_v42 = vld [vmem:[#allocation9 + $0x13b0] sm:$0xff] }
  0x91   :  { %1785 = vmatpush.msrb.mxu2 %v982_v47  ;;  %1765 = vmatpush.msrb.mxu1 %v1461_v25  ;;  %v804_v39 = vld [vmem:[#allocation9 + $0x2e8] sm:$0xff]  ;;  %v1342_v43 = vld [vmem:[#allocation9 + $0x13b8] sm:$0xff]  ;;  %v773_v44 = vld [vmem:[#allocation9 + $0x1f0] sm:$0xff] }
  0x92   :  { %1746 = vmatpush.msrb.mxu0 %v951_v50  ;;  %1805 = vmatpush.msrb.mxu3 %v1462_v16  ;;  %v774_v46 = vld [vmem:[#allocation9 + $0x1f8] sm:$0xff]  ;;  %v1311_v33 = vld [vmem:[#allocation9 + $0x12c0] sm:$0xff]  ;;  %v1312_v47 = vld [vmem:[#allocation9 + $0x12c8] sm:$0xff] }
  0x93   :  { %1786 = vmatpush.msrb.mxu2 %v952_v51  ;;  %1766 = vmatpush.msrb.mxu1 %v1431_v29  ;;  %v743_v48 = vld [vmem:[#allocation9 + $0x100] sm:$0xff]  ;;  %v744_v49 = vld [vmem:[#allocation9 + $0x108] sm:$0xff]  ;;  %v1281_v50 = vld [vmem:[#allocation9 + $0x11d0] sm:$0xff] }
  0x94   :  { %1747 = vmatpush.msrb.mxu0 %v921_v52  ;;  %1806 = vmatpush.msrb.mxu3 %v1432_v30  ;;  %v1282_v51 = vld [vmem:[#allocation9 + $0x11d8] sm:$0xff]  ;;  %v713_v53 = vld [vmem:[#allocation9 + $0x10] sm:$0xff]  ;;  %v1251_v52 = vld [vmem:[#allocation9 + $0x10e0] sm:$0xff] }
  0x95   :  { %1787 = vmatpush.msrb.mxu2 %v922_v55  ;;  %1767 = vmatpush.msrb.mxu1 %v1401_v32  ;;  %v714_v54 = vld [vmem:[#allocation9 + $0x18] sm:$0xff]  ;;  %v1252_v55 = vld [vmem:[#allocation9 + $0x10e8] sm:$0xff]  ;;  %v1313_v30 = vld [vmem:[#allocation9 + $0x12d0] sm:$0xff] }
  0x96   :  { %1748 = vmatpush.msrb.mxu0 %v891_v56  ;;  %1807 = vmatpush.msrb.mxu3 %v1402_v34  ;;  %v1221_v56 = vld [vmem:[#allocation9 + $0xff0] sm:$0xff]  ;;  %v1404_v21 = vld [vmem:[#allocation9 + $0x15a8] sm:$0xff]  ;;  %v1374_v25 = vld [vmem:[#allocation9 + $0x14b8] sm:$0xff] }
  0x97   :  { %1788 = vmatpush.msrb.mxu2 %v892_v57  ;;  %1768 = vmatpush.msrb.mxu1 %v1371_v4  ;;  %v1222_v57 = vld [vmem:[#allocation9 + $0xff8] sm:$0xff]  ;;  %v1283_v32 = vld [vmem:[#allocation9 + $0x11e0] sm:$0xff]  ;;  %v1284_v34 = vld [vmem:[#allocation9 + $0x11e8] sm:$0xff] }
  0x98   :  { %1749 = vmatpush.msrb.mxu0 %v861_v58  ;;  %1808 = vmatpush.msrb.mxu3 %v1372_v37  ;;  %v1191_v58 = vld [vmem:[#allocation9 + $0xf00] sm:$0xff]  ;;  %v1166_v4 = vld [vmem:[#allocation9 + $0xe38] sm:$0xff] }
  0x99   :  { %1789 = vmatpush.msrb.mxu2 %v862_v59  ;;  %1769 = vmatpush.msrb.mxu1 %v1341_v42  ;;  %v1192_v59 = vld [vmem:[#allocation9 + $0xf08] sm:$0xff]  ;;  %v1135_v37 = vld [vmem:[#allocation9 + $0xd40] sm:$0xff]  ;;  %v1254_v42 = vld [vmem:[#allocation9 + $0x10f8] sm:$0xff] }
  0x9a   :  { %1750 = vmatpush.msrb.mxu0 %v831_v45  ;;  %1809 = vmatpush.msrb.mxu3 %v1342_v43  ;;  %v1643_v45 = vld [vmem:[#allocation9 + $0x1d20] sm:$0xff]  ;;  %v1105_v43 = vld [vmem:[#allocation9 + $0xc50] sm:$0xff] }
  0x9b   :  { %1790 = vmatpush.msrb.mxu2 %v832_v60  ;;  %1770 = vmatpush.msrb.mxu1 %v1311_v33  ;;  %v1644_v60 = vld [vmem:[#allocation9 + $0x1d28] sm:$0xff] }
  0x9c   :  { %1751 = vmatpush.msrb.mxu0 %v801_v61  ;;  %1810 = vmatpush.msrb.mxu3 %v1312_v47  ;;  %v3596_v61 = vld [vmem:[#allocation7] sm:$0x3]  ;;  %v1224_v33 = vld [vmem:[#allocation9 + $0x1008] sm:$0xff]  ;;  %v1075_v47 = vld [vmem:[#allocation9 + $0xb60] sm:$0xff] }
  0x9d   :  { %1791 = vmatpush.msrb.mxu2 %v802_v62  ;;  %1771 = vmatpush.msrb.mxu1 %v1281_v50  ;;  %v1613_v62 = vld [vmem:[#allocation9 + $0x1c30] sm:$0xff]  ;;  %v1194_v50 = vld [vmem:[#allocation9 + $0xf18] sm:$0xff] }
  0x9e   :  { %1752 = vmatpush.msrb.mxu0 %v771_v40  ;;  %1811 = vmatpush.msrb.mxu3 %v1282_v51  ;;  %v1614_v40 = vld [vmem:[#allocation9 + $0x1c38] sm:$0xff]  ;;  %v1045_v51 = vld [vmem:[#allocation9 + $0xa70] sm:$0xff] }
  0x9f   :  { %1792 = vmatpush.msrb.mxu2 %v772_v63  ;;  %1772 = vmatpush.msrb.mxu1 %v1251_v52  ;;  %v1583_v63 = vld [vmem:[#allocation9 + $0x1b40] sm:$0xff]  ;;  %v1016_v52 = vld [vmem:[#allocation9 + $0x988] sm:$0xff] }
  0xa0   :  { %1753 = vmatpush.msrb.mxu0 %v741_v0  ;;  %1812 = vmatpush.msrb.mxu3 %v1252_v55  ;;  %v1584_v0 = vld [vmem:[#allocation9 + $0x1b48] sm:$0xff]  ;;  %v435_v55 = vperm.slane %v3596_v61, 1 }
  0xa1   :  { %1793 = vmatpush.msrb.mxu2 %v742_v1  ;;  %1773 = vmatpush.msrb.mxu1 %v1221_v56  ;;  %v434_v1 = vperm.slane %v3596_v61, 0  ;;  %v985_v56 = vld [vmem:[#allocation9 + $0x890] sm:$0xff] }
  0xa2   :  { %1754 = vmatpush.msrb.mxu0 %v711_v2  ;;  %1813 = vmatpush.msrb.mxu3 %v1222_v57  ;;  %v986_v57 = vld [vmem:[#allocation9 + $0x898] sm:$0xff] }
  0xa3   :  { %1794 = vmatpush.msrb.mxu2 %v712_v3  ;;  %1774 = vmatpush.msrb.mxu1 %v1191_v58  ;;  %v1553_v3 = vld [vmem:[#allocation9 + $0x1a50] sm:$0xff]  ;;  %v955_v58 = vld [vmem:[#allocation9 + $0x7a0] sm:$0xff] }
  0xa4   :  { %1819 = vmatpush.msra.mxu0 %v1163_v5  ;;  %1814 = vmatpush.msrb.mxu3 %v1192_v59  ;;  %v1554_v5 = vld [vmem:[#allocation9 + $0x1a58] sm:$0xff]  ;;  %v956_v59 = vld [vmem:[#allocation9 + $0x7a8] sm:$0xff] }
  0xa5   :  { %1859 = vmatpush.msra.mxu2 %v1164_v6  ;;  %1839 = vmatpush.msra.mxu1 %v1643_v45  ;;  %v1523_v6 = vld [vmem:[#allocation9 + $0x1960] sm:$0xff] }
  0xa6   :  { %1820 = vmatpush.msra.mxu0 %v1133_v7  ;;  %1879 = vmatpush.msra.mxu3 %v1644_v60  ;;  %v1524_v7 = vld [vmem:[#allocation9 + $0x1968] sm:$0xff] }
  0xa7   :  { %1860 = vmatpush.msra.mxu2 %v1134_v8  ;;  %1840 = vmatpush.msra.mxu1 %v1613_v62  ;;  %v925_v62 = vld [vmem:[#allocation9 + $0x6b0] sm:$0xff] }
  0xa8   :  { %1821 = vmatpush.msra.mxu0 %v1103_v9  ;;  %1880 = vmatpush.msra.mxu3 %v1614_v40  ;;  %v1493_v9 = vld [vmem:[#allocation9 + $0x1870] sm:$0xff]  ;;  %v926_v40 = vld [vmem:[#allocation9 + $0x6b8] sm:$0xff] }
  0xa9   :  { %1861 = vmatpush.msra.mxu2 %v1104_v10  ;;  %1841 = vmatpush.msra.mxu1 %v1583_v63  ;;  %v1494_v10 = vld [vmem:[#allocation9 + $0x1878] sm:$0xff] }
  0xaa   :  { %1822 = vmatpush.msra.mxu0 %v1073_v11  ;;  %1881 = vmatpush.msra.mxu3 %v1584_v0  ;;  %v895_v0 = vld [vmem:[#allocation9 + $0x5c0] sm:$0xff] }
  0xab   :  { %1862 = vmatpush.msra.mxu2 %v1074_v12  ;;  %1842 = vmatpush.msra.mxu1 %v1553_v3  ;;  %v865_v3 = vld [vmem:[#allocation9 + $0x4d0] sm:$0xff] }
  0xac   :  { %1823 = vmatpush.msra.mxu0 %v1043_v13  ;;  %1882 = vmatpush.msra.mxu3 %v1554_v5  ;;  %v1463_v13 = vld [vmem:[#allocation9 + $0x1780] sm:$0xff]  ;;  %v866_v5 = vld [vmem:[#allocation9 + $0x4d8] sm:$0xff] }
  0xad   :  { %1863 = vmatpush.msra.mxu2 %v1044_v14  ;;  %1843 = vmatpush.msra.mxu1 %v1523_v6  ;;  %v1464_v14 = vld [vmem:[#allocation9 + $0x1788] sm:$0xff] }
  0xae   :  { %1824 = vmatpush.msra.mxu0 %v1013_v41  ;;  %1883 = vmatpush.msra.mxu3 %v1524_v7 }
  0xaf   :  { %1864 = vmatpush.msra.mxu2 %v1014_v15  ;;  %1844 = vmatpush.msra.mxu1 %v1493_v9  ;;  %v836_v9 = vld [vmem:[#allocation9 + $0x3e8] sm:$0xff] }
  0xb0   :  { %1825 = vmatpush.msra.mxu0 %v983_v17  ;;  %1884 = vmatpush.msra.mxu3 %v1494_v10  ;;  %v1433_v17 = vld [vmem:[#allocation9 + $0x1690] sm:$0xff] }
  0xb1   :  { %1865 = vmatpush.msra.mxu2 %v984_v18  ;;  %1845 = vmatpush.msra.mxu1 %v1463_v13  ;;  %v1434_v18 = vld [vmem:[#allocation9 + $0x1698] sm:$0xff] }
  0xb2   :  { %1826 = vmatpush.msra.mxu0 %v953_v19  ;;  %1885 = vmatpush.msra.mxu3 %v1464_v14  ;;  %v806_v13 = vld [vmem:[#allocation9 + $0x2f8] sm:$0xff] }
  0xb3   :  { %1866 = vmatpush.msra.mxu2 %v954_v20  ;;  %1846 = vmatpush.msra.mxu1 %v1433_v17  ;;  %v1403_v20 = vld [vmem:[#allocation9 + $0x15a0] sm:$0xff]  ;;  %v776_v17 = vld [vmem:[#allocation9 + $0x208] sm:$0xff] }
  0xb4   :  { %1827 = vmatpush.msra.mxu0 %v923_v23  ;;  %1886 = vmatpush.msra.mxu3 %v1434_v18 }
  0xb5   :  { %1867 = vmatpush.msra.mxu2 %v924_v24  ;;  %1847 = vmatpush.msra.mxu1 %v1403_v20  ;;  %v1373_v24 = vld [vmem:[#allocation9 + $0x14b0] sm:$0xff]  ;;  %v746_v20 = vld [vmem:[#allocation9 + $0x118] sm:$0xff] }
  0xb6   :  { %1828 = vmatpush.msra.mxu0 %v893_v26  ;;  %1887 = vmatpush.msra.mxu3 %v1404_v21  ;;  %v1343_v26 = vld [vmem:[#allocation9 + $0x13c0] sm:$0xff] }
  0xb7   :  { %1868 = vmatpush.msra.mxu2 %v894_v28  ;;  %1848 = vmatpush.msra.mxu1 %v1373_v24  ;;  %v1344_v28 = vld [vmem:[#allocation9 + $0x13c8] sm:$0xff]  ;;  %v715_v24 = vld [vmem:[#allocation9 + $0x20] sm:$0xff] }
  0xb8   :  { %1829 = vmatpush.msra.mxu0 %v863_v27  ;;  %1888 = vmatpush.msra.mxu3 %v1374_v25  ;;  %v1314_v27 = vld [vmem:[#allocation9 + $0x12d8] sm:$0xff]  ;;  %v716_v25 = vld [vmem:[#allocation9 + $0x28] sm:$0xff] }
  0xb9   :  { %1869 = vmatpush.msra.mxu2 %v864_v31  ;;  %1849 = vmatpush.msra.mxu1 %v1343_v26  ;;  %v1168_v26 = vld [vmem:[#allocation9 + $0xe48] sm:$0xff] }
  0xba   :  { %1830 = vmatpush.msra.mxu0 %v833_v35  ;;  %1889 = vmatpush.msra.mxu3 %v1344_v28  ;;  %v1615_v28 = vld [vmem:[#allocation9 + $0x1c40] sm:$0xff] }
  0xbb   :  { %1870 = vmatpush.msra.mxu2 %v834_v36  ;;  %1850 = vmatpush.msra.mxu1 %v1313_v30  ;;  %v1165_v36 = vld [vmem:[#allocation9 + $0xe30] sm:$0xff] }
  0xbc   :  { %1831 = vmatpush.msra.mxu0 %v803_v38  ;;  %1890 = vmatpush.msra.mxu3 %v1314_v27  ;;  %v1136_v38 = vld [vmem:[#allocation9 + $0xd48] sm:$0xff]  ;;  %v1137_v30 = vld [vmem:[#allocation9 + $0xd50] sm:$0xff]  ;;  %v1138_v27 = vld [vmem:[#allocation9 + $0xd58] sm:$0xff] }
  0xbd   :  { %1871 = vmatpush.msra.mxu2 %v804_v39  ;;  %1851 = vmatpush.msra.mxu1 %v1283_v32  ;;  %v1253_v39 = vld [vmem:[#allocation9 + $0x10f0] sm:$0xff]  ;;  %v1586_v32 = vld [vmem:[#allocation9 + $0x1b58] sm:$0xff] }
  0xbe   :  { %1832 = vmatpush.msra.mxu0 %v773_v44  ;;  %1891 = vmatpush.msra.mxu3 %v1284_v34  ;;  %v1106_v44 = vld [vmem:[#allocation9 + $0xc58] sm:$0xff]  ;;  %v1107_v34 = vld [vmem:[#allocation9 + $0xc60] sm:$0xff] }
  0xbf   :  { %1872 = vmatpush.msra.mxu2 %v774_v46  ;;  %1852 = vmatpush.msra.mxu1 %v1253_v39  ;;  %v1223_v46 = vld [vmem:[#allocation9 + $0x1000] sm:$0xff]  ;;  %v1078_v39 = vld [vmem:[#allocation9 + $0xb78] sm:$0xff] }
  0xc0   :  { %1833 = vmatpush.msra.mxu0 %v743_v48  ;;  %1892 = vmatpush.msra.mxu3 %v1254_v42  ;;  %v1076_v48 = vld [vmem:[#allocation9 + $0xb68] sm:$0xff]  ;;  %v1047_v42 = vld [vmem:[#allocation9 + $0xa80] sm:$0xff] }
  0xc1   :  { %1873 = vmatpush.msra.mxu2 %v744_v49  ;;  %1853 = vmatpush.msra.mxu1 %v1223_v46  ;;  %v1193_v49 = vld [vmem:[#allocation9 + $0xf10] sm:$0xff]  ;;  %v1526_v46 = vld [vmem:[#allocation9 + $0x1978] sm:$0xff] }
  0xc2   :  { %1834 = vmatpush.msra.mxu0 %v713_v53  ;;  %1893 = vmatpush.msra.mxu3 %v1224_v33  ;;  %v1046_v53 = vld [vmem:[#allocation9 + $0xa78] sm:$0xff]  ;;  %v1017_v33 = vld [vmem:[#allocation9 + $0x990] sm:$0xff] }
  0xc3   :  { %1874 = vmatpush.msra.mxu2 %v714_v54  ;;  %1854 = vmatpush.msra.mxu1 %v1193_v49  ;;  %v1015_v54 = vld [vmem:[#allocation9 + $0x980] sm:$0xff]  ;;  %v1496_v49 = vld [vmem:[#allocation9 + $0x1888] sm:$0xff] }
  0xc4   :  { %1894 = vmatpush.msra.mxu3 %v1194_v50  ;;  %v987_v50 = vld [vmem:[#allocation9 + $0x8a0] sm:$0xff] }
  0xd4   :  { %v486_v2 = vpop.f32.mrf.mxu0 }
  0xd5   :  { %v487_v8 = vadd.f32 %v486_v2, %v434_v1  ;;  %v896_v1 = vld [vmem:[#allocation9 + $0x5c8] sm:$0xff] }
  0xd7   :  { %v526_v12 = vpop.f32.mrf.mxu2 }
  0xdd   :  { %v546_v15 = vpop.f32.mrf.mxu3 }
  0xdf   :  { %v506_v11 = vpop.f32.mrf.mxu1 }
  0xe0   :  { %v507_v41 = vadd.f32 %v506_v11, %v487_v8  ;;  %v835_v8 = vld [vmem:[#allocation9 + $0x3e0] sm:$0xff] }
  0xe2   :  { %v527_v19 = vadd.f32 %v526_v12, %v507_v41  ;;  %v805_v12 = vld [vmem:[#allocation9 + $0x2f0] sm:$0xff] }
  0xe4   :  { %v547_v22 = vadd.f32 %v546_v15, %v527_v19  ;;  %v566_v23 = vpop.f32.mrf.mxu0  ;;  %v775_v15 = vld [vmem:[#allocation9 + $0x200] sm:$0xff]  ;;  %v745_v19 = vld [vmem:[#allocation9 + $0x110] sm:$0xff] }
  0xe6   :  { %v567_v16 = vadd.f32 %v566_v23, %v547_v22  ;;  %v1645_v22 = vld [vmem:[#allocation9 + $0x1d30] sm:$0xff]  ;;  %v1646_v23 = vld [vmem:[#allocation9 + $0x1d38] sm:$0xff] }
  0xea   :  { %v586_v29 = vpop.f32.mrf.mxu1 }
  0xeb   :  { %v587_v31 = vadd.f32 %v586_v29, %v567_v16  ;;  %v1167_v16 = vld [vmem:[#allocation9 + $0xe40] sm:$0xff]  ;;  %v1616_v29 = vld [vmem:[#allocation9 + $0x1c48] sm:$0xff] }
  0xed   :  { %v3599_v35 = vmax.f32 %v587_v31, 0.0  ;;  %v1585_v31 = vld [vmem:[#allocation9 + $0x1b50] sm:$0xff] }
  0xef   :  { %1755 = vmatmul.f32.vlgmr.msrb.gmra.mxu0 %v3599_v35  ;;  %1795 = vmatmul.f32.vlgmr.msrb.gmra.mxu2 %v3599_v35 }
  0xf0   :  { %1899 = vmatpush.msrb.mxu0 %v1165_v36  ;;  %1939 = vmatpush.msrb.mxu2 %v1166_v4  ;;  %v1108_v36 = vld [vmem:[#allocation9 + $0xc68] sm:$0xff]  ;;  %v1555_v4 = vld [vmem:[#allocation9 + $0x1a60] sm:$0xff] }
  0xf2   :  { %1900 = vmatpush.msrb.mxu0 %v1135_v37  ;;  %1940 = vmatpush.msrb.mxu2 %v1136_v38  ;;  %v1556_v37 = vld [vmem:[#allocation9 + $0x1a68] sm:$0xff]  ;;  %v1077_v38 = vld [vmem:[#allocation9 + $0xb70] sm:$0xff] }
  0xf4   :  { %1901 = vmatpush.msrb.mxu0 %v1105_v43  ;;  %1941 = vmatpush.msrb.mxu2 %v1106_v44  ;;  %v1048_v43 = vld [vmem:[#allocation9 + $0xa88] sm:$0xff]  ;;  %v1525_v44 = vld [vmem:[#allocation9 + $0x1970] sm:$0xff] }
  0xf6   :  { %1902 = vmatpush.msrb.mxu0 %v1075_v47  ;;  %1942 = vmatpush.msrb.mxu2 %v1076_v48  ;;  %v1018_v47 = vld [vmem:[#allocation9 + $0x998] sm:$0xff]  ;;  %v1495_v48 = vld [vmem:[#allocation9 + $0x1880] sm:$0xff] }
  0xf7   :  { %1835 = vmatmul.f32.vlgmr.msra.gmra.mxu0 %v3599_v35  ;;  %1875 = vmatmul.f32.vlgmr.msra.gmra.mxu2 %v3599_v35 }
  0xf8   :  { %1903 = vmatpush.msrb.mxu0 %v1045_v51  ;;  %1943 = vmatpush.msrb.mxu2 %v1046_v53  ;;  %v988_v51 = vld [vmem:[#allocation9 + $0x8a8] sm:$0xff]  ;;  %v1465_v53 = vld [vmem:[#allocation9 + $0x1790] sm:$0xff] }
  0xfa   :  { %1904 = vmatpush.msrb.mxu0 %v1015_v54  ;;  %1944 = vmatpush.msrb.mxu2 %v1016_v52  ;;  %v606_v45 = vpop.f32.mrf.mxu2  ;;  %v1466_v54 = vld [vmem:[#allocation9 + $0x1798] sm:$0xff]  ;;  %v957_v52 = vld [vmem:[#allocation9 + $0x7b0] sm:$0xff] }
  0xfb   :  { %v607_v60 = vadd.f32 %v606_v45, %v435_v55  ;;  %v958_v55 = vld [vmem:[#allocation9 + $0x7b8] sm:$0xff]  ;;  %v1405_v45 = vld [vmem:[#allocation9 + $0x15b0] sm:$0xff] }
  0xfc   :  { %1905 = vmatpush.msrb.mxu0 %v985_v56  ;;  %1945 = vmatpush.msrb.mxu2 %v986_v57  ;;  %v1435_v56 = vld [vmem:[#allocation9 + $0x16a0] sm:$0xff]  ;;  %v1436_v57 = vld [vmem:[#allocation9 + $0x16a8] sm:$0xff] }
  0xfd   :  { %v626_v63 = vpop.f32.mrf.mxu3 }
  0xfe   :  { %1906 = vmatpush.msrb.mxu0 %v955_v58  ;;  %1946 = vmatpush.msrb.mxu2 %v956_v59  ;;  %v627_v2 = vadd.f32 %v626_v63, %v607_v60  ;;  %v927_v58 = vld [vmem:[#allocation9 + $0x6c0] sm:$0xff]  ;;  %v928_v59 = vld [vmem:[#allocation9 + $0x6c8] sm:$0xff]  ;;  %v1406_v60 = vld [vmem:[#allocation9 + $0x15b8] sm:$0xff] }
  0xff   :  { %v646_v61 = vpop.f32.mrf.mxu0  ;;  %v1375_v63 = vld [vmem:[#allocation9 + $0x14c0] sm:$0xff] }
 0x100   :  { %1907 = vmatpush.msrb.mxu0 %v925_v62  ;;  %1947 = vmatpush.msrb.mxu2 %v926_v40  ;;  %v647_v6 = vadd.f32 %v646_v61, %v627_v2  ;;  %v897_v62 = vld [vmem:[#allocation9 + $0x5d0] sm:$0xff]  ;;  %v898_v40 = vld [vmem:[#allocation9 + $0x5d8] sm:$0xff]  ;;  %v868_v2 = vld [vmem:[#allocation9 + $0x4e8] sm:$0xff] }
 0x101   :  { %v666_v7 = vpop.f32.mrf.mxu1  ;;  %v1345_v61 = vld [vmem:[#allocation9 + $0x13d0] sm:$0xff] }
 0x102   :  { %1908 = vmatpush.msrb.mxu0 %v895_v0  ;;  %1948 = vmatpush.msrb.mxu2 %v896_v1  ;;  %v667_v10 = vadd.f32 %v666_v7, %v647_v6  ;;  %v1376_v0 = vld [vmem:[#allocation9 + $0x14c8] sm:$0xff]  ;;  %v867_v1 = vld [vmem:[#allocation9 + $0x4e0] sm:$0xff]  ;;  %v838_v6 = vld [vmem:[#allocation9 + $0x3f8] sm:$0xff] }
 0x103   :  { %v686_v11 = vpop.f32.mrf.mxu2  ;;  %v1315_v7 = vld [vmem:[#allocation9 + $0x12e0] sm:$0xff] }
 0x104   :  { %1909 = vmatpush.msrb.mxu0 %v865_v3  ;;  %1949 = vmatpush.msrb.mxu2 %v866_v5  ;;  %v687_v14 = vadd.f32 %v686_v11, %v667_v10  ;;  %v1346_v3 = vld [vmem:[#allocation9 + $0x13d8] sm:$0xff]  ;;  %v837_v5 = vld [vmem:[#allocation9 + $0x3f0] sm:$0xff]  ;;  %v808_v10 = vld [vmem:[#allocation9 + $0x308] sm:$0xff] }
 0x105   :  { %v1285_v11 = vld [vmem:[#allocation9 + $0x11f0] sm:$0xff] }
 0x106   :  { %1910 = vmatpush.msrb.mxu0 %v835_v8  ;;  %1950 = vmatpush.msrb.mxu2 %v836_v9  ;;  %v706_v41 = vpop.f32.mrf.mxu3  ;;  %v1316_v8 = vld [vmem:[#allocation9 + $0x12e8] sm:$0xff]  ;;  %v807_v9 = vld [vmem:[#allocation9 + $0x300] sm:$0xff] }
 0x107   :  { %v707_v18 = vadd.f32 %v706_v41, %v687_v14  ;;  %v778_v14 = vld [vmem:[#allocation9 + $0x218] sm:$0xff]  ;;  %v1255_v41 = vld [vmem:[#allocation9 + $0x1100] sm:$0xff] }
 0x108   :  { %1911 = vmatpush.msrb.mxu0 %v805_v12  ;;  %1951 = vmatpush.msrb.mxu2 %v806_v13  ;;  %v1286_v12 = vld [vmem:[#allocation9 + $0x11f8] sm:$0xff]  ;;  %v777_v13 = vld [vmem:[#allocation9 + $0x210] sm:$0xff] }
 0x109   :  { %v3606_v21 = vmax.f32 %v707_v18, 0.0  ;;  %v748_v18 = vld [vmem:[#allocation9 + $0x128] sm:$0xff] }
 0x10a   :  { %1912 = vmatpush.msrb.mxu0 %v775_v15  ;;  %1952 = vmatpush.msrb.mxu2 %v776_v17  ;;  %v1256_v15 = vld [vmem:[#allocation9 + $0x1108] sm:$0xff]  ;;  %v747_v17 = vld [vmem:[#allocation9 + $0x120] sm:$0xff] }
 0x10b   :  { %1775 = vmatmul.f32.vlgmr.msrb.gmra.mxu1 %v3606_v21  ;;  %1815 = vmatmul.f32.vlgmr.msrb.gmra.mxu3 %v3606_v21 }
 0x10c   :  { %1913 = vmatpush.msrb.mxu0 %v745_v19  ;;  %1953 = vmatpush.msrb.mxu2 %v746_v20  ;;  %v1225_v19 = vld [vmem:[#allocation9 + $0x1010] sm:$0xff]  ;;  %v1226_v20 = vld [vmem:[#allocation9 + $0x1018] sm:$0xff] }
 0x10d   :  { %1919 = vmatpush.msrb.mxu1 %v1645_v22  ;;  %1959 = vmatpush.msrb.mxu3 %v1646_v23  ;;  %v717_v22 = vld [vmem:[#allocation9 + $0x30] sm:$0xff]  ;;  %v718_v23 = vld [vmem:[#allocation9 + $0x38] sm:$0xff] }
 0x10e   :  { %1914 = vmatpush.msrb.mxu0 %v715_v24  ;;  %1954 = vmatpush.msrb.mxu2 %v716_v25  ;;  %v1169_v24 = vld [vmem:[#allocation9 + $0xe50] sm:$0xff]  ;;  %v1170_v25 = vld [vmem:[#allocation9 + $0xe58] sm:$0xff] }
 0x10f   :  { %1915 = vmatmul.f32.vlgmr.msrb.gmra.mxu0 %v3599_v35  ;;  %1955 = vmatmul.f32.vlgmr.msrb.gmra.mxu2 %v3599_v35 }
 0x110   :  { %1979 = vmatpush.msra.mxu0 %v1167_v16  ;;  %2019 = vmatpush.msra.mxu2 %v1168_v26  ;;  %v1195_v16 = vld [vmem:[#allocation9 + $0xf20] sm:$0xff]  ;;  %v1196_v26 = vld [vmem:[#allocation9 + $0xf28] sm:$0xff] }
 0x111   :  { %1920 = vmatpush.msrb.mxu1 %v1615_v28  ;;  %1960 = vmatpush.msrb.mxu3 %v1616_v29  ;;  %v1139_v28 = vld [vmem:[#allocation9 + $0xd60] sm:$0xff]  ;;  %v1140_v29 = vld [vmem:[#allocation9 + $0xd68] sm:$0xff] }
 0x112   :  { %1980 = vmatpush.msra.mxu0 %v1137_v30  ;;  %2020 = vmatpush.msra.mxu2 %v1138_v27  ;;  %v1109_v30 = vld [vmem:[#allocation9 + $0xc70] sm:$0xff]  ;;  %v1110_v27 = vld [vmem:[#allocation9 + $0xc78] sm:$0xff] }
 0x113   :  { %1921 = vmatpush.msrb.mxu1 %v1585_v31  ;;  %1961 = vmatpush.msrb.mxu3 %v1586_v32  ;;  %v1647_v31 = vld [vmem:[#allocation9 + $0x1d40] sm:$0xff]  ;;  %v1648_v32 = vld [vmem:[#allocation9 + $0x1d48] sm:$0xff] }
 0x114   :  { %1981 = vmatpush.msra.mxu0 %v1107_v34  ;;  %2021 = vmatpush.msra.mxu2 %v1108_v36  ;;  %v1079_v34 = vld [vmem:[#allocation9 + $0xb80] sm:$0xff]  ;;  %v1080_v36 = vld [vmem:[#allocation9 + $0xb88] sm:$0xff] }
 0x115   :  { %1922 = vmatpush.msrb.mxu1 %v1555_v4  ;;  %1962 = vmatpush.msrb.mxu3 %v1556_v37  ;;  %v1617_v4 = vld [vmem:[#allocation9 + $0x1c50] sm:$0xff]  ;;  %v1618_v37 = vld [vmem:[#allocation9 + $0x1c58] sm:$0xff] }
 0x116   :  { %1982 = vmatpush.msra.mxu0 %v1077_v38  ;;  %2022 = vmatpush.msra.mxu2 %v1078_v39  ;;  %v1049_v38 = vld [vmem:[#allocation9 + $0xa90] sm:$0xff]  ;;  %v1050_v39 = vld [vmem:[#allocation9 + $0xa98] sm:$0xff] }
 0x117   :  { %1855 = vmatmul.f32.vlgmr.msra.gmra.mxu1 %v3606_v21  ;;  %1895 = vmatmul.f32.vlgmr.msra.gmra.mxu3 %v3606_v21 }
 0x118   :  { %1983 = vmatpush.msra.mxu0 %v1047_v42  ;;  %2023 = vmatpush.msra.mxu2 %v1048_v43  ;;  %v1587_v42 = vld [vmem:[#allocation9 + $0x1b60] sm:$0xff]  ;;  %v1588_v43 = vld [vmem:[#allocation9 + $0x1b68] sm:$0xff] }
 0x119   :  { %1923 = vmatpush.msrb.mxu1 %v1525_v44  ;;  %1963 = vmatpush.msrb.mxu3 %v1526_v46  ;;  %v1019_v44 = vld [vmem:[#allocation9 + $0x9a0] sm:$0xff]  ;;  %v1020_v46 = vld [vmem:[#allocation9 + $0x9a8] sm:$0xff] }
 0x11a   :  { %1984 = vmatpush.msra.mxu0 %v1017_v33  ;;  %2024 = vmatpush.msra.mxu2 %v1018_v47  ;;  %v1557_v33 = vld [vmem:[#allocation9 + $0x1a70] sm:$0xff]  ;;  %v1558_v47 = vld [vmem:[#allocation9 + $0x1a78] sm:$0xff] }
 0x11b   :  { %1924 = vmatpush.msrb.mxu1 %v1495_v48  ;;  %1964 = vmatpush.msrb.mxu3 %v1496_v49  ;;  %v989_v48 = vld [vmem:[#allocation9 + $0x8b0] sm:$0xff]  ;;  %v990_v49 = vld [vmem:[#allocation9 + $0x8b8] sm:$0xff] }
 0x11c   :  { %1985 = vmatpush.msra.mxu0 %v987_v50  ;;  %2025 = vmatpush.msra.mxu2 %v988_v51  ;;  %v1527_v50 = vld [vmem:[#allocation9 + $0x1980] sm:$0xff]  ;;  %v1528_v51 = vld [vmem:[#allocation9 + $0x1988] sm:$0xff] }
 0x11d   :  { %1925 = vmatpush.msrb.mxu1 %v1465_v53  ;;  %1965 = vmatpush.msrb.mxu3 %v1466_v54  ;;  %v959_v53 = vld [vmem:[#allocation9 + $0x7c0] sm:$0xff]  ;;  %v960_v54 = vld [vmem:[#allocation9 + $0x7c8] sm:$0xff] }
 0x11e   :  { %1986 = vmatpush.msra.mxu0 %v957_v52  ;;  %2026 = vmatpush.msra.mxu2 %v958_v55  ;;  %v1497_v52 = vld [vmem:[#allocation9 + $0x1890] sm:$0xff]  ;;  %v1498_v55 = vld [vmem:[#allocation9 + $0x1898] sm:$0xff] }
 0x11f   :  { %1926 = vmatpush.msrb.mxu1 %v1435_v56  ;;  %1966 = vmatpush.msrb.mxu3 %v1436_v57  ;;  %v929_v56 = vld [vmem:[#allocation9 + $0x6d0] sm:$0xff]  ;;  %v930_v57 = vld [vmem:[#allocation9 + $0x6d8] sm:$0xff] }
 0x120   :  { %1987 = vmatpush.msra.mxu0 %v927_v58  ;;  %2027 = vmatpush.msra.mxu2 %v928_v59  ;;  %v1467_v58 = vld [vmem:[#allocation9 + $0x17a0] sm:$0xff]  ;;  %v1468_v59 = vld [vmem:[#allocation9 + $0x17a8] sm:$0xff] }
 0x121   :  { %1927 = vmatpush.msrb.mxu1 %v1405_v45  ;;  %1967 = vmatpush.msrb.mxu3 %v1406_v60  ;;  %v899_v45 = vld [vmem:[#allocation9 + $0x5e0] sm:$0xff]  ;;  %v900_v60 = vld [vmem:[#allocation9 + $0x5e8] sm:$0xff] }
 0x122   :  { %1988 = vmatpush.msra.mxu0 %v897_v62  ;;  %2028 = vmatpush.msra.mxu2 %v898_v40  ;;  %v1437_v62 = vld [vmem:[#allocation9 + $0x16b0] sm:$0xff]  ;;  %v1438_v40 = vld [vmem:[#allocation9 + $0x16b8] sm:$0xff] }
 0x123   :  { %1928 = vmatpush.msrb.mxu1 %v1375_v63  ;;  %1968 = vmatpush.msrb.mxu3 %v1376_v0  ;;  %v869_v63 = vld [vmem:[#allocation9 + $0x4f0] sm:$0xff]  ;;  %v870_v0 = vld [vmem:[#allocation9 + $0x4f8] sm:$0xff] }
 0x124   :  { %1989 = vmatpush.msra.mxu0 %v867_v1  ;;  %2029 = vmatpush.msra.mxu2 %v868_v2  ;;  %v1407_v1 = vld [vmem:[#allocation9 + $0x15c0] sm:$0xff]  ;;  %v1408_v2 = vld [vmem:[#allocation9 + $0x15c8] sm:$0xff] }
 0x125   :  { %1929 = vmatpush.msrb.mxu1 %v1345_v61  ;;  %1969 = vmatpush.msrb.mxu3 %v1346_v3  ;;  %v839_v61 = vld [vmem:[#allocation9 + $0x400] sm:$0xff]  ;;  %v840_v3 = vld [vmem:[#allocation9 + $0x408] sm:$0xff] }
 0x126   :  { %1990 = vmatpush.msra.mxu0 %v837_v5  ;;  %2030 = vmatpush.msra.mxu2 %v838_v6  ;;  %v1377_v5 = vld [vmem:[#allocation9 + $0x14d0] sm:$0xff]  ;;  %v1378_v6 = vld [vmem:[#allocation9 + $0x14d8] sm:$0xff] }
 0x127   :  { %1930 = vmatpush.msrb.mxu1 %v1315_v7  ;;  %1970 = vmatpush.msrb.mxu3 %v1316_v8  ;;  %v809_v7 = vld [vmem:[#allocation9 + $0x310] sm:$0xff]  ;;  %v810_v8 = vld [vmem:[#allocation9 + $0x318] sm:$0xff] }
 0x128   :  { %1991 = vmatpush.msra.mxu0 %v807_v9  ;;  %2031 = vmatpush.msra.mxu2 %v808_v10  ;;  %v1347_v9 = vld [vmem:[#allocation9 + $0x13e0] sm:$0xff]  ;;  %v1348_v10 = vld [vmem:[#allocation9 + $0x13e8] sm:$0xff] }
 0x129   :  { %1931 = vmatpush.msrb.mxu1 %v1285_v11  ;;  %1971 = vmatpush.msrb.mxu3 %v1286_v12  ;;  %v779_v11 = vld [vmem:[#allocation9 + $0x220] sm:$0xff]  ;;  %v780_v12 = vld [vmem:[#allocation9 + $0x228] sm:$0xff] }
 0x12a   :  { %1992 = vmatpush.msra.mxu0 %v777_v13  ;;  %2032 = vmatpush.msra.mxu2 %v778_v14  ;;  %v1317_v13 = vld [vmem:[#allocation9 + $0x12f0] sm:$0xff]  ;;  %v1318_v14 = vld [vmem:[#allocation9 + $0x12f8] sm:$0xff] }
 0x12b   :  { %1932 = vmatpush.msrb.mxu1 %v1255_v41  ;;  %1972 = vmatpush.msrb.mxu3 %v1256_v15  ;;  %v749_v41 = vld [vmem:[#allocation9 + $0x130] sm:$0xff]  ;;  %v750_v15 = vld [vmem:[#allocation9 + $0x138] sm:$0xff] }
 0x12c   :  { %1993 = vmatpush.msra.mxu0 %v747_v17  ;;  %2033 = vmatpush.msra.mxu2 %v748_v18  ;;  %v1287_v17 = vld [vmem:[#allocation9 + $0x1200] sm:$0xff]  ;;  %v1288_v18 = vld [vmem:[#allocation9 + $0x1208] sm:$0xff] }
 0x12d   :  { %1933 = vmatpush.msrb.mxu1 %v1225_v19  ;;  %1973 = vmatpush.msrb.mxu3 %v1226_v20  ;;  %v719_v19 = vld [vmem:[#allocation9 + $0x40] sm:$0xff]  ;;  %v720_v20 = vld [vmem:[#allocation9 + $0x48] sm:$0xff] }
 0x12e   :  { %1994 = vmatpush.msra.mxu0 %v717_v22  ;;  %2034 = vmatpush.msra.mxu2 %v718_v23  ;;  %v1171_v22 = vld [vmem:[#allocation9 + $0xe60] sm:$0xff]  ;;  %v1172_v23 = vld [vmem:[#allocation9 + $0xe68] sm:$0xff] }
 0x12f   :  { %1995 = vmatmul.f32.vlgmr.msra.gmra.mxu0 %v3599_v35  ;;  %2035 = vmatmul.f32.vlgmr.msra.gmra.mxu2 %v3599_v35 }
 0x130   :  { %2059 = vmatpush.msrb.mxu0 %v1169_v24  ;;  %2099 = vmatpush.msrb.mxu2 %v1170_v25  ;;  %v1257_v24 = vld [vmem:[#allocation9 + $0x1110] sm:$0xff]  ;;  %v1258_v25 = vld [vmem:[#allocation9 + $0x1118] sm:$0xff] }
 0x131   :  { %1934 = vmatpush.msrb.mxu1 %v1195_v16  ;;  %1974 = vmatpush.msrb.mxu3 %v1196_v26  ;;  %v1141_v16 = vld [vmem:[#allocation9 + $0xd70] sm:$0xff]  ;;  %v1142_v26 = vld [vmem:[#allocation9 + $0xd78] sm:$0xff] }
 0x132   :  { %2060 = vmatpush.msrb.mxu0 %v1139_v28  ;;  %2100 = vmatpush.msrb.mxu2 %v1140_v29  ;;  %v1227_v28 = vld [vmem:[#allocation9 + $0x1020] sm:$0xff]  ;;  %v1228_v29 = vld [vmem:[#allocation9 + $0x1028] sm:$0xff] }
 0x133   :  { %1935 = vmatmul.f32.vlgmr.msrb.gmra.mxu1 %v3606_v21  ;;  %1975 = vmatmul.f32.vlgmr.msrb.gmra.mxu3 %v3606_v21 }
 0x134   :  { %2061 = vmatpush.msrb.mxu0 %v1109_v30  ;;  %2101 = vmatpush.msrb.mxu2 %v1110_v27  ;;  %v1111_v30 = vld [vmem:[#allocation9 + $0xc80] sm:$0xff]  ;;  %v1112_v27 = vld [vmem:[#allocation9 + $0xc88] sm:$0xff] }
 0x135   :  { %1999 = vmatpush.msra.mxu1 %v1647_v31  ;;  %2039 = vmatpush.msra.mxu3 %v1648_v32  ;;  %v1197_v31 = vld [vmem:[#allocation9 + $0xf30] sm:$0xff]  ;;  %v1198_v32 = vld [vmem:[#allocation9 + $0xf38] sm:$0xff] }
 0x136   :  { %2062 = vmatpush.msrb.mxu0 %v1079_v34  ;;  %2102 = vmatpush.msrb.mxu2 %v1080_v36  ;;  %v1649_v34 = vld [vmem:[#allocation9 + $0x1d50] sm:$0xff]  ;;  %v1650_v36 = vld [vmem:[#allocation9 + $0x1d58] sm:$0xff] }
 0x137   :  { %2000 = vmatpush.msra.mxu1 %v1617_v4  ;;  %2040 = vmatpush.msra.mxu3 %v1618_v37  ;;  %v1081_v4 = vld [vmem:[#allocation9 + $0xb90] sm:$0xff]  ;;  %v1082_v37 = vld [vmem:[#allocation9 + $0xb98] sm:$0xff] }
 0x138   :  { %2063 = vmatpush.msrb.mxu0 %v1049_v38  ;;  %2103 = vmatpush.msrb.mxu2 %v1050_v39  ;;  %v1619_v38 = vld [vmem:[#allocation9 + $0x1c60] sm:$0xff]  ;;  %v1620_v39 = vld [vmem:[#allocation9 + $0x1c68] sm:$0xff] }
 0x139   :  { %2001 = vmatpush.msra.mxu1 %v1587_v42  ;;  %2041 = vmatpush.msra.mxu3 %v1588_v43  ;;  %v1051_v42 = vld [vmem:[#allocation9 + $0xaa0] sm:$0xff]  ;;  %v1052_v43 = vld [vmem:[#allocation9 + $0xaa8] sm:$0xff] }
 0x13a   :  { %2064 = vmatpush.msrb.mxu0 %v1019_v44  ;;  %2104 = vmatpush.msrb.mxu2 %v1020_v46  ;;  %v1589_v44 = vld [vmem:[#allocation9 + $0x1b70] sm:$0xff]  ;;  %v1590_v46 = vld [vmem:[#allocation9 + $0x1b78] sm:$0xff] }
 0x13b   :  { %2002 = vmatpush.msra.mxu1 %v1557_v33  ;;  %2042 = vmatpush.msra.mxu3 %v1558_v47  ;;  %v1021_v33 = vld [vmem:[#allocation9 + $0x9b0] sm:$0xff]  ;;  %v1022_v47 = vld [vmem:[#allocation9 + $0x9b8] sm:$0xff] }
 0x13c   :  { %2065 = vmatpush.msrb.mxu0 %v989_v48  ;;  %2105 = vmatpush.msrb.mxu2 %v990_v49  ;;  %v1559_v48 = vld [vmem:[#allocation9 + $0x1a80] sm:$0xff]  ;;  %v1560_v49 = vld [vmem:[#allocation9 + $0x1a88] sm:$0xff] }
 0x13d   :  { %2003 = vmatpush.msra.mxu1 %v1527_v50  ;;  %2043 = vmatpush.msra.mxu3 %v1528_v51  ;;  %v991_v50 = vld [vmem:[#allocation9 + $0x8c0] sm:$0xff]  ;;  %v992_v51 = vld [vmem:[#allocation9 + $0x8c8] sm:$0xff] }
 0x13e   :  { %2066 = vmatpush.msrb.mxu0 %v959_v53  ;;  %2106 = vmatpush.msrb.mxu2 %v960_v54  ;;  %v1529_v53 = vld [vmem:[#allocation9 + $0x1990] sm:$0xff]  ;;  %v1530_v54 = vld [vmem:[#allocation9 + $0x1998] sm:$0xff] }
 0x13f   :  { %2004 = vmatpush.msra.mxu1 %v1497_v52  ;;  %2044 = vmatpush.msra.mxu3 %v1498_v55  ;;  %v961_v52 = vld [vmem:[#allocation9 + $0x7d0] sm:$0xff]  ;;  %v962_v55 = vld [vmem:[#allocation9 + $0x7d8] sm:$0xff] }
 0x140   :  { %2067 = vmatpush.msrb.mxu0 %v929_v56  ;;  %2107 = vmatpush.msrb.mxu2 %v930_v57  ;;  %v1499_v56 = vld [vmem:[#allocation9 + $0x18a0] sm:$0xff]  ;;  %v1500_v57 = vld [vmem:[#allocation9 + $0x18a8] sm:$0xff] }
 0x141   :  { %2005 = vmatpush.msra.mxu1 %v1467_v58  ;;  %2045 = vmatpush.msra.mxu3 %v1468_v59  ;;  %v931_v58 = vld [vmem:[#allocation9 + $0x6e0] sm:$0xff]  ;;  %v932_v59 = vld [vmem:[#allocation9 + $0x6e8] sm:$0xff] }
 0x142   :  { %2068 = vmatpush.msrb.mxu0 %v899_v45  ;;  %2108 = vmatpush.msrb.mxu2 %v900_v60  ;;  %v1469_v45 = vld [vmem:[#allocation9 + $0x17b0] sm:$0xff]  ;;  %v1470_v60 = vld [vmem:[#allocation9 + $0x17b8] sm:$0xff] }
 0x143   :  { %2006 = vmatpush.msra.mxu1 %v1437_v62  ;;  %2046 = vmatpush.msra.mxu3 %v1438_v40  ;;  %v901_v62 = vld [vmem:[#allocation9 + $0x5f0] sm:$0xff]  ;;  %v902_v40 = vld [vmem:[#allocation9 + $0x5f8] sm:$0xff] }
 0x144   :  { %2069 = vmatpush.msrb.mxu0 %v869_v63  ;;  %2109 = vmatpush.msrb.mxu2 %v870_v0  ;;  %v1439_v63 = vld [vmem:[#allocation9 + $0x16c0] sm:$0xff]  ;;  %v1440_v0 = vld [vmem:[#allocation9 + $0x16c8] sm:$0xff] }
 0x145   :  { %2007 = vmatpush.msra.mxu1 %v1407_v1  ;;  %2047 = vmatpush.msra.mxu3 %v1408_v2  ;;  %v871_v1 = vld [vmem:[#allocation9 + $0x500] sm:$0xff]  ;;  %v872_v2 = vld [vmem:[#allocation9 + $0x508] sm:$0xff] }
 0x146   :  { %2070 = vmatpush.msrb.mxu0 %v839_v61  ;;  %2110 = vmatpush.msrb.mxu2 %v840_v3  ;;  %v1409_v61 = vld [vmem:[#allocation9 + $0x15d0] sm:$0xff]  ;;  %v1410_v3 = vld [vmem:[#allocation9 + $0x15d8] sm:$0xff] }
 0x147   :  { %2008 = vmatpush.msra.mxu1 %v1377_v5  ;;  %2048 = vmatpush.msra.mxu3 %v1378_v6  ;;  %v841_v5 = vld [vmem:[#allocation9 + $0x410] sm:$0xff]  ;;  %v842_v6 = vld [vmem:[#allocation9 + $0x418] sm:$0xff] }
 0x148   :  { %2071 = vmatpush.msrb.mxu0 %v809_v7  ;;  %2111 = vmatpush.msrb.mxu2 %v810_v8  ;;  %v1379_v7 = vld [vmem:[#allocation9 + $0x14e0] sm:$0xff]  ;;  %v1380_v8 = vld [vmem:[#allocation9 + $0x14e8] sm:$0xff] }
 0x149   :  { %2009 = vmatpush.msra.mxu1 %v1347_v9  ;;  %2049 = vmatpush.msra.mxu3 %v1348_v10  ;;  %v811_v9 = vld [vmem:[#allocation9 + $0x320] sm:$0xff]  ;;  %v812_v10 = vld [vmem:[#allocation9 + $0x328] sm:$0xff] }
 0x14a   :  { %2072 = vmatpush.msrb.mxu0 %v779_v11  ;;  %2112 = vmatpush.msrb.mxu2 %v780_v12  ;;  %v1349_v11 = vld [vmem:[#allocation9 + $0x13f0] sm:$0xff]  ;;  %v1350_v12 = vld [vmem:[#allocation9 + $0x13f8] sm:$0xff] }
 0x14b   :  { %2010 = vmatpush.msra.mxu1 %v1317_v13  ;;  %2050 = vmatpush.msra.mxu3 %v1318_v14  ;;  %v781_v13 = vld [vmem:[#allocation9 + $0x230] sm:$0xff]  ;;  %v782_v14 = vld [vmem:[#allocation9 + $0x238] sm:$0xff] }
 0x14c   :  { %2073 = vmatpush.msrb.mxu0 %v749_v41  ;;  %2113 = vmatpush.msrb.mxu2 %v750_v15  ;;  %v1319_v41 = vld [vmem:[#allocation9 + $0x1300] sm:$0xff]  ;;  %v1320_v15 = vld [vmem:[#allocation9 + $0x1308] sm:$0xff] }
 0x14d   :  { %2011 = vmatpush.msra.mxu1 %v1287_v17  ;;  %2051 = vmatpush.msra.mxu3 %v1288_v18  ;;  %v751_v17 = vld [vmem:[#allocation9 + $0x140] sm:$0xff]  ;;  %v752_v18 = vld [vmem:[#allocation9 + $0x148] sm:$0xff] }
 0x14e   :  { %2074 = vmatpush.msrb.mxu0 %v719_v19  ;;  %2114 = vmatpush.msrb.mxu2 %v720_v20  ;;  %v1289_v19 = vld [vmem:[#allocation9 + $0x1210] sm:$0xff]  ;;  %v1290_v20 = vld [vmem:[#allocation9 + $0x1218] sm:$0xff] }
 0x14f   :  { %2075 = vmatmul.f32.vlgmr.msrb.gmra.mxu0 %v3599_v35  ;;  %2115 = vmatmul.f32.vlgmr.msrb.gmra.mxu2 %v3599_v35 }
 0x150   :  { %2139 = vmatpush.msra.mxu0 %v1171_v22  ;;  %2179 = vmatpush.msra.mxu2 %v1172_v23  ;;  %v721_v22 = vld [vmem:[#allocation9 + $0x50] sm:$0xff]  ;;  %v722_v23 = vld [vmem:[#allocation9 + $0x58] sm:$0xff] }
 0x151   :  { %2012 = vmatpush.msra.mxu1 %v1257_v24  ;;  %2052 = vmatpush.msra.mxu3 %v1258_v25  ;;  %v1173_v24 = vld [vmem:[#allocation9 + $0xe70] sm:$0xff]  ;;  %v1174_v25 = vld [vmem:[#allocation9 + $0xe78] sm:$0xff] }
 0x152   :  { %2140 = vmatpush.msra.mxu0 %v1141_v16  ;;  %2180 = vmatpush.msra.mxu2 %v1142_v26  ;;  %v1259_v16 = vld [vmem:[#allocation9 + $0x1120] sm:$0xff]  ;;  %v1260_v26 = vld [vmem:[#allocation9 + $0x1128] sm:$0xff] }
 0x153   :  { %2013 = vmatpush.msra.mxu1 %v1227_v28  ;;  %2053 = vmatpush.msra.mxu3 %v1228_v29  ;;  %v1143_v28 = vld [vmem:[#allocation9 + $0xd80] sm:$0xff]  ;;  %v1144_v29 = vld [vmem:[#allocation9 + $0xd88] sm:$0xff] }
 0x154   :  { %2141 = vmatpush.msra.mxu0 %v1111_v30  ;;  %2181 = vmatpush.msra.mxu2 %v1112_v27  ;;  %v1229_v30 = vld [vmem:[#allocation9 + $0x1030] sm:$0xff]  ;;  %v1230_v27 = vld [vmem:[#allocation9 + $0x1038] sm:$0xff] }
 0x155   :  { %2014 = vmatpush.msra.mxu1 %v1197_v31  ;;  %2054 = vmatpush.msra.mxu3 %v1198_v32  ;;  %v1113_v31 = vld [vmem:[#allocation9 + $0xc90] sm:$0xff]  ;;  %v1114_v32 = vld [vmem:[#allocation9 + $0xc98] sm:$0xff] }
 0x156   :  { %2015 = vmatmul.f32.vlgmr.msra.gmra.mxu1 %v3606_v21  ;;  %2055 = vmatmul.f32.vlgmr.msra.gmra.mxu3 %v3606_v21 }
 0x157   :  { %2079 = vmatpush.msrb.mxu1 %v1649_v34  ;;  %2119 = vmatpush.msrb.mxu3 %v1650_v36  ;;  %v1199_v34 = vld [vmem:[#allocation9 + $0xf40] sm:$0xff]  ;;  %v1200_v36 = vld [vmem:[#allocation9 + $0xf48] sm:$0xff] }
 0x158   :  { %2142 = vmatpush.msra.mxu0 %v1081_v4  ;;  %2182 = vmatpush.msra.mxu2 %v1082_v37  ;;  %v1651_v4 = vld [vmem:[#allocation9 + $0x1d60] sm:$0xff]  ;;  %v1652_v37 = vld [vmem:[#allocation9 + $0x1d68] sm:$0xff] }
 0x159   :  { %2080 = vmatpush.msrb.mxu1 %v1619_v38  ;;  %2120 = vmatpush.msrb.mxu3 %v1620_v39  ;;  %v1083_v38 = vld [vmem:[#allocation9 + $0xba0] sm:$0xff]  ;;  %v1084_v39 = vld [vmem:[#allocation9 + $0xba8] sm:$0xff] }
 0x15a   :  { %2143 = vmatpush.msra.mxu0 %v1051_v42  ;;  %2183 = vmatpush.msra.mxu2 %v1052_v43  ;;  %v1621_v42 = vld [vmem:[#allocation9 + $0x1c70] sm:$0xff]  ;;  %v1622_v43 = vld [vmem:[#allocation9 + $0x1c78] sm:$0xff] }
 0x15b   :  { %2081 = vmatpush.msrb.mxu1 %v1589_v44  ;;  %2121 = vmatpush.msrb.mxu3 %v1590_v46  ;;  %v1053_v44 = vld [vmem:[#allocation9 + $0xab0] sm:$0xff]  ;;  %v1054_v46 = vld [vmem:[#allocation9 + $0xab8] sm:$0xff] }
 0x15c   :  { %2144 = vmatpush.msra.mxu0 %v1021_v33  ;;  %2184 = vmatpush.msra.mxu2 %v1022_v47  ;;  %v1591_v33 = vld [vmem:[#allocation9 + $0x1b80] sm:$0xff]  ;;  %v1592_v47 = vld [vmem:[#allocation9 + $0x1b88] sm:$0xff] }
 0x15d   :  { %2082 = vmatpush.msrb.mxu1 %v1559_v48  ;;  %2122 = vmatpush.msrb.mxu3 %v1560_v49  ;;  %v1023_v48 = vld [vmem:[#allocation9 + $0x9c0] sm:$0xff]  ;;  %v1024_v49 = vld [vmem:[#allocation9 + $0x9c8] sm:$0xff] }
 0x15e   :  { %2145 = vmatpush.msra.mxu0 %v991_v50  ;;  %2185 = vmatpush.msra.mxu2 %v992_v51  ;;  %v1561_v50 = vld [vmem:[#allocation9 + $0x1a90] sm:$0xff]  ;;  %v1562_v51 = vld [vmem:[#allocation9 + $0x1a98] sm:$0xff] }
 0x15f   :  { %2083 = vmatpush.msrb.mxu1 %v1529_v53  ;;  %2123 = vmatpush.msrb.mxu3 %v1530_v54  ;;  %v993_v53 = vld [vmem:[#allocation9 + $0x8d0] sm:$0xff]  ;;  %v994_v54 = vld [vmem:[#allocation9 + $0x8d8] sm:$0xff] }
 0x160   :  { %2146 = vmatpush.msra.mxu0 %v961_v52  ;;  %2186 = vmatpush.msra.mxu2 %v962_v55  ;;  %v1531_v52 = vld [vmem:[#allocation9 + $0x19a0] sm:$0xff]  ;;  %v1532_v55 = vld [vmem:[#allocation9 + $0x19a8] sm:$0xff] }
 0x161   :  { %2084 = vmatpush.msrb.mxu1 %v1499_v56  ;;  %2124 = vmatpush.msrb.mxu3 %v1500_v57  ;;  %v963_v56 = vld [vmem:[#allocation9 + $0x7e0] sm:$0xff]  ;;  %v964_v57 = vld [vmem:[#allocation9 + $0x7e8] sm:$0xff] }
 0x162   :  { %2147 = vmatpush.msra.mxu0 %v931_v58  ;;  %2187 = vmatpush.msra.mxu2 %v932_v59  ;;  %v3626_v58 = vld [vmem:[#allocation10] sm:$0xff]  ;;  %v1501_v59 = vld [vmem:[#allocation9 + $0x18b0] sm:$0xff] }
 0x163   :  { %2085 = vmatpush.msrb.mxu1 %v1469_v45  ;;  %2125 = vmatpush.msrb.mxu3 %v1470_v60  ;;  %v1502_v45 = vld [vmem:[#allocation9 + $0x18b8] sm:$0xff]  ;;  %v933_v60 = vld [vmem:[#allocation9 + $0x6f0] sm:$0xff] }
 0x164   :  { %2148 = vmatpush.msra.mxu0 %v901_v62  ;;  %2188 = vmatpush.msra.mxu2 %v902_v40  ;;  %v934_v62 = vld [vmem:[#allocation9 + $0x6f8] sm:$0xff]  ;;  %v1471_v40 = vld [vmem:[#allocation9 + $0x17c0] sm:$0xff] }
 0x165   :  { %2086 = vmatpush.msrb.mxu1 %v1439_v63  ;;  %2126 = vmatpush.msrb.mxu3 %v1440_v0  ;;  %v1472_v63 = vld [vmem:[#allocation9 + $0x17c8] sm:$0xff]  ;;  %v1679_v0 = vperm.slane %v3626_v58, 0 }
 0x166   :  { %2149 = vmatpush.msra.mxu0 %v871_v1  ;;  %2189 = vmatpush.msra.mxu2 %v872_v2  ;;  %v903_v1 = vld [vmem:[#allocation9 + $0x600] sm:$0xff]  ;;  %v904_v2 = vld [vmem:[#allocation9 + $0x608] sm:$0xff] }
 0x167   :  { %2087 = vmatpush.msrb.mxu1 %v1409_v61  ;;  %2127 = vmatpush.msrb.mxu3 %v1410_v3  ;;  %v1441_v61 = vld [vmem:[#allocation9 + $0x16d0] sm:$0xff]  ;;  %v1442_v3 = vld [vmem:[#allocation9 + $0x16d8] sm:$0xff] }
 0x168   :  { %2150 = vmatpush.msra.mxu0 %v841_v5  ;;  %2190 = vmatpush.msra.mxu2 %v842_v6  ;;  %v873_v5 = vld [vmem:[#allocation9 + $0x510] sm:$0xff]  ;;  %v874_v6 = vld [vmem:[#allocation9 + $0x518] sm:$0xff] }
 0x169   :  { %2088 = vmatpush.msrb.mxu1 %v1379_v7  ;;  %2128 = vmatpush.msrb.mxu3 %v1380_v8  ;;  %v1411_v8 = vld [vmem:[#allocation9 + $0x15e0] sm:$0xff] }
 0x16a   :  { %2151 = vmatpush.msra.mxu0 %v811_v9  ;;  %2191 = vmatpush.msra.mxu2 %v812_v10  ;;  %v1412_v9 = vld [vmem:[#allocation9 + $0x15e8] sm:$0xff] }
 0x16b   :  { %2089 = vmatpush.msrb.mxu1 %v1349_v11  ;;  %2129 = vmatpush.msrb.mxu3 %v1350_v12  ;;  %v843_v11 = vld [vmem:[#allocation9 + $0x420] sm:$0xff]  ;;  %v844_v12 = vld [vmem:[#allocation9 + $0x428] sm:$0xff] }
 0x16c   :  { %2152 = vmatpush.msra.mxu0 %v781_v13  ;;  %2192 = vmatpush.msra.mxu2 %v782_v14  ;;  %v1756_v7 = vpop.f32.mrf.mxu0  ;;  %v1381_v13 = vld [vmem:[#allocation9 + $0x14f0] sm:$0xff]  ;;  %v1382_v14 = vld [vmem:[#allocation9 + $0x14f8] sm:$0xff] }
 0x16d   :  { %2090 = vmatpush.msrb.mxu1 %v1319_v41  ;;  %2130 = vmatpush.msrb.mxu3 %v1320_v15  ;;  %v1757_v10 = vadd.f32 %v1756_v7, %v1679_v0  ;;  %v1680_v15 = vperm.slane %v3626_v58, 1  ;;  %v1624_v0 = vld [vmem:[#allocation9 + $0x1c88] sm:$0xff]  ;;  %v1025_v7 = vld [vmem:[#allocation9 + $0x9d0] sm:$0xff] }
 0x16e   :  { %2153 = vmatpush.msra.mxu0 %v751_v17  ;;  %2193 = vmatpush.msra.mxu2 %v752_v18  ;;  %v813_v17 = vld [vmem:[#allocation9 + $0x330] sm:$0xff]  ;;  %v814_v18 = vld [vmem:[#allocation9 + $0x338] sm:$0xff] }
 0x16f   :  { %2091 = vmatpush.msrb.mxu1 %v1289_v19  ;;  %2131 = vmatpush.msrb.mxu3 %v1290_v20  ;;  %v1351_v20 = vld [vmem:[#allocation9 + $0x1400] sm:$0xff] }
 0x170   :  { %2154 = vmatpush.msra.mxu0 %v721_v22  ;;  %2194 = vmatpush.msra.mxu2 %v722_v23  ;;  %v1352_v22 = vld [vmem:[#allocation9 + $0x1408] sm:$0xff]  ;;  %v783_v23 = vld [vmem:[#allocation9 + $0x240] sm:$0xff] }
 0x171   :  { %2155 = vmatmul.f32.vlgmr.msra.gmra.mxu0 %v3599_v35  ;;  %2195 = vmatmul.f32.vlgmr.msra.gmra.mxu2 %v3599_v35 }
 0x172   :  { %2219 = vmatpush.msrb.mxu0 %v1173_v24  ;;  %2259 = vmatpush.msrb.mxu2 %v1174_v25  ;;  %v784_v24 = vld [vmem:[#allocation9 + $0x248] sm:$0xff]  ;;  %v1796_v25 = vpop.f32.mrf.mxu2 }
 0x173   :  { %2092 = vmatpush.msrb.mxu1 %v1259_v16  ;;  %2132 = vmatpush.msrb.mxu3 %v1260_v26  ;;  %v1321_v16 = vld [vmem:[#allocation9 + $0x1310] sm:$0xff]  ;;  %v1322_v26 = vld [vmem:[#allocation9 + $0x1318] sm:$0xff] }
 0x174   :  { %2220 = vmatpush.msrb.mxu0 %v1143_v28  ;;  %2260 = vmatpush.msrb.mxu2 %v1144_v29  ;;  %v1797_v28 = vadd.f32 %v1796_v25, %v1680_v15  ;;  %v753_v29 = vld [vmem:[#allocation9 + $0x150] sm:$0xff]  ;;  %v966_v15 = vld [vmem:[#allocation9 + $0x7f8] sm:$0xff] }
 0x175   :  { %2093 = vmatpush.msrb.mxu1 %v1229_v30  ;;  %2133 = vmatpush.msrb.mxu3 %v1230_v27  ;;  %v754_v30 = vld [vmem:[#allocation9 + $0x158] sm:$0xff]  ;;  %v1291_v27 = vld [vmem:[#allocation9 + $0x1220] sm:$0xff]  ;;  %v905_v25 = vld [vmem:[#allocation9 + $0x610] sm:$0xff] }
 0x176   :  { %2221 = vmatpush.msrb.mxu0 %v1113_v31  ;;  %2261 = vmatpush.msrb.mxu2 %v1114_v32  ;;  %v1292_v31 = vld [vmem:[#allocation9 + $0x1228] sm:$0xff] }
 0x177   :  { %2094 = vmatpush.msrb.mxu1 %v1199_v34  ;;  %2134 = vmatpush.msrb.mxu3 %v1200_v36  ;;  %v1681_v34 = vperm.slane %v3626_v58, 2  ;;  %v723_v36 = vld [vmem:[#allocation9 + $0x60] sm:$0xff] }
 0x178   :  { %2095 = vmatmul.f32.vlgmr.msrb.gmra.mxu1 %v3606_v21  ;;  %2135 = vmatmul.f32.vlgmr.msrb.gmra.mxu3 %v3606_v21 }
 0x179   :  { %2159 = vmatpush.msra.mxu1 %v1651_v4  ;;  %2199 = vmatpush.msra.mxu3 %v1652_v37  ;;  %v724_v4 = vld [vmem:[#allocation9 + $0x68] sm:$0xff] }
 0x17a   :  { %2222 = vmatpush.msrb.mxu0 %v1083_v38  ;;  %2262 = vmatpush.msrb.mxu2 %v1084_v39  ;;  %v1836_v38 = vpop.f32.mrf.mxu0  ;;  %v1175_v39 = vld [vmem:[#allocation9 + $0xe80] sm:$0xff] }
 0x17b   :  { %2160 = vmatpush.msra.mxu1 %v1621_v42  ;;  %2200 = vmatpush.msra.mxu3 %v1622_v43  ;;  %v1176_v42 = vld [vmem:[#allocation9 + $0xe88] sm:$0xff]  ;;  %v1261_v43 = vld [vmem:[#allocation9 + $0x1130] sm:$0xff] }
 0x17c   :  { %2223 = vmatpush.msrb.mxu0 %v1053_v44  ;;  %2263 = vmatpush.msrb.mxu2 %v1054_v46  ;;  %v1262_v44 = vld [vmem:[#allocation9 + $0x1138] sm:$0xff]  ;;  %v1837_v46 = vadd.f32 %v1836_v38, %v1681_v34  ;;  %v1683_v38 = vperm.slane %v3626_v58, 4 }
 0x17d   :  { %2161 = vmatpush.msra.mxu1 %v1591_v33  ;;  %2201 = vmatpush.msra.mxu3 %v1592_v47  ;;  %v1145_v33 = vld [vmem:[#allocation9 + $0xd90] sm:$0xff]  ;;  %v1146_v47 = vld [vmem:[#allocation9 + $0xd98] sm:$0xff] }
 0x17e   :  { %2224 = vmatpush.msrb.mxu0 %v1023_v48  ;;  %2264 = vmatpush.msrb.mxu2 %v1024_v49  ;;  %v1231_v48 = vld [vmem:[#allocation9 + $0x1040] sm:$0xff]  ;;  %v1232_v49 = vld [vmem:[#allocation9 + $0x1048] sm:$0xff]  ;;  %v846_v34 = vld [vmem:[#allocation9 + $0x438] sm:$0xff] }
 0x17f   :  { %2162 = vmatpush.msra.mxu1 %v1561_v50  ;;  %2202 = vmatpush.msra.mxu3 %v1562_v51  ;;  %v1682_v51 = vperm.slane %v3626_v58, 3 }
 0x180   :  { %2225 = vmatpush.msrb.mxu0 %v993_v53  ;;  %2265 = vmatpush.msrb.mxu2 %v994_v54  ;;  %v1115_v53 = vld [vmem:[#allocation9 + $0xca0] sm:$0xff]  ;;  %v1116_v54 = vld [vmem:[#allocation9 + $0xca8] sm:$0xff] }
 0x181   :  { %2163 = vmatpush.msra.mxu1 %v1531_v52  ;;  %2203 = vmatpush.msra.mxu3 %v1532_v55  ;;  %v1876_v55 = vpop.f32.mrf.mxu2 }
 0x182   :  { %2226 = vmatpush.msrb.mxu0 %v963_v56  ;;  %2266 = vmatpush.msrb.mxu2 %v964_v57  ;;  %v1201_v56 = vld [vmem:[#allocation9 + $0xf50] sm:$0xff]  ;;  %v1202_v57 = vld [vmem:[#allocation9 + $0xf58] sm:$0xff] }
 0x183   :  { %2164 = vmatpush.msra.mxu1 %v1501_v59  ;;  %2204 = vmatpush.msra.mxu3 %v1502_v45  ;;  %v1653_v59 = vld [vmem:[#allocation9 + $0x1d70] sm:$0xff]  ;;  %v1654_v45 = vld [vmem:[#allocation9 + $0x1d78] sm:$0xff] }
 0x184   :  { %2227 = vmatpush.msrb.mxu0 %v933_v60  ;;  %2267 = vmatpush.msrb.mxu2 %v934_v62  ;;  %v1877_v60 = vadd.f32 %v1876_v55, %v1682_v51  ;;  %v1085_v62 = vld [vmem:[#allocation9 + $0xbb0] sm:$0xff]  ;;  %v755_v51 = vld [vmem:[#allocation9 + $0x160] sm:$0xff]  ;;  %v1294_v55 = vld [vmem:[#allocation9 + $0x1238] sm:$0xff] }
 0x185   :  { %2165 = vmatpush.msra.mxu1 %v1471_v40  ;;  %2205 = vmatpush.msra.mxu3 %v1472_v63  ;;  %v1086_v40 = vld [vmem:[#allocation9 + $0xbb8] sm:$0xff]  ;;  %v1623_v63 = vld [vmem:[#allocation9 + $0x1c80] sm:$0xff] }
 0x186   :  { %2228 = vmatpush.msrb.mxu0 %v903_v1  ;;  %2268 = vmatpush.msrb.mxu2 %v904_v2  ;;  %v1055_v2 = vld [vmem:[#allocation9 + $0xac0] sm:$0xff] }
 0x187   :  { %2166 = vmatpush.msra.mxu1 %v1441_v61  ;;  %2206 = vmatpush.msra.mxu3 %v1442_v3  ;;  %v1056_v61 = vld [vmem:[#allocation9 + $0xac8] sm:$0xff] }
 0x188   :  { %2229 = vmatpush.msrb.mxu0 %v873_v5  ;;  %2269 = vmatpush.msrb.mxu2 %v874_v6  ;;  %v1776_v41 = vpop.f32.mrf.mxu1  ;;  %v1593_v5 = vld [vmem:[#allocation9 + $0x1b90] sm:$0xff]  ;;  %v1594_v6 = vld [vmem:[#allocation9 + $0x1b98] sm:$0xff] }
 0x189   :  { %2167 = vmatpush.msra.mxu1 %v1411_v8  ;;  %2207 = vmatpush.msra.mxu3 %v1412_v9  ;;  %v3630_v19 = vadd.f32 %v1776_v41, %v1757_v10  ;;  %v1026_v8 = vld [vmem:[#allocation9 + $0x9d8] sm:$0xff]  ;;  %v1563_v9 = vld [vmem:[#allocation9 + $0x1aa0] sm:$0xff]  ;;  %v1564_v10 = vld [vmem:[#allocation9 + $0x1aa8] sm:$0xff] }
 0x18a   :  { %2230 = vmatpush.msrb.mxu0 %v843_v11  ;;  %2270 = vmatpush.msrb.mxu2 %v844_v12  ;;  %v995_v11 = vld [vmem:[#allocation9 + $0x8e0] sm:$0xff]  ;;  %v996_v12 = vld [vmem:[#allocation9 + $0x8e8] sm:$0xff]  ;;  %v965_v41 = vld [vmem:[#allocation9 + $0x7f0] sm:$0xff] }
 0x18b   :  { %2168 = vmatpush.msra.mxu1 %v1381_v13  ;;  %2208 = vmatpush.msra.mxu3 %v1382_v14  ;;  %v1533_v13 = vld [vmem:[#allocation9 + $0x19b0] sm:$0xff]  ;;  %v1534_v14 = vld [vmem:[#allocation9 + $0x19b8] sm:$0xff] }
 0x18c   :  { %2231 = vmatpush.msrb.mxu0 %v813_v17  ;;  %2271 = vmatpush.msrb.mxu2 %v814_v18  ;;  %v1503_v17 = vld [vmem:[#allocation9 + $0x18c0] sm:$0xff]  ;;  %v1504_v18 = vld [vmem:[#allocation9 + $0x18c8] sm:$0xff] }
 0x18d   :  { %2169 = vmatpush.msra.mxu1 %v1351_v20  ;;  %2209 = vmatpush.msra.mxu3 %v1352_v22  ;;  %v935_v20 = vld [vmem:[#allocation9 + $0x700] sm:$0xff]  ;;  %v936_v22 = vld [vmem:[#allocation9 + $0x708] sm:$0xff] }
 0x18e   :  { %2232 = vmatpush.msrb.mxu0 %v783_v23  ;;  %2272 = vmatpush.msrb.mxu2 %v784_v24  ;;  %v1816_v32 = vpop.f32.mrf.mxu3  ;;  %v1473_v23 = vld [vmem:[#allocation9 + $0x17d0] sm:$0xff]  ;;  %v1474_v24 = vld [vmem:[#allocation9 + $0x17d8] sm:$0xff] }
 0x18f   :  { %2170 = vmatpush.msra.mxu1 %v1321_v16  ;;  %2210 = vmatpush.msra.mxu3 %v1322_v26  ;;  %v3633_v37 = vadd.f32 %v1816_v32, %v1797_v28  ;;  %v906_v16 = vld [vmem:[#allocation9 + $0x618] sm:$0xff]  ;;  %v1443_v26 = vld [vmem:[#allocation9 + $0x16e0] sm:$0xff]  ;;  %v1444_v28 = vld [vmem:[#allocation9 + $0x16e8] sm:$0xff] }
 0x190   :  { %2233 = vmatpush.msrb.mxu0 %v753_v29  ;;  %2273 = vmatpush.msrb.mxu2 %v754_v30  ;;  %v875_v29 = vld [vmem:[#allocation9 + $0x520] sm:$0xff]  ;;  %v876_v30 = vld [vmem:[#allocation9 + $0x528] sm:$0xff]  ;;  %v845_v32 = vld [vmem:[#allocation9 + $0x430] sm:$0xff] }
 0x191   :  { %2171 = vmatpush.msra.mxu1 %v1291_v27  ;;  %2211 = vmatpush.msra.mxu3 %v1292_v31  ;;  %v1413_v27 = vld [vmem:[#allocation9 + $0x15f0] sm:$0xff]  ;;  %v1414_v31 = vld [vmem:[#allocation9 + $0x15f8] sm:$0xff] }
 0x192   :  { %2234 = vmatpush.msrb.mxu0 %v723_v36  ;;  %2274 = vmatpush.msrb.mxu2 %v724_v4  ;;  %v1383_v36 = vld [vmem:[#allocation9 + $0x1500] sm:$0xff]  ;;  %v1384_v4 = vld [vmem:[#allocation9 + $0x1508] sm:$0xff] }
 0x193   :  { %2235 = vmatmul.f32.vlgmr.msrb.gmra.mxu0 %v3599_v35  ;;  %2275 = vmatmul.f32.vlgmr.msrb.gmra.mxu2 %v3599_v35 }
 0x194   :  { %2299 = vmatpush.msra.mxu0 %v1175_v39  ;;  %2339 = vmatpush.msra.mxu2 %v1176_v42  ;;  %v1856_v50 = vpop.f32.mrf.mxu1  ;;  %v815_v39 = vld [vmem:[#allocation9 + $0x340] sm:$0xff]  ;;  %v816_v42 = vld [vmem:[#allocation9 + $0x348] sm:$0xff] }
 0x195   :  { %2172 = vmatpush.msra.mxu1 %v1261_v43  ;;  %2212 = vmatpush.msra.mxu3 %v1262_v44  ;;  %v3638_v52 = vadd.f32 %v1856_v50, %v1837_v46  ;;  %v1916_v43 = vpop.f32.mrf.mxu0  ;;  %v1353_v44 = vld [vmem:[#allocation9 + $0x1410] sm:$0xff]  ;;  %v1354_v46 = vld [vmem:[#allocation9 + $0x1418] sm:$0xff] }
 0x196   :  { %2300 = vmatpush.msra.mxu0 %v1145_v33  ;;  %2340 = vmatpush.msra.mxu2 %v1146_v47  ;;  %v785_v33 = vld [vmem:[#allocation9 + $0x250] sm:$0xff]  ;;  %v786_v47 = vld [vmem:[#allocation9 + $0x258] sm:$0xff]  ;;  %v1917_v50 = vadd.f32 %v1916_v43, %v1683_v38  ;;  %v1475_v43 = vld [vmem:[#allocation9 + $0x17e0] sm:$0xff] }
 0x197   :  { %2173 = vmatpush.msra.mxu1 %v1231_v48  ;;  %2213 = vmatpush.msra.mxu3 %v1232_v49  ;;  %v1323_v48 = vld [vmem:[#allocation9 + $0x1320] sm:$0xff]  ;;  %v1324_v49 = vld [vmem:[#allocation9 + $0x1328] sm:$0xff]  ;;  %v1506_v38 = vld [vmem:[#allocation9 + $0x18d8] sm:$0xff] }
 0x198   :  { %2301 = vmatpush.msra.mxu0 %v1115_v53  ;;  %2341 = vmatpush.msra.mxu2 %v1116_v54  ;;  %v756_v53 = vld [vmem:[#allocation9 + $0x168] sm:$0xff]  ;;  %v1293_v54 = vld [vmem:[#allocation9 + $0x1230] sm:$0xff] }
 0x199   :  { %2174 = vmatpush.msra.mxu1 %v1201_v56  ;;  %2214 = vmatpush.msra.mxu3 %v1202_v57  ;;  %v1684_v57 = vperm.slane %v3626_v58, 5 }
 0x19a   :  { %2175 = vmatmul.f32.vlgmr.msra.gmra.mxu1 %v3606_v21  ;;  %2215 = vmatmul.f32.vlgmr.msra.gmra.mxu3 %v3606_v21  ;;  %v1896_v1 = vpop.f32.mrf.mxu3 }
 0x19b   :  { %2239 = vmatpush.msrb.mxu1 %v1653_v59  ;;  %2279 = vmatpush.msrb.mxu3 %v1654_v45  ;;  %v3642_v3 = vadd.f32 %v1896_v1, %v1877_v60  ;;  %v725_v59 = vld [vmem:[#allocation9 + $0x70] sm:$0xff]  ;;  %v726_v45 = vld [vmem:[#allocation9 + $0x78] sm:$0xff]  ;;  %v1264_v1 = vld [vmem:[#allocation9 + $0x1148] sm:$0xff] }
 0x19c   :  { %2302 = vmatpush.msra.mxu0 %v1085_v62  ;;  %2342 = vmatpush.msra.mxu2 %v1086_v40  ;;  %v1956_v62 = vpop.f32.mrf.mxu2  ;;  %v1177_v40 = vld [vmem:[#allocation9 + $0xe90] sm:$0xff] }
 0x19d   :  { %2240 = vmatpush.msrb.mxu1 %v1623_v63  ;;  %2280 = vmatpush.msrb.mxu3 %v1624_v0  ;;  %v1178_v63 = vld [vmem:[#allocation9 + $0xe98] sm:$0xff]  ;;  %v1263_v0 = vld [vmem:[#allocation9 + $0x1140] sm:$0xff] }
 0x19e   :  { %2303 = vmatpush.msra.mxu0 %v1055_v2  ;;  %2343 = vmatpush.msra.mxu2 %v1056_v61  ;;  %v1957_v2 = vadd.f32 %v1956_v62, %v1684_v57  ;;  %v1147_v61 = vld [vmem:[#allocation9 + $0xda0] sm:$0xff]  ;;  %v1386_v57 = vld [vmem:[#allocation9 + $0x1518] sm:$0xff]  ;;  %v1685_v62 = vperm.slane %v3626_v58, 6 }
 0x19f   :  { %2241 = vmatpush.msrb.mxu1 %v1593_v5  ;;  %2281 = vmatpush.msrb.mxu3 %v1594_v6  ;;  %v1148_v5 = vld [vmem:[#allocation9 + $0xda8] sm:$0xff]  ;;  %v1233_v6 = vld [vmem:[#allocation9 + $0x1050] sm:$0xff] }
 0x1a0   :  { %2304 = vmatpush.msra.mxu0 %v1025_v7  ;;  %2344 = vmatpush.msra.mxu2 %v1026_v8  ;;  %v1234_v7 = vld [vmem:[#allocation9 + $0x1058] sm:$0xff] }
 0x1a1   :  { %2242 = vmatpush.msrb.mxu1 %v1563_v9  ;;  %2282 = vmatpush.msrb.mxu3 %v1564_v10  ;;  %v1117_v9 = vld [vmem:[#allocation9 + $0xcb0] sm:$0xff]  ;;  %v1118_v10 = vld [vmem:[#allocation9 + $0xcb8] sm:$0xff] }
 0x1a2   :  { %2305 = vmatpush.msra.mxu0 %v995_v11  ;;  %2345 = vmatpush.msra.mxu2 %v996_v12  ;;  %v1203_v12 = vld [vmem:[#allocation9 + $0xf60] sm:$0xff] }
 0x1a3   :  { %2243 = vmatpush.msrb.mxu1 %v1533_v13  ;;  %2283 = vmatpush.msrb.mxu3 %v1534_v14  ;;  %v1204_v13 = vld [vmem:[#allocation9 + $0xf68] sm:$0xff]  ;;  %v1655_v14 = vld [vmem:[#allocation9 + $0x1d80] sm:$0xff] }
 0x1a4   :  { %2306 = vmatpush.msra.mxu0 %v965_v41  ;;  %2346 = vmatpush.msra.mxu2 %v966_v15  ;;  %v1656_v41 = vld [vmem:[#allocation9 + $0x1d88] sm:$0xff]  ;;  %v1087_v15 = vld [vmem:[#allocation9 + $0xbc0] sm:$0xff] }
 0x1a5   :  { %2244 = vmatpush.msrb.mxu1 %v1503_v17  ;;  %2284 = vmatpush.msrb.mxu3 %v1504_v18  ;;  %v1088_v17 = vld [vmem:[#allocation9 + $0xbc8] sm:$0xff]  ;;  %v1625_v18 = vld [vmem:[#allocation9 + $0x1c90] sm:$0xff] }
 0x1a6   :  { %2307 = vmatpush.msra.mxu0 %v935_v20  ;;  %2347 = vmatpush.msra.mxu2 %v936_v22  ;;  %v1626_v20 = vld [vmem:[#allocation9 + $0x1c98] sm:$0xff]  ;;  %v1057_v22 = vld [vmem:[#allocation9 + $0xad0] sm:$0xff] }
 0x1a7   :  { %2245 = vmatpush.msrb.mxu1 %v1473_v23  ;;  %2285 = vmatpush.msrb.mxu3 %v1474_v24  ;;  %v1058_v23 = vld [vmem:[#allocation9 + $0xad8] sm:$0xff]  ;;  %v1595_v24 = vld [vmem:[#allocation9 + $0x1ba0] sm:$0xff] }
 0x1a8   :  { %2308 = vmatpush.msra.mxu0 %v905_v25  ;;  %2348 = vmatpush.msra.mxu2 %v906_v16  ;;  %v1596_v25 = vld [vmem:[#allocation9 + $0x1ba8] sm:$0xff]  ;;  %v1027_v16 = vld [vmem:[#allocation9 + $0x9e0] sm:$0xff] }
 0x1a9   :  { %2246 = vmatpush.msrb.mxu1 %v1443_v26  ;;  %2286 = vmatpush.msrb.mxu3 %v1444_v28  ;;  %v1028_v26 = vld [vmem:[#allocation9 + $0x9e8] sm:$0xff]  ;;  %v1565_v28 = vld [vmem:[#allocation9 + $0x1ab0] sm:$0xff] }
 0x1aa   :  { %2309 = vmatpush.msra.mxu0 %v875_v29  ;;  %2349 = vmatpush.msra.mxu2 %v876_v30  ;;  %v1566_v29 = vld [vmem:[#allocation9 + $0x1ab8] sm:$0xff]  ;;  %v997_v30 = vld [vmem:[#allocation9 + $0x8f0] sm:$0xff] }
 0x1ab   :  { %2247 = vmatpush.msrb.mxu1 %v1413_v27  ;;  %2287 = vmatpush.msrb.mxu3 %v1414_v31  ;;  %v998_v27 = vld [vmem:[#allocation9 + $0x8f8] sm:$0xff]  ;;  %v1535_v31 = vld [vmem:[#allocation9 + $0x19c0] sm:$0xff] }
 0x1ac   :  { %2310 = vmatpush.msra.mxu0 %v845_v32  ;;  %2350 = vmatpush.msra.mxu2 %v846_v34  ;;  %v1536_v32 = vld [vmem:[#allocation9 + $0x19c8] sm:$0xff]  ;;  %v967_v34 = vld [vmem:[#allocation9 + $0x800] sm:$0xff] }
 0x1ad   :  { %2248 = vmatpush.msrb.mxu1 %v1383_v36  ;;  %2288 = vmatpush.msrb.mxu3 %v1384_v4  ;;  %v968_v36 = vld [vmem:[#allocation9 + $0x808] sm:$0xff]  ;;  %v1505_v4 = vld [vmem:[#allocation9 + $0x18d0] sm:$0xff] }
 0x1ae   :  { %2311 = vmatpush.msra.mxu0 %v815_v39  ;;  %2351 = vmatpush.msra.mxu2 %v816_v42  ;;  %v937_v39 = vld [vmem:[#allocation9 + $0x710] sm:$0xff]  ;;  %v938_v42 = vld [vmem:[#allocation9 + $0x718] sm:$0xff] }
 0x1af   :  { %2249 = vmatpush.msrb.mxu1 %v1353_v44  ;;  %2289 = vmatpush.msrb.mxu3 %v1354_v46  ;;  %v1476_v44 = vld [vmem:[#allocation9 + $0x17e8] sm:$0xff]  ;;  %v907_v46 = vld [vmem:[#allocation9 + $0x620] sm:$0xff] }
 0x1b0   :  { %2312 = vmatpush.msra.mxu0 %v785_v33  ;;  %2352 = vmatpush.msra.mxu2 %v786_v47  ;;  %v1936_v56 = vpop.f32.mrf.mxu1  ;;  %v908_v33 = vld [vmem:[#allocation9 + $0x628] sm:$0xff]  ;;  %v1445_v47 = vld [vmem:[#allocation9 + $0x16f0] sm:$0xff] }
 0x1b1   :  { %2250 = vmatpush.msrb.mxu1 %v1323_v48  ;;  %2290 = vmatpush.msrb.mxu3 %v1324_v49  ;;  %v3646_v60 = vadd.f32 %v1936_v56, %v1917_v50  ;;  %v1446_v48 = vld [vmem:[#allocation9 + $0x16f8] sm:$0xff]  ;;  %v877_v49 = vld [vmem:[#allocation9 + $0x530] sm:$0xff] }
 0x1b2   :  { %2313 = vmatpush.msra.mxu0 %v755_v51  ;;  %2353 = vmatpush.msra.mxu2 %v756_v53  ;;  %v878_v50 = vld [vmem:[#allocation9 + $0x538] sm:$0xff]  ;;  %v1415_v51 = vld [vmem:[#allocation9 + $0x1600] sm:$0xff]  ;;  %v1416_v53 = vld [vmem:[#allocation9 + $0x1608] sm:$0xff] }
 0x1b3   :  { %2251 = vmatpush.msrb.mxu1 %v1293_v54  ;;  %2291 = vmatpush.msrb.mxu3 %v1294_v55  ;;  %v847_v54 = vld [vmem:[#allocation9 + $0x440] sm:$0xff]  ;;  %v848_v55 = vld [vmem:[#allocation9 + $0x448] sm:$0xff]  ;;  %v1385_v56 = vld [vmem:[#allocation9 + $0x1510] sm:$0xff] }
 0x1b4   :  { %2314 = vmatpush.msra.mxu0 %v725_v59  ;;  %2354 = vmatpush.msra.mxu2 %v726_v45  ;;  %v817_v59 = vld [vmem:[#allocation9 + $0x350] sm:$0xff]  ;;  %v818_v45 = vld [vmem:[#allocation9 + $0x358] sm:$0xff] }
 0x1b5   :  { %2315 = vmatmul.f32.vlgmr.msra.gmra.mxu0 %v3599_v35  ;;  %2355 = vmatmul.f32.vlgmr.msra.gmra.mxu2 %v3599_v35 }
 0x1b6   :  { %2379 = vmatpush.msrb.mxu0 %v1177_v40  ;;  %2419 = vmatpush.msrb.mxu2 %v1178_v63  ;;  %v1976_v8 = vpop.f32.mrf.mxu3  ;;  %v1355_v40 = vld [vmem:[#allocation9 + $0x1420] sm:$0xff]  ;;  %v1356_v63 = vld [vmem:[#allocation9 + $0x1428] sm:$0xff] }
 0x1b7   :  { %2252 = vmatpush.msrb.mxu1 %v1263_v0  ;;  %2292 = vmatpush.msrb.mxu3 %v1264_v1  ;;  %v3650_v11 = vadd.f32 %v1976_v8, %v1957_v2  ;;  %v1996_v0 = vpop.f32.mrf.mxu0  ;;  %v787_v1 = vld [vmem:[#allocation9 + $0x260] sm:$0xff]  ;;  %v788_v2 = vld [vmem:[#allocation9 + $0x268] sm:$0xff] }
 0x1b8   :  { %2380 = vmatpush.msrb.mxu0 %v1147_v61  ;;  %2420 = vmatpush.msrb.mxu2 %v1148_v5  ;;  %v1325_v61 = vld [vmem:[#allocation9 + $0x1330] sm:$0xff]  ;;  %v1326_v5 = vld [vmem:[#allocation9 + $0x1338] sm:$0xff]  ;;  %v1997_v8 = vadd.f32 %v1996_v0, %v1685_v62  ;;  %v939_v62 = vld [vmem:[#allocation9 + $0x720] sm:$0xff] }
 0x1b9   :  { %2253 = vmatpush.msrb.mxu1 %v1233_v6  ;;  %2293 = vmatpush.msrb.mxu3 %v1234_v7  ;;  %v757_v6 = vld [vmem:[#allocation9 + $0x170] sm:$0xff]  ;;  %v758_v7 = vld [vmem:[#allocation9 + $0x178] sm:$0xff] }
 0x1ba   :  { %2381 = vmatpush.msrb.mxu0 %v1117_v9  ;;  %2421 = vmatpush.msrb.mxu2 %v1118_v10  ;;  %v1295_v9 = vld [vmem:[#allocation9 + $0x1240] sm:$0xff]  ;;  %v1296_v10 = vld [vmem:[#allocation9 + $0x1248] sm:$0xff]  ;;  %v1478_v0 = vld [vmem:[#allocation9 + $0x17f8] sm:$0xff] }
 0x1bb   :  { %2254 = vmatpush.msrb.mxu1 %v1203_v12  ;;  %2294 = vmatpush.msrb.mxu3 %v1204_v13  ;;  %v727_v12 = vld [vmem:[#allocation9 + $0x80] sm:$0xff]  ;;  %v728_v13 = vld [vmem:[#allocation9 + $0x88] sm:$0xff] }
 0x1bc   :  { %2255 = vmatmul.f32.vlgmr.msrb.gmra.mxu1 %v3606_v21  ;;  %2295 = vmatmul.f32.vlgmr.msrb.gmra.mxu3 %v3606_v21 }
 0x1bd   :  { %2319 = vmatpush.msra.mxu1 %v1655_v14  ;;  %2359 = vmatpush.msra.mxu3 %v1656_v41  ;;  %v1686_v41 = vperm.slane %v3626_v58, 7 }
 0x1be   :  { %2382 = vmatpush.msrb.mxu0 %v1087_v15  ;;  %2422 = vmatpush.msrb.mxu2 %v1088_v17  ;;  %v2036_v17 = vpop.f32.mrf.mxu2 }
 0x1bf   :  { %2320 = vmatpush.msra.mxu1 %v1625_v18  ;;  %2360 = vmatpush.msra.mxu3 %v1626_v20  ;;  %v1179_v18 = vld [vmem:[#allocation9 + $0xea0] sm:$0xff]  ;;  %v1180_v20 = vld [vmem:[#allocation9 + $0xea8] sm:$0xff]  ;;  %v2037_v58 = vadd.f32 %v2036_v17, %v1686_v41 }
 0x1c0   :  { %2383 = vmatpush.msrb.mxu0 %v1057_v22  ;;  %2423 = vmatpush.msrb.mxu2 %v1058_v23  ;;  %v1265_v22 = vld [vmem:[#allocation9 + $0x1150] sm:$0xff]  ;;  %v1266_v23 = vld [vmem:[#allocation9 + $0x1158] sm:$0xff]  ;;  %v1388_v41 = vld [vmem:[#allocation9 + $0x1528] sm:$0xff] }
 0x1c1   :  { %2321 = vmatpush.msra.mxu1 %v1595_v24  ;;  %2361 = vmatpush.msra.mxu3 %v1596_v25  ;;  %v1149_v24 = vld [vmem:[#allocation9 + $0xdb0] sm:$0xff]  ;;  %v1150_v25 = vld [vmem:[#allocation9 + $0xdb8] sm:$0xff]  ;;  %v819_v17 = vld [vmem:[#allocation9 + $0x360] sm:$0xff] }
 0x1c2   :  { %2384 = vmatpush.msrb.mxu0 %v1027_v16  ;;  %2424 = vmatpush.msrb.mxu2 %v1028_v26  ;;  %v1235_v16 = vld [vmem:[#allocation9 + $0x1060] sm:$0xff]  ;;  %v1236_v26 = vld [vmem:[#allocation9 + $0x1068] sm:$0xff] }
 0x1c3   :  { %2322 = vmatpush.msra.mxu1 %v1565_v28  ;;  %2362 = vmatpush.msra.mxu3 %v1566_v29  ;;  %v1119_v28 = vld [vmem:[#allocation9 + $0xcc0] sm:$0xff]  ;;  %v1120_v29 = vld [vmem:[#allocation9 + $0xcc8] sm:$0xff] }
 0x1c4   :  { %2385 = vmatpush.msrb.mxu0 %v997_v30  ;;  %2425 = vmatpush.msrb.mxu2 %v998_v27  ;;  %v1205_v27 = vld [vmem:[#allocation9 + $0xf70] sm:$0xff] }
 0x1c5   :  { %2323 = vmatpush.msra.mxu1 %v1535_v31  ;;  %2363 = vmatpush.msra.mxu3 %v1536_v32  ;;  %v1206_v31 = vld [vmem:[#allocation9 + $0xf78] sm:$0xff] }
 0x1c6   :  { %2386 = vmatpush.msrb.mxu0 %v967_v34  ;;  %2426 = vmatpush.msrb.mxu2 %v968_v36  ;;  %v1657_v34 = vld [vmem:[#allocation9 + $0x1d90] sm:$0xff]  ;;  %v1658_v36 = vld [vmem:[#allocation9 + $0x1d98] sm:$0xff] }
 0x1c7   :  { %2324 = vmatpush.msra.mxu1 %v1505_v4  ;;  %2364 = vmatpush.msra.mxu3 %v1506_v38  ;;  %v1089_v4 = vld [vmem:[#allocation9 + $0xbd0] sm:$0xff]  ;;  %v1090_v38 = vld [vmem:[#allocation9 + $0xbd8] sm:$0xff] }
 0x1c8   :  { %2387 = vmatpush.msrb.mxu0 %v937_v39  ;;  %2427 = vmatpush.msrb.mxu2 %v938_v42  ;;  %v1627_v39 = vld [vmem:[#allocation9 + $0x1ca0] sm:$0xff]  ;;  %v1628_v42 = vld [vmem:[#allocation9 + $0x1ca8] sm:$0xff] }
 0x1c9   :  { %2325 = vmatpush.msra.mxu1 %v1475_v43  ;;  %2365 = vmatpush.msra.mxu3 %v1476_v44  ;;  %v1059_v43 = vld [vmem:[#allocation9 + $0xae0] sm:$0xff]  ;;  %v1060_v44 = vld [vmem:[#allocation9 + $0xae8] sm:$0xff] }
 0x1ca   :  { %2388 = vmatpush.msrb.mxu0 %v907_v46  ;;  %2428 = vmatpush.msrb.mxu2 %v908_v33  ;;  %v1597_v46 = vld [vmem:[#allocation9 + $0x1bb0] sm:$0xff]  ;;  %v1598_v33 = vld [vmem:[#allocation9 + $0x1bb8] sm:$0xff] }
 0x1cb   :  { %2326 = vmatpush.msra.mxu1 %v1445_v47  ;;  %2366 = vmatpush.msra.mxu3 %v1446_v48  ;;  %v1029_v47 = vld [vmem:[#allocation9 + $0x9f0] sm:$0xff]  ;;  %v1030_v48 = vld [vmem:[#allocation9 + $0x9f8] sm:$0xff] }
 0x1cc   :  { %2389 = vmatpush.msrb.mxu0 %v877_v49  ;;  %2429 = vmatpush.msrb.mxu2 %v878_v50  ;;  %v1567_v49 = vld [vmem:[#allocation9 + $0x1ac0] sm:$0xff]  ;;  %v1568_v50 = vld [vmem:[#allocation9 + $0x1ac8] sm:$0xff] }
 0x1cd   :  { %2327 = vmatpush.msra.mxu1 %v1415_v51  ;;  %2367 = vmatpush.msra.mxu3 %v1416_v53  ;;  %v999_v51 = vld [vmem:[#allocation9 + $0x900] sm:$0xff]  ;;  %v1000_v53 = vld [vmem:[#allocation9 + $0x908] sm:$0xff] }
 0x1ce   :  { %2390 = vmatpush.msrb.mxu0 %v847_v54  ;;  %2430 = vmatpush.msrb.mxu2 %v848_v55  ;;  %v1537_v54 = vld [vmem:[#allocation9 + $0x19d0] sm:$0xff]  ;;  %v1538_v55 = vld [vmem:[#allocation9 + $0x19d8] sm:$0xff] }
 0x1cf   :  { %2328 = vmatpush.msra.mxu1 %v1385_v56  ;;  %2368 = vmatpush.msra.mxu3 %v1386_v57  ;;  %v969_v56 = vld [vmem:[#allocation9 + $0x810] sm:$0xff]  ;;  %v970_v57 = vld [vmem:[#allocation9 + $0x818] sm:$0xff] }
 0x1d0   :  { %2391 = vmatpush.msrb.mxu0 %v817_v59  ;;  %2431 = vmatpush.msrb.mxu2 %v818_v45  ;;  %v1507_v59 = vld [vmem:[#allocation9 + $0x18e0] sm:$0xff]  ;;  %v1508_v45 = vld [vmem:[#allocation9 + $0x18e8] sm:$0xff] }
 0x1d1   :  { %2329 = vmatpush.msra.mxu1 %v1355_v40  ;;  %2369 = vmatpush.msra.mxu3 %v1356_v63  ;;  %v940_v40 = vld [vmem:[#allocation9 + $0x728] sm:$0xff]  ;;  %v1477_v63 = vld [vmem:[#allocation9 + $0x17f0] sm:$0xff] }
 0x1d2   :  { %2392 = vmatpush.msrb.mxu0 %v787_v1  ;;  %2432 = vmatpush.msrb.mxu2 %v788_v2  ;;  %v909_v1 = vld [vmem:[#allocation9 + $0x630] sm:$0xff]  ;;  %v910_v2 = vld [vmem:[#allocation9 + $0x638] sm:$0xff] }
 0x1d3   :  { %2330 = vmatpush.msra.mxu1 %v1325_v61  ;;  %2370 = vmatpush.msra.mxu3 %v1326_v5  ;;  %v2016_v14 = vpop.f32.mrf.mxu1  ;;  %v1447_v61 = vld [vmem:[#allocation9 + $0x1700] sm:$0xff]  ;;  %v1448_v5 = vld [vmem:[#allocation9 + $0x1708] sm:$0xff] }
 0x1d4   :  { %2393 = vmatpush.msrb.mxu0 %v757_v6  ;;  %2433 = vmatpush.msrb.mxu2 %v758_v7  ;;  %v3656_v15 = vadd.f32 %v2016_v14, %v1997_v8  ;;  %v879_v6 = vld [vmem:[#allocation9 + $0x540] sm:$0xff]  ;;  %v880_v7 = vld [vmem:[#allocation9 + $0x548] sm:$0xff]  ;;  %v1417_v8 = vld [vmem:[#allocation9 + $0x1610] sm:$0xff] }
 0x1d5   :  { %2331 = vmatpush.msra.mxu1 %v1295_v9  ;;  %2371 = vmatpush.msra.mxu3 %v1296_v10  ;;  %v1418_v9 = vld [vmem:[#allocation9 + $0x1618] sm:$0xff]  ;;  %v3664_v10 = vld [vmem:[#allocation10 + $0x8] sm:$0xff]  ;;  %v1387_v14 = vld [vmem:[#allocation9 + $0x1520] sm:$0xff] }
 0x1d6   :  { %2394 = vmatpush.msrb.mxu0 %v727_v12  ;;  %2434 = vmatpush.msrb.mxu2 %v728_v13  ;;  %v849_v12 = vld [vmem:[#allocation9 + $0x450] sm:$0xff]  ;;  %v850_v13 = vld [vmem:[#allocation9 + $0x458] sm:$0xff] }
 0x1d7   :  { %2395 = vmatmul.f32.vlgmr.msrb.gmra.mxu0 %v3599_v35  ;;  %2435 = vmatmul.f32.vlgmr.msrb.gmra.mxu2 %v3599_v35 }
 0x1d8   :  { %2459 = vmatpush.msra.mxu0 %v1179_v18  ;;  %2499 = vmatpush.msra.mxu2 %v1180_v20  ;;  %v820_v18 = vld [vmem:[#allocation9 + $0x368] sm:$0xff]  ;;  %v1687_v20 = vperm.slane %v3664_v10, 0 }
 0x1d9   :  { %2332 = vmatpush.msra.mxu1 %v1265_v22  ;;  %2372 = vmatpush.msra.mxu3 %v1266_v23  ;;  %v2056_v30 = vpop.f32.mrf.mxu3  ;;  %v1357_v22 = vld [vmem:[#allocation9 + $0x1430] sm:$0xff]  ;;  %v1358_v23 = vld [vmem:[#allocation9 + $0x1438] sm:$0xff] }
 0x1da   :  { %2460 = vmatpush.msra.mxu0 %v1149_v24  ;;  %2500 = vmatpush.msra.mxu2 %v1150_v25  ;;  %v3660_v32 = vadd.f32 %v2056_v30, %v2037_v58  ;;  %v2076_v24 = vpop.f32.mrf.mxu0  ;;  %v789_v25 = vld [vmem:[#allocation9 + $0x270] sm:$0xff]  ;;  %v790_v58 = vld [vmem:[#allocation9 + $0x278] sm:$0xff] }
 0x1db   :  { %2333 = vmatpush.msra.mxu1 %v1235_v16  ;;  %2373 = vmatpush.msra.mxu3 %v1236_v26  ;;  %v1327_v16 = vld [vmem:[#allocation9 + $0x1340] sm:$0xff]  ;;  %v1328_v26 = vld [vmem:[#allocation9 + $0x1348] sm:$0xff]  ;;  %v2077_v30 = vadd.f32 %v2076_v24, %v1687_v20  ;;  %v941_v24 = vld [vmem:[#allocation9 + $0x730] sm:$0xff] }
 0x1dc   :  { %2461 = vmatpush.msra.mxu0 %v1119_v28  ;;  %2501 = vmatpush.msra.mxu2 %v1120_v29  ;;  %v759_v28 = vld [vmem:[#allocation9 + $0x180] sm:$0xff]  ;;  %v760_v29 = vld [vmem:[#allocation9 + $0x188] sm:$0xff] }
 0x1dd   :  { %2334 = vmatpush.msra.mxu1 %v1205_v27  ;;  %2374 = vmatpush.msra.mxu3 %v1206_v31  ;;  %v1297_v27 = vld [vmem:[#allocation9 + $0x1250] sm:$0xff]  ;;  %v1298_v31 = vld [vmem:[#allocation9 + $0x1258] sm:$0xff]  ;;  %v972_v20 = vld [vmem:[#allocation9 + $0x828] sm:$0xff] }
 0x1de   :  { %2335 = vmatmul.f32.vlgmr.msra.gmra.mxu1 %v3606_v21  ;;  %2375 = vmatmul.f32.vlgmr.msra.gmra.mxu3 %v3606_v21 }
 0x1df   :  { %2399 = vmatpush.msrb.mxu1 %v1657_v34  ;;  %2439 = vmatpush.msrb.mxu3 %v1658_v36  ;;  %v729_v34 = vld [vmem:[#allocation9 + $0x90] sm:$0xff]  ;;  %v730_v36 = vld [vmem:[#allocation9 + $0x98] sm:$0xff] }
 0x1e0   :  { %2462 = vmatpush.msra.mxu0 %v1089_v4  ;;  %2502 = vmatpush.msra.mxu2 %v1090_v38  ;;  %v1688_v38 = vperm.slane %v3664_v10, 1 }
 0x1e1   :  { %2400 = vmatpush.msrb.mxu1 %v1627_v39  ;;  %2440 = vmatpush.msrb.mxu3 %v1628_v42  ;;  %v2116_v42 = vpop.f32.mrf.mxu2 }
 0x1e2   :  { %2463 = vmatpush.msra.mxu0 %v1059_v43  ;;  %2503 = vmatpush.msra.mxu2 %v1060_v44  ;;  %v1181_v43 = vld [vmem:[#allocation9 + $0xeb0] sm:$0xff]  ;;  %v1182_v44 = vld [vmem:[#allocation9 + $0xeb8] sm:$0xff] }
 0x1e3   :  { %2401 = vmatpush.msrb.mxu1 %v1597_v46  ;;  %2441 = vmatpush.msrb.mxu3 %v1598_v33  ;;  %v1267_v46 = vld [vmem:[#allocation9 + $0x1160] sm:$0xff]  ;;  %v1268_v33 = vld [vmem:[#allocation9 + $0x1168] sm:$0xff] }
 0x1e4   :  { %2464 = vmatpush.msra.mxu0 %v1029_v47  ;;  %2504 = vmatpush.msra.mxu2 %v1030_v48  ;;  %v1151_v47 = vld [vmem:[#allocation9 + $0xdc0] sm:$0xff]  ;;  %v1152_v48 = vld [vmem:[#allocation9 + $0xdc8] sm:$0xff] }
 0x1e5   :  { %2402 = vmatpush.msrb.mxu1 %v1567_v49  ;;  %2442 = vmatpush.msrb.mxu3 %v1568_v50  ;;  %v2117_v49 = vadd.f32 %v2116_v42, %v1688_v38  ;;  %v1237_v50 = vld [vmem:[#allocation9 + $0x1070] sm:$0xff]  ;;  %v852_v38 = vld [vmem:[#allocation9 + $0x468] sm:$0xff] }
 0x1e6   :  { %2465 = vmatpush.msra.mxu0 %v999_v51  ;;  %2505 = vmatpush.msra.mxu2 %v1000_v53  ;;  %v1238_v51 = vld [vmem:[#allocation9 + $0x1078] sm:$0xff]  ;;  %v1121_v53 = vld [vmem:[#allocation9 + $0xcd0] sm:$0xff] }
 0x1e7   :  { %2403 = vmatpush.msrb.mxu1 %v1537_v54  ;;  %2443 = vmatpush.msrb.mxu3 %v1538_v55  ;;  %v1122_v54 = vld [vmem:[#allocation9 + $0xcd8] sm:$0xff]  ;;  %v1389_v42 = vld [vmem:[#allocation9 + $0x1530] sm:$0xff] }
 0x1e8   :  { %2466 = vmatpush.msra.mxu0 %v969_v56  ;;  %2506 = vmatpush.msra.mxu2 %v970_v57  ;;  %v1207_v56 = vld [vmem:[#allocation9 + $0xf80] sm:$0xff]  ;;  %v1208_v57 = vld [vmem:[#allocation9 + $0xf88] sm:$0xff] }
 0x1e9   :  { %2404 = vmatpush.msrb.mxu1 %v1507_v59  ;;  %2444 = vmatpush.msrb.mxu3 %v1508_v45  ;;  %v1659_v45 = vld [vmem:[#allocation9 + $0x1da0] sm:$0xff] }
 0x1ea   :  { %2467 = vmatpush.msra.mxu0 %v939_v62  ;;  %2507 = vmatpush.msra.mxu2 %v940_v40  ;;  %v1660_v62 = vld [vmem:[#allocation9 + $0x1da8] sm:$0xff]  ;;  %v1091_v40 = vld [vmem:[#allocation9 + $0xbe0] sm:$0xff] }
 0x1eb   :  { %2405 = vmatpush.msrb.mxu1 %v1477_v63  ;;  %2445 = vmatpush.msrb.mxu3 %v1478_v0  ;;  %v1092_v63 = vld [vmem:[#allocation9 + $0xbe8] sm:$0xff]  ;;  %v1629_v0 = vld [vmem:[#allocation9 + $0x1cb0] sm:$0xff] }
 0x1ec   :  { %2468 = vmatpush.msra.mxu0 %v909_v1  ;;  %2508 = vmatpush.msra.mxu2 %v910_v2  ;;  %v1630_v1 = vld [vmem:[#allocation9 + $0x1cb8] sm:$0xff]  ;;  %v1061_v2 = vld [vmem:[#allocation9 + $0xaf0] sm:$0xff] }
 0x1ed   :  { %2406 = vmatpush.msrb.mxu1 %v1447_v61  ;;  %2446 = vmatpush.msrb.mxu3 %v1448_v5  ;;  %v1062_v61 = vld [vmem:[#allocation9 + $0xaf8] sm:$0xff]  ;;  %v1599_v5 = vld [vmem:[#allocation9 + $0x1bc0] sm:$0xff] }
 0x1ee   :  { %2469 = vmatpush.msra.mxu0 %v879_v6  ;;  %2509 = vmatpush.msra.mxu2 %v880_v7  ;;  %v1600_v6 = vld [vmem:[#allocation9 + $0x1bc8] sm:$0xff]  ;;  %v1031_v7 = vld [vmem:[#allocation9 + $0xa00] sm:$0xff] }
 0x1ef   :  { %2407 = vmatpush.msrb.mxu1 %v1417_v8  ;;  %2447 = vmatpush.msrb.mxu3 %v1418_v9  ;;  %v1032_v8 = vld [vmem:[#allocation9 + $0xa08] sm:$0xff]  ;;  %v1569_v9 = vld [vmem:[#allocation9 + $0x1ad0] sm:$0xff] }
 0x1f0   :  { %2470 = vmatpush.msra.mxu0 %v849_v12  ;;  %2510 = vmatpush.msra.mxu2 %v850_v13  ;;  %v1570_v12 = vld [vmem:[#allocation9 + $0x1ad8] sm:$0xff]  ;;  %v1001_v13 = vld [vmem:[#allocation9 + $0x910] sm:$0xff] }
 0x1f1   :  { %2408 = vmatpush.msrb.mxu1 %v1387_v14  ;;  %2448 = vmatpush.msrb.mxu3 %v1388_v41  ;;  %v1002_v14 = vld [vmem:[#allocation9 + $0x918] sm:$0xff]  ;;  %v1539_v41 = vld [vmem:[#allocation9 + $0x19e0] sm:$0xff] }
 0x1f2   :  { %2471 = vmatpush.msra.mxu0 %v819_v17  ;;  %2511 = vmatpush.msra.mxu2 %v820_v18  ;;  %v1540_v17 = vld [vmem:[#allocation9 + $0x19e8] sm:$0xff]  ;;  %v971_v18 = vld [vmem:[#allocation9 + $0x820] sm:$0xff] }
 0x1f3   :  { %2409 = vmatpush.msrb.mxu1 %v1357_v22  ;;  %2449 = vmatpush.msrb.mxu3 %v1358_v23  ;;  %v1509_v22 = vld [vmem:[#allocation9 + $0x18f0] sm:$0xff]  ;;  %v1510_v23 = vld [vmem:[#allocation9 + $0x18f8] sm:$0xff] }
 0x1f4   :  { %2472 = vmatpush.msra.mxu0 %v789_v25  ;;  %2512 = vmatpush.msra.mxu2 %v790_v58  ;;  %v942_v25 = vld [vmem:[#allocation9 + $0x738] sm:$0xff]  ;;  %v1479_v58 = vld [vmem:[#allocation9 + $0x1800] sm:$0xff] }
 0x1f5   :  { %2410 = vmatpush.msrb.mxu1 %v1327_v16  ;;  %2450 = vmatpush.msrb.mxu3 %v1328_v26  ;;  %v2096_v4 = vpop.f32.mrf.mxu1  ;;  %v1480_v16 = vld [vmem:[#allocation9 + $0x1808] sm:$0xff]  ;;  %v911_v26 = vld [vmem:[#allocation9 + $0x640] sm:$0xff] }
 0x1f6   :  { %2473 = vmatpush.msra.mxu0 %v759_v28  ;;  %2513 = vmatpush.msra.mxu2 %v760_v29  ;;  %v3668_v39 = vadd.f32 %v2096_v4, %v2077_v30  ;;  %v912_v28 = vld [vmem:[#allocation9 + $0x648] sm:$0xff]  ;;  %v1449_v29 = vld [vmem:[#allocation9 + $0x1710] sm:$0xff]  ;;  %v1450_v30 = vld [vmem:[#allocation9 + $0x1718] sm:$0xff] }
 0x1f7   :  { %2411 = vmatpush.msrb.mxu1 %v1297_v27  ;;  %2451 = vmatpush.msrb.mxu3 %v1298_v31  ;;  %v881_v27 = vld [vmem:[#allocation9 + $0x550] sm:$0xff]  ;;  %v882_v31 = vld [vmem:[#allocation9 + $0x558] sm:$0xff]  ;;  %v851_v4 = vld [vmem:[#allocation9 + $0x460] sm:$0xff] }
 0x1f8   :  { %2474 = vmatpush.msra.mxu0 %v729_v34  ;;  %2514 = vmatpush.msra.mxu2 %v730_v36  ;;  %v1419_v34 = vld [vmem:[#allocation9 + $0x1620] sm:$0xff]  ;;  %v1420_v36 = vld [vmem:[#allocation9 + $0x1628] sm:$0xff] }
 0x1f9   :  { %2475 = vmatmul.f32.vlgmr.msra.gmra.mxu0 %v3599_v35  ;;  %2515 = vmatmul.f32.vlgmr.msra.gmra.mxu2 %v3599_v35 }
 0x1fa   :  { %2539 = vmatpush.msrb.mxu0 %v1181_v43  ;;  %2579 = vmatpush.msrb.mxu2 %v1182_v44  ;;  %v1390_v43 = vld [vmem:[#allocation9 + $0x1538] sm:$0xff]  ;;  %v821_v44 = vld [vmem:[#allocation9 + $0x370] sm:$0xff] }
 0x1fb   :  { %2412 = vmatpush.msrb.mxu1 %v1267_v46  ;;  %2452 = vmatpush.msrb.mxu3 %v1268_v33  ;;  %v2136_v55 = vpop.f32.mrf.mxu3  ;;  %v822_v46 = vld [vmem:[#allocation9 + $0x378] sm:$0xff]  ;;  %v1689_v33 = vperm.slane %v3664_v10, 2 }
 0x1fc   :  { %2540 = vmatpush.msrb.mxu0 %v1151_v47  ;;  %2580 = vmatpush.msrb.mxu2 %v1152_v48  ;;  %v3672_v59 = vadd.f32 %v2136_v55, %v2117_v49  ;;  %v1359_v47 = vld [vmem:[#allocation9 + $0x1440] sm:$0xff]  ;;  %v1360_v48 = vld [vmem:[#allocation9 + $0x1448] sm:$0xff]  ;;  %v2156_v49 = vpop.f32.mrf.mxu0  ;;  %v761_v55 = vld [vmem:[#allocation9 + $0x190] sm:$0xff] }
 0x1fd   :  { %2413 = vmatpush.msrb.mxu1 %v1237_v50  ;;  %2453 = vmatpush.msrb.mxu3 %v1238_v51  ;;  %v791_v50 = vld [vmem:[#allocation9 + $0x280] sm:$0xff]  ;;  %v792_v51 = vld [vmem:[#allocation9 + $0x288] sm:$0xff] }
 0x1fe   :  { %2541 = vmatpush.msrb.mxu0 %v1121_v53  ;;  %2581 = vmatpush.msrb.mxu2 %v1122_v54  ;;  %v1329_v53 = vld [vmem:[#allocation9 + $0x1350] sm:$0xff]  ;;  %v1330_v54 = vld [vmem:[#allocation9 + $0x1358] sm:$0xff] }
 0x1ff   :  { %2414 = vmatpush.msrb.mxu1 %v1207_v56  ;;  %2454 = vmatpush.msrb.mxu3 %v1208_v57  ;;  %v762_v56 = vld [vmem:[#allocation9 + $0x198] sm:$0xff]  ;;  %v2157_v57 = vadd.f32 %v2156_v49, %v1689_v33  ;;  %v1511_v49 = vld [vmem:[#allocation9 + $0x1900] sm:$0xff] }
 0x200   :  { %2415 = vmatmul.f32.vlgmr.msrb.gmra.mxu1 %v3606_v21  ;;  %2455 = vmatmul.f32.vlgmr.msrb.gmra.mxu3 %v3606_v21  ;;  %v1542_v33 = vld [vmem:[#allocation9 + $0x19f8] sm:$0xff] }
 0x201   :  { %2479 = vmatpush.msra.mxu1 %v1659_v45  ;;  %2519 = vmatpush.msra.mxu3 %v1660_v62  ;;  %v1299_v45 = vld [vmem:[#allocation9 + $0x1260] sm:$0xff]  ;;  %v1300_v62 = vld [vmem:[#allocation9 + $0x1268] sm:$0xff] }
 0x202   :  { %2542 = vmatpush.msrb.mxu0 %v1091_v40  ;;  %2582 = vmatpush.msrb.mxu2 %v1092_v63  ;;  %v731_v40 = vld [vmem:[#allocation9 + $0xa0] sm:$0xff]  ;;  %v732_v63 = vld [vmem:[#allocation9 + $0xa8] sm:$0xff] }
 0x203   :  { %2480 = vmatpush.msra.mxu1 %v1629_v0  ;;  %2520 = vmatpush.msra.mxu3 %v1630_v1  ;;  %v1690_v1 = vperm.slane %v3664_v10, 3 }
 0x204   :  { %2543 = vmatpush.msrb.mxu0 %v1061_v2  ;;  %2583 = vmatpush.msrb.mxu2 %v1062_v61  ;;  %v2196_v61 = vpop.f32.mrf.mxu2 }
 0x205   :  { %2481 = vmatpush.msra.mxu1 %v1599_v5  ;;  %2521 = vmatpush.msra.mxu3 %v1600_v6  ;;  %v1183_v5 = vld [vmem:[#allocation9 + $0xec0] sm:$0xff]  ;;  %v1184_v6 = vld [vmem:[#allocation9 + $0xec8] sm:$0xff] }
 0x206   :  { %2544 = vmatpush.msrb.mxu0 %v1031_v7  ;;  %2584 = vmatpush.msrb.mxu2 %v1032_v8  ;;  %v1269_v7 = vld [vmem:[#allocation9 + $0x1170] sm:$0xff]  ;;  %v1270_v8 = vld [vmem:[#allocation9 + $0x1178] sm:$0xff] }
 0x207   :  { %2482 = vmatpush.msra.mxu1 %v1569_v9  ;;  %2522 = vmatpush.msra.mxu3 %v1570_v12  ;;  %v1153_v9 = vld [vmem:[#allocation9 + $0xdd0] sm:$0xff]  ;;  %v1154_v12 = vld [vmem:[#allocation9 + $0xdd8] sm:$0xff] }
 0x208   :  { %2545 = vmatpush.msrb.mxu0 %v1001_v13  ;;  %2585 = vmatpush.msrb.mxu2 %v1002_v14  ;;  %v2197_v13 = vadd.f32 %v2196_v61, %v1690_v1  ;;  %v1239_v14 = vld [vmem:[#allocation9 + $0x1080] sm:$0xff]  ;;  %v1422_v1 = vld [vmem:[#allocation9 + $0x1638] sm:$0xff]  ;;  %v853_v61 = vld [vmem:[#allocation9 + $0x470] sm:$0xff] }
 0x209   :  { %2483 = vmatpush.msra.mxu1 %v1539_v41  ;;  %2523 = vmatpush.msra.mxu3 %v1540_v17  ;;  %v1240_v41 = vld [vmem:[#allocation9 + $0x1088] sm:$0xff]  ;;  %v1123_v17 = vld [vmem:[#allocation9 + $0xce0] sm:$0xff] }
 0x20a   :  { %2546 = vmatpush.msrb.mxu0 %v971_v18  ;;  %2586 = vmatpush.msrb.mxu2 %v972_v20  ;;  %v1124_v18 = vld [vmem:[#allocation9 + $0xce8] sm:$0xff] }
 0x20b   :  { %2484 = vmatpush.msra.mxu1 %v1509_v22  ;;  %2524 = vmatpush.msra.mxu3 %v1510_v23  ;;  %v1209_v22 = vld [vmem:[#allocation9 + $0xf90] sm:$0xff]  ;;  %v1210_v23 = vld [vmem:[#allocation9 + $0xf98] sm:$0xff] }
 0x20c   :  { %2547 = vmatpush.msrb.mxu0 %v941_v24  ;;  %2587 = vmatpush.msrb.mxu2 %v942_v25  ;;  %v1661_v25 = vld [vmem:[#allocation9 + $0x1db0] sm:$0xff] }
 0x20d   :  { %2485 = vmatpush.msra.mxu1 %v1479_v58  ;;  %2525 = vmatpush.msra.mxu3 %v1480_v16  ;;  %v1662_v58 = vld [vmem:[#allocation9 + $0x1db8] sm:$0xff]  ;;  %v1093_v16 = vld [vmem:[#allocation9 + $0xbf0] sm:$0xff] }
 0x20e   :  { %2548 = vmatpush.msrb.mxu0 %v911_v26  ;;  %2588 = vmatpush.msrb.mxu2 %v912_v28  ;;  %v1094_v26 = vld [vmem:[#allocation9 + $0xbf8] sm:$0xff]  ;;  %v1631_v28 = vld [vmem:[#allocation9 + $0x1cc0] sm:$0xff] }
 0x20f   :  { %2486 = vmatpush.msra.mxu1 %v1449_v29  ;;  %2526 = vmatpush.msra.mxu3 %v1450_v30  ;;  %v1632_v29 = vld [vmem:[#allocation9 + $0x1cc8] sm:$0xff]  ;;  %v1063_v30 = vld [vmem:[#allocation9 + $0xb00] sm:$0xff] }
 0x210   :  { %2549 = vmatpush.msrb.mxu0 %v881_v27  ;;  %2589 = vmatpush.msrb.mxu2 %v882_v31  ;;  %v1064_v27 = vld [vmem:[#allocation9 + $0xb08] sm:$0xff]  ;;  %v1601_v31 = vld [vmem:[#allocation9 + $0x1bd0] sm:$0xff] }
 0x211   :  { %2487 = vmatpush.msra.mxu1 %v1419_v34  ;;  %2527 = vmatpush.msra.mxu3 %v1420_v36  ;;  %v1602_v34 = vld [vmem:[#allocation9 + $0x1bd8] sm:$0xff]  ;;  %v1033_v36 = vld [vmem:[#allocation9 + $0xa10] sm:$0xff] }
 0x212   :  { %2550 = vmatpush.msrb.mxu0 %v851_v4  ;;  %2590 = vmatpush.msrb.mxu2 %v852_v38  ;;  %v1034_v4 = vld [vmem:[#allocation9 + $0xa18] sm:$0xff]  ;;  %v1571_v38 = vld [vmem:[#allocation9 + $0x1ae0] sm:$0xff] }
 0x213   :  { %2488 = vmatpush.msra.mxu1 %v1389_v42  ;;  %2528 = vmatpush.msra.mxu3 %v1390_v43  ;;  %v1572_v42 = vld [vmem:[#allocation9 + $0x1ae8] sm:$0xff]  ;;  %v1003_v43 = vld [vmem:[#allocation9 + $0x920] sm:$0xff] }
 0x214   :  { %2551 = vmatpush.msrb.mxu0 %v821_v44  ;;  %2591 = vmatpush.msrb.mxu2 %v822_v46  ;;  %v1004_v44 = vld [vmem:[#allocation9 + $0x928] sm:$0xff]  ;;  %v1541_v46 = vld [vmem:[#allocation9 + $0x19f0] sm:$0xff] }
 0x215   :  { %2489 = vmatpush.msra.mxu1 %v1359_v47  ;;  %2529 = vmatpush.msra.mxu3 %v1360_v48  ;;  %v973_v47 = vld [vmem:[#allocation9 + $0x830] sm:$0xff]  ;;  %v974_v48 = vld [vmem:[#allocation9 + $0x838] sm:$0xff] }
 0x216   :  { %2552 = vmatpush.msrb.mxu0 %v791_v50  ;;  %2592 = vmatpush.msrb.mxu2 %v792_v51  ;;  %v1512_v50 = vld [vmem:[#allocation9 + $0x1908] sm:$0xff]  ;;  %v943_v51 = vld [vmem:[#allocation9 + $0x740] sm:$0xff] }
 0x217   :  { %2490 = vmatpush.msra.mxu1 %v1329_v53  ;;  %2530 = vmatpush.msra.mxu3 %v1330_v54  ;;  %v2176_v0 = vpop.f32.mrf.mxu1  ;;  %v944_v53 = vld [vmem:[#allocation9 + $0x748] sm:$0xff]  ;;  %v1481_v54 = vld [vmem:[#allocation9 + $0x1810] sm:$0xff] }
 0x218   :  { %2553 = vmatpush.msrb.mxu0 %v761_v55  ;;  %2593 = vmatpush.msrb.mxu2 %v762_v56  ;;  %v3678_v2 = vadd.f32 %v2176_v0, %v2157_v57  ;;  %v1482_v55 = vld [vmem:[#allocation9 + $0x1818] sm:$0xff]  ;;  %v913_v56 = vld [vmem:[#allocation9 + $0x650] sm:$0xff] }
 0x219   :  { %2491 = vmatpush.msra.mxu1 %v1299_v45  ;;  %2531 = vmatpush.msra.mxu3 %v1300_v62  ;;  %v914_v57 = vld [vmem:[#allocation9 + $0x658] sm:$0xff]  ;;  %v1451_v45 = vld [vmem:[#allocation9 + $0x1720] sm:$0xff]  ;;  %v1452_v62 = vld [vmem:[#allocation9 + $0x1728] sm:$0xff] }
 0x21a   :  { %2554 = vmatpush.msrb.mxu0 %v731_v40  ;;  %2594 = vmatpush.msrb.mxu2 %v732_v63  ;;  %v883_v40 = vld [vmem:[#allocation9 + $0x560] sm:$0xff]  ;;  %v884_v63 = vld [vmem:[#allocation9 + $0x568] sm:$0xff]  ;;  %v1421_v0 = vld [vmem:[#allocation9 + $0x1630] sm:$0xff] }
 0x21b   :  { %2555 = vmatmul.f32.vlgmr.msrb.gmra.mxu0 %v3599_v35  ;;  %2595 = vmatmul.f32.vlgmr.msrb.gmra.mxu2 %v3599_v35 }
 0x21c   :  { %2619 = vmatpush.msra.mxu0 %v1183_v5  ;;  %2659 = vmatpush.msra.mxu2 %v1184_v6  ;;  %v854_v5 = vld [vmem:[#allocation9 + $0x478] sm:$0xff]  ;;  %v1391_v6 = vld [vmem:[#allocation9 + $0x1540] sm:$0xff] }
 0x21d   :  { %2492 = vmatpush.msra.mxu1 %v1269_v7  ;;  %2532 = vmatpush.msra.mxu3 %v1270_v8  ;;  %v2216_v20 = vpop.f32.mrf.mxu3  ;;  %v1392_v7 = vld [vmem:[#allocation9 + $0x1548] sm:$0xff]  ;;  %v823_v8 = vld [vmem:[#allocation9 + $0x380] sm:$0xff] }
 0x21e   :  { %2620 = vmatpush.msra.mxu0 %v1153_v9  ;;  %2660 = vmatpush.msra.mxu2 %v1154_v12  ;;  %v3682_v24 = vadd.f32 %v2216_v20, %v2197_v13  ;;  %v824_v9 = vld [vmem:[#allocation9 + $0x388] sm:$0xff]  ;;  %v1361_v12 = vld [vmem:[#allocation9 + $0x1450] sm:$0xff]  ;;  %v1362_v13 = vld [vmem:[#allocation9 + $0x1458] sm:$0xff] }
 0x21f   :  { %2493 = vmatpush.msra.mxu1 %v1239_v14  ;;  %2533 = vmatpush.msra.mxu3 %v1240_v41  ;;  %v793_v14 = vld [vmem:[#allocation9 + $0x290] sm:$0xff]  ;;  %v794_v41 = vld [vmem:[#allocation9 + $0x298] sm:$0xff]  ;;  %v763_v20 = vld [vmem:[#allocation9 + $0x1a0] sm:$0xff] }
 0x220   :  { %2621 = vmatpush.msra.mxu0 %v1123_v17  ;;  %2661 = vmatpush.msra.mxu2 %v1124_v18  ;;  %v1331_v17 = vld [vmem:[#allocation9 + $0x1360] sm:$0xff]  ;;  %v1332_v18 = vld [vmem:[#allocation9 + $0x1368] sm:$0xff] }
 0x221   :  { %2494 = vmatpush.msra.mxu1 %v1209_v22  ;;  %2534 = vmatpush.msra.mxu3 %v1210_v23  ;;  %v764_v22 = vld [vmem:[#allocation9 + $0x1a8] sm:$0xff]  ;;  %v1301_v23 = vld [vmem:[#allocation9 + $0x1270] sm:$0xff] }
 0x222   :  { %2495 = vmatmul.f32.vlgmr.msra.gmra.mxu1 %v3606_v21  ;;  %2535 = vmatmul.f32.vlgmr.msra.gmra.mxu3 %v3606_v21 }
 0x223   :  { %2559 = vmatpush.msrb.mxu1 %v1661_v25  ;;  %2599 = vmatpush.msrb.mxu3 %v1662_v58  ;;  %v1302_v25 = vld [vmem:[#allocation9 + $0x1278] sm:$0xff]  ;;  %v733_v58 = vld [vmem:[#allocation9 + $0xb0] sm:$0xff] }
 0x224   :  { %2622 = vmatpush.msra.mxu0 %v1093_v16  ;;  %2662 = vmatpush.msra.mxu2 %v1094_v26  ;;  %v734_v16 = vld [vmem:[#allocation9 + $0xb8] sm:$0xff]  ;;  %v1185_v26 = vld [vmem:[#allocation9 + $0xed0] sm:$0xff] }
 0x225   :  { %2560 = vmatpush.msrb.mxu1 %v1631_v28  ;;  %2600 = vmatpush.msrb.mxu3 %v1632_v29  ;;  %v1186_v28 = vld [vmem:[#allocation9 + $0xed8] sm:$0xff]  ;;  %v1271_v29 = vld [vmem:[#allocation9 + $0x1180] sm:$0xff] }
 0x226   :  { %2623 = vmatpush.msra.mxu0 %v1063_v30  ;;  %2663 = vmatpush.msra.mxu2 %v1064_v27  ;;  %v1272_v30 = vld [vmem:[#allocation9 + $0x1188] sm:$0xff]  ;;  %v1155_v27 = vld [vmem:[#allocation9 + $0xde0] sm:$0xff] }
 0x227   :  { %2561 = vmatpush.msrb.mxu1 %v1601_v31  ;;  %2601 = vmatpush.msrb.mxu3 %v1602_v34  ;;  %v1156_v31 = vld [vmem:[#allocation9 + $0xde8] sm:$0xff]  ;;  %v1241_v34 = vld [vmem:[#allocation9 + $0x1090] sm:$0xff] }
 0x228   :  { %2624 = vmatpush.msra.mxu0 %v1033_v36  ;;  %2664 = vmatpush.msra.mxu2 %v1034_v4  ;;  %v1242_v36 = vld [vmem:[#allocation9 + $0x1098] sm:$0xff]  ;;  %v1125_v4 = vld [vmem:[#allocation9 + $0xcf0] sm:$0xff] }
 0x229   :  { %2562 = vmatpush.msrb.mxu1 %v1571_v38  ;;  %2602 = vmatpush.msrb.mxu3 %v1572_v42  ;;  %v1126_v38 = vld [vmem:[#allocation9 + $0xcf8] sm:$0xff]  ;;  %v1211_v42 = vld [vmem:[#allocation9 + $0xfa0] sm:$0xff] }
 0x22a   :  { %2625 = vmatpush.msra.mxu0 %v1003_v43  ;;  %2665 = vmatpush.msra.mxu2 %v1004_v44  ;;  %v1212_v43 = vld [vmem:[#allocation9 + $0xfa8] sm:$0xff]  ;;  %v1663_v44 = vld [vmem:[#allocation9 + $0x1dc0] sm:$0xff] }
 0x22b   :  { %2563 = vmatpush.msrb.mxu1 %v1541_v46  ;;  %2603 = vmatpush.msrb.mxu3 %v1542_v33  ;;  %v1664_v46 = vld [vmem:[#allocation9 + $0x1dc8] sm:$0xff]  ;;  %v1095_v33 = vld [vmem:[#allocation9 + $0xc00] sm:$0xff] }
 0x22c   :  { %2626 = vmatpush.msra.mxu0 %v973_v47  ;;  %2666 = vmatpush.msra.mxu2 %v974_v48  ;;  %v1096_v47 = vld [vmem:[#allocation9 + $0xc08] sm:$0xff]  ;;  %v1633_v48 = vld [vmem:[#allocation9 + $0x1cd0] sm:$0xff] }
 0x22d   :  { %2564 = vmatpush.msrb.mxu1 %v1511_v49  ;;  %2604 = vmatpush.msrb.mxu3 %v1512_v50  ;;  %v1634_v49 = vld [vmem:[#allocation9 + $0x1cd8] sm:$0xff]  ;;  %v1065_v50 = vld [vmem:[#allocation9 + $0xb10] sm:$0xff] }
 0x22e   :  { %2627 = vmatpush.msra.mxu0 %v943_v51  ;;  %2667 = vmatpush.msra.mxu2 %v944_v53  ;;  %v1066_v51 = vld [vmem:[#allocation9 + $0xb18] sm:$0xff]  ;;  %v1603_v53 = vld [vmem:[#allocation9 + $0x1be0] sm:$0xff] }
 0x22f   :  { %2565 = vmatpush.msrb.mxu1 %v1481_v54  ;;  %2605 = vmatpush.msrb.mxu3 %v1482_v55  ;;  %v1604_v54 = vld [vmem:[#allocation9 + $0x1be8] sm:$0xff]  ;;  %v1035_v55 = vld [vmem:[#allocation9 + $0xa20] sm:$0xff] }
 0x230   :  { %2628 = vmatpush.msra.mxu0 %v913_v56  ;;  %2668 = vmatpush.msra.mxu2 %v914_v57  ;;  %v1036_v56 = vld [vmem:[#allocation9 + $0xa28] sm:$0xff]  ;;  %v1573_v57 = vld [vmem:[#allocation9 + $0x1af0] sm:$0xff] }
 0x231   :  { %2566 = vmatpush.msrb.mxu1 %v1451_v45  ;;  %2606 = vmatpush.msrb.mxu3 %v1452_v62  ;;  %v1574_v45 = vld [vmem:[#allocation9 + $0x1af8] sm:$0xff]  ;;  %v1005_v62 = vld [vmem:[#allocation9 + $0x930] sm:$0xff] }
 0x232   :  { %2629 = vmatpush.msra.mxu0 %v883_v40  ;;  %2669 = vmatpush.msra.mxu2 %v884_v63  ;;  %v1006_v40 = vld [vmem:[#allocation9 + $0x938] sm:$0xff]  ;;  %v1543_v63 = vld [vmem:[#allocation9 + $0x1a00] sm:$0xff] }
 0x233   :  { %2567 = vmatpush.msrb.mxu1 %v1421_v0  ;;  %2607 = vmatpush.msrb.mxu3 %v1422_v1  ;;  %v1544_v0 = vld [vmem:[#allocation9 + $0x1a08] sm:$0xff]  ;;  %v975_v1 = vld [vmem:[#allocation9 + $0x840] sm:$0xff] }
 0x234   :  { %2630 = vmatpush.msra.mxu0 %v853_v61  ;;  %2670 = vmatpush.msra.mxu2 %v854_v5  ;;  %v976_v61 = vld [vmem:[#allocation9 + $0x848] sm:$0xff]  ;;  %v1513_v5 = vld [vmem:[#allocation9 + $0x1910] sm:$0xff] }
 0x235   :  { %2568 = vmatpush.msrb.mxu1 %v1391_v6  ;;  %2608 = vmatpush.msrb.mxu3 %v1392_v7  ;;  %v1514_v6 = vld [vmem:[#allocation9 + $0x1918] sm:$0xff]  ;;  %v945_v7 = vld [vmem:[#allocation9 + $0x750] sm:$0xff] }
 0x236   :  { %2631 = vmatpush.msra.mxu0 %v823_v8  ;;  %2671 = vmatpush.msra.mxu2 %v824_v9  ;;  %v946_v8 = vld [vmem:[#allocation9 + $0x758] sm:$0xff]  ;;  %v1483_v9 = vld [vmem:[#allocation9 + $0x1820] sm:$0xff] }
 0x237   :  { %2569 = vmatpush.msrb.mxu1 %v1361_v12  ;;  %2609 = vmatpush.msrb.mxu3 %v1362_v13  ;;  %v1484_v12 = vld [vmem:[#allocation9 + $0x1828] sm:$0xff]  ;;  %v3690_v13 = vpop.f32.mrf.mxu0 }
 0x238   :  { %2632 = vmatpush.msra.mxu0 %v793_v14  ;;  %2672 = vmatpush.msra.mxu2 %v794_v41  ;;  %v915_v14 = vld [vmem:[#allocation9 + $0x660] sm:$0xff]  ;;  %v916_v41 = vld [vmem:[#allocation9 + $0x668] sm:$0xff] }
 0x239   :  { %2570 = vmatpush.msrb.mxu1 %v1331_v17  ;;  %2610 = vmatpush.msrb.mxu3 %v1332_v18  ;;  %v1453_v17 = vld [vmem:[#allocation9 + $0x1730] sm:$0xff]  ;;  %v1454_v18 = vld [vmem:[#allocation9 + $0x1738] sm:$0xff] }
 0x23a   :  { %2633 = vmatpush.msra.mxu0 %v763_v20  ;;  %2673 = vmatpush.msra.mxu2 %v764_v22  ;;  %v885_v20 = vld [vmem:[#allocation9 + $0x570] sm:$0xff]  ;;  %v886_v22 = vld [vmem:[#allocation9 + $0x578] sm:$0xff] }
 0x23b   :  { %2571 = vmatpush.msrb.mxu1 %v1301_v23  ;;  %2611 = vmatpush.msrb.mxu3 %v1302_v25  ;;  %v1423_v23 = vld [vmem:[#allocation9 + $0x1640] sm:$0xff]  ;;  %v1424_v25 = vld [vmem:[#allocation9 + $0x1648] sm:$0xff] }
 0x23c   :  { %2634 = vmatpush.msra.mxu0 %v733_v58  ;;  %2674 = vmatpush.msra.mxu2 %v734_v16  ;;  %v3692_v58 = vpop.f32.mrf.mxu1  ;;  %v855_v16 = vld [vmem:[#allocation9 + $0x480] sm:$0xff] }
 0x23d   :  { %2635 = vmatmul.f32.vlgmr.msra.gmra.mxu0 %v3599_v35  ;;  %2675 = vmatmul.f32.vlgmr.msra.gmra.mxu2 %v3599_v35 }
 0x23e   :  { %2699 = vmatpush.msrb.mxu0 %v1185_v26  ;;  %2739 = vmatpush.msrb.mxu2 %v1186_v28  ;;  %v856_v26 = vld [vmem:[#allocation9 + $0x488] sm:$0xff]  ;;  %v1393_v28 = vld [vmem:[#allocation9 + $0x1550] sm:$0xff] }
 0x23f   :  { %2572 = vmatpush.msrb.mxu1 %v1271_v29  ;;  %2612 = vmatpush.msrb.mxu3 %v1272_v30  ;;  %v1394_v29 = vld [vmem:[#allocation9 + $0x1558] sm:$0xff]  ;;  %v3694_v30 = vpop.f32.mrf.mxu2 }
 0x240   :  { %2700 = vmatpush.msrb.mxu0 %v1155_v27  ;;  %2740 = vmatpush.msrb.mxu2 %v1156_v31  ;;  %v825_v27 = vld [vmem:[#allocation9 + $0x390] sm:$0xff]  ;;  %v826_v31 = vld [vmem:[#allocation9 + $0x398] sm:$0xff] }
 0x241   :  { %2573 = vmatpush.msrb.mxu1 %v1241_v34  ;;  %2613 = vmatpush.msrb.mxu3 %v1242_v36  ;;  %v1693_v34 = vperm.slane %v3664_v10, 6  ;;  %v1363_v36 = vld [vmem:[#allocation9 + $0x1460] sm:$0xff] }
 0x242   :  { %2701 = vmatpush.msrb.mxu0 %v1125_v4  ;;  %2741 = vmatpush.msrb.mxu2 %v1126_v38  ;;  %v1364_v4 = vld [vmem:[#allocation9 + $0x1468] sm:$0xff]  ;;  %v2316_v38 = vpop.f32.mrf.mxu0 }
 0x243   :  { %2574 = vmatpush.msrb.mxu1 %v1211_v42  ;;  %2614 = vmatpush.msrb.mxu3 %v1212_v43  ;;  %v795_v42 = vld [vmem:[#allocation9 + $0x2a0] sm:$0xff]  ;;  %v796_v43 = vld [vmem:[#allocation9 + $0x2a8] sm:$0xff] }
 0x244   :  { %2575 = vmatmul.f32.vlgmr.msrb.gmra.mxu1 %v3606_v21  ;;  %2615 = vmatmul.f32.vlgmr.msrb.gmra.mxu3 %v3606_v21 }
 0x245   :  { %2639 = vmatpush.msra.mxu1 %v1663_v44  ;;  %2679 = vmatpush.msra.mxu3 %v1664_v46  ;;  %v1333_v44 = vld [vmem:[#allocation9 + $0x1370] sm:$0xff]  ;;  %v1334_v46 = vld [vmem:[#allocation9 + $0x1378] sm:$0xff] }
 0x246   :  { %2702 = vmatpush.msrb.mxu0 %v1095_v33  ;;  %2742 = vmatpush.msrb.mxu2 %v1096_v47  ;;  %v3697_v33 = vpop.f32.mrf.mxu3  ;;  %v765_v47 = vld [vmem:[#allocation9 + $0x1b0] sm:$0xff] }
 0x247   :  { %2640 = vmatpush.msra.mxu1 %v1633_v48  ;;  %2680 = vmatpush.msra.mxu3 %v1634_v49  ;;  %v766_v48 = vld [vmem:[#allocation9 + $0x1b8] sm:$0xff]  ;;  %v2317_v49 = vadd.f32 %v2316_v38, %v1693_v34  ;;  %v1575_v38 = vld [vmem:[#allocation9 + $0x1b00] sm:$0xff] }
 0x248   :  { %2703 = vmatpush.msrb.mxu0 %v1065_v50  ;;  %2743 = vmatpush.msrb.mxu2 %v1066_v51  ;;  %v1303_v50 = vld [vmem:[#allocation9 + $0x1280] sm:$0xff]  ;;  %v1304_v51 = vld [vmem:[#allocation9 + $0x1288] sm:$0xff]  ;;  %v1606_v34 = vld [vmem:[#allocation9 + $0x1bf8] sm:$0xff] }
 0x249   :  { %2641 = vmatpush.msra.mxu1 %v1603_v53  ;;  %2681 = vmatpush.msra.mxu3 %v1604_v54  ;;  %v735_v53 = vld [vmem:[#allocation9 + $0xc0] sm:$0xff]  ;;  %v736_v54 = vld [vmem:[#allocation9 + $0xc8] sm:$0xff] }
 0x24a   :  { %2704 = vmatpush.msrb.mxu0 %v1035_v55  ;;  %2744 = vmatpush.msrb.mxu2 %v1036_v56  ;;  %v1694_v56 = vperm.slane %v3664_v10, 7  ;;  %v1158_v10 = vld [vmem:[#allocation9 + $0xdf8] sm:$0xff] }
 0x24b   :  { %2642 = vmatpush.msra.mxu1 %v1573_v57  ;;  %2682 = vmatpush.msra.mxu3 %v1574_v45  ;;  %v2356_v45 = vpop.f32.mrf.mxu2 }
 0x24c   :  { %2705 = vmatpush.msrb.mxu0 %v1005_v62  ;;  %2745 = vmatpush.msrb.mxu2 %v1006_v40  ;;  %v1187_v62 = vld [vmem:[#allocation9 + $0xee0] sm:$0xff]  ;;  %v1188_v40 = vld [vmem:[#allocation9 + $0xee8] sm:$0xff] }
 0x24d   :  { %2643 = vmatpush.msra.mxu1 %v1543_v63  ;;  %2683 = vmatpush.msra.mxu3 %v1544_v0  ;;  %v1273_v63 = vld [vmem:[#allocation9 + $0x1190] sm:$0xff]  ;;  %v1274_v0 = vld [vmem:[#allocation9 + $0x1198] sm:$0xff] }
 0x24e   :  { %2706 = vmatpush.msrb.mxu0 %v975_v1  ;;  %2746 = vmatpush.msrb.mxu2 %v976_v61  ;;  %v1157_v61 = vld [vmem:[#allocation9 + $0xdf0] sm:$0xff] }
 0x24f   :  { %2644 = vmatpush.msra.mxu1 %v1513_v5  ;;  %2684 = vmatpush.msra.mxu3 %v1514_v6  ;;  %v2357_v5 = vadd.f32 %v2356_v45, %v1694_v56  ;;  %v1243_v6 = vld [vmem:[#allocation9 + $0x10a0] sm:$0xff]  ;;  %v917_v56 = vld [vmem:[#allocation9 + $0x670] sm:$0xff] }
 0x250   :  { %2707 = vmatpush.msrb.mxu0 %v945_v7  ;;  %2747 = vmatpush.msrb.mxu2 %v946_v8  ;;  %v1244_v7 = vld [vmem:[#allocation9 + $0x10a8] sm:$0xff]  ;;  %v1455_v45 = vld [vmem:[#allocation9 + $0x1740] sm:$0xff] }
 0x251   :  { %2645 = vmatpush.msra.mxu1 %v1483_v9  ;;  %2685 = vmatpush.msra.mxu3 %v1484_v12  ;;  %v1127_v9 = vld [vmem:[#allocation9 + $0xd00] sm:$0xff]  ;;  %v1128_v12 = vld [vmem:[#allocation9 + $0xd08] sm:$0xff] }
 0x252   :  { %2708 = vmatpush.msrb.mxu0 %v915_v14  ;;  %2748 = vmatpush.msrb.mxu2 %v916_v41  ;;  %v1213_v41 = vld [vmem:[#allocation9 + $0xfb0] sm:$0xff] }
 0x253   :  { %2646 = vmatpush.msra.mxu1 %v1453_v17  ;;  %2686 = vmatpush.msra.mxu3 %v1454_v18  ;;  %v1214_v17 = vld [vmem:[#allocation9 + $0xfb8] sm:$0xff] }
 0x254   :  { %2709 = vmatpush.msrb.mxu0 %v885_v20  ;;  %2749 = vmatpush.msrb.mxu2 %v886_v22  ;;  %v1665_v20 = vld [vmem:[#allocation9 + $0x1dd0] sm:$0xff]  ;;  %v1666_v22 = vld [vmem:[#allocation9 + $0x1dd8] sm:$0xff] }
 0x255   :  { %2647 = vmatpush.msra.mxu1 %v1423_v23  ;;  %2687 = vmatpush.msra.mxu3 %v1424_v25  ;;  %v1098_v25 = vld [vmem:[#allocation9 + $0xc18] sm:$0xff] }
 0x256   :  { %2710 = vmatpush.msrb.mxu0 %v855_v16  ;;  %2750 = vmatpush.msrb.mxu2 %v856_v26  ;;  %v1635_v16 = vld [vmem:[#allocation9 + $0x1ce0] sm:$0xff]  ;;  %v1636_v26 = vld [vmem:[#allocation9 + $0x1ce8] sm:$0xff] }
 0x257   :  { %2648 = vmatpush.msra.mxu1 %v1393_v28  ;;  %2688 = vmatpush.msra.mxu3 %v1394_v29  ;;  %v1067_v29 = vld [vmem:[#allocation9 + $0xb20] sm:$0xff] }
 0x258   :  { %2711 = vmatpush.msrb.mxu0 %v825_v27  ;;  %2751 = vmatpush.msrb.mxu2 %v826_v31  ;;  %v1068_v27 = vld [vmem:[#allocation9 + $0xb28] sm:$0xff]  ;;  %v1605_v31 = vld [vmem:[#allocation9 + $0x1bf0] sm:$0xff] }
 0x259   :  { %2649 = vmatpush.msra.mxu1 %v1363_v36  ;;  %2689 = vmatpush.msra.mxu3 %v1364_v4  ;;  %v1037_v36 = vld [vmem:[#allocation9 + $0xa30] sm:$0xff]  ;;  %v1038_v4 = vld [vmem:[#allocation9 + $0xa38] sm:$0xff] }
 0x25a   :  { %2712 = vmatpush.msrb.mxu0 %v795_v42  ;;  %2752 = vmatpush.msrb.mxu2 %v796_v43  ;;  %v1576_v42 = vld [vmem:[#allocation9 + $0x1b08] sm:$0xff] }
 0x25b   :  { %2650 = vmatpush.msra.mxu1 %v1333_v44  ;;  %2690 = vmatpush.msra.mxu3 %v1334_v46  ;;  %v2336_v55 = vpop.f32.mrf.mxu1  ;;  %v1008_v43 = vld [vmem:[#allocation9 + $0x948] sm:$0xff]  ;;  %v1545_v44 = vld [vmem:[#allocation9 + $0x1a10] sm:$0xff]  ;;  %v1546_v46 = vld [vmem:[#allocation9 + $0x1a18] sm:$0xff] }
 0x25c   :  { %2713 = vmatpush.msrb.mxu0 %v765_v47  ;;  %2753 = vmatpush.msrb.mxu2 %v766_v48  ;;  %v2337_v57 = vadd.f32 %v2336_v55, %v2317_v49  ;;  %v977_v47 = vld [vmem:[#allocation9 + $0x850] sm:$0xff]  ;;  %v978_v48 = vld [vmem:[#allocation9 + $0x858] sm:$0xff]  ;;  %v1515_v49 = vld [vmem:[#allocation9 + $0x1920] sm:$0xff] }
 0x25d   :  { %2651 = vmatpush.msra.mxu1 %v1303_v50  ;;  %2691 = vmatpush.msra.mxu3 %v1304_v51  ;;  %v1516_v50 = vld [vmem:[#allocation9 + $0x1928] sm:$0xff]  ;;  %v947_v51 = vld [vmem:[#allocation9 + $0x760] sm:$0xff]  ;;  %v1486_v55 = vld [vmem:[#allocation9 + $0x1838] sm:$0xff] }
 0x25e   :  { %2714 = vmatpush.msrb.mxu0 %v735_v53  ;;  %2754 = vmatpush.msrb.mxu2 %v736_v54  ;;  %v2992_v1 = vrot.slane %v2337_v57, 4  ;;  %v948_v53 = vld [vmem:[#allocation9 + $0x768] sm:$0xff]  ;;  %v1485_v54 = vld [vmem:[#allocation9 + $0x1830] sm:$0xff]  ;;  %v918_v57 = vld [vmem:[#allocation9 + $0x678] sm:$0xff] }
 0x25f   :  { %2715 = vmatmul.f32.vlgmr.msrb.gmra.mxu0 %v3599_v35  ;;  %2755 = vmatmul.f32.vlgmr.msrb.gmra.mxu2 %v3599_v35 }
 0x260   :  { %2779 = vmatpush.msra.mxu0 %v1187_v62  ;;  %2819 = vmatpush.msra.mxu2 %v1188_v40  ;;  %v3704_v8 = vsel %vm2940_vm2, %v2992_v1, %v3638_v52  ;;  %v1097_v52 = vld [vmem:[#allocation9 + $0xc10] sm:$0xff]  ;;  %v1456_v62 = vld [vmem:[#allocation9 + $0x1748] sm:$0xff]  ;;  %v887_v40 = vld [vmem:[#allocation9 + $0x580] sm:$0xff] }
 0x261   :  { %2652 = vmatpush.msra.mxu1 %v1273_v63  ;;  %2692 = vmatpush.msra.mxu3 %v1274_v0  ;;  %v2376_v14 = vpop.f32.mrf.mxu3  ;;  %v888_v63 = vld [vmem:[#allocation9 + $0x588] sm:$0xff]  ;;  %v1425_v0 = vld [vmem:[#allocation9 + $0x1650] sm:$0xff]  ;;  %v1426_v1 = vld [vmem:[#allocation9 + $0x1658] sm:$0xff] }
 0x262   :  { %2780 = vmatpush.msra.mxu0 %v1157_v61  ;;  %2820 = vmatpush.msra.mxu2 %v1158_v10  ;;  %v2377_v18 = vadd.f32 %v2376_v14, %v2357_v5  ;;  %v3712_v61 = vld [vmem:[#allocation10 + $0x10] sm:$0xff]  ;;  %v858_v5 = vld [vmem:[#allocation9 + $0x498] sm:$0xff] }
 0x263   :  { %2653 = vmatpush.msra.mxu1 %v1243_v6  ;;  %2693 = vmatpush.msra.mxu3 %v1244_v7  ;;  %v857_v10 = vld [vmem:[#allocation9 + $0x490] sm:$0xff]  ;;  %v1395_v6 = vld [vmem:[#allocation9 + $0x1560] sm:$0xff]  ;;  %v1396_v7 = vld [vmem:[#allocation9 + $0x1568] sm:$0xff]  ;;  %v1695_v14 = vperm.slane %v3712_v61, 0 }
 0x264   :  { %2781 = vmatpush.msra.mxu0 %v1127_v9  ;;  %2821 = vmatpush.msra.mxu2 %v1128_v12  ;;  %v3018_v23 = vrot.slane %v2377_v18, 4  ;;  %v827_v9 = vld [vmem:[#allocation9 + $0x3a0] sm:$0xff]  ;;  %v828_v12 = vld [vmem:[#allocation9 + $0x3a8] sm:$0xff]  ;;  %v2396_v18 = vpop.f32.mrf.mxu0 }
 0x265   :  { %2654 = vmatpush.msra.mxu1 %v1213_v41  ;;  %2694 = vmatpush.msra.mxu3 %v1214_v17  ;;  %v1365_v41 = vld [vmem:[#allocation9 + $0x1470] sm:$0xff]  ;;  %v1366_v17 = vld [vmem:[#allocation9 + $0x1478] sm:$0xff] }
 0x266   :  { %2655 = vmatmul.f32.vlgmr.msra.gmra.mxu1 %v3606_v21  ;;  %2695 = vmatmul.f32.vlgmr.msra.gmra.mxu3 %v3606_v21  ;;  %v3710_v28 = vsel %vm2940_vm2, %v3018_v23, %v3642_v3  ;;  %v1007_v3 = vld [vmem:[#allocation9 + $0x940] sm:$0xff] }
 0x267   :  { %2719 = vmatpush.msrb.mxu1 %v1665_v20  ;;  %2759 = vmatpush.msrb.mxu3 %v1666_v22  ;;  %v797_v20 = vld [vmem:[#allocation9 + $0x2b0] sm:$0xff]  ;;  %v798_v22 = vld [vmem:[#allocation9 + $0x2b8] sm:$0xff]  ;;  %v1335_v23 = vld [vmem:[#allocation9 + $0x1380] sm:$0xff] }
 0x268   :  { %2782 = vmatpush.msra.mxu0 %v1097_v52  ;;  %2822 = vmatpush.msra.mxu2 %v1098_v25  ;;  %v1336_v52 = vld [vmem:[#allocation9 + $0x1388] sm:$0xff]  ;;  %v767_v25 = vld [vmem:[#allocation9 + $0x1c0] sm:$0xff] }
 0x269   :  { %2720 = vmatpush.msrb.mxu1 %v1635_v16  ;;  %2760 = vmatpush.msrb.mxu3 %v1636_v26  ;;  %v768_v16 = vld [vmem:[#allocation9 + $0x1c8] sm:$0xff]  ;;  %v2397_v26 = vadd.f32 %v2396_v18, %v1695_v14  ;;  %v1607_v14 = vld [vmem:[#allocation9 + $0x1c00] sm:$0xff] }
 0x26a   :  { %2783 = vmatpush.msra.mxu0 %v1067_v29  ;;  %2823 = vmatpush.msra.mxu2 %v1068_v27  ;;  %v1305_v29 = vld [vmem:[#allocation9 + $0x1290] sm:$0xff]  ;;  %v1306_v27 = vld [vmem:[#allocation9 + $0x1298] sm:$0xff]  ;;  %v1040_v18 = vld [vmem:[#allocation9 + $0xa48] sm:$0xff] }
 0x26b   :  { %2721 = vmatpush.msrb.mxu1 %v1605_v31  ;;  %2761 = vmatpush.msrb.mxu3 %v1606_v34  ;;  %v737_v31 = vld [vmem:[#allocation9 + $0xd0] sm:$0xff]  ;;  %v738_v34 = vld [vmem:[#allocation9 + $0xd8] sm:$0xff] }
 0x26c   :  { %2784 = vmatpush.msra.mxu0 %v1037_v36  ;;  %2824 = vmatpush.msra.mxu2 %v1038_v4  ;;  %v1696_v4 = vperm.slane %v3712_v61, 1 }
 0x26d   :  { %2722 = vmatpush.msrb.mxu1 %v1575_v38  ;;  %2762 = vmatpush.msrb.mxu3 %v1576_v42  ;;  %v2436_v42 = vpop.f32.mrf.mxu2 }
 0x26e   :  { %2785 = vmatpush.msra.mxu0 %v1007_v3  ;;  %2825 = vmatpush.msra.mxu2 %v1008_v43  ;;  %v1189_v3 = vld [vmem:[#allocation9 + $0xef0] sm:$0xff]  ;;  %v1190_v43 = vld [vmem:[#allocation9 + $0xef8] sm:$0xff] }
 0x26f   :  { %2723 = vmatpush.msrb.mxu1 %v1545_v44  ;;  %2763 = vmatpush.msrb.mxu3 %v1546_v46  ;;  %v1275_v44 = vld [vmem:[#allocation9 + $0x11a0] sm:$0xff]  ;;  %v1276_v46 = vld [vmem:[#allocation9 + $0x11a8] sm:$0xff] }
 0x270   :  { %2786 = vmatpush.msra.mxu0 %v977_v47  ;;  %2826 = vmatpush.msra.mxu2 %v978_v48  ;;  %v1159_v48 = vld [vmem:[#allocation9 + $0xe00] sm:$0xff] }
 0x271   :  { %2724 = vmatpush.msrb.mxu1 %v1515_v49  ;;  %2764 = vmatpush.msrb.mxu3 %v1516_v50  ;;  %v1160_v49 = vld [vmem:[#allocation9 + $0xe08] sm:$0xff]  ;;  %v2437_v50 = vadd.f32 %v2436_v42, %v1696_v4 }
 0x272   :  { %2787 = vmatpush.msra.mxu0 %v947_v51  ;;  %2827 = vmatpush.msra.mxu2 %v948_v53  ;;  %v1245_v51 = vld [vmem:[#allocation9 + $0x10b0] sm:$0xff]  ;;  %v1246_v53 = vld [vmem:[#allocation9 + $0x10b8] sm:$0xff]  ;;  %v1488_v4 = vld [vmem:[#allocation9 + $0x1848] sm:$0xff] }
 0x273   :  { %2725 = vmatpush.msrb.mxu1 %v1485_v54  ;;  %2765 = vmatpush.msrb.mxu3 %v1486_v55  ;;  %v1129_v55 = vld [vmem:[#allocation9 + $0xd10] sm:$0xff]  ;;  %v920_v42 = vld [vmem:[#allocation9 + $0x688] sm:$0xff] }
 0x274   :  { %2788 = vmatpush.msra.mxu0 %v917_v56  ;;  %2828 = vmatpush.msra.mxu2 %v918_v57  ;;  %v1130_v56 = vld [vmem:[#allocation9 + $0xd18] sm:$0xff] }
 0x275   :  { %2726 = vmatpush.msrb.mxu1 %v1455_v45  ;;  %2766 = vmatpush.msrb.mxu3 %v1456_v62  ;;  %v1215_v45 = vld [vmem:[#allocation9 + $0xfc0] sm:$0xff]  ;;  %v1216_v62 = vld [vmem:[#allocation9 + $0xfc8] sm:$0xff] }
 0x276   :  { %2789 = vmatpush.msra.mxu0 %v887_v40  ;;  %2829 = vmatpush.msra.mxu2 %v888_v63  ;;  %v1667_v63 = vld [vmem:[#allocation9 + $0x1de0] sm:$0xff] }
 0x277   :  { %2727 = vmatpush.msrb.mxu1 %v1425_v0  ;;  %2767 = vmatpush.msrb.mxu3 %v1426_v1  ;;  %v1668_v0 = vld [vmem:[#allocation9 + $0x1de8] sm:$0xff] }
 0x278   :  { %2790 = vmatpush.msra.mxu0 %v857_v10  ;;  %2830 = vmatpush.msra.mxu2 %v858_v5  ;;  %v1100_v10 = vld [vmem:[#allocation9 + $0xc28] sm:$0xff]  ;;  %v1637_v5 = vld [vmem:[#allocation9 + $0x1cf0] sm:$0xff] }
 0x279   :  { %2728 = vmatpush.msrb.mxu1 %v1395_v6  ;;  %2768 = vmatpush.msrb.mxu3 %v1396_v7  ;;  %v1638_v6 = vld [vmem:[#allocation9 + $0x1cf8] sm:$0xff] }
 0x27a   :  { %2791 = vmatpush.msra.mxu0 %v827_v9  ;;  %2831 = vmatpush.msra.mxu2 %v828_v12  ;;  %v1069_v9 = vld [vmem:[#allocation9 + $0xb30] sm:$0xff]  ;;  %v1070_v12 = vld [vmem:[#allocation9 + $0xb38] sm:$0xff] }
 0x27b   :  { %2729 = vmatpush.msrb.mxu1 %v1365_v41  ;;  %2769 = vmatpush.msrb.mxu3 %v1366_v17  ;;  %v1608_v41 = vld [vmem:[#allocation9 + $0x1c08] sm:$0xff]  ;;  %v1039_v17 = vld [vmem:[#allocation9 + $0xa40] sm:$0xff] }
 0x27c   :  { %2792 = vmatpush.msra.mxu0 %v797_v20  ;;  %2832 = vmatpush.msra.mxu2 %v798_v22  ;;  %v1577_v20 = vld [vmem:[#allocation9 + $0x1b10] sm:$0xff]  ;;  %v1578_v22 = vld [vmem:[#allocation9 + $0x1b18] sm:$0xff] }
 0x27d   :  { %2730 = vmatpush.msrb.mxu1 %v1335_v23  ;;  %2770 = vmatpush.msrb.mxu3 %v1336_v52  ;;  %v2416_v36 = vpop.f32.mrf.mxu1  ;;  %v1010_v23 = vld [vmem:[#allocation9 + $0x958] sm:$0xff]  ;;  %v1547_v52 = vld [vmem:[#allocation9 + $0x1a20] sm:$0xff] }
 0x27e   :  { %2793 = vmatpush.msra.mxu0 %v767_v25  ;;  %2833 = vmatpush.msra.mxu2 %v768_v16  ;;  %v2417_v38 = vadd.f32 %v2416_v36, %v2397_v26  ;;  %v1548_v25 = vld [vmem:[#allocation9 + $0x1a28] sm:$0xff]  ;;  %v979_v16 = vld [vmem:[#allocation9 + $0x860] sm:$0xff] }
 0x27f   :  { %2731 = vmatpush.msrb.mxu1 %v1305_v29  ;;  %2771 = vmatpush.msrb.mxu3 %v1306_v27  ;;  %v980_v26 = vld [vmem:[#allocation9 + $0x868] sm:$0xff]  ;;  %v1517_v29 = vld [vmem:[#allocation9 + $0x1930] sm:$0xff]  ;;  %v1518_v27 = vld [vmem:[#allocation9 + $0x1938] sm:$0xff] }
 0x280   :  { %2794 = vmatpush.msra.mxu0 %v737_v31  ;;  %2834 = vmatpush.msra.mxu2 %v738_v34  ;;  %v3044_v47 = vrot.slane %v2417_v38, 4  ;;  %v949_v31 = vld [vmem:[#allocation9 + $0x770] sm:$0xff]  ;;  %v950_v34 = vld [vmem:[#allocation9 + $0x778] sm:$0xff]  ;;  %v1487_v36 = vld [vmem:[#allocation9 + $0x1840] sm:$0xff] }
 0x281   :  { %2795 = vmatmul.f32.vlgmr.msra.gmra.mxu0 %v3599_v35  ;;  %2835 = vmatmul.f32.vlgmr.msra.gmra.mxu2 %v3599_v35  ;;  %v919_v38 = vld [vmem:[#allocation9 + $0x680] sm:$0xff] }
 0x282   :  { %2859 = vmatpush.msrb.mxu0 %v1189_v3  ;;  %2899 = vmatpush.msrb.mxu2 %v1190_v43  ;;  %v3720_v54 = vsel %vm2940_vm2, %v3044_v47, %v3646_v60  ;;  %v1099_v60 = vld [vmem:[#allocation9 + $0xc20] sm:$0xff]  ;;  %v1457_v3 = vld [vmem:[#allocation9 + $0x1750] sm:$0xff]  ;;  %v1458_v43 = vld [vmem:[#allocation9 + $0x1758] sm:$0xff] }
 0x283   :  { %2732 = vmatpush.msrb.mxu1 %v1275_v44  ;;  %2772 = vmatpush.msrb.mxu3 %v1276_v46  ;;  %v2456_v57 = vpop.f32.mrf.mxu3  ;;  %v889_v44 = vld [vmem:[#allocation9 + $0x590] sm:$0xff]  ;;  %v890_v46 = vld [vmem:[#allocation9 + $0x598] sm:$0xff]  ;;  %v3193_v47 = vld [vmem:[#allocation10 + $0x8] sm:$0xff] }
 0x284   :  { %2860 = vmatpush.msrb.mxu0 %v1159_v48  ;;  %2900 = vmatpush.msrb.mxu2 %v1160_v49  ;;  %v2457_v40 = vadd.f32 %v2456_v57, %v2437_v50  ;;  %v1691_v48 = vperm.slane %v3193_v47, 4  ;;  %v1427_v49 = vld [vmem:[#allocation9 + $0x1660] sm:$0xff]  ;;  %v1428_v50 = vld [vmem:[#allocation9 + $0x1668] sm:$0xff]  ;;  %v829_v57 = vld [vmem:[#allocation9 + $0x3b0] sm:$0xff] }
 0x285   :  { %2733 = vmatpush.msrb.mxu1 %v1245_v51  ;;  %2773 = vmatpush.msrb.mxu3 %v1246_v53  ;;  %v859_v51 = vld [vmem:[#allocation9 + $0x4a0] sm:$0xff]  ;;  %v860_v53 = vld [vmem:[#allocation9 + $0x4a8] sm:$0xff] }
 0x286   :  { %2861 = vmatpush.msrb.mxu0 %v1129_v55  ;;  %2901 = vmatpush.msrb.mxu2 %v1130_v56  ;;  %v3070_v1 = vrot.slane %v2457_v40, 4  ;;  %v1397_v55 = vld [vmem:[#allocation9 + $0x1570] sm:$0xff]  ;;  %v1398_v56 = vld [vmem:[#allocation9 + $0x1578] sm:$0xff]  ;;  %v1697_v40 = vperm.slane %v3712_v61, 2 }
 0x287   :  { %2734 = vmatpush.msrb.mxu1 %v1215_v45  ;;  %2774 = vmatpush.msrb.mxu3 %v1216_v62  ;;  %v830_v45 = vld [vmem:[#allocation9 + $0x3b8] sm:$0xff]  ;;  %v2237_v62 = vadd.f32 %v3690_v13, %v1691_v48  ;;  %v769_v13 = vld [vmem:[#allocation9 + $0x1d0] sm:$0xff] }
 0x288   :  { %2735 = vmatmul.f32.vlgmr.msrb.gmra.mxu1 %v3606_v21  ;;  %2775 = vmatmul.f32.vlgmr.msrb.gmra.mxu3 %v3606_v21  ;;  %v3726_v7 = vsel %vm2940_vm2, %v3070_v1, %v3650_v11  ;;  %v1009_v11 = vld [vmem:[#allocation9 + $0x950] sm:$0xff]  ;;  %v2476_v1 = vpop.f32.mrf.mxu0 }
 0x289   :  { %2799 = vmatpush.msra.mxu1 %v1667_v63  ;;  %2839 = vmatpush.msra.mxu3 %v1668_v0  ;;  %v1367_v63 = vld [vmem:[#allocation9 + $0x1480] sm:$0xff]  ;;  %v1368_v0 = vld [vmem:[#allocation9 + $0x1488] sm:$0xff] }
 0x28a   :  { %2862 = vmatpush.msrb.mxu0 %v1099_v60  ;;  %2902 = vmatpush.msrb.mxu2 %v1100_v10  ;;  %v799_v60 = vld [vmem:[#allocation9 + $0x2c0] sm:$0xff]  ;;  %v800_v10 = vld [vmem:[#allocation9 + $0x2c8] sm:$0xff] }
 0x28b   :  { %2800 = vmatpush.msra.mxu1 %v1637_v5  ;;  %2840 = vmatpush.msra.mxu3 %v1638_v6  ;;  %v1692_v5 = vperm.slane %v3193_v47, 5  ;;  %v2257_v6 = vadd.f32 %v3692_v58, %v2237_v62  ;;  %v1609_v62 = vld [vmem:[#allocation9 + $0x1c10] sm:$0xff] }
 0x28c   :  { %2863 = vmatpush.msrb.mxu0 %v1069_v9  ;;  %2903 = vmatpush.msrb.mxu2 %v1070_v12  ;;  %v1337_v9 = vld [vmem:[#allocation9 + $0x1390] sm:$0xff]  ;;  %v1338_v12 = vld [vmem:[#allocation9 + $0x1398] sm:$0xff] }
 0x28d   :  { %2801 = vmatpush.msra.mxu1 %v1607_v14  ;;  %2841 = vmatpush.msra.mxu3 %v1608_v41  ;;  %v770_v14 = vld [vmem:[#allocation9 + $0x1d8] sm:$0xff]  ;;  %v2477_v41 = vadd.f32 %v2476_v1, %v1697_v40  ;;  %v1579_v1 = vld [vmem:[#allocation9 + $0x1b20] sm:$0xff] }
 0x28e   :  { %2864 = vmatpush.msrb.mxu0 %v1039_v17  ;;  %2904 = vmatpush.msrb.mxu2 %v1040_v18  ;;  %v1307_v17 = vld [vmem:[#allocation9 + $0x12a0] sm:$0xff]  ;;  %v1308_v18 = vld [vmem:[#allocation9 + $0x12a8] sm:$0xff]  ;;  %v1610_v40 = vld [vmem:[#allocation9 + $0x1c18] sm:$0xff] }
 0x28f   :  { %2802 = vmatpush.msra.mxu1 %v1577_v20  ;;  %2842 = vmatpush.msra.mxu3 %v1578_v22  ;;  %v3359_v20 = vmov 1983009808  }
 0x290   :  { %2865 = vmatpush.msrb.mxu0 %v1009_v11  ;;  %2905 = vmatpush.msrb.mxu2 %v1010_v23  ;;  %v2943_v22 = vunpack.c.l.s4 %v3359_v20  ;;  %v739_v11 = vld [vmem:[#allocation9 + $0xe0] sm:$0xff]  ;;  %v740_v23 = vld [vmem:[#allocation9 + $0xe8] sm:$0xff] }
 0x291   :  { %2803 = vmatpush.msra.mxu1 %v1547_v52  ;;  %2843 = vmatpush.msra.mxu3 %v1548_v25  ;;  %v2277_v52 = vadd.f32 %v3694_v30, %v1692_v5  ;;  %v2939_v25 = vrot.slane %v2257_v6, 4  ;;  %v1247_v30 = vld [vmem:[#allocation9 + $0x10c0] sm:$0xff]  ;;  %v1549_v5 = vld [vmem:[#allocation9 + $0x1a30] sm:$0xff]  ;;  %v1550_v6 = vld [vmem:[#allocation9 + $0x1a38] sm:$0xff] }
 0x292   :  { %2866 = vmatpush.msrb.mxu0 %v979_v16  ;;  %2906 = vmatpush.msrb.mxu2 %v980_v26  ;;  %v1698_v16 = vperm.slane %v3712_v61, 3  ;;  %v1399_v20 = vld [vmem:[#allocation9 + $0x1580] sm:$0xff] }
 0x293   :  { %2804 = vmatpush.msra.mxu1 %v1517_v29  ;;  %2844 = vmatpush.msra.mxu3 %v1518_v27  ;;  %v2516_v29 = vpop.f32.mrf.mxu2  ;;  %v1277_v27 = vld [vmem:[#allocation9 + $0x11b0] sm:$0xff] }
 0x294   :  { %2867 = vmatpush.msrb.mxu0 %v949_v31  ;;  %2907 = vmatpush.msrb.mxu2 %v950_v34  ;;  %v1278_v31 = vld [vmem:[#allocation9 + $0x11b8] sm:$0xff]  ;;  %v2297_v34 = vadd.f32 %v3697_v33, %v2277_v52 }
 0x295   :  { %2805 = vmatpush.msra.mxu1 %v1487_v36  ;;  %2845 = vmatpush.msra.mxu3 %v1488_v4  ;;  %v3734_v4 = vunpack.c.0.s8 %v2943_v22  ;;  %v1400_v22 = vld [vmem:[#allocation9 + $0x1588] sm:$0xff] }
 0x296   :  { %2868 = vmatpush.msrb.mxu0 %v919_v38  ;;  %2908 = vmatpush.msrb.mxu2 %v920_v42  ;;  %v1248_v38 = vld [vmem:[#allocation9 + $0x10c8] sm:$0xff]  ;;  %v2941_v42 = vsel %vm2940_vm2, %v2939_v25, %v3630_v19  ;;  %v2966_v48 = vrot.slane %v2297_v34, 4  ;;  %v1339_v25 = vld [vmem:[#allocation9 + $0x13a0] sm:$0xff] }
 0x297   :  { %2806 = vmatpush.msra.mxu1 %v1457_v3  ;;  %2846 = vmatpush.msra.mxu3 %v1458_v43  ;;  %v2517_v3 = vadd.f32 %v2516_v29, %v1698_v16  ;;  %v1217_v43 = vld [vmem:[#allocation9 + $0xfd0] sm:$0xff]  ;;  %v1340_v16 = vld [vmem:[#allocation9 + $0x13a8] sm:$0xff]  ;;  %v1310_v29 = vld [vmem:[#allocation9 + $0x12b8] sm:$0xff] }
 0x298   :  { %2869 = vmatpush.msrb.mxu0 %v889_v44  ;;  %2909 = vmatpush.msrb.mxu2 %v890_v46  ;;  %v1218_v44 = vld [vmem:[#allocation9 + $0xfd8] sm:$0xff]  ;;  %v2556_v52 = vpop.f32.mrf.mxu0  ;;  %v1280_v34 = vld [vmem:[#allocation9 + $0x11c8] sm:$0xff] }
 0x299   :  { %2807 = vmatpush.msra.mxu1 %v1427_v49  ;;  %2847 = vmatpush.msra.mxu3 %v1428_v50  ;;  %v2945_v49 = vperm.slane %v2941_v42, %v3734_v4  ;;  %v1669_v50 = vld [vmem:[#allocation9 + $0x1df0] sm:$0xff] }
 0x29a   :  { %2870 = vmatpush.msrb.mxu0 %v859_v51  ;;  %2910 = vmatpush.msrb.mxu2 %v860_v53  ;;  %v1670_v51 = vld [vmem:[#allocation9 + $0x1df8] sm:$0xff] }
 0x29b   :  { %2808 = vmatpush.msra.mxu1 %v1397_v55  ;;  %2848 = vmatpush.msra.mxu3 %v1398_v56  ;;  %v1639_v55 = vld [vmem:[#allocation9 + $0x1d00] sm:$0xff]  ;;  %v1640_v56 = vld [vmem:[#allocation9 + $0x1d08] sm:$0xff] }
 0x29c   :  { %2871 = vmatpush.msrb.mxu0 %v829_v57  ;;  %2911 = vmatpush.msrb.mxu2 %v830_v45  ;;  %v2967_v57 = vsel %vm2940_vm2, %v2966_v48, %v3633_v37 }
 0x29d   :  { %2809 = vmatpush.msra.mxu1 %v1367_v63  ;;  %2849 = vmatpush.msra.mxu3 %v1368_v0  ;;  %v2971_v0 = vperm.slane %v2967_v57, %v3734_v4  ;;  %v3023_v57 = vperm.slane %v3710_v28, %v3734_v4 }
 0x29e   :  { %2872 = vmatpush.msrb.mxu0 %v799_v60  ;;  %2912 = vmatpush.msrb.mxu2 %v800_v10  ;;  %v1580_v60 = vld [vmem:[#allocation9 + $0x1b28] sm:$0xff]  ;;  %v2596_v42 = vpop.f32.mrf.mxu2 }
 0x29f   :  { %2810 = vmatpush.msra.mxu1 %v1337_v9  ;;  %2850 = vmatpush.msra.mxu3 %v1338_v12  ;;  %v2496_v58 = vpop.f32.mrf.mxu1  ;;  %v1520_v9 = vld [vmem:[#allocation9 + $0x1948] sm:$0xff]  ;;  %v1489_v12 = vld [vmem:[#allocation9 + $0x1850] sm:$0xff] }
 0x2a0   :  { %2873 = vmatpush.msrb.mxu0 %v769_v13  ;;  %2913 = vmatpush.msrb.mxu2 %v770_v14  ;;  %v2497_v26 = vadd.f32 %v2496_v58, %v2477_v41  ;;  %v1490_v13 = vld [vmem:[#allocation9 + $0x1858] sm:$0xff]  ;;  %v1459_v14 = vld [vmem:[#allocation9 + $0x1760] sm:$0xff]  ;;  %v1460_v41 = vld [vmem:[#allocation9 + $0x1768] sm:$0xff]  ;;  %v1699_v58 = vperm.slane %v3712_v61, 4 }
 0x2a1   :  { %2811 = vmatpush.msra.mxu1 %v1307_v17  ;;  %2851 = vmatpush.msra.mxu3 %v1308_v18  ;;  %v1429_v17 = vld [vmem:[#allocation9 + $0x1670] sm:$0xff]  ;;  %v1430_v18 = vld [vmem:[#allocation9 + $0x1678] sm:$0xff] }
 0x2a2   :  { %2874 = vmatpush.msrb.mxu0 %v739_v11  ;;  %2914 = vmatpush.msrb.mxu2 %v740_v23  ;;  %v2946_v36 = vrot.slane %v2497_v26, 4  ;;  %v1369_v11 = vld [vmem:[#allocation9 + $0x1490] sm:$0xff]  ;;  %v1370_v23 = vld [vmem:[#allocation9 + $0x1498] sm:$0xff] }
 0x2a3   :  { %2875 = vmatmul.f32.vlgmr.msrb.gmra.mxu0 %v3599_v35  ;;  %2915 = vmatmul.f32.vlgmr.msrb.gmra.mxu2 %v3599_v35  ;;  %v1309_v26 = vld [vmem:[#allocation9 + $0x12b0] sm:$0xff] }
 0x2a4   :  { %2812 = vmatpush.msra.mxu1 %v1277_v27  ;;  %2852 = vmatpush.msra.mxu3 %v1278_v31  ;;  %v2947_v33 = vsel %vm2940_vm2, %v2946_v36, %v3656_v15  ;;  %v2557_v27 = vadd.f32 %v2556_v52, %v1699_v58  ;;  %v1279_v31 = vld [vmem:[#allocation9 + $0x11c0] sm:$0xff] }
 0x2a5   :  { %v2951_v46 = vperm.slane %v2947_v33, %v3734_v4  ;;  %v2536_v47 = vpop.f32.mrf.mxu3  ;;  %v1250_v33 = vld [vmem:[#allocation9 + $0x10d8] sm:$0xff] }
 0x2a6   :  { %2813 = vmatpush.msra.mxu1 %v1247_v30  ;;  %2853 = vmatpush.msra.mxu3 %v1248_v38  ;;  %v2537_v35 = vadd.f32 %v2536_v47, %v2517_v3  ;;  %v1700_v30 = vperm.slane %v3712_v61, 5  ;;  %v1249_v3 = vld [vmem:[#allocation9 + $0x10d0] sm:$0xff] }
 0x2a7   :  { %v2952_v19 = vrot.slane %v2951_v46, 4  ;;  %v1220_v46 = vld [vmem:[#allocation9 + $0xfe8] sm:$0xff] }
 0x2a8   :  { %2814 = vmatpush.msra.mxu1 %v1217_v43  ;;  %2854 = vmatpush.msra.mxu3 %v1218_v44  ;;  %v2972_v53 = vrot.slane %v2537_v35, 4  ;;  %v1219_v44 = vld [vmem:[#allocation9 + $0xfe0] sm:$0xff]  ;;  %v2597_v47 = vadd.f32 %v2596_v42, %v1700_v30 }
 0x2a9   :  { %2815 = vmatmul.f32.vlgmr.msra.gmra.mxu1 %v3606_v21  ;;  %2855 = vmatmul.f32.vlgmr.msra.gmra.mxu3 %v3606_v21  ;;  %v3747_v15 = vsel %vm2940_vm2, %v2952_v19, %v2945_v49 }
 0x2aa   :  { %2879 = vmatpush.msrb.mxu1 %v1669_v50  ;;  %2919 = vmatpush.msrb.mxu3 %v1670_v51  ;;  %v2973_v45 = vsel %vm2940_vm2, %v2972_v53, %v3660_v32  ;;  %v1519_v32 = vld [vmem:[#allocation9 + $0x1940] sm:$0xff]  ;;  %v2997_v51 = vperm.slane %v3704_v8, %v3734_v4  ;;  %v1701_v8 = vperm.slane %v3712_v61, 6 }
 0x2ab   :  { %v2977_v63 = vperm.slane %v2973_v45, %v3734_v4 }
 0x2ac   :  { %2880 = vmatpush.msrb.mxu1 %v1639_v55  ;;  %2920 = vmatpush.msrb.mxu3 %v1640_v56 }
 0x2ad   :  { %v2978_v10 = vrot.slane %v2977_v63, 4 }
 0x2ae   :  { %2881 = vmatpush.msrb.mxu1 %v1609_v62  ;;  %2921 = vmatpush.msrb.mxu3 %v1610_v40 }
 0x2af   :  { %v3756_v37 = vsel %vm2940_vm2, %v2978_v10, %v2971_v0  ;;  %v1702_v0 = vperm.slane %v3712_v61, 7 }
 0x2b0   :  { %2882 = vmatpush.msrb.mxu1 %v1579_v1  ;;  %2922 = vmatpush.msrb.mxu3 %v1580_v60 }
 0x2b2   :  { %2883 = vmatpush.msrb.mxu1 %v1549_v5  ;;  %2923 = vmatpush.msrb.mxu3 %v1550_v6 }
 0x2b4   :  { %2884 = vmatpush.msrb.mxu1 %v1519_v32  ;;  %2924 = vmatpush.msrb.mxu3 %v1520_v9  ;;  %v3049_v9 = vperm.slane %v3720_v54, %v3734_v4  ;;  %v3794_v54 = vld [vmem:[#allocation10 + $0x18] sm:$0x3f] }
 0x2b6   :  { %2885 = vmatpush.msrb.mxu1 %v1489_v12  ;;  %2925 = vmatpush.msrb.mxu3 %v1490_v13 }
 0x2b8   :  { %2886 = vmatpush.msrb.mxu1 %v1459_v14  ;;  %2926 = vmatpush.msrb.mxu3 %v1460_v41 }
 0x2ba   :  { %2887 = vmatpush.msrb.mxu1 %v1429_v17  ;;  %2927 = vmatpush.msrb.mxu3 %v1430_v18  ;;  %v2636_v40 = vpop.f32.mrf.mxu0 }
 0x2bc   :  { %2888 = vmatpush.msrb.mxu1 %v1399_v20  ;;  %2928 = vmatpush.msrb.mxu3 %v1400_v22  ;;  %v3360_v20 = vmov 1934713408  }
 0x2bd   :  { %v2955_v22 = vunpack.c.l.s4 %v3360_v20 }
 0x2be   :  { %2889 = vmatpush.msrb.mxu1 %v1369_v11  ;;  %2929 = vmatpush.msrb.mxu3 %v1370_v23  ;;  %v1703_v23 = vperm.slane %v3794_v54, 0 }
 0x2bf   :  { %v3796_v11 = vunpack.c.0.s8 %v2955_v22 }
 0x2c0   :  { %2890 = vmatpush.msrb.mxu1 %v1339_v25  ;;  %2930 = vmatpush.msrb.mxu3 %v1340_v16  ;;  %v2676_v60 = vpop.f32.mrf.mxu2 }
 0x2c1   :  { %v2576_v36 = vpop.f32.mrf.mxu1 }
 0x2c2   :  { %2891 = vmatpush.msrb.mxu1 %v1309_v26  ;;  %2931 = vmatpush.msrb.mxu3 %v1310_v29  ;;  %v2577_v38 = vadd.f32 %v2576_v36, %v2557_v27  ;;  %v2983_v27 = vperm.slane %v3756_v37, %v3796_v11 }
 0x2c4   :  { %2892 = vmatpush.msrb.mxu1 %v1279_v31  ;;  %2932 = vmatpush.msrb.mxu3 %v1280_v34  ;;  %v2998_v43 = vrot.slane %v2577_v38, 4 }
 0x2c6   :  { %2893 = vmatpush.msrb.mxu1 %v1249_v3  ;;  %2933 = vmatpush.msrb.mxu3 %v1250_v33  ;;  %v2999_v48 = vsel %vm2940_vm2, %v2998_v43, %v3668_v39  ;;  %v2990_v3 = vrot.slane %v2983_v27, 4 }
 0x2c7   :  { %v3003_v35 = vperm.slane %v2999_v48, %v3734_v4  ;;  %v2616_v49 = vpop.f32.mrf.mxu3 }
 0x2c8   :  { %2894 = vmatpush.msrb.mxu1 %v1219_v44  ;;  %2934 = vmatpush.msrb.mxu3 %v1220_v46  ;;  %v2617_v50 = vadd.f32 %v2616_v49, %v2597_v47  ;;  %v1705_v44 = vperm.slane %v3794_v54, 2  ;;  %v1706_v49 = vperm.slane %v3794_v54, 3 }
 0x2c9   :  { %2895 = vmatmul.f32.vlgmr.msrb.gmra.mxu1 %v3606_v21  ;;  %2935 = vmatmul.f32.vlgmr.msrb.gmra.mxu3 %v3606_v21  ;;  %v3004_v19 = vrot.slane %v3003_v35, 4  ;;  %v2637_v21 = vadd.f32 %v2636_v40, %v1701_v8 }
 0x2ca   :  { %v3024_v53 = vrot.slane %v2617_v50, 4 }
 0x2cb   :  { %v3005_v55 = vsel %vm2940_vm2, %v3004_v19, %v2997_v51 }
 0x2cc   :  { %v3025_v39 = vsel %vm2940_vm2, %v3024_v53, %v3672_v59  ;;  %v2677_v59 = vadd.f32 %v2676_v60, %v1702_v0  ;;  %v3009_v47 = vperm.slane %v3005_v55, %v3796_v11  ;;  %v1707_v60 = vperm.slane %v3794_v54, 4 }
 0x2cd   :  { %v3029_v56 = vperm.slane %v3025_v39, %v3734_v4 }
 0x2ce   :  { %v3016_v53 = vrot.slane %v3009_v47, 4 }
 0x2cf   :  { %v3030_v45 = vrot.slane %v3029_v56, 4 }
 0x2d1   :  { %v3774_v62 = vsel %vm2940_vm2, %v3030_v45, %v3023_v57 }
 0x2d2   :  { %v3035_v39 = vperm.slane %v3774_v62, %v3796_v11 }
 0x2dc   :  { %v2716_v58 = vpop.f32.mrf.mxu0 }
 0x2dd   :  { %v2717_v52 = vadd.f32 %v2716_v58, %v1703_v23 }
 0x2e2   :  { %v2756_v16 = vpop.f32.mrf.mxu2 }
 0x2e3   :  { %v2656_v63 = vpop.f32.mrf.mxu1 }
 0x2e4   :  { %v2657_v1 = vadd.f32 %v2656_v63, %v2637_v21  ;;  %v3042_v63 = vrot.slane %v3035_v39, 4 }
 0x2e6   :  { %v3050_v10 = vrot.slane %v2657_v1, 4 }
 0x2e8   :  { %v3051_v5 = vsel %vm2940_vm2, %v3050_v10, %v3678_v2  ;;  %v3075_v2 = vperm.slane %v3726_v7, %v3734_v4  ;;  %v1704_v7 = vperm.slane %v3794_v54, 1 }
 0x2e9   :  { %v3055_v28 = vperm.slane %v3051_v5, %v3734_v4  ;;  %v2696_v6 = vpop.f32.mrf.mxu3 }
 0x2ea   :  { %v2697_v32 = vadd.f32 %v2696_v6, %v2677_v59  ;;  %v2757_v31 = vadd.f32 %v2756_v16, %v1704_v7  ;;  %v1708_v6 = vperm.slane %v3794_v54, 5 }
 0x2eb   :  { %v3056_v12 = vrot.slane %v3055_v28, 4 }
 0x2ec   :  { %v3076_v13 = vrot.slane %v2697_v32, 4 }
 0x2ed   :  { %v3784_v14 = vsel %vm2940_vm2, %v3056_v12, %v3049_v9 }
 0x2ee   :  { %v3077_v61 = vsel %vm2940_vm2, %v3076_v13, %v3682_v24  ;;  %v2957_v24 = vperm.slane %v3747_v15, %v3796_v11  ;;  %v3061_v59 = vperm.slane %v3784_v14, %v3796_v11 }
 0x2ef   :  { %v3081_v41 = vperm.slane %v3077_v61, %v3734_v4 }
 0x2f0   :  { %v2964_v29 = vrot.slane %v2957_v24, 4  ;;  %v3068_v13 = vrot.slane %v3061_v59, 4 }
 0x2f1   :  { %v3082_v17 = vrot.slane %v3081_v41, 4 }
 0x2f3   :  { %v3792_v18 = vsel %vm2940_vm2, %v3082_v17, %v3075_v2 }
 0x2f4   :  { %v3087_v61 = vperm.slane %v3792_v18, %v3796_v11 }
 0x2f6   :  { %v3094_v23 = vrot.slane %v3087_v61, 4 }
 0x2fe   :  { %v2796_v46 = vpop.f32.mrf.mxu0 }
 0x2ff   :  { %v2797_v48 = vadd.f32 %v2796_v46, %v1705_v44 }
 0x304   :  { %v2836_v51 = vpop.f32.mrf.mxu2 }
 0x305   :  { %v2736_v25 = vpop.f32.mrf.mxu1  ;;  %v2837_v56 = vadd.f32 %v2836_v51, %v1706_v49 }
 0x306   :  { %v2737_v4 = vadd.f32 %v2736_v25, %v2717_v52 }
 0x308   :  { %v2961_v26 = vperm.slane %v2737_v4, %v3796_v11 }
 0x30a   :  { %v2962_v34 = vrot.slane %v2961_v26, 4  ;;  %v2965_v36 = vsel %vm2940_vm2, %v2961_v26, %v2964_v29 }
 0x30b   :  { %3102 = vst [vmem:[%s3875_s6 + $0x60] sm:$0x1f] %v2965_v36  ;;  %v2776_v15 = vpop.f32.mrf.mxu3 }
 0x30c   :  { %v2963_v30 = vsel %vm2940_vm2, %v2962_v34, %v2957_v24  ;;  %v2777_v38 = vadd.f32 %v2776_v15, %v2757_v31 }
 0x30d   :  { %3096 = vst [vmem:[%s3875_s6] sm:$0x1f] %v2963_v30 }
 0x30e   :  { %v2987_v42 = vperm.slane %v2777_v38, %v3796_v11 }
 0x310   :  { %v2988_v37 = vrot.slane %v2987_v42, 4  ;;  %v2991_v33 = vsel %vm2940_vm2, %v2987_v42, %v2990_v3 }
 0x311   :  { %3103 = vst [vmem:[%s3875_s6 + $0x68] sm:$0x1f] %v2991_v33 }
 0x312   :  { %v2989_v43 = vsel %vm2940_vm2, %v2988_v37, %v2983_v27 }
 0x313   :  { %3097 = vst [vmem:[%s3875_s6 + $0x8] sm:$0x1f] %v2989_v43 }
 0x320   :  { %v2876_v10 = vpop.f32.mrf.mxu0 }
 0x321   :  { %v2877_v5 = vadd.f32 %v2876_v10, %v1707_v60 }
 0x326   :  { %v2816_v35 = vpop.f32.mrf.mxu1  ;;  %v2916_v9 = vpop.f32.mrf.mxu2 }
 0x327   :  { %v2817_v50 = vadd.f32 %v2816_v35, %v2797_v48  ;;  %v2917_v41 = vadd.f32 %v2916_v9, %v1708_v6 }
 0x329   :  { %v3013_v19 = vperm.slane %v2817_v50, %v3796_v11 }
 0x32b   :  { %v3014_v57 = vrot.slane %v3013_v19, 4  ;;  %v3017_v45 = vsel %vm2940_vm2, %v3013_v19, %v3016_v53 }
 0x32c   :  { %3104 = vst [vmem:[%s3875_s6 + $0x70] sm:$0x1f] %v3017_v45  ;;  %v2856_v55 = vpop.f32.mrf.mxu3 }
 0x32d   :  { %v3015_v8 = vsel %vm2940_vm2, %v3014_v57, %v3009_v47  ;;  %v2857_v40 = vadd.f32 %v2856_v55, %v2837_v56 }
 0x32e   :  { %3098 = vst [vmem:[%s3875_s6 + $0x10] sm:$0x1f] %v3015_v8 }
 0x32f   :  { %v3039_v21 = vperm.slane %v2857_v40, %v3796_v11 }
 0x331   :  { %v3040_v62 = vrot.slane %v3039_v21, 4  ;;  %v3043_v0 = vsel %vm2940_vm2, %v3039_v21, %v3042_v63 }
 0x332   :  { %3105 = vst [vmem:[%s3875_s6 + $0x78] sm:$0x1f] %v3043_v0 }
 0x333   :  { %v3041_v1 = vsel %vm2940_vm2, %v3040_v62, %v3035_v39 }
 0x334   :  { %3099 = vst [vmem:[%s3875_s6 + $0x18] sm:$0x1f] %v3041_v1 }
 0x346   :  { %v2896_v28 = vpop.f32.mrf.mxu1 }
 0x347   :  { %v2897_v32 = vadd.f32 %v2896_v28, %v2877_v5 }
 0x349   :  { %v3065_v12 = vperm.slane %v2897_v32, %v3796_v11 }
 0x34b   :  { %v3066_v2 = vrot.slane %v3065_v12, 4  ;;  %v3069_v17 = vsel %vm2940_vm2, %v3065_v12, %v3068_v13 }
 0x34c   :  { %3106 = vst [vmem:[%s3875_s6 + $0x80] sm:$0x1f] %v3069_v17  ;;  %v2936_v14 = vpop.f32.mrf.mxu3 }
 0x34d   :  { %v3067_v20 = vsel %vm2940_vm2, %v3066_v2, %v3061_v59  ;;  %v2937_v22 = vadd.f32 %v2936_v14, %v2917_v41 }
 0x34e   :  { %3100 = vst [vmem:[%s3875_s6 + $0x20] sm:$0x1f] %v3067_v20 }
 0x34f   :  { %v3091_v54 = vperm.slane %v2937_v22, %v3796_v11 }
 0x351   :  { %v3092_v18 = vrot.slane %v3091_v54, 4  ;;  %v3095_v58 = vsel %vm2940_vm2, %v3091_v54, %v3094_v23 }
 0x352   :  { %3107 = vst [vmem:[%s3875_s6 + $0x88] sm:$0x1f] %v3095_v58 }
 0x353   :  { %v3093_v24 = vsel %vm2940_vm2, %v3092_v18, %v3087_v61 }
 0x354   :  { %3101 = vst [vmem:[%s3875_s6 + $0x28] sm:$0x1f] %v3093_v24 }
 0x355   :  { %3172 = vsyncpa [#allocation3], 1 }
 0x356   :  { %3173 = vsyncpa [#allocation5], 1 }
 0x357   :  { %3174 = vsyncpa [#allocation8], 1 }
 0x358   :  { %3175 = vsyncpa [#allocation11], 1 }

</bundles_post_ra>
